<compile_context>
chip_gen: v7x
topology: tpu7x:2x2x1
jax: 0.10.0
libtpu: 0.0.40
codegen_flags: <defaults>
</compile_context>

<pallas_src>
import functools

import jax
import jax.numpy as jnp
from jax.experimental import pallas as pl
from jax.experimental.pallas import tpu as pltpu

CONV_CH = 180     # conv channel count in the PyTorch module
CP = 256          # padded conv channel width (one full 256-wide MXU)
MP_ALIGN = 16     # FC batch rows padded to 16 (native bf16 sublane tile)


def _round_up(x, m):
    return (x + m - 1) // m * m


def _slab_stride(ydim):
    """Per-sample row stride of the batched conv slab (>= ydim, mult of 8)."""
    return _round_up(ydim, 8)


def _pool_widths(ydim):
    """(width entering pool1, width entering pool2, final conv width)."""
    wi1 = ydim - 4                    # conv1, conv2
    wi2 = -(-wi1 // 2) - 4            # pool1, conv3, conv4
    wf = -(-wi2 // 2) - 4             # pool2, conv5, conv6
    return wi1, wi2, wf


# ---------------------------------------------------------------------------
# Kernel A: conv1..conv6 + both pools + fc1, activations resident in VMEM.
# ---------------------------------------------------------------------------
def _conv_fc1_kernel(x_ref, w1_ref, wc_ref, bc_ref, psel_ref, fw_ref, fb_ref,
                     h1_ref, buf_a, buf_b, flat, *, nb, s):
    f32, bf16 = jnp.float32, jnp.bfloat16
    m = buf_a.shape[0]            # nb * s rows (all samples, one slab)
    mo = m - 2                    # rows produced by each 1x3 conv

    @pl.when(pl.program_id(0) == 0)
    def _conv_stack():
        # Zero the slabs once: garbage / cross-sample boundary rows stay
        # finite and are never read by valid rows (pools also re-zero them).
        buf_a[...] = jnp.zeros_like(buf_a)
        buf_b[...] = jnp.zeros_like(buf_b)
        flat[...] = jnp.zeros_like(flat)

        def conv3(src_bf, w_t0, w_t1, w_t2, b_row):
            """'valid' 1x3 conv + bias + ReLU as 3 shifted bf16 matmuls."""
            acc = jnp.dot(src_bf[0:mo, :], w_t0, preferred_element_type=f32)
            acc = acc + jnp.dot(src_bf[1:1 + mo, :], w_t1,
                                preferred_element_type=f32)
            acc = acc + jnp.dot(src_bf[2:2 + mo, :], w_t2,
                                preferred_element_type=f32)
            return jnp.maximum(acc + b_row, 0.0)        # (mo, CP) f32

        def conv_layer(li, src, dst):
            src_bf = src[...].astype(bf16)              # single cast per layer
            dst[0:mo, :] = conv3(src_bf,
                                 wc_ref[3 * li + 0, :, :],
                                 wc_ref[3 * li + 1, :, :],
                                 wc_ref[3 * li + 2, :, :],
                                 bc_ref[li + 1:li + 2, :])

        def pool_layer(pi, src, dst):
            """MaxPool2d((1,2), stride=2, ceil_mode=True) over width, via two
            precomputed 0/1 selection matmuls (exact pair selection)."""
            hmat = src[...]                             # (m, CP) f32
            dst[...] = jnp.maximum(
                jnp.dot(psel_ref[2 * pi + 0, :, :], hmat,
                        preferred_element_type=f32),
                jnp.dot(psel_ref[2 * pi + 1, :, :], hmat,
                        preferred_element_type=f32))

        # conv1: (H,3) kernel with channels-last input -> 1x3 conv over C*H.
        buf_a[0:mo, :] = conv3(x_ref[...],
                               w1_ref[0, :, :], w1_ref[1, :, :], w1_ref[2, :, :],
                               bc_ref[0:1, :])
        conv_layer(0, buf_a, buf_b)     # conv2
        pool_layer(0, buf_b, buf_a)     # pool1
        conv_layer(1, buf_a, buf_b)     # conv3
        conv_layer(2, buf_b, buf_a)     # conv4
        pool_layer(1, buf_a, buf_b)     # pool2
        conv_layer(3, buf_b, buf_a)     # conv5
        conv_layer(4, buf_a, buf_b)     # conv6 -> final activations in buf_b

        # Build the fc1 LHS (mp, 3*CP): PyTorch's channel-major flatten is
        # absorbed by the fc1 weight row permutation done in prepare_params,
        # so rows here are laid out (width*CP + channel).
        wf = flat.shape[1] // CP
        for n in range(nb):
            for w in range(wf):
                flat[n:n + 1, w * CP:(w + 1) * CP] = (
                    buf_b[n * s + w:n * s + w + 1, :])

    # fc1 for this 512-wide N block (runs every grid step; conv output is
    # resident in `flat` scratch).  Output stored as bf16 -> no XLA glue.
    lhs = flat[...].astype(bf16)
    acc = jnp.dot(lhs, fw_ref[...], preferred_element_type=f32)
    h1_ref[...] = jnp.maximum(acc + fb_ref[...], 0.0).astype(bf16)


def conv_fc1_pallas(x_slab, w1, wc, bc, psel, fc1_w, fc1_b, *, nb, tn=512):
    """x_slab: (nb*S, C*H) bf16.  Returns h1: (mp, 2048) bf16."""
    m, ch = x_slab.shape
    s = m // nb
    k1, n1 = fc1_w.shape
    assert n1 % tn == 0 and k1 % CP == 0
    mp = _round_up(nb, MP_ALIGN)

    flops = int(2 * (m - 2) * CP * 3 * (ch + 5 * CP)       # conv1 + conv2..6
                + 2 * 2 * (2 * m * m * CP)                  # 2 pools x 2 matmuls
                + 2 * mp * k1 * n1)                          # fc1
    bytes_accessed = int(x_slab.size * 2 + w1.size * 2 + wc.size * 2
                         + bc.size * 4 + psel.size * 4
                         + fc1_w.size * 2 + fc1_b.size * 4 + mp * n1 * 2)

    return pl.pallas_call(
        functools.partial(_conv_fc1_kernel, nb=nb, s=s),
        out_shape=jax.ShapeDtypeStruct((mp, n1), jnp.bfloat16),
        grid_spec=pltpu.PrefetchScalarGridSpec(
            num_scalar_prefetch=0,
            grid=(n1 // tn,),
            in_specs=[
                pl.BlockSpec((m, ch), lambda j: (0, 0)),
                pl.BlockSpec(w1.shape, lambda j: (0, 0, 0)),
                pl.BlockSpec(wc.shape, lambda j: (0, 0, 0)),
                pl.BlockSpec(bc.shape, lambda j: (0, 0)),
                pl.BlockSpec(psel.shape, lambda j: (0, 0, 0)),
                pl.BlockSpec((k1, tn), lambda j: (0, j)),     # fc1_w N blocks
                pl.BlockSpec((1, tn), lambda j: (0, j)),      # fc1_b N blocks
            ],
            out_specs=pl.BlockSpec((mp, tn), lambda j: (0, j)),
            scratch_shapes=[pltpu.VMEM((m, CP), jnp.float32),
                            pltpu.VMEM((m, CP), jnp.float32),
                            pltpu.VMEM((mp, k1), jnp.float32)],
        ),
        compiler_params=pltpu.CompilerParams(
            dimension_semantics=("arbitrary",)),
        cost_estimate=pl.CostEstimate(flops=flops, transcendentals=0,
                                      bytes_accessed=bytes_accessed),
    )(x_slab, w1, wc, bc, psel, fc1_w, fc1_b)


# ---------------------------------------------------------------------------
# Kernel B: fc2 + fc3 fused.  h2 never leaves VMEM; fc3 accumulates in f32.
# ---------------------------------------------------------------------------
def _fc2_fc3_kernel(h1_ref, w2_ref, b2_ref, w3_ref, b3_ref, o_ref, acc_ref):
    j = pl.program_id(0)

    @pl.when(j == 0)
    def _init():
        acc_ref[...] = jnp.broadcast_to(b3_ref[...], acc_ref.shape)

    h2 = jnp.maximum(
        jnp.dot(h1_ref[...], w2_ref[...], preferred_element_type=jnp.float32)
        + b2_ref[...], 0.0).astype(jnp.bfloat16)            # (mp, tn) bf16
    acc_ref[...] += jnp.dot(h2, w3_ref[...], preferred_element_type=jnp.float32)

    @pl.when(j == pl.num_programs(0) - 1)
    def _store():
        o_ref[...] = acc_ref[...]


def fc2_fc3_pallas(h1, w2, b2, w3, b3, *, tn=512):
    """h1: (mp, 2048) bf16 -> logits (mp, n3p) f32."""
    mp, k2 = h1.shape
    n2 = w2.shape[1]
    n3 = w3.shape[1]
    assert w2.shape[0] == k2 and w3.shape[0] == n2 and n2 % tn == 0

    flops = int(2 * mp * k2 * n2 + 2 * mp * n2 * n3)
    bytes_accessed = int(h1.size * 2 + w2.size * 2 + b2.size * 4
                         + w3.size * 2 + b3.size * 4 + mp * n3 * 4)

    return pl.pallas_call(
        _fc2_fc3_kernel,
        out_shape=jax.ShapeDtypeStruct((mp, n3), jnp.float32),
        grid_spec=pltpu.PrefetchScalarGridSpec(
            num_scalar_prefetch=0,
            grid=(n2 // tn,),
            in_specs=[
                pl.BlockSpec((mp, k2), lambda j: (0, 0)),     # h1, resident
                pl.BlockSpec((k2, tn), lambda j: (0, j)),     # fc2_w N blocks
                pl.BlockSpec((1, tn), lambda j: (0, j)),      # fc2_b N blocks
                pl.BlockSpec((tn, n3), lambda j: (j, 0)),     # fc3_w K blocks
                pl.BlockSpec((1, n3), lambda j: (0, 0)),      # fc3_b
            ],
            out_specs=pl.BlockSpec((mp, n3), lambda j: (0, 0)),
            scratch_shapes=[pltpu.VMEM((mp, n3), jnp.float32)],
        ),
        compiler_params=pltpu.CompilerParams(
            dimension_semantics=("arbitrary",)),
        cost_estimate=pl.CostEstimate(flops=flops, transcendentals=0,
                                      bytes_accessed=bytes_accessed),
    )(h1, w2, b2, w3, b3)


# ---------------------------------------------------------------------------
# One-time parameter prep: reshape / pad / permute / cast + pool matrices.
# ---------------------------------------------------------------------------
def _pool_select(nb, s, wi):
    """Even/odd 0/1 selection matrices for one ceil-mode (1,2)/stride-2 pool,
    in the batched slab layout (rows = n*s + local position)."""
    half = -(-wi // 2)
    m = nb * s
    r = jnp.arange(m)
    p = r % s
    base = (r // s) * s
    valid = p < half
    even_col = base + 2 * p
    odd_col = base + jnp.minimum(2 * p + 1, wi - 1)       # ceil-mode clamp
    cols = jnp.arange(m)[None, :]
    pe = ((cols == even_col[:, None]) & valid[:, None]).astype(jnp.float32)
    po = ((cols == odd_col[:, None]) & valid[:, None]).astype(jnp.float32)
    return pe, po


def prepare_params(params, *, batch, ydim):
    f32, bf16 = jnp.float32, jnp.bfloat16
    o = CONV_CH

    # conv1 (O, C, H, 3) -> per-tap (3, C*H, CP) matching channels-last x.
    w1 = params["conv1_w"]
    ch = w1.shape[1] * w1.shape[2]
    w1 = w1.transpose(3, 1, 2, 0).reshape(3, ch, o)
    w1 = jnp.pad(w1, ((0, 0), (0, 0), (0, CP - o))).astype(bf16)

    # conv2..6 (O, Ci, 1, 3) -> stacked per-tap (15, CP, CP), zero padded.
    wc = []
    for name in ("conv2", "conv3", "conv4", "conv5", "conv6"):
        wk = params[f"{name}_w"].reshape(o, o, 3).transpose(2, 1, 0)   # (3,ci,o)
        wc.append(jnp.pad(wk, ((0, 0), (0, CP - o), (0, CP - o))))
    wc = jnp.concatenate(wc, axis=0).astype(bf16)

    bc = jnp.stack([jnp.pad(params[f"conv{i}_b"], (0, CP - o))
                    for i in range(1, 7)]).astype(f32)                  # (6, CP)

    # Precomputed pool selection matrices for the batched slab layout.
    s = _slab_stride(ydim)
    wi1, wi2, wf = _pool_widths(ydim)
    assert wf * o == params["fc1_w"].shape[0], \
        "ydim incompatible with the module's hard-coded Linear(540, ...)"
    p1e, p1o = _pool_select(batch, s, wi1)
    p2e, p2o = _pool_select(batch, s, wi2)
    psel = jnp.stack([p1e, p1o, p2e, p2o]).astype(f32)      # (4, nb*s, nb*s)

    # fc1: absorb PyTorch's channel-major flatten (row = c*wf + w) into a
    # one-time row permutation + channel padding -> rows ordered (w*CP + c).
    fc1_w = params["fc1_w"]
    n1 = fc1_w.shape[1]
    fc1_w = fc1_w.reshape(o, wf, n1).transpose(1, 0, 2)
    fc1_w = jnp.pad(fc1_w, ((0, 0), (0, CP - o), (0, 0))).reshape(wf * CP, n1)

    n3 = params["fc3_w"].shape[1]
    n3p = _round_up(max(n3, 128), 128)
    fc3_w = jnp.pad(params["fc3_w"], ((0, 0), (0, n3p - n3))).astype(bf16)
    fc3_b = jnp.pad(params["fc3_b"], (0, n3p - n3)).astype(f32).reshape(1, n3p)

    return {
        "conv_w1": w1, "conv_wc": wc, "conv_bc": bc, "psel": psel,
        "fc1_w": fc1_w.astype(bf16),
        "fc1_b": params["fc1_b"].astype(f32).reshape(1, -1),
        "fc2_w": params["fc2_w"].astype(bf16),
        "fc2_b": params["fc2_b"].astype(f32).reshape(1, -1),
        "fc3_w": fc3_w, "fc3_b": fc3_b,
    }


# ---------------------------------------------------------------------------
# Forward pass: exactly two pallas_calls, no XLA glue in between.
# ---------------------------------------------------------------------------
def cnn_forward(x, prep, *, output_num):
    n, c, h, w = x.shape
    s = _slab_stride(w)
    assert prep["psel"].shape[1] == n * s, "prepare_params batch/ydim mismatch"

    # channels-last batched slab (nb*S, C*H), one tiny fused XLA prep op.
    x_cl = x.transpose(0, 3, 1, 2).reshape(n, w, c * h)
    x_slab = jnp.pad(x_cl, ((0, 0), (0, s - w), (0, 0)))
    x_slab = x_slab.reshape(n * s, c * h).astype(jnp.bfloat16)

    h1 = conv_fc1_pallas(x_slab, prep["conv_w1"], prep["conv_wc"],
                         prep["conv_bc"], prep["psel"],
                         prep["fc1_w"], prep["fc1_b"], nb=n)     # (mp,2048) bf16
    out = fc2_fc3_pallas(h1, prep["fc2_w"], prep["fc2_b"],
                         prep["fc3_w"], prep["fc3_b"])           # (mp,n3p) f32
    return out[:n, :output_num]


# ---------------------------------------------------------------------------
# Deterministic parameter init (PyTorch-default-style uniform(+-1/sqrt(fan_in))).
# ---------------------------------------------------------------------------
def init_params(key, channel, xdim, output_num):
    params = {}

    def unif(k, shape, fan_in):
        bound = 1.0 / jnp.sqrt(fan_in)
        return jax.random.uniform(k, shape, jnp.float32, -bound, bound)

    specs = {
        "conv1": ((180, channel, xdim, 3), channel * xdim * 3),
        "conv2": ((180, 180, 1, 3), 180 * 3),
        "conv3": ((180, 180, 1, 3), 180 * 3),
        "conv4": ((180, 180, 1, 3), 180 * 3),
        "conv5": ((180, 180, 1, 3), 180 * 3),
        "conv6": ((180, 180, 1, 3), 180 * 3),
        "fc1": ((540, 2048), 540),
        "fc2": ((2048, 2048), 2048),
        "fc3": ((2048, output_num), 2048),
    }
    keys = jax.random.split(key, 2 * len(specs))
    for i, (name, (shape, fan_in)) in enumerate(specs.items()):
        params[f"{name}_w"] = unif(keys[2 * i], shape, fan_in)
        out_dim = shape[0] if name.startswith("conv") else shape[1]
        params[f"{name}_b"] = unif(keys[2 * i + 1], (out_dim,), fan_in)
    return params


if __name__ == "__main__":
    # Small shapes: batch=2, channel=4, xdim=8, ydim=37 (ydim fixed by the
    # module's hard-coded Linear(540, ...): conv stack must end at width 3).
    batch, channel, xdim, ydim, output_num = 2, 4, 8, 37, 10

    key = jax.random.PRNGKey(0)
    k_x, k_p = jax.random.split(key)
    x = jax.random.normal(k_x, (batch, channel, xdim, ydim), jnp.float32)
    params = init_params(k_p, channel, xdim, output_num)

    prep = prepare_params(params, batch=batch, ydim=ydim)   # one-time prep
    fwd = jax.jit(functools.partial(cnn_forward, output_num=output_num))
    out = fwd(x, prep)
    jax.block_until_ready(out)

    assert out.shape == (batch, output_num), out.shape
    assert bool(jnp.all(jnp.isfinite(out)))
    print("KERNEL_OK")
</pallas_src>

<mosaic_0001>
module attributes {stable_mosaic.version = 11 : i64} {
  func.func @_conv_fc1_kernel(%arg0: i32, %arg1: memref<80x32xbf16, #tpu.memory_space<vmem>>, %arg2: memref<3x32x256xbf16, #tpu.memory_space<vmem>>, %arg3: memref<15x256x256xbf16, #tpu.memory_space<vmem>>, %arg4: memref<6x256xf32, #tpu.memory_space<vmem>>, %arg5: memref<4x80x80xf32, #tpu.memory_space<vmem>>, %arg6: memref<768x512xbf16, #tpu.memory_space<vmem>>, %arg7: memref<1x512xf32, #tpu.memory_space<vmem>>, %arg8: memref<16x512xbf16, #tpu.memory_space<vmem>>, %arg9: memref<80x256xf32, #tpu.memory_space<vmem>>, %arg10: memref<80x256xf32, #tpu.memory_space<vmem>>, %arg11: memref<16x768xf32, #tpu.memory_space<vmem>>) attributes {dimension_semantics = [#tpu.dimension_semantics<arbitrary>], iteration_bounds = array<i64: 4>, scalar_prefetch = 0 : i64, scratch_operands = 3 : i64, tpu.core_type = #tpu.core_type<tc>, window_params = [{pipeline_mode = #tpu.pipeline_mode<synchronous>, transform_indices = @transform_0, window_bounds = array<i64: 80, 32>}, {pipeline_mode = #tpu.pipeline_mode<synchronous>, transform_indices = @transform_1, window_bounds = array<i64: 3, 32, 256>}, {pipeline_mode = #tpu.pipeline_mode<synchronous>, transform_indices = @transform_2, window_bounds = array<i64: 15, 256, 256>}, {pipeline_mode = #tpu.pipeline_mode<synchronous>, transform_indices = @transform_3, window_bounds = array<i64: 6, 256>}, {pipeline_mode = #tpu.pipeline_mode<synchronous>, transform_indices = @transform_4, window_bounds = array<i64: 4, 80, 80>}, {transform_indices = @transform_5, window_bounds = array<i64: 768, 512>}, {transform_indices = @transform_6, window_bounds = array<i64: 1, 512>}, {transform_indices = @transform_7, window_bounds = array<i64: 16, 512>}]} {
    %c0_i32 = arith.constant 0 : i32
    %0 = arith.cmpi eq, %arg0, %c0_i32 : i32
    %1 = arith.extui %0 : i1 to i32
    %c0_i32_0 = arith.constant 0 : i32
    %2 = arith.cmpi ne, %1, %c0_i32_0 : i32
    scf.if %2 {
      %cst_9 = arith.constant 0.000000e+00 : f32
      %14 = vector.broadcast %cst_9 : f32 to vector<80x256xf32>
      %c0_10 = arith.constant 0 : index
      %c0_11 = arith.constant 0 : index
      %15 = vector.load %arg9[%c0_10, %c0_11] : memref<80x256xf32, #tpu.memory_space<vmem>>, vector<80x256xf32>
      tpu.vector_store %arg9[%c0_10, %c0_11], %14 {strides = array<i32>} : memref<80x256xf32, #tpu.memory_space<vmem>>, vector<80x256xf32>,
      %cst_12 = arith.constant 0.000000e+00 : f32
      %16 = vector.broadcast %cst_12 : f32 to vector<80x256xf32>
      %c0_13 = arith.constant 0 : index
      %c0_14 = arith.constant 0 : index
      %17 = vector.load %arg10[%c0_13, %c0_14] : memref<80x256xf32, #tpu.memory_space<vmem>>, vector<80x256xf32>
      tpu.vector_store %arg10[%c0_13, %c0_14], %16 {strides = array<i32>} : memref<80x256xf32, #tpu.memory_space<vmem>>, vector<80x256xf32>,
      %cst_15 = arith.constant 0.000000e+00 : f32
      %18 = vector.broadcast %cst_15 : f32 to vector<16x768xf32>
      %c0_16 = arith.constant 0 : index
      %c0_17 = arith.constant 0 : index
      %19 = vector.load %arg11[%c0_16, %c0_17] : memref<16x768xf32, #tpu.memory_space<vmem>>, vector<16x768xf32>
      tpu.vector_store %arg11[%c0_16, %c0_17], %18 {strides = array<i32>} : memref<16x768xf32, #tpu.memory_space<vmem>>, vector<16x768xf32>,
      %c0_18 = arith.constant 0 : index
      %c0_19 = arith.constant 0 : index
      %20 = vector.load %arg1[%c0_18, %c0_19] : memref<80x32xbf16, #tpu.memory_space<vmem>>, vector<80x32xbf16>
      %c0_20 = arith.constant 0 : index
      %c0_21 = arith.constant 0 : index
      %c0_22 = arith.constant 0 : index
      %21 = vector.load %arg2[%c0_20, %c0_21, %c0_22] : memref<3x32x256xbf16, #tpu.memory_space<vmem>>, vector<1x32x256xbf16>
      %22 = vector.shape_cast %21 : vector<1x32x256xbf16> to vector<32x256xbf16>
      %c1 = arith.constant 1 : index
      %c0_23 = arith.constant 0 : index
      %c0_24 = arith.constant 0 : index
      %23 = vector.load %arg2[%c1, %c0_23, %c0_24] : memref<3x32x256xbf16, #tpu.memory_space<vmem>>, vector<1x32x256xbf16>
      %24 = vector.shape_cast %23 : vector<1x32x256xbf16> to vector<32x256xbf16>
      %c2 = arith.constant 2 : index
      %c0_25 = arith.constant 0 : index
      %c0_26 = arith.constant 0 : index
      %25 = vector.load %arg2[%c2, %c0_25, %c0_26] : memref<3x32x256xbf16, #tpu.memory_space<vmem>>, vector<1x32x256xbf16>
      %26 = vector.shape_cast %25 : vector<1x32x256xbf16> to vector<32x256xbf16>
      %c0_27 = arith.constant 0 : index
      %c0_28 = arith.constant 0 : index
      %27 = vector.load %arg4[%c0_27, %c0_28] : memref<6x256xf32, #tpu.memory_space<vmem>>, vector<1x256xf32>
      %28 = vector.extract_strided_slice %20 {offsets = [0, 0], sizes = [78, 32], strides = [1, 1]} : vector<80x32xbf16> to vector<78x32xbf16>
      %cst_29 = arith.constant dense<0.000000e+00> : vector<78x256xf32>
      %29 = tpu.matmul %28, %22, %cst_29 {dimension_numbers = #tpu.dot_dimension_numbers<[1], [0], [0], [1], [0, 0, 1, 1], [], []>} : vector<78x32xbf16>, vector<32x256xbf16>, vector<78x256xf32> -> vector<78x256xf32>
      %30 = vector.extract_strided_slice %20 {offsets = [1, 0], sizes = [78, 32], strides = [1, 1]} : vector<80x32xbf16> to vector<78x32xbf16>
      %cst_30 = arith.constant dense<0.000000e+00> : vector<78x256xf32>
      %31 = tpu.matmul %30, %24, %cst_30 {dimension_numbers = #tpu.dot_dimension_numbers<[1], [0], [0], [1], [0, 0, 1, 1], [], []>} : vector<78x32xbf16>, vector<32x256xbf16>, vector<78x256xf32> -> vector<78x256xf32>
      %32 = arith.addf %29, %31 : vector<78x256xf32>
      %33 = vector.extract_strided_slice %20 {offsets = [2, 0], sizes = [78, 32], strides = [1, 1]} : vector<80x32xbf16> to vector<78x32xbf16>
      %cst_31 = arith.constant dense<0.000000e+00> : vector<78x256xf32>
      %34 = tpu.matmul %33, %26, %cst_31 {dimension_numbers = #tpu.dot_dimension_numbers<[1], [0], [0], [1], [0, 0, 1, 1], [], []>} : vector<78x32xbf16>, vector<32x256xbf16>, vector<78x256xf32> -> vector<78x256xf32>
      %35 = arith.addf %32, %34 : vector<78x256xf32>
      %36 = vector.broadcast %27 : vector<1x256xf32> to vector<78x256xf32>
      %37 = arith.addf %35, %36 : vector<78x256xf32>
      %cst_32 = arith.constant 0.000000e+00 : f32
      %38 = vector.broadcast %cst_32 : f32 to vector<78x256xf32>
      %39 = arith.maximumf %37, %38 : vector<78x256xf32>
      %c0_33 = arith.constant 0 : index
      %c0_34 = arith.constant 0 : index
      %40 = vector.load %arg9[%c0_33, %c0_34] : memref<80x256xf32, #tpu.memory_space<vmem>>, vector<78x256xf32>
      tpu.vector_store %arg9[%c0_33, %c0_34], %39 {strides = array<i32>} : memref<80x256xf32, #tpu.memory_space<vmem>>, vector<78x256xf32>,
      %c0_35 = arith.constant 0 : index
      %c0_36 = arith.constant 0 : index
      %41 = vector.load %arg9[%c0_35, %c0_36] : memref<80x256xf32, #tpu.memory_space<vmem>>, vector<80x256xf32>
      %42 = arith.truncf %41 : vector<80x256xf32> to vector<80x256xbf16>
      %c0_37 = arith.constant 0 : index
      %c0_38 = arith.constant 0 : index
      %c0_39 = arith.constant 0 : index
      %43 = vector.load %arg3[%c0_37, %c0_38, %c0_39] : memref<15x256x256xbf16, #tpu.memory_space<vmem>>, vector<1x256x256xbf16>
      %44 = vector.shape_cast %43 : vector<1x256x256xbf16> to vector<256x256xbf16>
      %c1_40 = arith.constant 1 : index
      %c0_41 = arith.constant 0 : index
      %c0_42 = arith.constant 0 : index
      %45 = vector.load %arg3[%c1_40, %c0_41, %c0_42] : memref<15x256x256xbf16, #tpu.memory_space<vmem>>, vector<1x256x256xbf16>
      %46 = vector.shape_cast %45 : vector<1x256x256xbf16> to vector<256x256xbf16>
      %c2_43 = arith.constant 2 : index
      %c0_44 = arith.constant 0 : index
      %c0_45 = arith.constant 0 : index
      %47 = vector.load %arg3[%c2_43, %c0_44, %c0_45] : memref<15x256x256xbf16, #tpu.memory_space<vmem>>, vector<1x256x256xbf16>
      %48 = vector.shape_cast %47 : vector<1x256x256xbf16> to vector<256x256xbf16>
      %c1_46 = arith.constant 1 : index
      %c0_47 = arith.constant 0 : index
      %49 = vector.load %arg4[%c1_46, %c0_47] : memref<6x256xf32, #tpu.memory_space<vmem>>, vector<1x256xf32>
      %50 = vector.extract_strided_slice %42 {offsets = [0, 0], sizes = [78, 256], strides = [1, 1]} : vector<80x256xbf16> to vector<78x256xbf16>
      %cst_48 = arith.constant dense<0.000000e+00> : vector<78x256xf32>
      %51 = tpu.matmul %50, %44, %cst_48 {dimension_numbers = #tpu.dot_dimension_numbers<[1], [0], [0], [1], [0, 0, 1, 1], [], []>} : vector<78x256xbf16>, vector<256x256xbf16>, vector<78x256xf32> -> vector<78x256xf32>
      %52 = vector.extract_strided_slice %42 {offsets = [1, 0], sizes = [78, 256], strides = [1, 1]} : vector<80x256xbf16> to vector<78x256xbf16>
      %cst_49 = arith.constant dense<0.000000e+00> : vector<78x256xf32>
      %53 = tpu.matmul %52, %46, %cst_49 {dimension_numbers = #tpu.dot_dimension_numbers<[1], [0], [0], [1], [0, 0, 1, 1], [], []>} : vector<78x256xbf16>, vector<256x256xbf16>, vector<78x256xf32> -> vector<78x256xf32>
      %54 = arith.addf %51, %53 : vector<78x256xf32>
      %55 = vector.extract_strided_slice %42 {offsets = [2, 0], sizes = [78, 256], strides = [1, 1]} : vector<80x256xbf16> to vector<78x256xbf16>
      %cst_50 = arith.constant dense<0.000000e+00> : vector<78x256xf32>
      %56 = tpu.matmul %55, %48, %cst_50 {dimension_numbers = #tpu.dot_dimension_numbers<[1], [0], [0], [1], [0, 0, 1, 1], [], []>} : vector<78x256xbf16>, vector<256x256xbf16>, vector<78x256xf32> -> vector<78x256xf32>
      %57 = arith.addf %54, %56 : vector<78x256xf32>
      %58 = vector.broadcast %49 : vector<1x256xf32> to vector<78x256xf32>
      %59 = arith.addf %57, %58 : vector<78x256xf32>
      %cst_51 = arith.constant 0.000000e+00 : f32
      %60 = vector.broadcast %cst_51 : f32 to vector<78x256xf32>
      %61 = arith.maximumf %59, %60 : vector<78x256xf32>
      %c0_52 = arith.constant 0 : index
      %c0_53 = arith.constant 0 : index
      %62 = vector.load %arg10[%c0_52, %c0_53] : memref<80x256xf32, #tpu.memory_space<vmem>>, vector<78x256xf32>
      tpu.vector_store %arg10[%c0_52, %c0_53], %61 {strides = array<i32>} : memref<80x256xf32, #tpu.memory_space<vmem>>, vector<78x256xf32>,
      %c0_54 = arith.constant 0 : index
      %c0_55 = arith.constant 0 : index
      %63 = vector.load %arg10[%c0_54, %c0_55] : memref<80x256xf32, #tpu.memory_space<vmem>>, vector<80x256xf32>
      %c0_56 = arith.constant 0 : index
      %c0_57 = arith.constant 0 : index
      %c0_58 = arith.constant 0 : index
      %64 = vector.load %arg5[%c0_56, %c0_57, %c0_58] : memref<4x80x80xf32, #tpu.memory_space<vmem>>, vector<1x80x80xf32>
      %65 = vector.shape_cast %64 : vector<1x80x80xf32> to vector<80x80xf32>
      %cst_59 = arith.constant dense<0.000000e+00> : vector<80x256xf32>
      %66 = tpu.matmul %65, %63, %cst_59 {dimension_numbers = #tpu.dot_dimension_numbers<[1], [0], [0], [1], [0, 0, 1, 1], [], []>} : vector<80x80xf32>, vector<80x256xf32>, vector<80x256xf32> -> vector<80x256xf32>
      %c1_60 = arith.constant 1 : index
      %c0_61 = arith.constant 0 : index
      %c0_62 = arith.constant 0 : index
      %67 = vector.load %arg5[%c1_60, %c0_61, %c0_62] : memref<4x80x80xf32, #tpu.memory_space<vmem>>, vector<1x80x80xf32>
      %68 = vector.shape_cast %67 : vector<1x80x80xf32> to vector<80x80xf32>
      %cst_63 = arith.constant dense<0.000000e+00> : vector<80x256xf32>
      %69 = tpu.matmul %68, %63, %cst_63 {dimension_numbers = #tpu.dot_dimension_numbers<[1], [0], [0], [1], [0, 0, 1, 1], [], []>} : vector<80x80xf32>, vector<80x256xf32>, vector<80x256xf32> -> vector<80x256xf32>
      %70 = arith.maximumf %66, %69 : vector<80x256xf32>
      %c0_64 = arith.constant 0 : index
      %c0_65 = arith.constant 0 : index
      %71 = vector.load %arg9[%c0_64, %c0_65] : memref<80x256xf32, #tpu.memory_space<vmem>>, vector<80x256xf32>
      tpu.vector_store %arg9[%c0_64, %c0_65], %70 {strides = array<i32>} : memref<80x256xf32, #tpu.memory_space<vmem>>, vector<80x256xf32>,
      %c0_66 = arith.constant 0 : index
      %c0_67 = arith.constant 0 : index
      %72 = vector.load %arg9[%c0_66, %c0_67] : memref<80x256xf32, #tpu.memory_space<vmem>>, vector<80x256xf32>
      %73 = arith.truncf %72 : vector<80x256xf32> to vector<80x256xbf16>
      %c3 = arith.constant 3 : index
      %c0_68 = arith.constant 0 : index
      %c0_69 = arith.constant 0 : index
      %74 = vector.load %arg3[%c3, %c0_68, %c0_69] : memref<15x256x256xbf16, #tpu.memory_space<vmem>>, vector<1x256x256xbf16>
      %75 = vector.shape_cast %74 : vector<1x256x256xbf16> to vector<256x256xbf16>
      %c4 = arith.constant 4 : index
      %c0_70 = arith.constant 0 : index
      %c0_71 = arith.constant 0 : index
      %76 = vector.load %arg3[%c4, %c0_70, %c0_71] : memref<15x256x256xbf16, #tpu.memory_space<vmem>>, vector<1x256x256xbf16>
      %77 = vector.shape_cast %76 : vector<1x256x256xbf16> to vector<256x256xbf16>
      %c5 = arith.constant 5 : index
      %c0_72 = arith.constant 0 : index
      %c0_73 = arith.constant 0 : index
      %78 = vector.load %arg3[%c5, %c0_72, %c0_73] : memref<15x256x256xbf16, #tpu.memory_space<vmem>>, vector<1x256x256xbf16>
      %79 = vector.shape_cast %78 : vector<1x256x256xbf16> to vector<256x256xbf16>
      %c2_74 = arith.constant 2 : index
      %c0_75 = arith.constant 0 : index
      %80 = vector.load %arg4[%c2_74, %c0_75] : memref<6x256xf32, #tpu.memory_space<vmem>>, vector<1x256xf32>
      %81 = vector.extract_strided_slice %73 {offsets = [0, 0], sizes = [78, 256], strides = [1, 1]} : vector<80x256xbf16> to vector<78x256xbf16>
      %cst_76 = arith.constant dense<0.000000e+00> : vector<78x256xf32>
      %82 = tpu.matmul %81, %75, %cst_76 {dimension_numbers = #tpu.dot_dimension_numbers<[1], [0], [0], [1], [0, 0, 1, 1], [], []>} : vector<78x256xbf16>, vector<256x256xbf16>, vector<78x256xf32> -> vector<78x256xf32>
      %83 = vector.extract_strided_slice %73 {offsets = [1, 0], sizes = [78, 256], strides = [1, 1]} : vector<80x256xbf16> to vector<78x256xbf16>
      %cst_77 = arith.constant dense<0.000000e+00> : vector<78x256xf32>
      %84 = tpu.matmul %83, %77, %cst_77 {dimension_numbers = #tpu.dot_dimension_numbers<[1], [0], [0], [1], [0, 0, 1, 1], [], []>} : vector<78x256xbf16>, vector<256x256xbf16>, vector<78x256xf32> -> vector<78x256xf32>
      %85 = arith.addf %82, %84 : vector<78x256xf32>
      %86 = vector.extract_strided_slice %73 {offsets = [2, 0], sizes = [78, 256], strides = [1, 1]} : vector<80x256xbf16> to vector<78x256xbf16>
      %cst_78 = arith.constant dense<0.000000e+00> : vector<78x256xf32>
      %87 = tpu.matmul %86, %79, %cst_78 {dimension_numbers = #tpu.dot_dimension_numbers<[1], [0], [0], [1], [0, 0, 1, 1], [], []>} : vector<78x256xbf16>, vector<256x256xbf16>, vector<78x256xf32> -> vector<78x256xf32>
      %88 = arith.addf %85, %87 : vector<78x256xf32>
      %89 = vector.broadcast %80 : vector<1x256xf32> to vector<78x256xf32>
      %90 = arith.addf %88, %89 : vector<78x256xf32>
      %cst_79 = arith.constant 0.000000e+00 : f32
      %91 = vector.broadcast %cst_79 : f32 to vector<78x256xf32>
      %92 = arith.maximumf %90, %91 : vector<78x256xf32>
      %c0_80 = arith.constant 0 : index
      %c0_81 = arith.constant 0 : index
      %93 = vector.load %arg10[%c0_80, %c0_81] : memref<80x256xf32, #tpu.memory_space<vmem>>, vector<78x256xf32>
      tpu.vector_store %arg10[%c0_80, %c0_81], %92 {strides = array<i32>} : memref<80x256xf32, #tpu.memory_space<vmem>>, vector<78x256xf32>,
      %c0_82 = arith.constant 0 : index
      %c0_83 = arith.constant 0 : index
      %94 = vector.load %arg10[%c0_82, %c0_83] : memref<80x256xf32, #tpu.memory_space<vmem>>, vector<80x256xf32>
      %95 = arith.truncf %94 : vector<80x256xf32> to vector<80x256xbf16>
      %c6 = arith.constant 6 : index
      %c0_84 = arith.constant 0 : index
      %c0_85 = arith.constant 0 : index
      %96 = vector.load %arg3[%c6, %c0_84, %c0_85] : memref<15x256x256xbf16, #tpu.memory_space<vmem>>, vector<1x256x256xbf16>
      %97 = vector.shape_cast %96 : vector<1x256x256xbf16> to vector<256x256xbf16>
      %c7 = arith.constant 7 : index
      %c0_86 = arith.constant 0 : index
      %c0_87 = arith.constant 0 : index
      %98 = vector.load %arg3[%c7, %c0_86, %c0_87] : memref<15x256x256xbf16, #tpu.memory_space<vmem>>, vector<1x256x256xbf16>
      %99 = vector.shape_cast %98 : vector<1x256x256xbf16> to vector<256x256xbf16>
      %c8 = arith.constant 8 : index
      %c0_88 = arith.constant 0 : index
      %c0_89 = arith.constant 0 : index
      %100 = vector.load %arg3[%c8, %c0_88, %c0_89] : memref<15x256x256xbf16, #tpu.memory_space<vmem>>, vector<1x256x256xbf16>
      %101 = vector.shape_cast %100 : vector<1x256x256xbf16> to vector<256x256xbf16>
      %c3_90 = arith.constant 3 : index
      %c0_91 = arith.constant 0 : index
      %102 = vector.load %arg4[%c3_90, %c0_91] : memref<6x256xf32, #tpu.memory_space<vmem>>, vector<1x256xf32>
      %103 = vector.extract_strided_slice %95 {offsets = [0, 0], sizes = [78, 256], strides = [1, 1]} : vector<80x256xbf16> to vector<78x256xbf16>
      %cst_92 = arith.constant dense<0.000000e+00> : vector<78x256xf32>
      %104 = tpu.matmul %103, %97, %cst_92 {dimension_numbers = #tpu.dot_dimension_numbers<[1], [0], [0], [1], [0, 0, 1, 1], [], []>} : vector<78x256xbf16>, vector<256x256xbf16>, vector<78x256xf32> -> vector<78x256xf32>
      %105 = vector.extract_strided_slice %95 {offsets = [1, 0], sizes = [78, 256], strides = [1, 1]} : vector<80x256xbf16> to vector<78x256xbf16>
      %cst_93 = arith.constant dense<0.000000e+00> : vector<78x256xf32>
      %106 = tpu.matmul %105, %99, %cst_93 {dimension_numbers = #tpu.dot_dimension_numbers<[1], [0], [0], [1], [0, 0, 1, 1], [], []>} : vector<78x256xbf16>, vector<256x256xbf16>, vector<78x256xf32> -> vector<78x256xf32>
      %107 = arith.addf %104, %106 : vector<78x256xf32>
      %108 = vector.extract_strided_slice %95 {offsets = [2, 0], sizes = [78, 256], strides = [1, 1]} : vector<80x256xbf16> to vector<78x256xbf16>
      %cst_94 = arith.constant dense<0.000000e+00> : vector<78x256xf32>
      %109 = tpu.matmul %108, %101, %cst_94 {dimension_numbers = #tpu.dot_dimension_numbers<[1], [0], [0], [1], [0, 0, 1, 1], [], []>} : vector<78x256xbf16>, vector<256x256xbf16>, vector<78x256xf32> -> vector<78x256xf32>
      %110 = arith.addf %107, %109 : vector<78x256xf32>
      %111 = vector.broadcast %102 : vector<1x256xf32> to vector<78x256xf32>
      %112 = arith.addf %110, %111 : vector<78x256xf32>
      %cst_95 = arith.constant 0.000000e+00 : f32
      %113 = vector.broadcast %cst_95 : f32 to vector<78x256xf32>
      %114 = arith.maximumf %112, %113 : vector<78x256xf32>
      %c0_96 = arith.constant 0 : index
      %c0_97 = arith.constant 0 : index
      %115 = vector.load %arg9[%c0_96, %c0_97] : memref<80x256xf32, #tpu.memory_space<vmem>>, vector<78x256xf32>
      tpu.vector_store %arg9[%c0_96, %c0_97], %114 {strides = array<i32>} : memref<80x256xf32, #tpu.memory_space<vmem>>, vector<78x256xf32>,
      %c0_98 = arith.constant 0 : index
      %c0_99 = arith.constant 0 : index
      %116 = vector.load %arg9[%c0_98, %c0_99] : memref<80x256xf32, #tpu.memory_space<vmem>>, vector<80x256xf32>
      %c2_100 = arith.constant 2 : index
      %c0_101 = arith.constant 0 : index
      %c0_102 = arith.constant 0 : index
      %117 = vector.load %arg5[%c2_100, %c0_101, %c0_102] : memref<4x80x80xf32, #tpu.memory_space<vmem>>, vector<1x80x80xf32>
      %118 = vector.shape_cast %117 : vector<1x80x80xf32> to vector<80x80xf32>
      %cst_103 = arith.constant dense<0.000000e+00> : vector<80x256xf32>
      %119 = tpu.matmul %118, %116, %cst_103 {dimension_numbers = #tpu.dot_dimension_numbers<[1], [0], [0], [1], [0, 0, 1, 1], [], []>} : vector<80x80xf32>, vector<80x256xf32>, vector<80x256xf32> -> vector<80x256xf32>
      %c3_104 = arith.constant 3 : index
      %c0_105 = arith.constant 0 : index
      %c0_106 = arith.constant 0 : index
      %120 = vector.load %arg5[%c3_104, %c0_105, %c0_106] : memref<4x80x80xf32, #tpu.memory_space<vmem>>, vector<1x80x80xf32>
      %121 = vector.shape_cast %120 : vector<1x80x80xf32> to vector<80x80xf32>
      %cst_107 = arith.constant dense<0.000000e+00> : vector<80x256xf32>
      %122 = tpu.matmul %121, %116, %cst_107 {dimension_numbers = #tpu.dot_dimension_numbers<[1], [0], [0], [1], [0, 0, 1, 1], [], []>} : vector<80x80xf32>, vector<80x256xf32>, vector<80x256xf32> -> vector<80x256xf32>
      %123 = arith.maximumf %119, %122 : vector<80x256xf32>
      %c0_108 = arith.constant 0 : index
      %c0_109 = arith.constant 0 : index
      %124 = vector.load %arg10[%c0_108, %c0_109] : memref<80x256xf32, #tpu.memory_space<vmem>>, vector<80x256xf32>
      tpu.vector_store %arg10[%c0_108, %c0_109], %123 {strides = array<i32>} : memref<80x256xf32, #tpu.memory_space<vmem>>, vector<80x256xf32>,
      %c0_110 = arith.constant 0 : index
      %c0_111 = arith.constant 0 : index
      %125 = vector.load %arg10[%c0_110, %c0_111] : memref<80x256xf32, #tpu.memory_space<vmem>>, vector<80x256xf32>
      %126 = arith.truncf %125 : vector<80x256xf32> to vector<80x256xbf16>
      %c9 = arith.constant 9 : index
      %c0_112 = arith.constant 0 : index
      %c0_113 = arith.constant 0 : index
      %127 = vector.load %arg3[%c9, %c0_112, %c0_113] : memref<15x256x256xbf16, #tpu.memory_space<vmem>>, vector<1x256x256xbf16>
      %128 = vector.shape_cast %127 : vector<1x256x256xbf16> to vector<256x256xbf16>
      %c10 = arith.constant 10 : index
      %c0_114 = arith.constant 0 : index
      %c0_115 = arith.constant 0 : index
      %129 = vector.load %arg3[%c10, %c0_114, %c0_115] : memref<15x256x256xbf16, #tpu.memory_space<vmem>>, vector<1x256x256xbf16>
      %130 = vector.shape_cast %129 : vector<1x256x256xbf16> to vector<256x256xbf16>
      %c11 = arith.constant 11 : index
      %c0_116 = arith.constant 0 : index
      %c0_117 = arith.constant 0 : index
      %131 = vector.load %arg3[%c11, %c0_116, %c0_117] : memref<15x256x256xbf16, #tpu.memory_space<vmem>>, vector<1x256x256xbf16>
      %132 = vector.shape_cast %131 : vector<1x256x256xbf16> to vector<256x256xbf16>
      %c4_118 = arith.constant 4 : index
      %c0_119 = arith.constant 0 : index
      %133 = vector.load %arg4[%c4_118, %c0_119] : memref<6x256xf32, #tpu.memory_space<vmem>>, vector<1x256xf32>
      %134 = vector.extract_strided_slice %126 {offsets = [0, 0], sizes = [78, 256], strides = [1, 1]} : vector<80x256xbf16> to vector<78x256xbf16>
      %cst_120 = arith.constant dense<0.000000e+00> : vector<78x256xf32>
      %135 = tpu.matmul %134, %128, %cst_120 {dimension_numbers = #tpu.dot_dimension_numbers<[1], [0], [0], [1], [0, 0, 1, 1], [], []>} : vector<78x256xbf16>, vector<256x256xbf16>, vector<78x256xf32> -> vector<78x256xf32>
      %136 = vector.extract_strided_slice %126 {offsets = [1, 0], sizes = [78, 256], strides = [1, 1]} : vector<80x256xbf16> to vector<78x256xbf16>
      %cst_121 = arith.constant dense<0.000000e+00> : vector<78x256xf32>
      %137 = tpu.matmul %136, %130, %cst_121 {dimension_numbers = #tpu.dot_dimension_numbers<[1], [0], [0], [1], [0, 0, 1, 1], [], []>} : vector<78x256xbf16>, vector<256x256xbf16>, vector<78x256xf32> -> vector<78x256xf32>
      %138 = arith.addf %135, %137 : vector<78x256xf32>
      %139 = vector.extract_strided_slice %126 {offsets = [2, 0], sizes = [78, 256], strides = [1, 1]} : vector<80x256xbf16> to vector<78x256xbf16>
      %cst_122 = arith.constant dense<0.000000e+00> : vector<78x256xf32>
      %140 = tpu.matmul %139, %132, %cst_122 {dimension_numbers = #tpu.dot_dimension_numbers<[1], [0], [0], [1], [0, 0, 1, 1], [], []>} : vector<78x256xbf16>, vector<256x256xbf16>, vector<78x256xf32> -> vector<78x256xf32>
      %141 = arith.addf %138, %140 : vector<78x256xf32>
      %142 = vector.broadcast %133 : vector<1x256xf32> to vector<78x256xf32>
      %143 = arith.addf %141, %142 : vector<78x256xf32>
      %cst_123 = arith.constant 0.000000e+00 : f32
      %144 = vector.broadcast %cst_123 : f32 to vector<78x256xf32>
      %145 = arith.maximumf %143, %144 : vector<78x256xf32>
      %c0_124 = arith.constant 0 : index
      %c0_125 = arith.constant 0 : index
      %146 = vector.load %arg9[%c0_124, %c0_125] : memref<80x256xf32, #tpu.memory_space<vmem>>, vector<78x256xf32>
      tpu.vector_store %arg9[%c0_124, %c0_125], %145 {strides = array<i32>} : memref<80x256xf32, #tpu.memory_space<vmem>>, vector<78x256xf32>,
      %c0_126 = arith.constant 0 : index
      %c0_127 = arith.constant 0 : index
      %147 = vector.load %arg9[%c0_126, %c0_127] : memref<80x256xf32, #tpu.memory_space<vmem>>, vector<80x256xf32>
      %148 = arith.truncf %147 : vector<80x256xf32> to vector<80x256xbf16>
      %c12 = arith.constant 12 : index
      %c0_128 = arith.constant 0 : index
      %c0_129 = arith.constant 0 : index
      %149 = vector.load %arg3[%c12, %c0_128, %c0_129] : memref<15x256x256xbf16, #tpu.memory_space<vmem>>, vector<1x256x256xbf16>
      %150 = vector.shape_cast %149 : vector<1x256x256xbf16> to vector<256x256xbf16>
      %c13 = arith.constant 13 : index
      %c0_130 = arith.constant 0 : index
      %c0_131 = arith.constant 0 : index
      %151 = vector.load %arg3[%c13, %c0_130, %c0_131] : memref<15x256x256xbf16, #tpu.memory_space<vmem>>, vector<1x256x256xbf16>
      %152 = vector.shape_cast %151 : vector<1x256x256xbf16> to vector<256x256xbf16>
      %c14 = arith.constant 14 : index
      %c0_132 = arith.constant 0 : index
      %c0_133 = arith.constant 0 : index
      %153 = vector.load %arg3[%c14, %c0_132, %c0_133] : memref<15x256x256xbf16, #tpu.memory_space<vmem>>, vector<1x256x256xbf16>
      %154 = vector.shape_cast %153 : vector<1x256x256xbf16> to vector<256x256xbf16>
      %c5_134 = arith.constant 5 : index
      %c0_135 = arith.constant 0 : index
      %155 = vector.load %arg4[%c5_134, %c0_135] : memref<6x256xf32, #tpu.memory_space<vmem>>, vector<1x256xf32>
      %156 = vector.extract_strided_slice %148 {offsets = [0, 0], sizes = [78, 256], strides = [1, 1]} : vector<80x256xbf16> to vector<78x256xbf16>
      %cst_136 = arith.constant dense<0.000000e+00> : vector<78x256xf32>
      %157 = tpu.matmul %156, %150, %cst_136 {dimension_numbers = #tpu.dot_dimension_numbers<[1], [0], [0], [1], [0, 0, 1, 1], [], []>} : vector<78x256xbf16>, vector<256x256xbf16>, vector<78x256xf32> -> vector<78x256xf32>
      %158 = vector.extract_strided_slice %148 {offsets = [1, 0], sizes = [78, 256], strides = [1, 1]} : vector<80x256xbf16> to vector<78x256xbf16>
      %cst_137 = arith.constant dense<0.000000e+00> : vector<78x256xf32>
      %159 = tpu.matmul %158, %152, %cst_137 {dimension_numbers = #tpu.dot_dimension_numbers<[1], [0], [0], [1], [0, 0, 1, 1], [], []>} : vector<78x256xbf16>, vector<256x256xbf16>, vector<78x256xf32> -> vector<78x256xf32>
      %160 = arith.addf %157, %159 : vector<78x256xf32>
      %161 = vector.extract_strided_slice %148 {offsets = [2, 0], sizes = [78, 256], strides = [1, 1]} : vector<80x256xbf16> to vector<78x256xbf16>
      %cst_138 = arith.constant dense<0.000000e+00> : vector<78x256xf32>
      %162 = tpu.matmul %161, %154, %cst_138 {dimension_numbers = #tpu.dot_dimension_numbers<[1], [0], [0], [1], [0, 0, 1, 1], [], []>} : vector<78x256xbf16>, vector<256x256xbf16>, vector<78x256xf32> -> vector<78x256xf32>
      %163 = arith.addf %160, %162 : vector<78x256xf32>
      %164 = vector.broadcast %155 : vector<1x256xf32> to vector<78x256xf32>
      %165 = arith.addf %163, %164 : vector<78x256xf32>
      %cst_139 = arith.constant 0.000000e+00 : f32
      %166 = vector.broadcast %cst_139 : f32 to vector<78x256xf32>
      %167 = arith.maximumf %165, %166 : vector<78x256xf32>
      %c0_140 = arith.constant 0 : index
      %c0_141 = arith.constant 0 : index
      %168 = vector.load %arg10[%c0_140, %c0_141] : memref<80x256xf32, #tpu.memory_space<vmem>>, vector<78x256xf32>
      tpu.vector_store %arg10[%c0_140, %c0_141], %167 {strides = array<i32>} : memref<80x256xf32, #tpu.memory_space<vmem>>, vector<78x256xf32>,
      %c0_142 = arith.constant 0 : index
      %c0_143 = arith.constant 0 : index
      %169 = vector.load %arg10[%c0_142, %c0_143] : memref<80x256xf32, #tpu.memory_space<vmem>>, vector<1x256xf32>
      %c0_144 = arith.constant 0 : index
      %c0_145 = arith.constant 0 : index
      %170 = vector.load %arg11[%c0_144, %c0_145] : memref<16x768xf32, #tpu.memory_space<vmem>>, vector<1x256xf32>
      tpu.vector_store %arg11[%c0_144, %c0_145], %169 {strides = array<i32>} : memref<16x768xf32, #tpu.memory_space<vmem>>, vector<1x256xf32>,
      %c1_146 = arith.constant 1 : index
      %c0_147 = arith.constant 0 : index
      %171 = vector.load %arg10[%c1_146, %c0_147] : memref<80x256xf32, #tpu.memory_space<vmem>>, vector<1x256xf32>
      %c0_148 = arith.constant 0 : index
      %c256 = arith.constant 256 : index
      %172 = vector.load %arg11[%c0_148, %c256] : memref<16x768xf32, #tpu.memory_space<vmem>>, vector<1x256xf32>
      tpu.vector_store %arg11[%c0_148, %c256], %171 {strides = array<i32>} : memref<16x768xf32, #tpu.memory_space<vmem>>, vector<1x256xf32>,
      %c2_149 = arith.constant 2 : index
      %c0_150 = arith.constant 0 : index
      %173 = vector.load %arg10[%c2_149, %c0_150] : memref<80x256xf32, #tpu.memory_space<vmem>>, vector<1x256xf32>
      %c0_151 = arith.constant 0 : index
      %c512 = arith.constant 512 : index
      %174 = vector.load %arg11[%c0_151, %c512] : memref<16x768xf32, #tpu.memory_space<vmem>>, vector<1x256xf32>
      tpu.vector_store %arg11[%c0_151, %c512], %173 {strides = array<i32>} : memref<16x768xf32, #tpu.memory_space<vmem>>, vector<1x256xf32>,
      %c40 = arith.constant 40 : index
      %c0_152 = arith.constant 0 : index
      %175 = vector.load %arg10[%c40, %c0_152] : memref<80x256xf32, #tpu.memory_space<vmem>>, vector<1x256xf32>
      %c1_153 = arith.constant 1 : index
      %c0_154 = arith.constant 0 : index
      %176 = vector.load %arg11[%c1_153, %c0_154] : memref<16x768xf32, #tpu.memory_space<vmem>>, vector<1x256xf32>
      tpu.vector_store %arg11[%c1_153, %c0_154], %175 {strides = array<i32>} : memref<16x768xf32, #tpu.memory_space<vmem>>, vector<1x256xf32>,
      %c41 = arith.constant 41 : index
      %c0_155 = arith.constant 0 : index
      %177 = vector.load %arg10[%c41, %c0_155] : memref<80x256xf32, #tpu.memory_space<vmem>>, vector<1x256xf32>
      %c1_156 = arith.constant 1 : index
      %c256_157 = arith.constant 256 : index
      %178 = vector.load %arg11[%c1_156, %c256_157] : memref<16x768xf32, #tpu.memory_space<vmem>>, vector<1x256xf32>
      tpu.vector_store %arg11[%c1_156, %c256_157], %177 {strides = array<i32>} : memref<16x768xf32, #tpu.memory_space<vmem>>, vector<1x256xf32>,
      %c42 = arith.constant 42 : index
      %c0_158 = arith.constant 0 : index
      %179 = vector.load %arg10[%c42, %c0_158] : memref<80x256xf32, #tpu.memory_space<vmem>>, vector<1x256xf32>
      %c1_159 = arith.constant 1 : index
      %c512_160 = arith.constant 512 : index
      %180 = vector.load %arg11[%c1_159, %c512_160] : memref<16x768xf32, #tpu.memory_space<vmem>>, vector<1x256xf32>
      tpu.vector_store %arg11[%c1_159, %c512_160], %179 {strides = array<i32>} : memref<16x768xf32, #tpu.memory_space<vmem>>, vector<1x256xf32>,
    } else {
    }
    %c0 = arith.constant 0 : index
    %c0_1 = arith.constant 0 : index
    %3 = vector.load %arg11[%c0, %c0_1] : memref<16x768xf32, #tpu.memory_space<vmem>>, vector<16x768xf32>
    %4 = arith.truncf %3 : vector<16x768xf32> to vector<16x768xbf16>
    %c0_2 = arith.constant 0 : index
    %c0_3 = arith.constant 0 : index
    %5 = vector.load %arg6[%c0_2, %c0_3] : memref<768x512xbf16, #tpu.memory_space<vmem>>, vector<768x512xbf16>
    %cst = arith.constant dense<0.000000e+00> : vector<16x512xf32>
    %6 = tpu.matmul %4, %5, %cst {dimension_numbers = #tpu.dot_dimension_numbers<[1], [0], [0], [1], [0, 0, 1, 1], [], []>} : vector<16x768xbf16>, vector<768x512xbf16>, vector<16x512xf32> -> vector<16x512xf32>
    %c0_4 = arith.constant 0 : index
    %c0_5 = arith.constant 0 : index
    %7 = vector.load %arg7[%c0_4, %c0_5] : memref<1x512xf32, #tpu.memory_space<vmem>>, vector<1x512xf32>
    %8 = vector.broadcast %7 : vector<1x512xf32> to vector<16x512xf32>
    %9 = arith.addf %6, %8 : vector<16x512xf32>
    %cst_6 = arith.constant 0.000000e+00 : f32
    %10 = vector.broadcast %cst_6 : f32 to vector<16x512xf32>
    %11 = arith.maximumf %9, %10 : vector<16x512xf32>
    %12 = arith.truncf %11 : vector<16x512xf32> to vector<16x512xbf16>
    %c0_7 = arith.constant 0 : index
    %c0_8 = arith.constant 0 : index
    %13 = vector.load %arg8[%c0_7, %c0_8] : memref<16x512xbf16, #tpu.memory_space<vmem>>, vector<16x512xbf16>
    tpu.vector_store %arg8[%c0_7, %c0_8], %12 {strides = array<i32>} : memref<16x512xbf16, #tpu.memory_space<vmem>>, vector<16x512xbf16>,
    return
  }
  func.func @transform_0(%arg0: i32) -> (i32, i32) {
    %c0_i32 = arith.constant 0 : i32
    %c0_i32_0 = arith.constant 0 : i32
    %c0_i32_1 = arith.constant 0 : i32
    return %c0_i32, %c0_i32_0 : i32, i32
  }
  func.func @transform_1(%arg0: i32) -> (i32, i32, i32) {
    %c0_i32 = arith.constant 0 : i32
    %c0_i32_0 = arith.constant 0 : i32
    %c0_i32_1 = arith.constant 0 : i32
    %c0_i32_2 = arith.constant 0 : i32
    return %c0_i32, %c0_i32_0, %c0_i32_1 : i32, i32, i32
  }
  func.func @transform_2(%arg0: i32) -> (i32, i32, i32) {
    %c0_i32 = arith.constant 0 : i32
    %c0_i32_0 = arith.constant 0 : i32
    %c0_i32_1 = arith.constant 0 : i32
    %c0_i32_2 = arith.constant 0 : i32
    return %c0_i32, %c0_i32_0, %c0_i32_1 : i32, i32, i32
  }
  func.func @transform_3(%arg0: i32) -> (i32, i32) {
    %c0_i32 = arith.constant 0 : i32
    %c0_i32_0 = arith.constant 0 : i32
    %c0_i32_1 = arith.constant 0 : i32
    return %c0_i32, %c0_i32_0 : i32, i32
  }
  func.func @transform_4(%arg0: i32) -> (i32, i32, i32) {
    %c0_i32 = arith.constant 0 : i32
    %c0_i32_0 = arith.constant 0 : i32
    %c0_i32_1 = arith.constant 0 : i32
    %c0_i32_2 = arith.constant 0 : i32
    return %c0_i32, %c0_i32_0, %c0_i32_1 : i32, i32, i32
  }
  func.func @transform_5(%arg0: i32) -> (i32, i32) {
    %c0_i32 = arith.constant 0 : i32
    %c0_i32_0 = arith.constant 0 : i32
    return %c0_i32, %arg0 : i32, i32
  }
  func.func @transform_6(%arg0: i32) -> (i32, i32) {
    %c0_i32 = arith.constant 0 : i32
    %c0_i32_0 = arith.constant 0 : i32
    return %c0_i32, %arg0 : i32, i32
  }
  func.func @transform_7(%arg0: i32) -> (i32, i32) {
    %c0_i32 = arith.constant 0 : i32
    %c0_i32_0 = arith.constant 0 : i32
    return %c0_i32, %arg0 : i32, i32
  }
}

module attributes {stable_mosaic.version = 11 : i64} {
  func.func @_fc2_fc3_kernel(%arg0: i32, %arg1: memref<16x2048xbf16, #tpu.memory_space<vmem>>, %arg2: memref<2048x512xbf16, #tpu.memory_space<vmem>>, %arg3: memref<1x512xf32, #tpu.memory_space<vmem>>, %arg4: memref<512x128xbf16, #tpu.memory_space<vmem>>, %arg5: memref<1x128xf32, #tpu.memory_space<vmem>>, %arg6: memref<16x128xf32, #tpu.memory_space<vmem>>, %arg7: memref<16x128xf32, #tpu.memory_space<vmem>>) attributes {dimension_semantics = [#tpu.dimension_semantics<arbitrary>], iteration_bounds = array<i64: 4>, scalar_prefetch = 0 : i64, scratch_operands = 1 : i64, tpu.core_type = #tpu.core_type<tc>, window_params = [{pipeline_mode = #tpu.pipeline_mode<synchronous>, transform_indices = @transform_0, window_bounds = array<i64: 16, 2048>}, {transform_indices = @transform_1, window_bounds = array<i64: 2048, 512>}, {transform_indices = @transform_2, window_bounds = array<i64: 1, 512>}, {transform_indices = @transform_3, window_bounds = array<i64: 512, 128>}, {pipeline_mode = #tpu.pipeline_mode<synchronous>, transform_indices = @transform_4, window_bounds = array<i64: 1, 128>}, {pipeline_mode = #tpu.pipeline_mode<synchronous>, transform_indices = @transform_5, window_bounds = array<i64: 16, 128>}]} {
    %c0_i32 = arith.constant 0 : i32
    %0 = arith.cmpi eq, %arg0, %c0_i32 : i32
    %1 = arith.extui %0 : i1 to i32
    %c0_i32_0 = arith.constant 0 : i32
    %2 = arith.cmpi ne, %1, %c0_i32_0 : i32
    scf.if %2 {
      %c0_15 = arith.constant 0 : index
      %c0_16 = arith.constant 0 : index
      %20 = vector.load %arg5[%c0_15, %c0_16] : memref<1x128xf32, #tpu.memory_space<vmem>>, vector<1x128xf32>
      %21 = vector.shape_cast %20 : vector<1x128xf32> to vector<1x128xf32>
      %22 = vector.broadcast %21 : vector<1x128xf32> to vector<16x128xf32>
      %c0_17 = arith.constant 0 : index
      %c0_18 = arith.constant 0 : index
      %23 = vector.load %arg7[%c0_17, %c0_18] : memref<16x128xf32, #tpu.memory_space<vmem>>, vector<16x128xf32>
      tpu.vector_store %arg7[%c0_17, %c0_18], %22 {strides = array<i32>} : memref<16x128xf32, #tpu.memory_space<vmem>>, vector<16x128xf32>,
    } else {
    }
    %c0 = arith.constant 0 : index
    %c0_1 = arith.constant 0 : index
    %3 = vector.load %arg1[%c0, %c0_1] : memref<16x2048xbf16, #tpu.memory_space<vmem>>, vector<16x2048xbf16>
    %c0_2 = arith.constant 0 : index
    %c0_3 = arith.constant 0 : index
    %4 = vector.load %arg2[%c0_2, %c0_3] : memref<2048x512xbf16, #tpu.memory_space<vmem>>, vector<2048x512xbf16>
    %cst = arith.constant dense<0.000000e+00> : vector<16x512xf32>
    %5 = tpu.matmul %3, %4, %cst {dimension_numbers = #tpu.dot_dimension_numbers<[1], [0], [0], [1], [0, 0, 1, 1], [], []>} : vector<16x2048xbf16>, vector<2048x512xbf16>, vector<16x512xf32> -> vector<16x512xf32>
    %c0_4 = arith.constant 0 : index
    %c0_5 = arith.constant 0 : index
    %6 = vector.load %arg3[%c0_4, %c0_5] : memref<1x512xf32, #tpu.memory_space<vmem>>, vector<1x512xf32>
    %7 = vector.broadcast %6 : vector<1x512xf32> to vector<16x512xf32>
    %8 = arith.addf %5, %7 : vector<16x512xf32>
    %cst_6 = arith.constant 0.000000e+00 : f32
    %9 = vector.broadcast %cst_6 : f32 to vector<16x512xf32>
    %10 = arith.maximumf %8, %9 : vector<16x512xf32>
    %11 = arith.truncf %10 : vector<16x512xf32> to vector<16x512xbf16>
    %c0_7 = arith.constant 0 : index
    %c0_8 = arith.constant 0 : index
    %12 = vector.load %arg7[%c0_7, %c0_8] : memref<16x128xf32, #tpu.memory_space<vmem>>, vector<16x128xf32>
    %c0_9 = arith.constant 0 : index
    %c0_10 = arith.constant 0 : index
    %13 = vector.load %arg4[%c0_9, %c0_10] : memref<512x128xbf16, #tpu.memory_space<vmem>>, vector<512x128xbf16>
    %cst_11 = arith.constant dense<0.000000e+00> : vector<16x128xf32>
    %14 = tpu.matmul %11, %13, %cst_11 {dimension_numbers = #tpu.dot_dimension_numbers<[1], [0], [0], [1], [0, 0, 1, 1], [], []>} : vector<16x512xbf16>, vector<512x128xbf16>, vector<16x128xf32> -> vector<16x128xf32>
    %15 = arith.addf %12, %14 : vector<16x128xf32>
    %c0_12 = arith.constant 0 : index
    %c0_13 = arith.constant 0 : index
    %16 = vector.load %arg7[%c0_12, %c0_13] : memref<16x128xf32, #tpu.memory_space<vmem>>, vector<16x128xf32>
    tpu.vector_store %arg7[%c0_12, %c0_13], %15 {strides = array<i32>} : memref<16x128xf32, #tpu.memory_space<vmem>>, vector<16x128xf32>,
    %c3_i32 = arith.constant 3 : i32
    %17 = arith.cmpi eq, %arg0, %c3_i32 : i32
    %18 = arith.extui %17 : i1 to i32
    %c0_i32_14 = arith.constant 0 : i32
    %19 = arith.cmpi ne, %18, %c0_i32_14 : i32
    scf.if %19 {
      %c0_15 = arith.constant 0 : index
      %c0_16 = arith.constant 0 : index
      %20 = vector.load %arg7[%c0_15, %c0_16] : memref<16x128xf32, #tpu.memory_space<vmem>>, vector<16x128xf32>
      %c0_17 = arith.constant 0 : index
      %c0_18 = arith.constant 0 : index
      %21 = vector.load %arg6[%c0_17, %c0_18] : memref<16x128xf32, #tpu.memory_space<vmem>>, vector<16x128xf32>
      tpu.vector_store %arg6[%c0_17, %c0_18], %20 {strides = array<i32>} : memref<16x128xf32, #tpu.memory_space<vmem>>, vector<16x128xf32>,
    } else {
    }
    return
  }
  func.func @transform_0(%arg0: i32) -> (i32, i32) {
    %c0_i32 = arith.constant 0 : i32
    %c0_i32_0 = arith.constant 0 : i32
    %c0_i32_1 = arith.constant 0 : i32
    return %c0_i32, %c0_i32_0 : i32, i32
  }
  func.func @transform_1(%arg0: i32) -> (i32, i32) {
    %c0_i32 = arith.constant 0 : i32
    %c0_i32_0 = arith.constant 0 : i32
    return %c0_i32, %arg0 : i32, i32
  }
  func.func @transform_2(%arg0: i32) -> (i32, i32) {
    %c0_i32 = arith.constant 0 : i32
    %c0_i32_0 = arith.constant 0 : i32
    return %c0_i32, %arg0 : i32, i32
  }
  func.func @transform_3(%arg0: i32) -> (i32, i32) {
    %c0_i32 = arith.constant 0 : i32
    %c0_i32_0 = arith.constant 0 : i32
    return %arg0, %c0_i32 : i32, i32
  }
  func.func @transform_4(%arg0: i32) -> (i32, i32) {
    %c0_i32 = arith.constant 0 : i32
    %c0_i32_0 = arith.constant 0 : i32
    %c0_i32_1 = arith.constant 0 : i32
    return %c0_i32, %c0_i32_0 : i32, i32
  }
  func.func @transform_5(%arg0: i32) -> (i32, i32) {
    %c0_i32 = arith.constant 0 : i32
    %c0_i32_0 = arith.constant 0 : i32
    %c0_i32_1 = arith.constant 0 : i32
    return %c0_i32, %c0_i32_0 : i32, i32
  }
}

</mosaic_0001>

<bundles_post_ra>
// kernel: cnn_forward.3
= control target key start
LH: loop header
LB: loop body
LE: loop exit
PB: predicated region body
PF: predicated region fallthrough
CT: control target
= control target key end

     0   :  { %10 = vsyncpa [#allocation4], 0  ;;  %s6995_s0 = inlined_call_operand.vmem [shape: bf16[16,2048], index: 0, kind: input, shape index: {}]   ;;  %s6996_s1 = inlined_call_operand.hbm [shape: bf16[2048,2048], index: 1, kind: input, shape index: {}]   ;;  %s6997_s2 = inlined_call_operand.vmem [shape: f32[1,2048], index: 2, kind: input, shape index: {}]   ;;  %s6998_s3 = inlined_call_operand.vmem [shape: bf16[2048,128], index: 3, kind: input, shape index: {}]   ;;  %s6999_s4 = inlined_call_operand.vmem [shape: f32[1,128], index: 4, kind: input, shape index: {}]   ;;  %s7000_s5 = inlined_call_operand.vmem [shape: f32[16,128], index: 5, kind: output, shape index: {}]  }
   0x1   :  { %12 = vsyncpa [#allocation4 + $0x1], 0  ;;  %s6215_s18 = smov 0   ;;  %s6217_s19 = smov 0  }
   0x2   :  { %s6219_s20 = smov 0   ;;  %s6221_s21 = smov 0  }
   0x3 LB: > { %s6234_s22 = sadd.s32 4294967295, %s6179_s21   ;;  %s6237_s23 = sadd.s32 1, %s6179_s21   ;;  %s6179_s21 = sphi %s6221_s21, %s7006_s21   ;;  %s6175_s20 = sphi %s6219_s20, %s7005_s20   ;;  %s6171_s19 = sphi %s6217_s19, %s7004_s19   ;;  %s6167_s18 = sphi %s6215_s18, %s7003_s18  }
   0x4   : > { %s43_s24 = ssub.s32 %s6179_s21, %s6237_s23  ;;  %s46_s25 = sadd.s32 1, %s6175_s20 }
   0x5   : > { %p44_p0 = scmp.eq.s32.totalorder %s43_s24, 0  ;;  %p53_p1 = scmp.ne.s32.totalorder %s6175_s20, %s6171_s19 }
   0x6   : > { %p54_p2 = scmp.eq.s32.totalorder %s6179_s21, 0  ;;  %p59_p3 = scmp.ne.s32.totalorder %s6171_s19, %s6167_s18 }
   0x7   : > { %s6247_s26 = scalar_select %p44_p0, %s6175_s20, %s46_s25  }
   0x8   : > { %p55_p4 = por %p54_p2, %p53_p1  ;;  %p60_p5 = scmp.eq.s32.totalorder %s6234_s22, 0 }
   0x9   : > { %p5279_p6 = scmp.lt.s32.totalorder %s6179_s21, 4  ;;  %s183_s28 = sand.u32 1, %s6175_s20  }
   0xa   : > { %p6251_p7 = por %p60_p5, %p59_p3  ;;  %s4591_s29 = sshll.u32 %s183_s28, 12 }
   0xb   : > { %s5164_s30 = sshll.u32 %s6179_s21, 8  ;;  %s187_s9 = scalar_lea.vmem [#allocation3], %s4591_s29 }
   0xc   : > { %s6260_s8 = scalar_lea.hbm %s6996_s1, %s5164_s30  ;;  %s194_s10 = sshll.u32 %s187_s9, 4  ;;  %s6262_s10 = int_to_ptr.vmem [resolvable:$true] %s194_s10 }
   0xd   : > { %p6264_p8 = pnand %p5279_p6, %p55_p4  ;;  %s6268_s12 = scalar_lea.sflag [#allocation4], %s183_s28 }
   0xe   : > { %s6115_s13 = scalar_lea.hbm %s6260_s8, 65536  ;;  %s6120_s16 = scalar_lea.hbm %s6996_s1, 262144 }
   0xf   : > { %p6116_p9 = scmp.ne.s32.totalorder %s6260_s8, %s6115_s13  ;;  %p6117_p10 = pneg %p6264_p8 }
  0x10   : > { %p6121_p13 = scmp.lt.u32.totalorder %s6260_s8, %s6996_s1  ;;  %p6122_p0 = scmp.lt.u32.totalorder %s6120_s16, %s6115_s13 }
  0x11   : > { %p6118_p11 = pnand %p6117_p10, %p6116_p9  ;;  %p6124_p2 = scmp.lt.u32.totalorder %s6115_s13, %s6260_s8 }
  0x12   : > { %p6123_p1 = por %p6122_p0, %p6121_p13 }
  0x13   : > { %p6119_p12 = pneg %p6118_p11 }
  0x14   : > { %p6125_p3 = por %p6124_p2, %p6123_p1 }
  0x16   : > { %p6126_p4 = pnand %p6125_p3, %p6119_p12 }
  0x18   : > { %6129 = shalt.err (!%p6126_p4)
}
  0x19   : > { %s6130_s24 = scalar_lea.vmem %s6262_s10, 65536  ;;  %s6181_s25 = smov [#allocation3]  }
  0x1a   : > { %p6131_p5 = scmp.ne.s32.totalorder %s6262_s10, %s6130_s24  ;;  %s6135_s28 = sshll.u32 %s6181_s25, 4  ;;  %s6136_s28 = int_to_ptr.vmem [resolvable:$false] %s6135_s28 }
  0x1b   : > { %s6137_s29 = scalar_lea.vmem %s6136_s28, 131072  ;;  %p6138_p11 = scmp.lt.s32.totalorder %s6262_s10, %s6136_s28 }
  0x1c   : > { %p6133_p6 = pnand %p6131_p5, %p6117_p10  ;;  %p6139_p13 = scmp.lt.s32.totalorder %s6137_s29, %s6130_s24 }
  0x1e   : > { %p6134_p9 = pneg %p6133_p6  ;;  %p6140_p0 = por %p6139_p13, %p6138_p11 }
  0x20   : > { %p6141_p1 = pnand %p6140_p0, %p6134_p9 }
  0x22   : > { %6144 = shalt.err (!%p6141_p1)
}
  0x23   : > { %s6182_s30 = smov 1024   ;;  %s6183_s6 = smov 256  }
  0x24   : > { %s6184_s7 = smov 16   ;;  %p4594_p10 = scmp.ge.s32.totalorder %s6179_s21, 1 }
  0x25   : > { %5278 = dma.hbm_to_vmem [thread:$0]  (!%p6264_p8), %s6260_s8, 65536, %s6262_s10, %s6268_s12, %s6182_s30, %s6183_s6, %s6184_s7  }
  0x26   : > { %p219_p12 = scmp.lt.s32.totalorder %s6179_s21, 5 }
  0x28   : > { %p220_p2 = pnand %p4594_p10, %p219_p12 }
  0x29   : > { %s225_s9 = sand.u32 (!%p220_p2), 1, %s6171_s19  }
  0x2a   : > { %223 = sbr.rel (%p220_p2) target bundleno = 1027 (0x403), region = 40  ;;  %s4595_s13 = sshll.u32 (!%p220_p2), %s225_s9, 12 }
  0x2b   : > { %s226_s14 = scalar_lea.sflag (!%p220_p2), [#allocation4], %s225_s9  ;;  %s6299_s15 = scalar_lea.vmem (!%p220_p2), [#allocation3], %s4595_s13 }
  0x31   : > { %6162 = dma.done.wait (%p6251_p7), %s226_s14, 65536  }
  0x32   : > { %6164 = vsyncadd (%p6251_p7), %s226_s14, 4294901760  ;;  %s4596_s11 = sshll.u32 %s6234_s22, 2  ;;  %s4597_s8 = sshll.u32 %s6234_s22, 6 }
  0x33   : > { %p262_p8 = scmp.lt.s32.totalorder %s4596_s11, 15  ;;  %p267_p3 = scmp.lt.s32.totalorder %s4597_s8, 255 }
  0x34   : > { %p4599_p7 = scmp.ne.s32.totalorder %s6234_s22, 0 }
  0x35   : > { %s7008_s11 = smov (!%p262_p8, %s4596_s11), 15  ;;  %s7010_s8 = smov (!%p267_p3, %s4597_s8), 255 }
  0x36   : > { %s264_s12 = scalar_lea.vmem %s6997_s2, %s7008_s11  ;;  %s4598_s16 = sshll.u32 %s7010_s8, 2  ;;  %v4600_v0 = vld [vmem:[%s6999_s4] ss:$0 sm:$0xff] (!%p4599_p7) }
  0x37   : > { %s6316_s27 = scalar_lea.vmem %s6998_s3, %s4598_s16  ;;  %276 = sbr.rel (%p4599_p7) target bundleno = 62 (0x3e), region = 48  ;;  %284 = vst [vmem:[#allocation2] sm:$0xff] (!%p4599_p7), %v4600_v0  ;;  %285 = vst [vmem:[#allocation2 + $0x8] sm:$0xff] (!%p4599_p7), %v4600_v0 }
  0x3e PF: > { %v5315_v1 = vld [vmem:[%s6299_s15 + $0x4] ss:$16 sps:$4 sm:$0xff]   ;;  %v5317_v2 = vld [vmem:[%s6299_s15 + $0xc] ss:$16 sps:$4 sm:$0xff]   ;;  %v5319_v3 = vld [vmem:[%s6299_s15] ss:$16 sps:$4 sm:$0xff]  }
  0x3f   : > { %3476 = vmatprep.subr.bf16.mxu0 %v5315_v1  ;;  %v5320_v4 = vld [vmem:[%s6299_s15 + $0x8] ss:$16 sps:$4 sm:$0xff]   ;;  %3820 = vmatprep.subr.bf16.mxu1 %v5317_v2  ;;  %v5321_v5 = vld [vmem:[%s6299_s15 + $0x24] ss:$16 sps:$4 sm:$0xff]   ;;  %v5323_v6 = vld [vmem:[%s6299_s15 + $0x2c] ss:$16 sps:$4 sm:$0xff]  }
  0x40   : > { %3477 = vmatpush1.bf16.msra.mxu0 %v5319_v3  ;;  %3821 = vmatpush1.bf16.msra.mxu1 %v5320_v4  ;;  %v5325_v7 = vld [vmem:[%s6299_s15 + $0x20] ss:$16 sps:$4 sm:$0xff]   ;;  %v5326_v8 = vld [vmem:[%s6299_s15 + $0x28] ss:$16 sps:$4 sm:$0xff]   ;;  %v5327_v9 = vld [vmem:[%s6299_s15 + $0x44] ss:$16 sps:$4 sm:$0xff]  }
  0x41   : > { %3478 = vmatprep.subr.bf16.mxu0 %v5321_v5  ;;  %3822 = vmatprep.subr.bf16.mxu1 %v5323_v6  ;;  %v5329_v10 = vld [vmem:[%s6299_s15 + $0x4c] ss:$16 sps:$4 sm:$0xff]   ;;  %v5331_v11 = vld [vmem:[%s6299_s15 + $0x40] ss:$16 sps:$4 sm:$0xff]   ;;  %v5332_v12 = vld [vmem:[%s6299_s15 + $0x48] ss:$16 sps:$4 sm:$0xff]  }
  0x42   : > { %v5333_v13 = vld [vmem:[%s6299_s15 + $0x64] ss:$16 sps:$4 sm:$0xff]   ;;  %v5335_v14 = vld [vmem:[%s6299_s15 + $0x6c] ss:$16 sps:$4 sm:$0xff]   ;;  %v5337_v15 = vld [vmem:[%s6299_s15 + $0x60] ss:$16 sps:$4 sm:$0xff]  }
  0x43   : > { %v5338_v16 = vld [vmem:[%s6299_s15 + $0x68] ss:$16 sps:$4 sm:$0xff]   ;;  %v5339_v17 = vld [vmem:[%s6299_s15 + $0x84] ss:$16 sps:$4 sm:$0xff]   ;;  %v5341_v18 = vld [vmem:[%s6299_s15 + $0x8c] ss:$16 sps:$4 sm:$0xff]  }
  0x44   : > { %3479 = vmatpush1.bf16.msra.mxu0 %v5325_v7  ;;  %3823 = vmatpush1.bf16.msra.mxu1 %v5326_v8  ;;  %v5343_v19 = vld [vmem:[%s6299_s15 + $0x80] ss:$16 sps:$4 sm:$0xff]   ;;  %v5344_v20 = vld [vmem:[%s6299_s15 + $0x88] ss:$16 sps:$4 sm:$0xff]   ;;  %v5345_v21 = vld [vmem:[%s6299_s15 + $0xa4] ss:$16 sps:$4 sm:$0xff]  }
  0x45   : > { %3480 = vmatprep.subr.bf16.mxu0 %v5327_v9  ;;  %3824 = vmatprep.subr.bf16.mxu1 %v5329_v10  ;;  %v5347_v22 = vld [vmem:[%s6299_s15 + $0xac] ss:$16 sps:$4 sm:$0xff]   ;;  %v5349_v23 = vld [vmem:[%s6299_s15 + $0xa0] ss:$16 sps:$4 sm:$0xff]   ;;  %v5350_v24 = vld [vmem:[%s6299_s15 + $0xa8] ss:$16 sps:$4 sm:$0xff]  }
  0x46   : > { %v5351_v25 = vld [vmem:[%s6299_s15 + $0xc4] ss:$16 sps:$4 sm:$0xff]   ;;  %v5353_v26 = vld [vmem:[%s6299_s15 + $0xcc] ss:$16 sps:$4 sm:$0xff]   ;;  %v5355_v27 = vld [vmem:[%s6299_s15 + $0xc0] ss:$16 sps:$4 sm:$0xff]  }
  0x47   : > { %v5356_v28 = vld [vmem:[%s6299_s15 + $0xc8] ss:$16 sps:$4 sm:$0xff]   ;;  %v5357_v29 = vld [vmem:[%s6299_s15 + $0xe4] ss:$16 sps:$4 sm:$0xff]   ;;  %v5359_v30 = vld [vmem:[%s6299_s15 + $0xec] ss:$16 sps:$4 sm:$0xff]  }
  0x48   : > { %3481 = vmatpush1.bf16.msra.mxu0 %v5331_v11  ;;  %3825 = vmatpush1.bf16.msra.mxu1 %v5332_v12  ;;  %v5361_v31 = vld [vmem:[%s6299_s15 + $0xe0] ss:$16 sps:$4 sm:$0xff]   ;;  %v5362_v32 = vld [vmem:[%s6299_s15 + $0xe8] ss:$16 sps:$4 sm:$0xff]   ;;  %v5363_v33 = vld [vmem:[%s6299_s15 + $0x104] ss:$16 sps:$4 sm:$0xff]  }
  0x49   : > { %3482 = vmatprep.subr.bf16.mxu0 %v5333_v13  ;;  %3826 = vmatprep.subr.bf16.mxu1 %v5335_v14  ;;  %v5365_v34 = vld [vmem:[%s6299_s15 + $0x10c] ss:$16 sps:$4 sm:$0xff]   ;;  %v5367_v35 = vld [vmem:[%s6299_s15 + $0x100] ss:$16 sps:$4 sm:$0xff]   ;;  %v5368_v36 = vld [vmem:[%s6299_s15 + $0x108] ss:$16 sps:$4 sm:$0xff]  }
  0x4a   : > { %v5369_v37 = vld [vmem:[%s6299_s15 + $0x124] ss:$16 sps:$4 sm:$0xff]   ;;  %v5371_v38 = vld [vmem:[%s6299_s15 + $0x12c] ss:$16 sps:$4 sm:$0xff]   ;;  %v5373_v39 = vld [vmem:[%s6299_s15 + $0x120] ss:$16 sps:$4 sm:$0xff]  }
  0x4b   : > { %v5374_v40 = vld [vmem:[%s6299_s15 + $0x128] ss:$16 sps:$4 sm:$0xff]   ;;  %v5375_v41 = vld [vmem:[%s6299_s15 + $0x144] ss:$16 sps:$4 sm:$0xff]   ;;  %v5377_v42 = vld [vmem:[%s6299_s15 + $0x14c] ss:$16 sps:$4 sm:$0xff]  }
  0x4c   : > { %3483 = vmatpush1.bf16.msra.mxu0 %v5337_v15  ;;  %3827 = vmatpush1.bf16.msra.mxu1 %v5338_v16  ;;  %v5379_v43 = vld [vmem:[%s6299_s15 + $0x140] ss:$16 sps:$4 sm:$0xff]   ;;  %v5380_v44 = vld [vmem:[%s6299_s15 + $0x148] ss:$16 sps:$4 sm:$0xff]   ;;  %v5381_v45 = vld [vmem:[%s6299_s15 + $0x164] ss:$16 sps:$4 sm:$0xff]  }
  0x4d   : > { %3484 = vmatprep.subr.bf16.mxu0 %v5339_v17  ;;  %3828 = vmatprep.subr.bf16.mxu1 %v5341_v18  ;;  %v5383_v46 = vld [vmem:[%s6299_s15 + $0x16c] ss:$16 sps:$4 sm:$0xff]   ;;  %v286_v47 = vld [vmem:[%s6995_s0] sm:$0xff]  ;;  %v5386_v50 = vld [vmem:[%s6299_s15 + $0x168] ss:$16 sps:$4 sm:$0xff]   ;;  %p5161_p4 = scmp.ne.s32.totalorder %s6234_s22, 3 }
  0x4e   : > { %v294_v48 = vld [vmem:[%s6995_s0 + $0x40] sm:$0xff]  ;;  %v5389_v53 = vld [vmem:[%s6299_s15 + $0x18c] ss:$16 sps:$4 sm:$0xff]   ;;  %v5392_v55 = vld [vmem:[%s6299_s15 + $0x188] ss:$16 sps:$4 sm:$0xff]  }
  0x4f   : > { %v5385_v49 = vld [vmem:[%s6299_s15 + $0x160] ss:$16 sps:$4 sm:$0xff]   ;;  %v4602_v51 = vcombine.high %v286_v47, %v294_v48  ;;  %v5387_v52 = vld [vmem:[%s6299_s15 + $0x184] ss:$16 sps:$4 sm:$0xff]   ;;  %v5395_v57 = vld [vmem:[%s6299_s15 + $0x1ac] ss:$16 sps:$4 sm:$0xff]   ;;  %v4601_v6 = vcombine.low %v286_v47, %v294_v48 }
  0x50   : > { %3485 = vmatpush1.bf16.msra.mxu0 %v5343_v19  ;;  %3829 = vmatpush1.bf16.msra.mxu1 %v5344_v20  ;;  %v5391_v54 = vld [vmem:[%s6299_s15 + $0x180] ss:$16 sps:$4 sm:$0xff]   ;;  %v5393_v56 = vld [vmem:[%s6299_s15 + $0x1a4] ss:$16 sps:$4 sm:$0xff]   ;;  %v5398_v59 = vld [vmem:[%s6299_s15 + $0x1a8] ss:$16 sps:$4 sm:$0xff]  }
  0x51   : > { %3486 = vmatprep.subr.bf16.mxu0 %v5345_v21  ;;  %3830 = vmatprep.subr.bf16.mxu1 %v5347_v22  ;;  %v5397_v58 = vld [vmem:[%s6299_s15 + $0x1a0] ss:$16 sps:$4 sm:$0xff]   ;;  %v5399_v60 = vld [vmem:[%s6299_s15 + $0x1c4] ss:$16 sps:$4 sm:$0xff]   ;;  %v5401_v61 = vld [vmem:[%s6299_s15 + $0x1cc] ss:$16 sps:$4 sm:$0xff]  }
  0x52   : > { %3508 = vmatprep.mubr.bf16.mxu0 %v4602_v51  ;;  %3852 = vmatprep.mubr.bf16.mxu1 %v4602_v51  ;;  %v5403_v62 = vld [vmem:[%s6299_s15 + $0x1c0] ss:$16 sps:$4 sm:$0xff]   ;;  %v5404_v63 = vld [vmem:[%s6299_s15 + $0x1c8] ss:$16 sps:$4 sm:$0xff]   ;;  %v5405_v0 = vld [vmem:[%s6299_s15 + $0x1e4] ss:$16 sps:$4 sm:$0xff]  }
  0x53   : > { %v5407_v1 = vld [vmem:[%s6299_s15 + $0x1ec] ss:$16 sps:$4 sm:$0xff]   ;;  %v5409_v2 = vld [vmem:[%s6299_s15 + $0x1e0] ss:$16 sps:$4 sm:$0xff]   ;;  %v5410_v3 = vld [vmem:[%s6299_s15 + $0x1e8] ss:$16 sps:$4 sm:$0xff]  }
  0x54   : > { %3487 = vmatpush1.bf16.msra.mxu0 %v5349_v23  ;;  %3831 = vmatpush1.bf16.msra.mxu1 %v5350_v24  ;;  %v5413_v4 = vld [vmem:[%s6299_s15 + $0x204] ss:$16 sps:$4 sm:$0xff]   ;;  %v5416_v5 = vld [vmem:[%s6299_s15 + $0x20c] ss:$16 sps:$4 sm:$0xff]   ;;  %v5411_v7 = vld [vmem:[%s6299_s15 + $0x200] ss:$16 sps:$4 sm:$0xff]  }
  0x55   : > { %3488 = vmatprep.subr.bf16.mxu0 %v5351_v25  ;;  %3832 = vmatprep.subr.bf16.mxu1 %v5353_v26  ;;  %v5414_v8 = vld [vmem:[%s6299_s15 + $0x208] ss:$16 sps:$4 sm:$0xff]   ;;  %v5419_v9 = vld [vmem:[%s6299_s15 + $0x224] ss:$16 sps:$4 sm:$0xff]   ;;  %v5422_v10 = vld [vmem:[%s6299_s15 + $0x22c] ss:$16 sps:$4 sm:$0xff]  }
  0x56   : > { %v5417_v11 = vld [vmem:[%s6299_s15 + $0x220] ss:$16 sps:$4 sm:$0xff]   ;;  %v5420_v12 = vld [vmem:[%s6299_s15 + $0x228] ss:$16 sps:$4 sm:$0xff]   ;;  %v5425_v13 = vld [vmem:[%s6299_s15 + $0x244] ss:$16 sps:$4 sm:$0xff]  }
  0x57   : > { %v5428_v14 = vld [vmem:[%s6299_s15 + $0x24c] ss:$16 sps:$4 sm:$0xff]   ;;  %v5423_v15 = vld [vmem:[%s6299_s15 + $0x240] ss:$16 sps:$4 sm:$0xff]   ;;  %v5426_v16 = vld [vmem:[%s6299_s15 + $0x248] ss:$16 sps:$4 sm:$0xff]  }
  0x58   : > { %3489 = vmatpush1.bf16.msra.mxu0 %v5355_v27  ;;  %3833 = vmatpush1.bf16.msra.mxu1 %v5356_v28  ;;  %v5431_v17 = vld [vmem:[%s6299_s15 + $0x264] ss:$16 sps:$4 sm:$0xff]   ;;  %v5434_v18 = vld [vmem:[%s6299_s15 + $0x26c] ss:$16 sps:$4 sm:$0xff]   ;;  %v5429_v19 = vld [vmem:[%s6299_s15 + $0x260] ss:$16 sps:$4 sm:$0xff]  }
  0x59   : > { %3490 = vmatprep.subr.bf16.mxu0 %v5357_v29  ;;  %3834 = vmatprep.subr.bf16.mxu1 %v5359_v30  ;;  %v5432_v20 = vld [vmem:[%s6299_s15 + $0x268] ss:$16 sps:$4 sm:$0xff]   ;;  %v5437_v21 = vld [vmem:[%s6299_s15 + $0x284] ss:$16 sps:$4 sm:$0xff]   ;;  %v5440_v22 = vld [vmem:[%s6299_s15 + $0x28c] ss:$16 sps:$4 sm:$0xff]  }
  0x5a   : > { %v5435_v23 = vld [vmem:[%s6299_s15 + $0x280] ss:$16 sps:$4 sm:$0xff]   ;;  %v5438_v24 = vld [vmem:[%s6299_s15 + $0x288] ss:$16 sps:$4 sm:$0xff]   ;;  %v5443_v25 = vld [vmem:[%s6299_s15 + $0x2a4] ss:$16 sps:$4 sm:$0xff]  }
  0x5b   : > { %v5446_v26 = vld [vmem:[%s6299_s15 + $0x2ac] ss:$16 sps:$4 sm:$0xff]   ;;  %v5441_v27 = vld [vmem:[%s6299_s15 + $0x2a0] ss:$16 sps:$4 sm:$0xff]   ;;  %v5444_v28 = vld [vmem:[%s6299_s15 + $0x2a8] ss:$16 sps:$4 sm:$0xff]  }
  0x5c   : > { %3491 = vmatpush1.bf16.msra.mxu0 %v5361_v31  ;;  %3835 = vmatpush1.bf16.msra.mxu1 %v5362_v32  ;;  %v5449_v29 = vld [vmem:[%s6299_s15 + $0x2c4] ss:$16 sps:$4 sm:$0xff]   ;;  %v5452_v30 = vld [vmem:[%s6299_s15 + $0x2cc] ss:$16 sps:$4 sm:$0xff]   ;;  %v5468_v47 = vld [vmem:[%s6299_s15 + $0x328] ss:$16 sps:$4 sm:$0xff]  }
  0x5d   : > { %3492 = vmatprep.subr.bf16.mxu0 %v5363_v33  ;;  %3836 = vmatprep.subr.bf16.mxu1 %v5365_v34  ;;  %v6421_v31 = vld [vmem:[%s6995_s0 + $0x8] sm:$0xff]  ;;  %v5447_v33 = vld [vmem:[%s6299_s15 + $0x2c0] ss:$16 sps:$4 sm:$0xff]   ;;  %v5473_v48 = vld [vmem:[%s6299_s15 + $0x344] ss:$16 sps:$4 sm:$0xff]  }
  0x5e   : > { %v6426_v32 = vld [vmem:[%s6995_s0 + $0x48] sm:$0xff] }
  0x5f   : > { %v5450_v34 = vld [vmem:[%s6299_s15 + $0x2c8] ss:$16 sps:$4 sm:$0xff]  }
  0x60   : > { %3493 = vmatpush1.bf16.msra.mxu0 %v5367_v35  ;;  %3837 = vmatpush1.bf16.msra.mxu1 %v5368_v36  ;;  %v4604_v35 = vcombine.high %v6421_v31, %v6426_v32  ;;  %v5455_v36 = vld [vmem:[%s6299_s15 + $0x2e4] ss:$16 sps:$4 sm:$0xff]   ;;  %v5474_v51 = vld [vmem:[%s6299_s15 + $0x348] ss:$16 sps:$4 sm:$0xff]  }
  0x61   : > { %3494 = vmatprep.subr.bf16.mxu0 %v5369_v37  ;;  %3838 = vmatprep.subr.bf16.mxu1 %v5371_v38  ;;  %v5458_v37 = vld [vmem:[%s6299_s15 + $0x2ec] ss:$16 sps:$4 sm:$0xff]   ;;  %v5453_v38 = vld [vmem:[%s6299_s15 + $0x2e0] ss:$16 sps:$4 sm:$0xff]  }
  0x64   : > { %3495 = vmatpush1.bf16.msra.mxu0 %v5373_v39  ;;  %3839 = vmatpush1.bf16.msra.mxu1 %v5374_v40  ;;  %v5456_v39 = vld [vmem:[%s6299_s15 + $0x2e8] ss:$16 sps:$4 sm:$0xff]   ;;  %v5461_v40 = vld [vmem:[%s6299_s15 + $0x304] ss:$16 sps:$4 sm:$0xff]  }
  0x65   : > { %3496 = vmatprep.subr.bf16.mxu0 %v5375_v41  ;;  %3840 = vmatprep.subr.bf16.mxu1 %v5377_v42  ;;  %v5464_v41 = vld [vmem:[%s6299_s15 + $0x30c] ss:$16 sps:$4 sm:$0xff]   ;;  %v5459_v42 = vld [vmem:[%s6299_s15 + $0x300] ss:$16 sps:$4 sm:$0xff]  }
  0x68   : > { %3497 = vmatpush1.bf16.msra.mxu0 %v5379_v43  ;;  %3841 = vmatpush1.bf16.msra.mxu1 %v5380_v44  ;;  %v5462_v43 = vld [vmem:[%s6299_s15 + $0x308] ss:$16 sps:$4 sm:$0xff]   ;;  %v5467_v44 = vld [vmem:[%s6299_s15 + $0x324] ss:$16 sps:$4 sm:$0xff]  }
  0x69   : > { %3498 = vmatprep.subr.bf16.mxu0 %v5381_v45  ;;  %3842 = vmatprep.subr.bf16.mxu1 %v5383_v46  ;;  %v5470_v45 = vld [vmem:[%s6299_s15 + $0x32c] ss:$16 sps:$4 sm:$0xff]   ;;  %v5465_v46 = vld [vmem:[%s6299_s15 + $0x320] ss:$16 sps:$4 sm:$0xff]  }
  0x6c   : > { %3499 = vmatpush1.bf16.msra.mxu0 %v5385_v49  ;;  %3843 = vmatpush1.bf16.msra.mxu1 %v5386_v50  ;;  %v5476_v49 = vld [vmem:[%s6299_s15 + $0x34c] ss:$16 sps:$4 sm:$0xff]   ;;  %v5471_v50 = vld [vmem:[%s6299_s15 + $0x340] ss:$16 sps:$4 sm:$0xff]  }
  0x6d   : > { %3500 = vmatprep.subr.bf16.mxu0 %v5387_v52  ;;  %3844 = vmatprep.subr.bf16.mxu1 %v5389_v53  ;;  %v5479_v52 = vld [vmem:[%s6299_s15 + $0x364] ss:$16 sps:$4 sm:$0xff]   ;;  %v5482_v53 = vld [vmem:[%s6299_s15 + $0x36c] ss:$16 sps:$4 sm:$0xff]  }
  0x70   : > { %3501 = vmatpush1.bf16.msra.mxu0 %v5391_v54  ;;  %3845 = vmatpush1.bf16.msra.mxu1 %v5392_v55  ;;  %v5477_v54 = vld [vmem:[%s6299_s15 + $0x360] ss:$16 sps:$4 sm:$0xff]   ;;  %v5480_v55 = vld [vmem:[%s6299_s15 + $0x368] ss:$16 sps:$4 sm:$0xff]  }
  0x71   : > { %3502 = vmatprep.subr.bf16.mxu0 %v5393_v56  ;;  %3846 = vmatprep.subr.bf16.mxu1 %v5395_v57  ;;  %v5485_v56 = vld [vmem:[%s6299_s15 + $0x384] ss:$16 sps:$4 sm:$0xff]   ;;  %v5488_v57 = vld [vmem:[%s6299_s15 + $0x38c] ss:$16 sps:$4 sm:$0xff]  }
  0x74   : > { %3503 = vmatpush1.bf16.msra.mxu0 %v5397_v58  ;;  %3847 = vmatpush1.bf16.msra.mxu1 %v5398_v59  ;;  %v5483_v58 = vld [vmem:[%s6299_s15 + $0x380] ss:$16 sps:$4 sm:$0xff]   ;;  %v5486_v59 = vld [vmem:[%s6299_s15 + $0x388] ss:$16 sps:$4 sm:$0xff]  }
  0x75   : > { %3504 = vmatprep.subr.bf16.mxu0 %v5399_v60  ;;  %3848 = vmatprep.subr.bf16.mxu1 %v5401_v61  ;;  %v5491_v60 = vld [vmem:[%s6299_s15 + $0x3a4] ss:$16 sps:$4 sm:$0xff]   ;;  %v5494_v61 = vld [vmem:[%s6299_s15 + $0x3ac] ss:$16 sps:$4 sm:$0xff]  }
  0x78   : > { %3505 = vmatpush1.bf16.msra.mxu0 %v5403_v62  ;;  %3849 = vmatpush1.bf16.msra.mxu1 %v5404_v63  ;;  %v5489_v62 = vld [vmem:[%s6299_s15 + $0x3a0] ss:$16 sps:$4 sm:$0xff]   ;;  %v5492_v63 = vld [vmem:[%s6299_s15 + $0x3a8] ss:$16 sps:$4 sm:$0xff]  }
  0x79   : > { %3506 = vmatprep.subr.bf16.mxu0 %v5405_v0  ;;  %3850 = vmatprep.subr.bf16.mxu1 %v5407_v1  ;;  %v5497_v0 = vld [vmem:[%s6299_s15 + $0x3c4] ss:$16 sps:$4 sm:$0xff]   ;;  %v5500_v1 = vld [vmem:[%s6299_s15 + $0x3cc] ss:$16 sps:$4 sm:$0xff]  }
  0x7c   : > { %3507 = vmatpush1.bf16.msra.mxu0 %v5409_v2  ;;  %3851 = vmatpush1.bf16.msra.mxu1 %v5410_v3  ;;  %v5495_v2 = vld [vmem:[%s6299_s15 + $0x3c0] ss:$16 sps:$4 sm:$0xff]   ;;  %v5498_v3 = vld [vmem:[%s6299_s15 + $0x3c8] ss:$16 sps:$4 sm:$0xff]  }
  0x7d   : > { %3519 = vmatprep.subr.bf16.mxu0 %v5413_v4  ;;  %3863 = vmatprep.subr.bf16.mxu1 %v5416_v5  ;;  %v5503_v4 = vld [vmem:[%s6299_s15 + $0x3e4] ss:$16 sps:$4 sm:$0xff]   ;;  %v5506_v5 = vld [vmem:[%s6299_s15 + $0x3ec] ss:$16 sps:$4 sm:$0xff]  }
  0x7f   : > { %3509 = vmatmul.mubr.bf16.vlgmr.msra.gmra.mrb[0].mxu0 %v4601_v6  ;;  %3853 = vmatmul.mubr.bf16.vlgmr.msra.gmra.mrb[0].mxu1 %v4601_v6  ;;  %v5501_v6 = vld [vmem:[%s6299_s15 + $0x3e0] ss:$16 sps:$4 sm:$0xff]  }
  0x80   : > { %3520 = vmatpush1.bf16.msra.mxu0 %v5411_v7  ;;  %3864 = vmatpush1.bf16.msra.mxu1 %v5414_v8  ;;  %v5504_v7 = vld [vmem:[%s6299_s15 + $0x3e8] ss:$16 sps:$4 sm:$0xff]   ;;  %v5509_v8 = vld [vmem:[%s6299_s15 + $0x404] ss:$16 sps:$4 sm:$0xff]  }
  0x81   : > { %3521 = vmatprep.subr.bf16.mxu0 %v5419_v9  ;;  %3865 = vmatprep.subr.bf16.mxu1 %v5422_v10  ;;  %v5512_v9 = vld [vmem:[%s6299_s15 + $0x40c] ss:$16 sps:$4 sm:$0xff]   ;;  %v4603_v10 = vcombine.low %v6421_v31, %v6426_v32  ;;  %v5534_v31 = vld [vmem:[%s6299_s15 + $0x488] ss:$16 sps:$4 sm:$0xff]   ;;  %v5539_v32 = vld [vmem:[%s6299_s15 + $0x4a4] ss:$16 sps:$4 sm:$0xff]  }
  0x82   : > { %3551 = vmatprep.mubr.bf16.mxu0 %v4604_v35  ;;  %3895 = vmatprep.mubr.bf16.mxu1 %v4604_v35  ;;  %v5540_v35 = vld [vmem:[%s6299_s15 + $0x4a8] ss:$16 sps:$4 sm:$0xff]  }
  0x84   : > { %3522 = vmatpush1.bf16.msra.mxu0 %v5417_v11  ;;  %3866 = vmatpush1.bf16.msra.mxu1 %v5420_v12  ;;  %v5507_v11 = vld [vmem:[%s6299_s15 + $0x400] ss:$16 sps:$4 sm:$0xff]   ;;  %v5510_v12 = vld [vmem:[%s6299_s15 + $0x408] ss:$16 sps:$4 sm:$0xff]  }
  0x85   : > { %3523 = vmatprep.subr.bf16.mxu0 %v5425_v13  ;;  %3867 = vmatprep.subr.bf16.mxu1 %v5428_v14  ;;  %v5515_v13 = vld [vmem:[%s6299_s15 + $0x424] ss:$16 sps:$4 sm:$0xff]   ;;  %v5518_v14 = vld [vmem:[%s6299_s15 + $0x42c] ss:$16 sps:$4 sm:$0xff]  }
  0x88   : > { %3524 = vmatpush1.bf16.msra.mxu0 %v5423_v15  ;;  %3868 = vmatpush1.bf16.msra.mxu1 %v5426_v16  ;;  %v6479_v15 = vld [vmem:[%s6995_s0 + $0x10] sm:$0xff] }
  0x89   : > { %3525 = vmatprep.subr.bf16.mxu0 %v5431_v17  ;;  %3869 = vmatprep.subr.bf16.mxu1 %v5434_v18  ;;  %v6484_v16 = vld [vmem:[%s6995_s0 + $0x50] sm:$0xff] }
  0x8a   : > { %v4606_v17 = vcombine.high %v6479_v15, %v6484_v16  ;;  %v5513_v18 = vld [vmem:[%s6299_s15 + $0x420] ss:$16 sps:$4 sm:$0xff]  }
  0x8c   : > { %3526 = vmatpush1.bf16.msra.mxu0 %v5429_v19  ;;  %3870 = vmatpush1.bf16.msra.mxu1 %v5432_v20  ;;  %v5516_v19 = vld [vmem:[%s6299_s15 + $0x428] ss:$16 sps:$4 sm:$0xff]   ;;  %v5521_v20 = vld [vmem:[%s6299_s15 + $0x444] ss:$16 sps:$4 sm:$0xff]  }
  0x8d   : > { %3527 = vmatprep.subr.bf16.mxu0 %v5437_v21  ;;  %3871 = vmatprep.subr.bf16.mxu1 %v5440_v22  ;;  %v5524_v21 = vld [vmem:[%s6299_s15 + $0x44c] ss:$16 sps:$4 sm:$0xff]   ;;  %v5519_v22 = vld [vmem:[%s6299_s15 + $0x440] ss:$16 sps:$4 sm:$0xff]  }
  0x90   : > { %3528 = vmatpush1.bf16.msra.mxu0 %v5435_v23  ;;  %3872 = vmatpush1.bf16.msra.mxu1 %v5438_v24  ;;  %v5522_v23 = vld [vmem:[%s6299_s15 + $0x448] ss:$16 sps:$4 sm:$0xff]   ;;  %v5527_v24 = vld [vmem:[%s6299_s15 + $0x464] ss:$16 sps:$4 sm:$0xff]  }
  0x91   : > { %3529 = vmatprep.subr.bf16.mxu0 %v5443_v25  ;;  %3873 = vmatprep.subr.bf16.mxu1 %v5446_v26  ;;  %v5530_v25 = vld [vmem:[%s6299_s15 + $0x46c] ss:$16 sps:$4 sm:$0xff]   ;;  %v5525_v26 = vld [vmem:[%s6299_s15 + $0x460] ss:$16 sps:$4 sm:$0xff]  }
  0x94   : > { %3530 = vmatpush1.bf16.msra.mxu0 %v5441_v27  ;;  %3874 = vmatpush1.bf16.msra.mxu1 %v5444_v28  ;;  %v5528_v27 = vld [vmem:[%s6299_s15 + $0x468] ss:$16 sps:$4 sm:$0xff]   ;;  %v5533_v28 = vld [vmem:[%s6299_s15 + $0x484] ss:$16 sps:$4 sm:$0xff]  }
  0x95   : > { %3531 = vmatprep.subr.bf16.mxu0 %v5449_v29  ;;  %3875 = vmatprep.subr.bf16.mxu1 %v5452_v30  ;;  %v5536_v29 = vld [vmem:[%s6299_s15 + $0x48c] ss:$16 sps:$4 sm:$0xff]   ;;  %v5531_v30 = vld [vmem:[%s6299_s15 + $0x480] ss:$16 sps:$4 sm:$0xff]  }
  0x98   : > { %3532 = vmatpush1.bf16.msra.mxu0 %v5447_v33  ;;  %3876 = vmatpush1.bf16.msra.mxu1 %v5450_v34  ;;  %v5542_v33 = vld [vmem:[%s6299_s15 + $0x4ac] ss:$16 sps:$4 sm:$0xff]   ;;  %v5537_v34 = vld [vmem:[%s6299_s15 + $0x4a0] ss:$16 sps:$4 sm:$0xff]  }
  0x99   : > { %3533 = vmatprep.subr.bf16.mxu0 %v5455_v36  ;;  %3877 = vmatprep.subr.bf16.mxu1 %v5458_v37  ;;  %v5545_v36 = vld [vmem:[%s6299_s15 + $0x4c4] ss:$16 sps:$4 sm:$0xff]   ;;  %v5548_v37 = vld [vmem:[%s6299_s15 + $0x4cc] ss:$16 sps:$4 sm:$0xff]  }
  0x9c   : > { %3534 = vmatpush1.bf16.msra.mxu0 %v5453_v38  ;;  %3878 = vmatpush1.bf16.msra.mxu1 %v5456_v39  ;;  %v5543_v38 = vld [vmem:[%s6299_s15 + $0x4c0] ss:$16 sps:$4 sm:$0xff]   ;;  %v5546_v39 = vld [vmem:[%s6299_s15 + $0x4c8] ss:$16 sps:$4 sm:$0xff]  }
  0x9d   : > { %3535 = vmatprep.subr.bf16.mxu0 %v5461_v40  ;;  %3879 = vmatprep.subr.bf16.mxu1 %v5464_v41  ;;  %v5551_v40 = vld [vmem:[%s6299_s15 + $0x4e4] ss:$16 sps:$4 sm:$0xff]   ;;  %v5554_v41 = vld [vmem:[%s6299_s15 + $0x4ec] ss:$16 sps:$4 sm:$0xff]  }
  0xa0   : > { %3536 = vmatpush1.bf16.msra.mxu0 %v5459_v42  ;;  %3880 = vmatpush1.bf16.msra.mxu1 %v5462_v43  ;;  %v5549_v42 = vld [vmem:[%s6299_s15 + $0x4e0] ss:$16 sps:$4 sm:$0xff]   ;;  %v5552_v43 = vld [vmem:[%s6299_s15 + $0x4e8] ss:$16 sps:$4 sm:$0xff]  }
  0xa1   : > { %3537 = vmatprep.subr.bf16.mxu0 %v5467_v44  ;;  %3881 = vmatprep.subr.bf16.mxu1 %v5470_v45  ;;  %v5557_v44 = vld [vmem:[%s6299_s15 + $0x504] ss:$16 sps:$4 sm:$0xff]   ;;  %v5560_v45 = vld [vmem:[%s6299_s15 + $0x50c] ss:$16 sps:$4 sm:$0xff]  }
  0xa4   : > { %3538 = vmatpush1.bf16.msra.mxu0 %v5465_v46  ;;  %3882 = vmatpush1.bf16.msra.mxu1 %v5468_v47  ;;  %v5555_v46 = vld [vmem:[%s6299_s15 + $0x500] ss:$16 sps:$4 sm:$0xff]   ;;  %v5558_v47 = vld [vmem:[%s6299_s15 + $0x508] ss:$16 sps:$4 sm:$0xff]  }
  0xa5   : > { %3539 = vmatprep.subr.bf16.mxu0 %v5473_v48  ;;  %3883 = vmatprep.subr.bf16.mxu1 %v5476_v49  ;;  %v5563_v48 = vld [vmem:[%s6299_s15 + $0x524] ss:$16 sps:$4 sm:$0xff]   ;;  %v5566_v49 = vld [vmem:[%s6299_s15 + $0x52c] ss:$16 sps:$4 sm:$0xff]  }
  0xa8   : > { %3540 = vmatpush1.bf16.msra.mxu0 %v5471_v50  ;;  %3884 = vmatpush1.bf16.msra.mxu1 %v5474_v51  ;;  %v5561_v50 = vld [vmem:[%s6299_s15 + $0x520] ss:$16 sps:$4 sm:$0xff]   ;;  %v5564_v51 = vld [vmem:[%s6299_s15 + $0x528] ss:$16 sps:$4 sm:$0xff]  }
  0xa9   : > { %3541 = vmatprep.subr.bf16.mxu0 %v5479_v52  ;;  %3885 = vmatprep.subr.bf16.mxu1 %v5482_v53  ;;  %v5569_v52 = vld [vmem:[%s6299_s15 + $0x544] ss:$16 sps:$4 sm:$0xff]   ;;  %v5572_v53 = vld [vmem:[%s6299_s15 + $0x54c] ss:$16 sps:$4 sm:$0xff]  }
  0xac   : > { %3542 = vmatpush1.bf16.msra.mxu0 %v5477_v54  ;;  %3886 = vmatpush1.bf16.msra.mxu1 %v5480_v55  ;;  %v5567_v54 = vld [vmem:[%s6299_s15 + $0x540] ss:$16 sps:$4 sm:$0xff]   ;;  %v5570_v55 = vld [vmem:[%s6299_s15 + $0x548] ss:$16 sps:$4 sm:$0xff]  }
  0xad   : > { %3543 = vmatprep.subr.bf16.mxu0 %v5485_v56  ;;  %3887 = vmatprep.subr.bf16.mxu1 %v5488_v57  ;;  %v5575_v56 = vld [vmem:[%s6299_s15 + $0x564] ss:$16 sps:$4 sm:$0xff]   ;;  %v5578_v57 = vld [vmem:[%s6299_s15 + $0x56c] ss:$16 sps:$4 sm:$0xff]  }
  0xb0   : > { %3544 = vmatpush1.bf16.msra.mxu0 %v5483_v58  ;;  %3888 = vmatpush1.bf16.msra.mxu1 %v5486_v59  ;;  %v5573_v58 = vld [vmem:[%s6299_s15 + $0x560] ss:$16 sps:$4 sm:$0xff]   ;;  %v5576_v59 = vld [vmem:[%s6299_s15 + $0x568] ss:$16 sps:$4 sm:$0xff]  }
  0xb1   : > { %3545 = vmatprep.subr.bf16.mxu0 %v5491_v60  ;;  %3889 = vmatprep.subr.bf16.mxu1 %v5494_v61  ;;  %v5581_v60 = vld [vmem:[%s6299_s15 + $0x584] ss:$16 sps:$4 sm:$0xff]   ;;  %v5584_v61 = vld [vmem:[%s6299_s15 + $0x58c] ss:$16 sps:$4 sm:$0xff]  }
  0xb4   : > { %3546 = vmatpush1.bf16.msra.mxu0 %v5489_v62  ;;  %3890 = vmatpush1.bf16.msra.mxu1 %v5492_v63  ;;  %v5579_v62 = vld [vmem:[%s6299_s15 + $0x580] ss:$16 sps:$4 sm:$0xff]   ;;  %v5582_v63 = vld [vmem:[%s6299_s15 + $0x588] ss:$16 sps:$4 sm:$0xff]  }
  0xb5   : > { %3547 = vmatprep.subr.bf16.mxu0 %v5497_v0  ;;  %3891 = vmatprep.subr.bf16.mxu1 %v5500_v1  ;;  %v5587_v0 = vld [vmem:[%s6299_s15 + $0x5a4] ss:$16 sps:$4 sm:$0xff]   ;;  %v5590_v1 = vld [vmem:[%s6299_s15 + $0x5ac] ss:$16 sps:$4 sm:$0xff]  }
  0xb8   : > { %3548 = vmatpush1.bf16.msra.mxu0 %v5495_v2  ;;  %3892 = vmatpush1.bf16.msra.mxu1 %v5498_v3  ;;  %v5585_v2 = vld [vmem:[%s6299_s15 + $0x5a0] ss:$16 sps:$4 sm:$0xff]   ;;  %v5588_v3 = vld [vmem:[%s6299_s15 + $0x5a8] ss:$16 sps:$4 sm:$0xff]  }
  0xb9   : > { %3549 = vmatprep.subr.bf16.mxu0 %v5503_v4  ;;  %3893 = vmatprep.subr.bf16.mxu1 %v5506_v5  ;;  %v5593_v4 = vld [vmem:[%s6299_s15 + $0x5c4] ss:$16 sps:$4 sm:$0xff]   ;;  %v5596_v5 = vld [vmem:[%s6299_s15 + $0x5cc] ss:$16 sps:$4 sm:$0xff]  }
  0xbc   : > { %3550 = vmatpush1.bf16.msra.mxu0 %v5501_v6  ;;  %3894 = vmatpush1.bf16.msra.mxu1 %v5504_v7  ;;  %v5591_v6 = vld [vmem:[%s6299_s15 + $0x5c0] ss:$16 sps:$4 sm:$0xff]   ;;  %v5594_v7 = vld [vmem:[%s6299_s15 + $0x5c8] ss:$16 sps:$4 sm:$0xff]  }
  0xbd   : > { %3562 = vmatprep.subr.bf16.mxu0 %v5509_v8  ;;  %3906 = vmatprep.subr.bf16.mxu1 %v5512_v9  ;;  %v5599_v8 = vld [vmem:[%s6299_s15 + $0x5e4] ss:$16 sps:$4 sm:$0xff]   ;;  %v5602_v9 = vld [vmem:[%s6299_s15 + $0x5ec] ss:$16 sps:$4 sm:$0xff]  }
  0xbf   : > { %3552 = vmatmul.mubr.bf16.vlgmr.msra.gmra.mrb[0].mxu0 %v4603_v10  ;;  %3896 = vmatmul.mubr.bf16.vlgmr.msra.gmra.mrb[0].mxu1 %v4603_v10  ;;  %v5597_v10 = vld [vmem:[%s6299_s15 + $0x5e0] ss:$16 sps:$4 sm:$0xff]  }
  0xc0   : > { %3563 = vmatpush1.bf16.msra.mxu0 %v5507_v11  ;;  %3907 = vmatpush1.bf16.msra.mxu1 %v5510_v12  ;;  %v5600_v11 = vld [vmem:[%s6299_s15 + $0x5e8] ss:$16 sps:$4 sm:$0xff]   ;;  %v5605_v12 = vld [vmem:[%s6299_s15 + $0x604] ss:$16 sps:$4 sm:$0xff]  }
  0xc1   : > { %3564 = vmatprep.subr.bf16.mxu0 %v5515_v13  ;;  %3908 = vmatprep.subr.bf16.mxu1 %v5518_v14  ;;  %v5608_v13 = vld [vmem:[%s6299_s15 + $0x60c] ss:$16 sps:$4 sm:$0xff]   ;;  %v5603_v14 = vld [vmem:[%s6299_s15 + $0x600] ss:$16 sps:$4 sm:$0xff]  }
  0xc2   : > { %3594 = vmatprep.mubr.bf16.mxu0 %v4606_v17  ;;  %3938 = vmatprep.mubr.bf16.mxu1 %v4606_v17  ;;  %v5606_v17 = vld [vmem:[%s6299_s15 + $0x608] ss:$16 sps:$4 sm:$0xff]  }
  0xc4   : > { %3565 = vmatpush1.bf16.msra.mxu0 %v5513_v18  ;;  %3909 = vmatpush1.bf16.msra.mxu1 %v5516_v19  ;;  %v4605_v18 = vcombine.low %v6479_v15, %v6484_v16  ;;  %v6555_v19 = vld [vmem:[%s6995_s0 + $0x18] sm:$0xff] }
  0xc5   : > { %3566 = vmatprep.subr.bf16.mxu0 %v5521_v20  ;;  %3910 = vmatprep.subr.bf16.mxu1 %v5524_v21  ;;  %v6560_v20 = vld [vmem:[%s6995_s0 + $0x58] sm:$0xff]  ;;  %v5611_v21 = vld [vmem:[%s6299_s15 + $0x624] ss:$16 sps:$4 sm:$0xff]  }
  0xc6   : > { %v5614_v15 = vld [vmem:[%s6299_s15 + $0x62c] ss:$16 sps:$4 sm:$0xff]   ;;  %v4608_v16 = vcombine.high %v6555_v19, %v6560_v20 }
  0xc8   : > { %3567 = vmatpush1.bf16.msra.mxu0 %v5519_v22  ;;  %3911 = vmatpush1.bf16.msra.mxu1 %v5522_v23  ;;  %v5609_v22 = vld [vmem:[%s6299_s15 + $0x620] ss:$16 sps:$4 sm:$0xff]   ;;  %v5612_v23 = vld [vmem:[%s6299_s15 + $0x628] ss:$16 sps:$4 sm:$0xff]  }
  0xc9   : > { %3568 = vmatprep.subr.bf16.mxu0 %v5527_v24  ;;  %3912 = vmatprep.subr.bf16.mxu1 %v5530_v25  ;;  %v5617_v24 = vld [vmem:[%s6299_s15 + $0x644] ss:$16 sps:$4 sm:$0xff]   ;;  %v5620_v25 = vld [vmem:[%s6299_s15 + $0x64c] ss:$16 sps:$4 sm:$0xff]  }
  0xcc   : > { %3569 = vmatpush1.bf16.msra.mxu0 %v5525_v26  ;;  %3913 = vmatpush1.bf16.msra.mxu1 %v5528_v27  ;;  %v5615_v26 = vld [vmem:[%s6299_s15 + $0x640] ss:$16 sps:$4 sm:$0xff]   ;;  %v5618_v27 = vld [vmem:[%s6299_s15 + $0x648] ss:$16 sps:$4 sm:$0xff]  }
  0xcd   : > { %3570 = vmatprep.subr.bf16.mxu0 %v5533_v28  ;;  %3914 = vmatprep.subr.bf16.mxu1 %v5536_v29  ;;  %v5623_v28 = vld [vmem:[%s6299_s15 + $0x664] ss:$16 sps:$4 sm:$0xff]   ;;  %v5626_v29 = vld [vmem:[%s6299_s15 + $0x66c] ss:$16 sps:$4 sm:$0xff]  }
  0xd0   : > { %3571 = vmatpush1.bf16.msra.mxu0 %v5531_v30  ;;  %3915 = vmatpush1.bf16.msra.mxu1 %v5534_v31  ;;  %v5621_v30 = vld [vmem:[%s6299_s15 + $0x660] ss:$16 sps:$4 sm:$0xff]   ;;  %v5624_v31 = vld [vmem:[%s6299_s15 + $0x668] ss:$16 sps:$4 sm:$0xff]  }
  0xd1   : > { %3572 = vmatprep.subr.bf16.mxu0 %v5539_v32  ;;  %3916 = vmatprep.subr.bf16.mxu1 %v5542_v33  ;;  %v5629_v32 = vld [vmem:[%s6299_s15 + $0x684] ss:$16 sps:$4 sm:$0xff]   ;;  %v5632_v33 = vld [vmem:[%s6299_s15 + $0x68c] ss:$16 sps:$4 sm:$0xff]  }
  0xd4   : > { %3573 = vmatpush1.bf16.msra.mxu0 %v5537_v34  ;;  %3917 = vmatpush1.bf16.msra.mxu1 %v5540_v35  ;;  %v5627_v34 = vld [vmem:[%s6299_s15 + $0x680] ss:$16 sps:$4 sm:$0xff]   ;;  %v5630_v35 = vld [vmem:[%s6299_s15 + $0x688] ss:$16 sps:$4 sm:$0xff]  }
  0xd5   : > { %3574 = vmatprep.subr.bf16.mxu0 %v5545_v36  ;;  %3918 = vmatprep.subr.bf16.mxu1 %v5548_v37  ;;  %v5635_v36 = vld [vmem:[%s6299_s15 + $0x6a4] ss:$16 sps:$4 sm:$0xff]   ;;  %v5638_v37 = vld [vmem:[%s6299_s15 + $0x6ac] ss:$16 sps:$4 sm:$0xff]  }
  0xd8   : > { %3575 = vmatpush1.bf16.msra.mxu0 %v5543_v38  ;;  %3919 = vmatpush1.bf16.msra.mxu1 %v5546_v39  ;;  %v5633_v38 = vld [vmem:[%s6299_s15 + $0x6a0] ss:$16 sps:$4 sm:$0xff]   ;;  %v5636_v39 = vld [vmem:[%s6299_s15 + $0x6a8] ss:$16 sps:$4 sm:$0xff]  }
  0xd9   : > { %3576 = vmatprep.subr.bf16.mxu0 %v5551_v40  ;;  %3920 = vmatprep.subr.bf16.mxu1 %v5554_v41  ;;  %v5641_v40 = vld [vmem:[%s6299_s15 + $0x6c4] ss:$16 sps:$4 sm:$0xff]   ;;  %v5644_v41 = vld [vmem:[%s6299_s15 + $0x6cc] ss:$16 sps:$4 sm:$0xff]  }
  0xdc   : > { %3577 = vmatpush1.bf16.msra.mxu0 %v5549_v42  ;;  %3921 = vmatpush1.bf16.msra.mxu1 %v5552_v43  ;;  %v5639_v42 = vld [vmem:[%s6299_s15 + $0x6c0] ss:$16 sps:$4 sm:$0xff]   ;;  %v5642_v43 = vld [vmem:[%s6299_s15 + $0x6c8] ss:$16 sps:$4 sm:$0xff]  }
  0xdd   : > { %3578 = vmatprep.subr.bf16.mxu0 %v5557_v44  ;;  %3922 = vmatprep.subr.bf16.mxu1 %v5560_v45  ;;  %v5647_v44 = vld [vmem:[%s6299_s15 + $0x6e4] ss:$16 sps:$4 sm:$0xff]   ;;  %v5650_v45 = vld [vmem:[%s6299_s15 + $0x6ec] ss:$16 sps:$4 sm:$0xff]  }
  0xe0   : > { %3579 = vmatpush1.bf16.msra.mxu0 %v5555_v46  ;;  %3923 = vmatpush1.bf16.msra.mxu1 %v5558_v47  ;;  %v5645_v46 = vld [vmem:[%s6299_s15 + $0x6e0] ss:$16 sps:$4 sm:$0xff]   ;;  %v5648_v47 = vld [vmem:[%s6299_s15 + $0x6e8] ss:$16 sps:$4 sm:$0xff]  }
  0xe1   : > { %3580 = vmatprep.subr.bf16.mxu0 %v5563_v48  ;;  %3924 = vmatprep.subr.bf16.mxu1 %v5566_v49  ;;  %v5653_v48 = vld [vmem:[%s6299_s15 + $0x704] ss:$16 sps:$4 sm:$0xff]   ;;  %v5656_v49 = vld [vmem:[%s6299_s15 + $0x70c] ss:$16 sps:$4 sm:$0xff]  }
  0xe4   : > { %3581 = vmatpush1.bf16.msra.mxu0 %v5561_v50  ;;  %3925 = vmatpush1.bf16.msra.mxu1 %v5564_v51  ;;  %v5651_v50 = vld [vmem:[%s6299_s15 + $0x700] ss:$16 sps:$4 sm:$0xff]   ;;  %v5654_v51 = vld [vmem:[%s6299_s15 + $0x708] ss:$16 sps:$4 sm:$0xff]  }
  0xe5   : > { %3582 = vmatprep.subr.bf16.mxu0 %v5569_v52  ;;  %3926 = vmatprep.subr.bf16.mxu1 %v5572_v53  ;;  %v5659_v52 = vld [vmem:[%s6299_s15 + $0x724] ss:$16 sps:$4 sm:$0xff]   ;;  %v5662_v53 = vld [vmem:[%s6299_s15 + $0x72c] ss:$16 sps:$4 sm:$0xff]  }
  0xe8   : > { %3583 = vmatpush1.bf16.msra.mxu0 %v5567_v54  ;;  %3927 = vmatpush1.bf16.msra.mxu1 %v5570_v55  ;;  %v5657_v54 = vld [vmem:[%s6299_s15 + $0x720] ss:$16 sps:$4 sm:$0xff]   ;;  %v5660_v55 = vld [vmem:[%s6299_s15 + $0x728] ss:$16 sps:$4 sm:$0xff]  }
  0xe9   : > { %3584 = vmatprep.subr.bf16.mxu0 %v5575_v56  ;;  %3928 = vmatprep.subr.bf16.mxu1 %v5578_v57  ;;  %v5665_v56 = vld [vmem:[%s6299_s15 + $0x744] ss:$16 sps:$4 sm:$0xff]   ;;  %v5668_v57 = vld [vmem:[%s6299_s15 + $0x74c] ss:$16 sps:$4 sm:$0xff]  }
  0xec   : > { %3585 = vmatpush1.bf16.msra.mxu0 %v5573_v58  ;;  %3929 = vmatpush1.bf16.msra.mxu1 %v5576_v59  ;;  %v5663_v58 = vld [vmem:[%s6299_s15 + $0x740] ss:$16 sps:$4 sm:$0xff]   ;;  %v5666_v59 = vld [vmem:[%s6299_s15 + $0x748] ss:$16 sps:$4 sm:$0xff]  }
  0xed   : > { %3586 = vmatprep.subr.bf16.mxu0 %v5581_v60  ;;  %3930 = vmatprep.subr.bf16.mxu1 %v5584_v61  ;;  %v5671_v60 = vld [vmem:[%s6299_s15 + $0x764] ss:$16 sps:$4 sm:$0xff]   ;;  %v5674_v61 = vld [vmem:[%s6299_s15 + $0x76c] ss:$16 sps:$4 sm:$0xff]  }
  0xf0   : > { %3587 = vmatpush1.bf16.msra.mxu0 %v5579_v62  ;;  %3931 = vmatpush1.bf16.msra.mxu1 %v5582_v63  ;;  %v5669_v62 = vld [vmem:[%s6299_s15 + $0x760] ss:$16 sps:$4 sm:$0xff]   ;;  %v5672_v63 = vld [vmem:[%s6299_s15 + $0x768] ss:$16 sps:$4 sm:$0xff]  }
  0xf1   : > { %3588 = vmatprep.subr.bf16.mxu0 %v5587_v0  ;;  %3932 = vmatprep.subr.bf16.mxu1 %v5590_v1  ;;  %v5677_v0 = vld [vmem:[%s6299_s15 + $0x784] ss:$16 sps:$4 sm:$0xff]   ;;  %v5680_v1 = vld [vmem:[%s6299_s15 + $0x78c] ss:$16 sps:$4 sm:$0xff]  }
  0xf4   : > { %3589 = vmatpush1.bf16.msra.mxu0 %v5585_v2  ;;  %3933 = vmatpush1.bf16.msra.mxu1 %v5588_v3  ;;  %v5675_v2 = vld [vmem:[%s6299_s15 + $0x780] ss:$16 sps:$4 sm:$0xff]   ;;  %v5678_v3 = vld [vmem:[%s6299_s15 + $0x788] ss:$16 sps:$4 sm:$0xff]  }
  0xf5   : > { %3590 = vmatprep.subr.bf16.mxu0 %v5593_v4  ;;  %3934 = vmatprep.subr.bf16.mxu1 %v5596_v5  ;;  %v5683_v4 = vld [vmem:[%s6299_s15 + $0x7a4] ss:$16 sps:$4 sm:$0xff]   ;;  %v5686_v5 = vld [vmem:[%s6299_s15 + $0x7ac] ss:$16 sps:$4 sm:$0xff]  }
  0xf8   : > { %3591 = vmatpush1.bf16.msra.mxu0 %v5591_v6  ;;  %3935 = vmatpush1.bf16.msra.mxu1 %v5594_v7  ;;  %v5681_v6 = vld [vmem:[%s6299_s15 + $0x7a0] ss:$16 sps:$4 sm:$0xff]   ;;  %v5684_v7 = vld [vmem:[%s6299_s15 + $0x7a8] ss:$16 sps:$4 sm:$0xff]  }
  0xf9   : > { %3592 = vmatprep.subr.bf16.mxu0 %v5599_v8  ;;  %3936 = vmatprep.subr.bf16.mxu1 %v5602_v9  ;;  %v5689_v8 = vld [vmem:[%s6299_s15 + $0x7c4] ss:$16 sps:$4 sm:$0xff]   ;;  %v5692_v9 = vld [vmem:[%s6299_s15 + $0x7cc] ss:$16 sps:$4 sm:$0xff]  }
  0xfc   : > { %3593 = vmatpush1.bf16.msra.mxu0 %v5597_v10  ;;  %3937 = vmatpush1.bf16.msra.mxu1 %v5600_v11  ;;  %v5687_v10 = vld [vmem:[%s6299_s15 + $0x7c0] ss:$16 sps:$4 sm:$0xff]   ;;  %v5690_v11 = vld [vmem:[%s6299_s15 + $0x7c8] ss:$16 sps:$4 sm:$0xff]  }
  0xfd   : > { %3605 = vmatprep.subr.bf16.mxu0 %v5605_v12  ;;  %3949 = vmatprep.subr.bf16.mxu1 %v5608_v13  ;;  %v5695_v12 = vld [vmem:[%s6299_s15 + $0x7e4] ss:$16 sps:$4 sm:$0xff]   ;;  %v5698_v13 = vld [vmem:[%s6299_s15 + $0x7ec] ss:$16 sps:$4 sm:$0xff]  }
  0xff   : > { %3595 = vmatmul.mubr.bf16.vlgmr.msra.gmra.mrb[0].mxu0 %v4605_v18  ;;  %3939 = vmatmul.mubr.bf16.vlgmr.msra.gmra.mrb[0].mxu1 %v4605_v18  ;;  %v5701_v18 = vld [vmem:[%s6299_s15 + $0x804] ss:$16 sps:$4 sm:$0xff]  }
 0x100   : > { %3606 = vmatpush1.bf16.msra.mxu0 %v5603_v14  ;;  %3950 = vmatpush1.bf16.msra.mxu1 %v5606_v17  ;;  %v5693_v14 = vld [vmem:[%s6299_s15 + $0x7e0] ss:$16 sps:$4 sm:$0xff]   ;;  %v5696_v17 = vld [vmem:[%s6299_s15 + $0x7e8] ss:$16 sps:$4 sm:$0xff]  }
 0x101   : > { %3607 = vmatprep.subr.bf16.mxu0 %v5611_v21  ;;  %3951 = vmatprep.subr.bf16.mxu1 %v5614_v15  ;;  %v5704_v21 = vld [vmem:[%s6299_s15 + $0x80c] ss:$16 sps:$4 sm:$0xff]   ;;  %v6629_v15 = vld [vmem:[%s6995_s0 + $0x20] sm:$0xff] }
 0x102   : > { %3637 = vmatprep.mubr.bf16.mxu0 %v4608_v16  ;;  %3981 = vmatprep.mubr.bf16.mxu1 %v4608_v16  ;;  %v4607_v16 = vcombine.low %v6555_v19, %v6560_v20  ;;  %v5705_v20 = vld [vmem:[%s6299_s15 + $0x820] ss:$16 sps:$4 sm:$0xff]  }
 0x104   : > { %3608 = vmatpush1.bf16.msra.mxu0 %v5609_v22  ;;  %3952 = vmatpush1.bf16.msra.mxu1 %v5612_v23  ;;  %v6636_v22 = vld [vmem:[%s6995_s0 + $0x60] sm:$0xff] }
 0x105   : > { %3609 = vmatprep.subr.bf16.mxu0 %v5617_v24  ;;  %3953 = vmatprep.subr.bf16.mxu1 %v5620_v25  ;;  %v5699_v23 = vld [vmem:[%s6299_s15 + $0x800] ss:$16 sps:$4 sm:$0xff]   ;;  %v5702_v24 = vld [vmem:[%s6299_s15 + $0x808] ss:$16 sps:$4 sm:$0xff]   ;;  %v5707_v25 = vld [vmem:[%s6299_s15 + $0x824] ss:$16 sps:$4 sm:$0xff]   ;;  %v4610_v19 = vcombine.high %v6629_v15, %v6636_v22 }
 0x108   : > { %3610 = vmatpush1.bf16.msra.mxu0 %v5615_v26  ;;  %3954 = vmatpush1.bf16.msra.mxu1 %v5618_v27  ;;  %v5710_v26 = vld [vmem:[%s6299_s15 + $0x82c] ss:$16 sps:$4 sm:$0xff]   ;;  %v5708_v27 = vld [vmem:[%s6299_s15 + $0x828] ss:$16 sps:$4 sm:$0xff]  }
 0x109   : > { %3611 = vmatprep.subr.bf16.mxu0 %v5623_v28  ;;  %3955 = vmatprep.subr.bf16.mxu1 %v5626_v29  ;;  %v5713_v28 = vld [vmem:[%s6299_s15 + $0x844] ss:$16 sps:$4 sm:$0xff]   ;;  %v5716_v29 = vld [vmem:[%s6299_s15 + $0x84c] ss:$16 sps:$4 sm:$0xff]  }
 0x10c   : > { %3612 = vmatpush1.bf16.msra.mxu0 %v5621_v30  ;;  %3956 = vmatpush1.bf16.msra.mxu1 %v5624_v31  ;;  %v5711_v30 = vld [vmem:[%s6299_s15 + $0x840] ss:$16 sps:$4 sm:$0xff]   ;;  %v5714_v31 = vld [vmem:[%s6299_s15 + $0x848] ss:$16 sps:$4 sm:$0xff]  }
 0x10d   : > { %3613 = vmatprep.subr.bf16.mxu0 %v5629_v32  ;;  %3957 = vmatprep.subr.bf16.mxu1 %v5632_v33  ;;  %v5719_v32 = vld [vmem:[%s6299_s15 + $0x864] ss:$16 sps:$4 sm:$0xff]   ;;  %v5722_v33 = vld [vmem:[%s6299_s15 + $0x86c] ss:$16 sps:$4 sm:$0xff]  }
 0x110   : > { %3614 = vmatpush1.bf16.msra.mxu0 %v5627_v34  ;;  %3958 = vmatpush1.bf16.msra.mxu1 %v5630_v35  ;;  %v5717_v34 = vld [vmem:[%s6299_s15 + $0x860] ss:$16 sps:$4 sm:$0xff]   ;;  %v5720_v35 = vld [vmem:[%s6299_s15 + $0x868] ss:$16 sps:$4 sm:$0xff]  }
 0x111   : > { %3615 = vmatprep.subr.bf16.mxu0 %v5635_v36  ;;  %3959 = vmatprep.subr.bf16.mxu1 %v5638_v37  ;;  %v5725_v36 = vld [vmem:[%s6299_s15 + $0x884] ss:$16 sps:$4 sm:$0xff]   ;;  %v5728_v37 = vld [vmem:[%s6299_s15 + $0x88c] ss:$16 sps:$4 sm:$0xff]  }
 0x114   : > { %3616 = vmatpush1.bf16.msra.mxu0 %v5633_v38  ;;  %3960 = vmatpush1.bf16.msra.mxu1 %v5636_v39  ;;  %v5723_v38 = vld [vmem:[%s6299_s15 + $0x880] ss:$16 sps:$4 sm:$0xff]   ;;  %v5726_v39 = vld [vmem:[%s6299_s15 + $0x888] ss:$16 sps:$4 sm:$0xff]  }
 0x115   : > { %3617 = vmatprep.subr.bf16.mxu0 %v5641_v40  ;;  %3961 = vmatprep.subr.bf16.mxu1 %v5644_v41  ;;  %v5731_v40 = vld [vmem:[%s6299_s15 + $0x8a4] ss:$16 sps:$4 sm:$0xff]   ;;  %v5734_v41 = vld [vmem:[%s6299_s15 + $0x8ac] ss:$16 sps:$4 sm:$0xff]  }
 0x118   : > { %3618 = vmatpush1.bf16.msra.mxu0 %v5639_v42  ;;  %3962 = vmatpush1.bf16.msra.mxu1 %v5642_v43  ;;  %v5729_v42 = vld [vmem:[%s6299_s15 + $0x8a0] ss:$16 sps:$4 sm:$0xff]   ;;  %v5732_v43 = vld [vmem:[%s6299_s15 + $0x8a8] ss:$16 sps:$4 sm:$0xff]  }
 0x119   : > { %3619 = vmatprep.subr.bf16.mxu0 %v5647_v44  ;;  %3963 = vmatprep.subr.bf16.mxu1 %v5650_v45  ;;  %v5737_v44 = vld [vmem:[%s6299_s15 + $0x8c4] ss:$16 sps:$4 sm:$0xff]   ;;  %v5740_v45 = vld [vmem:[%s6299_s15 + $0x8cc] ss:$16 sps:$4 sm:$0xff]  }
 0x11c   : > { %3620 = vmatpush1.bf16.msra.mxu0 %v5645_v46  ;;  %3964 = vmatpush1.bf16.msra.mxu1 %v5648_v47  ;;  %v5735_v46 = vld [vmem:[%s6299_s15 + $0x8c0] ss:$16 sps:$4 sm:$0xff]   ;;  %v5738_v47 = vld [vmem:[%s6299_s15 + $0x8c8] ss:$16 sps:$4 sm:$0xff]  }
 0x11d   : > { %3621 = vmatprep.subr.bf16.mxu0 %v5653_v48  ;;  %3965 = vmatprep.subr.bf16.mxu1 %v5656_v49  ;;  %v5743_v48 = vld [vmem:[%s6299_s15 + $0x8e4] ss:$16 sps:$4 sm:$0xff]   ;;  %v5746_v49 = vld [vmem:[%s6299_s15 + $0x8ec] ss:$16 sps:$4 sm:$0xff]  }
 0x120   : > { %3622 = vmatpush1.bf16.msra.mxu0 %v5651_v50  ;;  %3966 = vmatpush1.bf16.msra.mxu1 %v5654_v51  ;;  %v5741_v50 = vld [vmem:[%s6299_s15 + $0x8e0] ss:$16 sps:$4 sm:$0xff]   ;;  %v5744_v51 = vld [vmem:[%s6299_s15 + $0x8e8] ss:$16 sps:$4 sm:$0xff]  }
 0x121   : > { %3623 = vmatprep.subr.bf16.mxu0 %v5659_v52  ;;  %3967 = vmatprep.subr.bf16.mxu1 %v5662_v53  ;;  %v5749_v52 = vld [vmem:[%s6299_s15 + $0x904] ss:$16 sps:$4 sm:$0xff]   ;;  %v5752_v53 = vld [vmem:[%s6299_s15 + $0x90c] ss:$16 sps:$4 sm:$0xff]  }
 0x124   : > { %3624 = vmatpush1.bf16.msra.mxu0 %v5657_v54  ;;  %3968 = vmatpush1.bf16.msra.mxu1 %v5660_v55  ;;  %v5747_v54 = vld [vmem:[%s6299_s15 + $0x900] ss:$16 sps:$4 sm:$0xff]   ;;  %v5750_v55 = vld [vmem:[%s6299_s15 + $0x908] ss:$16 sps:$4 sm:$0xff]  }
 0x125   : > { %3625 = vmatprep.subr.bf16.mxu0 %v5665_v56  ;;  %3969 = vmatprep.subr.bf16.mxu1 %v5668_v57  ;;  %v5755_v56 = vld [vmem:[%s6299_s15 + $0x924] ss:$16 sps:$4 sm:$0xff]   ;;  %v5758_v57 = vld [vmem:[%s6299_s15 + $0x92c] ss:$16 sps:$4 sm:$0xff]  }
 0x128   : > { %3626 = vmatpush1.bf16.msra.mxu0 %v5663_v58  ;;  %3970 = vmatpush1.bf16.msra.mxu1 %v5666_v59  ;;  %v5753_v58 = vld [vmem:[%s6299_s15 + $0x920] ss:$16 sps:$4 sm:$0xff]   ;;  %v5756_v59 = vld [vmem:[%s6299_s15 + $0x928] ss:$16 sps:$4 sm:$0xff]  }
 0x129   : > { %3627 = vmatprep.subr.bf16.mxu0 %v5671_v60  ;;  %3971 = vmatprep.subr.bf16.mxu1 %v5674_v61  ;;  %v5761_v60 = vld [vmem:[%s6299_s15 + $0x944] ss:$16 sps:$4 sm:$0xff]   ;;  %v5764_v61 = vld [vmem:[%s6299_s15 + $0x94c] ss:$16 sps:$4 sm:$0xff]  }
 0x12c   : > { %3628 = vmatpush1.bf16.msra.mxu0 %v5669_v62  ;;  %3972 = vmatpush1.bf16.msra.mxu1 %v5672_v63  ;;  %v5759_v62 = vld [vmem:[%s6299_s15 + $0x940] ss:$16 sps:$4 sm:$0xff]   ;;  %v5762_v63 = vld [vmem:[%s6299_s15 + $0x948] ss:$16 sps:$4 sm:$0xff]  }
 0x12d   : > { %3629 = vmatprep.subr.bf16.mxu0 %v5677_v0  ;;  %3973 = vmatprep.subr.bf16.mxu1 %v5680_v1  ;;  %v5767_v0 = vld [vmem:[%s6299_s15 + $0x964] ss:$16 sps:$4 sm:$0xff]   ;;  %v5770_v1 = vld [vmem:[%s6299_s15 + $0x96c] ss:$16 sps:$4 sm:$0xff]  }
 0x130   : > { %3630 = vmatpush1.bf16.msra.mxu0 %v5675_v2  ;;  %3974 = vmatpush1.bf16.msra.mxu1 %v5678_v3  ;;  %v5765_v2 = vld [vmem:[%s6299_s15 + $0x960] ss:$16 sps:$4 sm:$0xff]   ;;  %v5768_v3 = vld [vmem:[%s6299_s15 + $0x968] ss:$16 sps:$4 sm:$0xff]  }
 0x131   : > { %3631 = vmatprep.subr.bf16.mxu0 %v5683_v4  ;;  %3975 = vmatprep.subr.bf16.mxu1 %v5686_v5  ;;  %v5773_v4 = vld [vmem:[%s6299_s15 + $0x984] ss:$16 sps:$4 sm:$0xff]   ;;  %v5776_v5 = vld [vmem:[%s6299_s15 + $0x98c] ss:$16 sps:$4 sm:$0xff]  }
 0x134   : > { %3632 = vmatpush1.bf16.msra.mxu0 %v5681_v6  ;;  %3976 = vmatpush1.bf16.msra.mxu1 %v5684_v7  ;;  %v5771_v6 = vld [vmem:[%s6299_s15 + $0x980] ss:$16 sps:$4 sm:$0xff]   ;;  %v5774_v7 = vld [vmem:[%s6299_s15 + $0x988] ss:$16 sps:$4 sm:$0xff]  }
 0x135   : > { %3633 = vmatprep.subr.bf16.mxu0 %v5689_v8  ;;  %3977 = vmatprep.subr.bf16.mxu1 %v5692_v9  ;;  %v5779_v8 = vld [vmem:[%s6299_s15 + $0x9a4] ss:$16 sps:$4 sm:$0xff]   ;;  %v5782_v9 = vld [vmem:[%s6299_s15 + $0x9ac] ss:$16 sps:$4 sm:$0xff]  }
 0x138   : > { %3634 = vmatpush1.bf16.msra.mxu0 %v5687_v10  ;;  %3978 = vmatpush1.bf16.msra.mxu1 %v5690_v11  ;;  %v5777_v10 = vld [vmem:[%s6299_s15 + $0x9a0] ss:$16 sps:$4 sm:$0xff]   ;;  %v5780_v11 = vld [vmem:[%s6299_s15 + $0x9a8] ss:$16 sps:$4 sm:$0xff]  }
 0x139   : > { %3635 = vmatprep.subr.bf16.mxu0 %v5695_v12  ;;  %3979 = vmatprep.subr.bf16.mxu1 %v5698_v13  ;;  %v5785_v12 = vld [vmem:[%s6299_s15 + $0x9c4] ss:$16 sps:$4 sm:$0xff]   ;;  %v5788_v13 = vld [vmem:[%s6299_s15 + $0x9cc] ss:$16 sps:$4 sm:$0xff]  }
 0x13c   : > { %3636 = vmatpush1.bf16.msra.mxu0 %v5693_v14  ;;  %3980 = vmatpush1.bf16.msra.mxu1 %v5696_v17  ;;  %v5783_v14 = vld [vmem:[%s6299_s15 + $0x9c0] ss:$16 sps:$4 sm:$0xff]   ;;  %v5786_v17 = vld [vmem:[%s6299_s15 + $0x9c8] ss:$16 sps:$4 sm:$0xff]  }
 0x13d   : > { %3648 = vmatprep.subr.bf16.mxu0 %v5701_v18  ;;  %3992 = vmatprep.subr.bf16.mxu1 %v5704_v21  ;;  %v5791_v18 = vld [vmem:[%s6299_s15 + $0x9e4] ss:$16 sps:$4 sm:$0xff]   ;;  %v5794_v21 = vld [vmem:[%s6299_s15 + $0x9ec] ss:$16 sps:$4 sm:$0xff]  }
 0x13f   : > { %3638 = vmatmul.mubr.bf16.vlgmr.msra.gmra.mrb[0].mxu0 %v4607_v16  ;;  %3982 = vmatmul.mubr.bf16.vlgmr.msra.gmra.mrb[0].mxu1 %v4607_v16  ;;  %v5789_v16 = vld [vmem:[%s6299_s15 + $0x9e0] ss:$16 sps:$4 sm:$0xff]  }
 0x140   : > { %3649 = vmatpush1.bf16.msra.mxu0 %v5699_v23  ;;  %3993 = vmatpush1.bf16.msra.mxu1 %v5702_v24  ;;  %v5792_v23 = vld [vmem:[%s6299_s15 + $0x9e8] ss:$16 sps:$4 sm:$0xff]   ;;  %v5797_v24 = vld [vmem:[%s6299_s15 + $0xa04] ss:$16 sps:$4 sm:$0xff]  }
 0x141   : > { %3650 = vmatprep.subr.bf16.mxu0 %v5707_v25  ;;  %3994 = vmatprep.subr.bf16.mxu1 %v5710_v26  ;;  %v5800_v25 = vld [vmem:[%s6299_s15 + $0xa0c] ss:$16 sps:$4 sm:$0xff]  }
 0x142   : > { %3680 = vmatprep.mubr.bf16.mxu0 %v4610_v19  ;;  %4024 = vmatprep.mubr.bf16.mxu1 %v4610_v19  ;;  %v6707_v26 = vld [vmem:[%s6995_s0 + $0x28] sm:$0xff] }
 0x143   : > { %v6712_v19 = vld [vmem:[%s6995_s0 + $0x68] sm:$0xff] }
 0x144   : > { %3651 = vmatpush1.bf16.msra.mxu0 %v5705_v20  ;;  %3995 = vmatpush1.bf16.msra.mxu1 %v5708_v27  ;;  %v4609_v20 = vcombine.low %v6629_v15, %v6636_v22  ;;  %v5795_v27 = vld [vmem:[%s6299_s15 + $0xa00] ss:$16 sps:$4 sm:$0xff]   ;;  %v5804_v22 = vld [vmem:[%s6299_s15 + $0xa28] ss:$16 sps:$4 sm:$0xff]  }
 0x145   : > { %3652 = vmatprep.subr.bf16.mxu0 %v5713_v28  ;;  %3996 = vmatprep.subr.bf16.mxu1 %v5716_v29  ;;  %v5798_v28 = vld [vmem:[%s6299_s15 + $0xa08] ss:$16 sps:$4 sm:$0xff]   ;;  %v5803_v29 = vld [vmem:[%s6299_s15 + $0xa24] ss:$16 sps:$4 sm:$0xff]   ;;  %v5801_v15 = vld [vmem:[%s6299_s15 + $0xa20] ss:$16 sps:$4 sm:$0xff]  }
 0x148   : > { %3653 = vmatpush1.bf16.msra.mxu0 %v5711_v30  ;;  %3997 = vmatpush1.bf16.msra.mxu1 %v5714_v31  ;;  %v5806_v30 = vld [vmem:[%s6299_s15 + $0xa2c] ss:$16 sps:$4 sm:$0xff]   ;;  %v4612_v31 = vcombine.high %v6707_v26, %v6712_v19 }
 0x149   : > { %3654 = vmatprep.subr.bf16.mxu0 %v5719_v32  ;;  %3998 = vmatprep.subr.bf16.mxu1 %v5722_v33  ;;  %v5809_v32 = vld [vmem:[%s6299_s15 + $0xa44] ss:$16 sps:$4 sm:$0xff]   ;;  %v5812_v33 = vld [vmem:[%s6299_s15 + $0xa4c] ss:$16 sps:$4 sm:$0xff]  }
 0x14c   : > { %3655 = vmatpush1.bf16.msra.mxu0 %v5717_v34  ;;  %3999 = vmatpush1.bf16.msra.mxu1 %v5720_v35  ;;  %v5807_v34 = vld [vmem:[%s6299_s15 + $0xa40] ss:$16 sps:$4 sm:$0xff]   ;;  %v5810_v35 = vld [vmem:[%s6299_s15 + $0xa48] ss:$16 sps:$4 sm:$0xff]  }
 0x14d   : > { %3656 = vmatprep.subr.bf16.mxu0 %v5725_v36  ;;  %4000 = vmatprep.subr.bf16.mxu1 %v5728_v37  ;;  %v5815_v36 = vld [vmem:[%s6299_s15 + $0xa64] ss:$16 sps:$4 sm:$0xff]   ;;  %v5818_v37 = vld [vmem:[%s6299_s15 + $0xa6c] ss:$16 sps:$4 sm:$0xff]  }
 0x150   : > { %3657 = vmatpush1.bf16.msra.mxu0 %v5723_v38  ;;  %4001 = vmatpush1.bf16.msra.mxu1 %v5726_v39  ;;  %v5813_v38 = vld [vmem:[%s6299_s15 + $0xa60] ss:$16 sps:$4 sm:$0xff]   ;;  %v5816_v39 = vld [vmem:[%s6299_s15 + $0xa68] ss:$16 sps:$4 sm:$0xff]  }
 0x151   : > { %3658 = vmatprep.subr.bf16.mxu0 %v5731_v40  ;;  %4002 = vmatprep.subr.bf16.mxu1 %v5734_v41  ;;  %v5821_v40 = vld [vmem:[%s6299_s15 + $0xa84] ss:$16 sps:$4 sm:$0xff]   ;;  %v5824_v41 = vld [vmem:[%s6299_s15 + $0xa8c] ss:$16 sps:$4 sm:$0xff]  }
 0x154   : > { %3659 = vmatpush1.bf16.msra.mxu0 %v5729_v42  ;;  %4003 = vmatpush1.bf16.msra.mxu1 %v5732_v43  ;;  %v5819_v42 = vld [vmem:[%s6299_s15 + $0xa80] ss:$16 sps:$4 sm:$0xff]   ;;  %v5822_v43 = vld [vmem:[%s6299_s15 + $0xa88] ss:$16 sps:$4 sm:$0xff]  }
 0x155   : > { %3660 = vmatprep.subr.bf16.mxu0 %v5737_v44  ;;  %4004 = vmatprep.subr.bf16.mxu1 %v5740_v45  ;;  %v5827_v44 = vld [vmem:[%s6299_s15 + $0xaa4] ss:$16 sps:$4 sm:$0xff]   ;;  %v5830_v45 = vld [vmem:[%s6299_s15 + $0xaac] ss:$16 sps:$4 sm:$0xff]  }
 0x158   : > { %3661 = vmatpush1.bf16.msra.mxu0 %v5735_v46  ;;  %4005 = vmatpush1.bf16.msra.mxu1 %v5738_v47  ;;  %v5825_v46 = vld [vmem:[%s6299_s15 + $0xaa0] ss:$16 sps:$4 sm:$0xff]   ;;  %v5828_v47 = vld [vmem:[%s6299_s15 + $0xaa8] ss:$16 sps:$4 sm:$0xff]  }
 0x159   : > { %3662 = vmatprep.subr.bf16.mxu0 %v5743_v48  ;;  %4006 = vmatprep.subr.bf16.mxu1 %v5746_v49  ;;  %v5833_v48 = vld [vmem:[%s6299_s15 + $0xac4] ss:$16 sps:$4 sm:$0xff]   ;;  %v5836_v49 = vld [vmem:[%s6299_s15 + $0xacc] ss:$16 sps:$4 sm:$0xff]  }
 0x15c   : > { %3663 = vmatpush1.bf16.msra.mxu0 %v5741_v50  ;;  %4007 = vmatpush1.bf16.msra.mxu1 %v5744_v51  ;;  %v5831_v50 = vld [vmem:[%s6299_s15 + $0xac0] ss:$16 sps:$4 sm:$0xff]   ;;  %v5834_v51 = vld [vmem:[%s6299_s15 + $0xac8] ss:$16 sps:$4 sm:$0xff]  }
 0x15d   : > { %3664 = vmatprep.subr.bf16.mxu0 %v5749_v52  ;;  %4008 = vmatprep.subr.bf16.mxu1 %v5752_v53  ;;  %v5839_v52 = vld [vmem:[%s6299_s15 + $0xae4] ss:$16 sps:$4 sm:$0xff]   ;;  %v5842_v53 = vld [vmem:[%s6299_s15 + $0xaec] ss:$16 sps:$4 sm:$0xff]  }
 0x160   : > { %3665 = vmatpush1.bf16.msra.mxu0 %v5747_v54  ;;  %4009 = vmatpush1.bf16.msra.mxu1 %v5750_v55  ;;  %v5837_v54 = vld [vmem:[%s6299_s15 + $0xae0] ss:$16 sps:$4 sm:$0xff]   ;;  %v5840_v55 = vld [vmem:[%s6299_s15 + $0xae8] ss:$16 sps:$4 sm:$0xff]  }
 0x161   : > { %3666 = vmatprep.subr.bf16.mxu0 %v5755_v56  ;;  %4010 = vmatprep.subr.bf16.mxu1 %v5758_v57  ;;  %v5845_v56 = vld [vmem:[%s6299_s15 + $0xb04] ss:$16 sps:$4 sm:$0xff]   ;;  %v5848_v57 = vld [vmem:[%s6299_s15 + $0xb0c] ss:$16 sps:$4 sm:$0xff]  }
 0x164   : > { %3667 = vmatpush1.bf16.msra.mxu0 %v5753_v58  ;;  %4011 = vmatpush1.bf16.msra.mxu1 %v5756_v59  ;;  %v5843_v58 = vld [vmem:[%s6299_s15 + $0xb00] ss:$16 sps:$4 sm:$0xff]   ;;  %v5846_v59 = vld [vmem:[%s6299_s15 + $0xb08] ss:$16 sps:$4 sm:$0xff]  }
 0x165   : > { %3668 = vmatprep.subr.bf16.mxu0 %v5761_v60  ;;  %4012 = vmatprep.subr.bf16.mxu1 %v5764_v61  ;;  %v5851_v60 = vld [vmem:[%s6299_s15 + $0xb24] ss:$16 sps:$4 sm:$0xff]   ;;  %v5854_v61 = vld [vmem:[%s6299_s15 + $0xb2c] ss:$16 sps:$4 sm:$0xff]  }
 0x168   : > { %3669 = vmatpush1.bf16.msra.mxu0 %v5759_v62  ;;  %4013 = vmatpush1.bf16.msra.mxu1 %v5762_v63  ;;  %v5849_v62 = vld [vmem:[%s6299_s15 + $0xb20] ss:$16 sps:$4 sm:$0xff]   ;;  %v5852_v63 = vld [vmem:[%s6299_s15 + $0xb28] ss:$16 sps:$4 sm:$0xff]  }
 0x169   : > { %3670 = vmatprep.subr.bf16.mxu0 %v5767_v0  ;;  %4014 = vmatprep.subr.bf16.mxu1 %v5770_v1  ;;  %v5857_v0 = vld [vmem:[%s6299_s15 + $0xb44] ss:$16 sps:$4 sm:$0xff]   ;;  %v5860_v1 = vld [vmem:[%s6299_s15 + $0xb4c] ss:$16 sps:$4 sm:$0xff]  }
 0x16c   : > { %3671 = vmatpush1.bf16.msra.mxu0 %v5765_v2  ;;  %4015 = vmatpush1.bf16.msra.mxu1 %v5768_v3  ;;  %v5855_v2 = vld [vmem:[%s6299_s15 + $0xb40] ss:$16 sps:$4 sm:$0xff]   ;;  %v5858_v3 = vld [vmem:[%s6299_s15 + $0xb48] ss:$16 sps:$4 sm:$0xff]  }
 0x16d   : > { %3672 = vmatprep.subr.bf16.mxu0 %v5773_v4  ;;  %4016 = vmatprep.subr.bf16.mxu1 %v5776_v5  ;;  %v5863_v4 = vld [vmem:[%s6299_s15 + $0xb64] ss:$16 sps:$4 sm:$0xff]   ;;  %v5866_v5 = vld [vmem:[%s6299_s15 + $0xb6c] ss:$16 sps:$4 sm:$0xff]  }
 0x170   : > { %3673 = vmatpush1.bf16.msra.mxu0 %v5771_v6  ;;  %4017 = vmatpush1.bf16.msra.mxu1 %v5774_v7  ;;  %v5861_v6 = vld [vmem:[%s6299_s15 + $0xb60] ss:$16 sps:$4 sm:$0xff]   ;;  %v5864_v7 = vld [vmem:[%s6299_s15 + $0xb68] ss:$16 sps:$4 sm:$0xff]  }
 0x171   : > { %3674 = vmatprep.subr.bf16.mxu0 %v5779_v8  ;;  %4018 = vmatprep.subr.bf16.mxu1 %v5782_v9  ;;  %v5869_v8 = vld [vmem:[%s6299_s15 + $0xb84] ss:$16 sps:$4 sm:$0xff]   ;;  %v5872_v9 = vld [vmem:[%s6299_s15 + $0xb8c] ss:$16 sps:$4 sm:$0xff]  }
 0x174   : > { %3675 = vmatpush1.bf16.msra.mxu0 %v5777_v10  ;;  %4019 = vmatpush1.bf16.msra.mxu1 %v5780_v11  ;;  %v5867_v10 = vld [vmem:[%s6299_s15 + $0xb80] ss:$16 sps:$4 sm:$0xff]   ;;  %v5870_v11 = vld [vmem:[%s6299_s15 + $0xb88] ss:$16 sps:$4 sm:$0xff]  }
 0x175   : > { %3676 = vmatprep.subr.bf16.mxu0 %v5785_v12  ;;  %4020 = vmatprep.subr.bf16.mxu1 %v5788_v13  ;;  %v5875_v12 = vld [vmem:[%s6299_s15 + $0xba4] ss:$16 sps:$4 sm:$0xff]   ;;  %v5878_v13 = vld [vmem:[%s6299_s15 + $0xbac] ss:$16 sps:$4 sm:$0xff]  }
 0x178   : > { %3677 = vmatpush1.bf16.msra.mxu0 %v5783_v14  ;;  %4021 = vmatpush1.bf16.msra.mxu1 %v5786_v17  ;;  %v5873_v14 = vld [vmem:[%s6299_s15 + $0xba0] ss:$16 sps:$4 sm:$0xff]   ;;  %v5876_v17 = vld [vmem:[%s6299_s15 + $0xba8] ss:$16 sps:$4 sm:$0xff]  }
 0x179   : > { %3678 = vmatprep.subr.bf16.mxu0 %v5791_v18  ;;  %4022 = vmatprep.subr.bf16.mxu1 %v5794_v21  ;;  %v5881_v18 = vld [vmem:[%s6299_s15 + $0xbc4] ss:$16 sps:$4 sm:$0xff]   ;;  %v5884_v21 = vld [vmem:[%s6299_s15 + $0xbcc] ss:$16 sps:$4 sm:$0xff]  }
 0x17c   : > { %3679 = vmatpush1.bf16.msra.mxu0 %v5789_v16  ;;  %4023 = vmatpush1.bf16.msra.mxu1 %v5792_v23  ;;  %v5879_v16 = vld [vmem:[%s6299_s15 + $0xbc0] ss:$16 sps:$4 sm:$0xff]   ;;  %v5882_v23 = vld [vmem:[%s6299_s15 + $0xbc8] ss:$16 sps:$4 sm:$0xff]  }
 0x17d   : > { %3691 = vmatprep.subr.bf16.mxu0 %v5797_v24  ;;  %4035 = vmatprep.subr.bf16.mxu1 %v5800_v25  ;;  %v5887_v24 = vld [vmem:[%s6299_s15 + $0xbe4] ss:$16 sps:$4 sm:$0xff]   ;;  %v5890_v25 = vld [vmem:[%s6299_s15 + $0xbec] ss:$16 sps:$4 sm:$0xff]  }
 0x17f   : > { %3681 = vmatmul.mubr.bf16.vlgmr.msra.gmra.mrb[0].mxu0 %v4609_v20  ;;  %4025 = vmatmul.mubr.bf16.vlgmr.msra.gmra.mrb[0].mxu1 %v4609_v20  ;;  %v5885_v20 = vld [vmem:[%s6299_s15 + $0xbe0] ss:$16 sps:$4 sm:$0xff]  }
 0x180   : > { %3692 = vmatpush1.bf16.msra.mxu0 %v5795_v27  ;;  %4036 = vmatpush1.bf16.msra.mxu1 %v5798_v28  ;;  %v5888_v27 = vld [vmem:[%s6299_s15 + $0xbe8] ss:$16 sps:$4 sm:$0xff]   ;;  %v5893_v28 = vld [vmem:[%s6299_s15 + $0xc04] ss:$16 sps:$4 sm:$0xff]  }
 0x181   : > { %3693 = vmatprep.subr.bf16.mxu0 %v5803_v29  ;;  %4037 = vmatprep.subr.bf16.mxu1 %v5806_v30  ;;  %v5896_v29 = vld [vmem:[%s6299_s15 + $0xc0c] ss:$16 sps:$4 sm:$0xff]   ;;  %v4611_v30 = vcombine.low %v6707_v26, %v6712_v19  ;;  %v5899_v26 = vld [vmem:[%s6299_s15 + $0xc24] ss:$16 sps:$4 sm:$0xff]  }
 0x182   : > { %3723 = vmatprep.mubr.bf16.mxu0 %v4612_v31  ;;  %4067 = vmatprep.mubr.bf16.mxu1 %v4612_v31  ;;  %v6787_v31 = vld [vmem:[%s6995_s0 + $0x30] sm:$0xff]  ;;  %v5902_v19 = vld [vmem:[%s6299_s15 + $0xc2c] ss:$16 sps:$4 sm:$0xff]  }
 0x184   : > { %3694 = vmatpush1.bf16.msra.mxu0 %v5801_v15  ;;  %4038 = vmatpush1.bf16.msra.mxu1 %v5804_v22  ;;  %v6792_v15 = vld [vmem:[%s6995_s0 + $0x70] sm:$0xff] }
 0x185   : > { %3695 = vmatprep.subr.bf16.mxu0 %v5809_v32  ;;  %4039 = vmatprep.subr.bf16.mxu1 %v5812_v33  ;;  %v5891_v22 = vld [vmem:[%s6299_s15 + $0xc00] ss:$16 sps:$4 sm:$0xff]   ;;  %v5894_v32 = vld [vmem:[%s6299_s15 + $0xc08] ss:$16 sps:$4 sm:$0xff]   ;;  %v4614_v33 = vcombine.high %v6787_v31, %v6792_v15 }
 0x188   : > { %3696 = vmatpush1.bf16.msra.mxu0 %v5807_v34  ;;  %4040 = vmatpush1.bf16.msra.mxu1 %v5810_v35  ;;  %v5897_v34 = vld [vmem:[%s6299_s15 + $0xc20] ss:$16 sps:$4 sm:$0xff]   ;;  %v5900_v35 = vld [vmem:[%s6299_s15 + $0xc28] ss:$16 sps:$4 sm:$0xff]  }
 0x189   : > { %3697 = vmatprep.subr.bf16.mxu0 %v5815_v36  ;;  %4041 = vmatprep.subr.bf16.mxu1 %v5818_v37  ;;  %v5905_v36 = vld [vmem:[%s6299_s15 + $0xc44] ss:$16 sps:$4 sm:$0xff]   ;;  %v5908_v37 = vld [vmem:[%s6299_s15 + $0xc4c] ss:$16 sps:$4 sm:$0xff]  }
 0x18c   : > { %3698 = vmatpush1.bf16.msra.mxu0 %v5813_v38  ;;  %4042 = vmatpush1.bf16.msra.mxu1 %v5816_v39  ;;  %v5903_v38 = vld [vmem:[%s6299_s15 + $0xc40] ss:$16 sps:$4 sm:$0xff]   ;;  %v5906_v39 = vld [vmem:[%s6299_s15 + $0xc48] ss:$16 sps:$4 sm:$0xff]  }
 0x18d   : > { %3699 = vmatprep.subr.bf16.mxu0 %v5821_v40  ;;  %4043 = vmatprep.subr.bf16.mxu1 %v5824_v41  ;;  %v5911_v40 = vld [vmem:[%s6299_s15 + $0xc64] ss:$16 sps:$4 sm:$0xff]   ;;  %v5914_v41 = vld [vmem:[%s6299_s15 + $0xc6c] ss:$16 sps:$4 sm:$0xff]  }
 0x190   : > { %3700 = vmatpush1.bf16.msra.mxu0 %v5819_v42  ;;  %4044 = vmatpush1.bf16.msra.mxu1 %v5822_v43  ;;  %v5909_v42 = vld [vmem:[%s6299_s15 + $0xc60] ss:$16 sps:$4 sm:$0xff]   ;;  %v5912_v43 = vld [vmem:[%s6299_s15 + $0xc68] ss:$16 sps:$4 sm:$0xff]  }
 0x191   : > { %3701 = vmatprep.subr.bf16.mxu0 %v5827_v44  ;;  %4045 = vmatprep.subr.bf16.mxu1 %v5830_v45  ;;  %v5917_v44 = vld [vmem:[%s6299_s15 + $0xc84] ss:$16 sps:$4 sm:$0xff]   ;;  %v5920_v45 = vld [vmem:[%s6299_s15 + $0xc8c] ss:$16 sps:$4 sm:$0xff]  }
 0x194   : > { %3702 = vmatpush1.bf16.msra.mxu0 %v5825_v46  ;;  %4046 = vmatpush1.bf16.msra.mxu1 %v5828_v47  ;;  %v5915_v46 = vld [vmem:[%s6299_s15 + $0xc80] ss:$16 sps:$4 sm:$0xff]   ;;  %v5918_v47 = vld [vmem:[%s6299_s15 + $0xc88] ss:$16 sps:$4 sm:$0xff]  }
 0x195   : > { %3703 = vmatprep.subr.bf16.mxu0 %v5833_v48  ;;  %4047 = vmatprep.subr.bf16.mxu1 %v5836_v49  ;;  %v5923_v48 = vld [vmem:[%s6299_s15 + $0xca4] ss:$16 sps:$4 sm:$0xff]   ;;  %v5926_v49 = vld [vmem:[%s6299_s15 + $0xcac] ss:$16 sps:$4 sm:$0xff]  }
 0x198   : > { %3704 = vmatpush1.bf16.msra.mxu0 %v5831_v50  ;;  %4048 = vmatpush1.bf16.msra.mxu1 %v5834_v51  ;;  %v5921_v50 = vld [vmem:[%s6299_s15 + $0xca0] ss:$16 sps:$4 sm:$0xff]   ;;  %v5924_v51 = vld [vmem:[%s6299_s15 + $0xca8] ss:$16 sps:$4 sm:$0xff]  }
 0x199   : > { %3705 = vmatprep.subr.bf16.mxu0 %v5839_v52  ;;  %4049 = vmatprep.subr.bf16.mxu1 %v5842_v53  ;;  %v5929_v52 = vld [vmem:[%s6299_s15 + $0xcc4] ss:$16 sps:$4 sm:$0xff]   ;;  %v5932_v53 = vld [vmem:[%s6299_s15 + $0xccc] ss:$16 sps:$4 sm:$0xff]  }
 0x19c   : > { %3706 = vmatpush1.bf16.msra.mxu0 %v5837_v54  ;;  %4050 = vmatpush1.bf16.msra.mxu1 %v5840_v55  ;;  %v5927_v54 = vld [vmem:[%s6299_s15 + $0xcc0] ss:$16 sps:$4 sm:$0xff]   ;;  %v5930_v55 = vld [vmem:[%s6299_s15 + $0xcc8] ss:$16 sps:$4 sm:$0xff]  }
 0x19d   : > { %3707 = vmatprep.subr.bf16.mxu0 %v5845_v56  ;;  %4051 = vmatprep.subr.bf16.mxu1 %v5848_v57  ;;  %v5935_v56 = vld [vmem:[%s6299_s15 + $0xce4] ss:$16 sps:$4 sm:$0xff]   ;;  %v5938_v57 = vld [vmem:[%s6299_s15 + $0xcec] ss:$16 sps:$4 sm:$0xff]  }
 0x1a0   : > { %3708 = vmatpush1.bf16.msra.mxu0 %v5843_v58  ;;  %4052 = vmatpush1.bf16.msra.mxu1 %v5846_v59  ;;  %v5933_v58 = vld [vmem:[%s6299_s15 + $0xce0] ss:$16 sps:$4 sm:$0xff]   ;;  %v5936_v59 = vld [vmem:[%s6299_s15 + $0xce8] ss:$16 sps:$4 sm:$0xff]  }
 0x1a1   : > { %3709 = vmatprep.subr.bf16.mxu0 %v5851_v60  ;;  %4053 = vmatprep.subr.bf16.mxu1 %v5854_v61  ;;  %v5941_v60 = vld [vmem:[%s6299_s15 + $0xd04] ss:$16 sps:$4 sm:$0xff]   ;;  %v5944_v61 = vld [vmem:[%s6299_s15 + $0xd0c] ss:$16 sps:$4 sm:$0xff]  }
 0x1a4   : > { %3710 = vmatpush1.bf16.msra.mxu0 %v5849_v62  ;;  %4054 = vmatpush1.bf16.msra.mxu1 %v5852_v63  ;;  %v5939_v62 = vld [vmem:[%s6299_s15 + $0xd00] ss:$16 sps:$4 sm:$0xff]   ;;  %v5942_v63 = vld [vmem:[%s6299_s15 + $0xd08] ss:$16 sps:$4 sm:$0xff]  }
 0x1a5   : > { %3711 = vmatprep.subr.bf16.mxu0 %v5857_v0  ;;  %4055 = vmatprep.subr.bf16.mxu1 %v5860_v1  ;;  %v5947_v0 = vld [vmem:[%s6299_s15 + $0xd24] ss:$16 sps:$4 sm:$0xff]   ;;  %v5950_v1 = vld [vmem:[%s6299_s15 + $0xd2c] ss:$16 sps:$4 sm:$0xff]  }
 0x1a8   : > { %3712 = vmatpush1.bf16.msra.mxu0 %v5855_v2  ;;  %4056 = vmatpush1.bf16.msra.mxu1 %v5858_v3  ;;  %v5945_v2 = vld [vmem:[%s6299_s15 + $0xd20] ss:$16 sps:$4 sm:$0xff]   ;;  %v5948_v3 = vld [vmem:[%s6299_s15 + $0xd28] ss:$16 sps:$4 sm:$0xff]  }
 0x1a9   : > { %3713 = vmatprep.subr.bf16.mxu0 %v5863_v4  ;;  %4057 = vmatprep.subr.bf16.mxu1 %v5866_v5  ;;  %v5953_v4 = vld [vmem:[%s6299_s15 + $0xd44] ss:$16 sps:$4 sm:$0xff]   ;;  %v5956_v5 = vld [vmem:[%s6299_s15 + $0xd4c] ss:$16 sps:$4 sm:$0xff]  }
 0x1ac   : > { %3714 = vmatpush1.bf16.msra.mxu0 %v5861_v6  ;;  %4058 = vmatpush1.bf16.msra.mxu1 %v5864_v7  ;;  %v5951_v6 = vld [vmem:[%s6299_s15 + $0xd40] ss:$16 sps:$4 sm:$0xff]   ;;  %v5954_v7 = vld [vmem:[%s6299_s15 + $0xd48] ss:$16 sps:$4 sm:$0xff]  }
 0x1ad   : > { %3715 = vmatprep.subr.bf16.mxu0 %v5869_v8  ;;  %4059 = vmatprep.subr.bf16.mxu1 %v5872_v9  ;;  %v5959_v8 = vld [vmem:[%s6299_s15 + $0xd64] ss:$16 sps:$4 sm:$0xff]   ;;  %v5962_v9 = vld [vmem:[%s6299_s15 + $0xd6c] ss:$16 sps:$4 sm:$0xff]  }
 0x1b0   : > { %3716 = vmatpush1.bf16.msra.mxu0 %v5867_v10  ;;  %4060 = vmatpush1.bf16.msra.mxu1 %v5870_v11  ;;  %v5957_v10 = vld [vmem:[%s6299_s15 + $0xd60] ss:$16 sps:$4 sm:$0xff]   ;;  %v5960_v11 = vld [vmem:[%s6299_s15 + $0xd68] ss:$16 sps:$4 sm:$0xff]  }
 0x1b1   : > { %3717 = vmatprep.subr.bf16.mxu0 %v5875_v12  ;;  %4061 = vmatprep.subr.bf16.mxu1 %v5878_v13  ;;  %v5965_v12 = vld [vmem:[%s6299_s15 + $0xd84] ss:$16 sps:$4 sm:$0xff]   ;;  %v5968_v13 = vld [vmem:[%s6299_s15 + $0xd8c] ss:$16 sps:$4 sm:$0xff]  }
 0x1b4   : > { %3718 = vmatpush1.bf16.msra.mxu0 %v5873_v14  ;;  %4062 = vmatpush1.bf16.msra.mxu1 %v5876_v17  ;;  %v5963_v14 = vld [vmem:[%s6299_s15 + $0xd80] ss:$16 sps:$4 sm:$0xff]   ;;  %v5966_v17 = vld [vmem:[%s6299_s15 + $0xd88] ss:$16 sps:$4 sm:$0xff]  }
 0x1b5   : > { %3719 = vmatprep.subr.bf16.mxu0 %v5881_v18  ;;  %4063 = vmatprep.subr.bf16.mxu1 %v5884_v21  ;;  %v5971_v18 = vld [vmem:[%s6299_s15 + $0xda4] ss:$16 sps:$4 sm:$0xff]   ;;  %v5974_v21 = vld [vmem:[%s6299_s15 + $0xdac] ss:$16 sps:$4 sm:$0xff]  }
 0x1b8   : > { %3720 = vmatpush1.bf16.msra.mxu0 %v5879_v16  ;;  %4064 = vmatpush1.bf16.msra.mxu1 %v5882_v23  ;;  %v5969_v16 = vld [vmem:[%s6299_s15 + $0xda0] ss:$16 sps:$4 sm:$0xff]   ;;  %v5972_v23 = vld [vmem:[%s6299_s15 + $0xda8] ss:$16 sps:$4 sm:$0xff]  }
 0x1b9   : > { %3721 = vmatprep.subr.bf16.mxu0 %v5887_v24  ;;  %4065 = vmatprep.subr.bf16.mxu1 %v5890_v25  ;;  %v5977_v24 = vld [vmem:[%s6299_s15 + $0xdc4] ss:$16 sps:$4 sm:$0xff]   ;;  %v5980_v25 = vld [vmem:[%s6299_s15 + $0xdcc] ss:$16 sps:$4 sm:$0xff]  }
 0x1bc   : > { %3722 = vmatpush1.bf16.msra.mxu0 %v5885_v20  ;;  %4066 = vmatpush1.bf16.msra.mxu1 %v5888_v27  ;;  %v5975_v20 = vld [vmem:[%s6299_s15 + $0xdc0] ss:$16 sps:$4 sm:$0xff]   ;;  %v5978_v27 = vld [vmem:[%s6299_s15 + $0xdc8] ss:$16 sps:$4 sm:$0xff]  }
 0x1bd   : > { %3734 = vmatprep.subr.bf16.mxu0 %v5893_v28  ;;  %4078 = vmatprep.subr.bf16.mxu1 %v5896_v29  ;;  %v5983_v28 = vld [vmem:[%s6299_s15 + $0xde4] ss:$16 sps:$4 sm:$0xff]   ;;  %v5986_v29 = vld [vmem:[%s6299_s15 + $0xdec] ss:$16 sps:$4 sm:$0xff]  }
 0x1bf   : > { %3724 = vmatmul.mubr.bf16.vlgmr.msra.gmra.mrb[0].mxu0 %v4611_v30  ;;  %4068 = vmatmul.mubr.bf16.vlgmr.msra.gmra.mrb[0].mxu1 %v4611_v30  ;;  %v5981_v30 = vld [vmem:[%s6299_s15 + $0xde0] ss:$16 sps:$4 sm:$0xff]  }
 0x1c0   : > { %3735 = vmatpush1.bf16.msra.mxu0 %v5891_v22  ;;  %4079 = vmatpush1.bf16.msra.mxu1 %v5894_v32  ;;  %v5984_v22 = vld [vmem:[%s6299_s15 + $0xde8] ss:$16 sps:$4 sm:$0xff]   ;;  %v5989_v32 = vld [vmem:[%s6299_s15 + $0xe04] ss:$16 sps:$4 sm:$0xff]  }
 0x1c1   : > { %3736 = vmatprep.subr.bf16.mxu0 %v5899_v26  ;;  %4080 = vmatprep.subr.bf16.mxu1 %v5902_v19  ;;  %v5992_v26 = vld [vmem:[%s6299_s15 + $0xe0c] ss:$16 sps:$4 sm:$0xff]   ;;  %v4613_v19 = vcombine.low %v6787_v31, %v6792_v15  ;;  %v5995_v31 = vld [vmem:[%s6299_s15 + $0xe24] ss:$16 sps:$4 sm:$0xff]  }
 0x1c2   : > { %3766 = vmatprep.mubr.bf16.mxu0 %v4614_v33  ;;  %4110 = vmatprep.mubr.bf16.mxu1 %v4614_v33  ;;  %v6865_v33 = vld [vmem:[%s6995_s0 + $0x38] sm:$0xff] }
 0x1c3   : > { %v5998_v15 = vld [vmem:[%s6299_s15 + $0xe2c] ss:$16 sps:$4 sm:$0xff]  }
 0x1c4   : > { %3737 = vmatpush1.bf16.msra.mxu0 %v5897_v34  ;;  %4081 = vmatpush1.bf16.msra.mxu1 %v5900_v35  ;;  %v6870_v34 = vld [vmem:[%s6995_s0 + $0x78] sm:$0xff]  ;;  %v5987_v35 = vld [vmem:[%s6299_s15 + $0xe00] ss:$16 sps:$4 sm:$0xff]  }
 0x1c5   : > { %3738 = vmatprep.subr.bf16.mxu0 %v5905_v36  ;;  %4082 = vmatprep.subr.bf16.mxu1 %v5908_v37  ;;  %v5990_v36 = vld [vmem:[%s6299_s15 + $0xe08] ss:$16 sps:$4 sm:$0xff]   ;;  %v4616_v37 = vcombine.high %v6865_v33, %v6870_v34 }
 0x1c8   : > { %3739 = vmatpush1.bf16.msra.mxu0 %v5903_v38  ;;  %4083 = vmatpush1.bf16.msra.mxu1 %v5906_v39  ;;  %v5993_v38 = vld [vmem:[%s6299_s15 + $0xe20] ss:$16 sps:$4 sm:$0xff]   ;;  %v5996_v39 = vld [vmem:[%s6299_s15 + $0xe28] ss:$16 sps:$4 sm:$0xff]  }
 0x1c9   : > { %3740 = vmatprep.subr.bf16.mxu0 %v5911_v40  ;;  %4084 = vmatprep.subr.bf16.mxu1 %v5914_v41  ;;  %v6001_v40 = vld [vmem:[%s6299_s15 + $0xe44] ss:$16 sps:$4 sm:$0xff]   ;;  %v6004_v41 = vld [vmem:[%s6299_s15 + $0xe4c] ss:$16 sps:$4 sm:$0xff]  }
 0x1cc   : > { %3741 = vmatpush1.bf16.msra.mxu0 %v5909_v42  ;;  %4085 = vmatpush1.bf16.msra.mxu1 %v5912_v43  ;;  %v5999_v42 = vld [vmem:[%s6299_s15 + $0xe40] ss:$16 sps:$4 sm:$0xff]   ;;  %v6002_v43 = vld [vmem:[%s6299_s15 + $0xe48] ss:$16 sps:$4 sm:$0xff]  }
 0x1cd   : > { %3742 = vmatprep.subr.bf16.mxu0 %v5917_v44  ;;  %4086 = vmatprep.subr.bf16.mxu1 %v5920_v45  ;;  %v6007_v44 = vld [vmem:[%s6299_s15 + $0xe64] ss:$16 sps:$4 sm:$0xff]   ;;  %v6010_v45 = vld [vmem:[%s6299_s15 + $0xe6c] ss:$16 sps:$4 sm:$0xff]  }
 0x1d0   : > { %3743 = vmatpush1.bf16.msra.mxu0 %v5915_v46  ;;  %4087 = vmatpush1.bf16.msra.mxu1 %v5918_v47  ;;  %v6005_v46 = vld [vmem:[%s6299_s15 + $0xe60] ss:$16 sps:$4 sm:$0xff]   ;;  %v6008_v47 = vld [vmem:[%s6299_s15 + $0xe68] ss:$16 sps:$4 sm:$0xff]  }
 0x1d1   : > { %3744 = vmatprep.subr.bf16.mxu0 %v5923_v48  ;;  %4088 = vmatprep.subr.bf16.mxu1 %v5926_v49  ;;  %v6013_v48 = vld [vmem:[%s6299_s15 + $0xe84] ss:$16 sps:$4 sm:$0xff]   ;;  %v6016_v49 = vld [vmem:[%s6299_s15 + $0xe8c] ss:$16 sps:$4 sm:$0xff]  }
 0x1d4   : > { %3745 = vmatpush1.bf16.msra.mxu0 %v5921_v50  ;;  %4089 = vmatpush1.bf16.msra.mxu1 %v5924_v51  ;;  %v6011_v50 = vld [vmem:[%s6299_s15 + $0xe80] ss:$16 sps:$4 sm:$0xff]   ;;  %v6014_v51 = vld [vmem:[%s6299_s15 + $0xe88] ss:$16 sps:$4 sm:$0xff]  }
 0x1d5   : > { %3746 = vmatprep.subr.bf16.mxu0 %v5929_v52  ;;  %4090 = vmatprep.subr.bf16.mxu1 %v5932_v53  ;;  %v6019_v52 = vld [vmem:[%s6299_s15 + $0xea4] ss:$16 sps:$4 sm:$0xff]   ;;  %v6022_v53 = vld [vmem:[%s6299_s15 + $0xeac] ss:$16 sps:$4 sm:$0xff]  }
 0x1d8   : > { %3747 = vmatpush1.bf16.msra.mxu0 %v5927_v54  ;;  %4091 = vmatpush1.bf16.msra.mxu1 %v5930_v55  ;;  %v6017_v54 = vld [vmem:[%s6299_s15 + $0xea0] ss:$16 sps:$4 sm:$0xff]   ;;  %v6020_v55 = vld [vmem:[%s6299_s15 + $0xea8] ss:$16 sps:$4 sm:$0xff]  }
 0x1d9   : > { %3748 = vmatprep.subr.bf16.mxu0 %v5935_v56  ;;  %4092 = vmatprep.subr.bf16.mxu1 %v5938_v57  ;;  %v6025_v56 = vld [vmem:[%s6299_s15 + $0xec4] ss:$16 sps:$4 sm:$0xff]   ;;  %v6028_v57 = vld [vmem:[%s6299_s15 + $0xecc] ss:$16 sps:$4 sm:$0xff]  }
 0x1dc   : > { %3749 = vmatpush1.bf16.msra.mxu0 %v5933_v58  ;;  %4093 = vmatpush1.bf16.msra.mxu1 %v5936_v59  ;;  %v6023_v58 = vld [vmem:[%s6299_s15 + $0xec0] ss:$16 sps:$4 sm:$0xff]   ;;  %v6026_v59 = vld [vmem:[%s6299_s15 + $0xec8] ss:$16 sps:$4 sm:$0xff]  }
 0x1dd   : > { %3750 = vmatprep.subr.bf16.mxu0 %v5941_v60  ;;  %4094 = vmatprep.subr.bf16.mxu1 %v5944_v61  ;;  %v6031_v60 = vld [vmem:[%s6299_s15 + $0xee4] ss:$16 sps:$4 sm:$0xff]   ;;  %v6034_v61 = vld [vmem:[%s6299_s15 + $0xeec] ss:$16 sps:$4 sm:$0xff]  }
 0x1e0   : > { %3751 = vmatpush1.bf16.msra.mxu0 %v5939_v62  ;;  %4095 = vmatpush1.bf16.msra.mxu1 %v5942_v63  ;;  %v6029_v62 = vld [vmem:[%s6299_s15 + $0xee0] ss:$16 sps:$4 sm:$0xff]   ;;  %v6032_v63 = vld [vmem:[%s6299_s15 + $0xee8] ss:$16 sps:$4 sm:$0xff]  }
 0x1e1   : > { %3752 = vmatprep.subr.bf16.mxu0 %v5947_v0  ;;  %4096 = vmatprep.subr.bf16.mxu1 %v5950_v1  ;;  %v6037_v0 = vld [vmem:[%s6299_s15 + $0xf04] ss:$16 sps:$4 sm:$0xff]   ;;  %v6040_v1 = vld [vmem:[%s6299_s15 + $0xf0c] ss:$16 sps:$4 sm:$0xff]  }
 0x1e4   : > { %3753 = vmatpush1.bf16.msra.mxu0 %v5945_v2  ;;  %4097 = vmatpush1.bf16.msra.mxu1 %v5948_v3  ;;  %v6035_v2 = vld [vmem:[%s6299_s15 + $0xf00] ss:$16 sps:$4 sm:$0xff]   ;;  %v6038_v3 = vld [vmem:[%s6299_s15 + $0xf08] ss:$16 sps:$4 sm:$0xff]  }
 0x1e5   : > { %3754 = vmatprep.subr.bf16.mxu0 %v5953_v4  ;;  %4098 = vmatprep.subr.bf16.mxu1 %v5956_v5  ;;  %v6043_v4 = vld [vmem:[%s6299_s15 + $0xf24] ss:$16 sps:$4 sm:$0xff]   ;;  %v6046_v5 = vld [vmem:[%s6299_s15 + $0xf2c] ss:$16 sps:$4 sm:$0xff]  }
 0x1e8   : > { %3755 = vmatpush1.bf16.msra.mxu0 %v5951_v6  ;;  %4099 = vmatpush1.bf16.msra.mxu1 %v5954_v7  ;;  %v6041_v6 = vld [vmem:[%s6299_s15 + $0xf20] ss:$16 sps:$4 sm:$0xff]   ;;  %v6044_v7 = vld [vmem:[%s6299_s15 + $0xf28] ss:$16 sps:$4 sm:$0xff]  }
 0x1e9   : > { %3756 = vmatprep.subr.bf16.mxu0 %v5959_v8  ;;  %4100 = vmatprep.subr.bf16.mxu1 %v5962_v9  ;;  %v6049_v8 = vld [vmem:[%s6299_s15 + $0xf44] ss:$16 sps:$4 sm:$0xff]   ;;  %v6052_v9 = vld [vmem:[%s6299_s15 + $0xf4c] ss:$16 sps:$4 sm:$0xff]  }
 0x1ec   : > { %3757 = vmatpush1.bf16.msra.mxu0 %v5957_v10  ;;  %4101 = vmatpush1.bf16.msra.mxu1 %v5960_v11  ;;  %v6047_v10 = vld [vmem:[%s6299_s15 + $0xf40] ss:$16 sps:$4 sm:$0xff]   ;;  %v6050_v11 = vld [vmem:[%s6299_s15 + $0xf48] ss:$16 sps:$4 sm:$0xff]  }
 0x1ed   : > { %3758 = vmatprep.subr.bf16.mxu0 %v5965_v12  ;;  %4102 = vmatprep.subr.bf16.mxu1 %v5968_v13  ;;  %v6055_v12 = vld [vmem:[%s6299_s15 + $0xf64] ss:$16 sps:$4 sm:$0xff]   ;;  %v6058_v13 = vld [vmem:[%s6299_s15 + $0xf6c] ss:$16 sps:$4 sm:$0xff]  }
 0x1f0   : > { %3759 = vmatpush1.bf16.msra.mxu0 %v5963_v14  ;;  %4103 = vmatpush1.bf16.msra.mxu1 %v5966_v17  ;;  %v6053_v14 = vld [vmem:[%s6299_s15 + $0xf60] ss:$16 sps:$4 sm:$0xff]   ;;  %v6056_v17 = vld [vmem:[%s6299_s15 + $0xf68] ss:$16 sps:$4 sm:$0xff]  }
 0x1f1   : > { %3760 = vmatprep.subr.bf16.mxu0 %v5971_v18  ;;  %4104 = vmatprep.subr.bf16.mxu1 %v5974_v21  ;;  %v6061_v18 = vld [vmem:[%s6299_s15 + $0xf84] ss:$16 sps:$4 sm:$0xff]   ;;  %v6064_v21 = vld [vmem:[%s6299_s15 + $0xf8c] ss:$16 sps:$4 sm:$0xff]  }
 0x1f4   : > { %3761 = vmatpush1.bf16.msra.mxu0 %v5969_v16  ;;  %4105 = vmatpush1.bf16.msra.mxu1 %v5972_v23  ;;  %v6059_v16 = vld [vmem:[%s6299_s15 + $0xf80] ss:$16 sps:$4 sm:$0xff]   ;;  %v6062_v23 = vld [vmem:[%s6299_s15 + $0xf88] ss:$16 sps:$4 sm:$0xff]  }
 0x1f5   : > { %3762 = vmatprep.subr.bf16.mxu0 %v5977_v24  ;;  %4106 = vmatprep.subr.bf16.mxu1 %v5980_v25  ;;  %v6067_v24 = vld [vmem:[%s6299_s15 + $0xfa4] ss:$16 sps:$4 sm:$0xff]   ;;  %v6070_v25 = vld [vmem:[%s6299_s15 + $0xfac] ss:$16 sps:$4 sm:$0xff]  }
 0x1f8   : > { %3763 = vmatpush1.bf16.msra.mxu0 %v5975_v20  ;;  %4107 = vmatpush1.bf16.msra.mxu1 %v5978_v27  ;;  %v6065_v20 = vld [vmem:[%s6299_s15 + $0xfa0] ss:$16 sps:$4 sm:$0xff]   ;;  %v6068_v27 = vld [vmem:[%s6299_s15 + $0xfa8] ss:$16 sps:$4 sm:$0xff]  }
 0x1f9   : > { %3764 = vmatprep.subr.bf16.mxu0 %v5983_v28  ;;  %4108 = vmatprep.subr.bf16.mxu1 %v5986_v29  ;;  %v6073_v28 = vld [vmem:[%s6299_s15 + $0xfc4] ss:$16 sps:$4 sm:$0xff]   ;;  %v6076_v29 = vld [vmem:[%s6299_s15 + $0xfcc] ss:$16 sps:$4 sm:$0xff]  }
 0x1fc   : > { %3765 = vmatpush1.bf16.msra.mxu0 %v5981_v30  ;;  %4109 = vmatpush1.bf16.msra.mxu1 %v5984_v22  ;;  %v6071_v30 = vld [vmem:[%s6299_s15 + $0xfc0] ss:$16 sps:$4 sm:$0xff]   ;;  %v6074_v22 = vld [vmem:[%s6299_s15 + $0xfc8] ss:$16 sps:$4 sm:$0xff]  }
 0x1fd   : > { %3777 = vmatprep.subr.bf16.mxu0 %v5989_v32  ;;  %4121 = vmatprep.subr.bf16.mxu1 %v5992_v26  ;;  %v6079_v32 = vld [vmem:[%s6299_s15 + $0xfe4] ss:$16 sps:$4 sm:$0xff]   ;;  %v6082_v26 = vld [vmem:[%s6299_s15 + $0xfec] ss:$16 sps:$4 sm:$0xff]  }
 0x1ff   : > { %3767 = vmatmul.mubr.bf16.vlgmr.msra.gmra.mrb[0].mxu0 %v4613_v19  ;;  %4111 = vmatmul.mubr.bf16.vlgmr.msra.gmra.mrb[0].mxu1 %v4613_v19  ;;  %v6077_v19 = vld [vmem:[%s6299_s15 + $0xfe0] ss:$16 sps:$4 sm:$0xff]  }
 0x200   : > { %3778 = vmatpush1.bf16.msra.mxu0 %v5987_v35  ;;  %4122 = vmatpush1.bf16.msra.mxu1 %v5990_v36  ;;  %v6080_v35 = vld [vmem:[%s6299_s15 + $0xfe8] ss:$16 sps:$4 sm:$0xff]   ;;  %v6083_v36 = vld [vmem:[%s6316_s27 + $0x40] sm:$0xff]  }
 0x201   : > { %3779 = vmatprep.subr.bf16.mxu0 %v5995_v31  ;;  %4123 = vmatprep.subr.bf16.mxu1 %v5998_v15  ;;  %v6084_v31 = vld [vmem:[%s6316_s27 + $0xc0] sm:$0xff]   ;;  %v4615_v15 = vcombine.low %v6865_v33, %v6870_v34  ;;  %v6090_v33 = vld [vmem:[%s6316_s27 + $0x88] sm:$0xff]   ;;  %v6091_v34 = vld [vmem:[%s6316_s27 + $0x50] sm:$0xff]  }
 0x202   : > { %3809 = vmatprep.mubr.bf16.mxu0 %v4616_v37  ;;  %4153 = vmatprep.mubr.bf16.mxu1 %v4616_v37  ;;  %v6085_v37 = vld [vmem:[%s6316_s27] sm:$0xff]  }
 0x204   : > { %3780 = vmatpush1.bf16.msra.mxu0 %v5993_v38  ;;  %4124 = vmatpush1.bf16.msra.mxu1 %v5996_v39  ;;  %v6086_v38 = vld [vmem:[%s6316_s27 + $0x80] sm:$0xff]   ;;  %v6087_v39 = vld [vmem:[%s6316_s27 + $0x48] sm:$0xff]  }
 0x205   : > { %3781 = vmatprep.subr.bf16.mxu0 %v6001_v40  ;;  %4125 = vmatprep.subr.bf16.mxu1 %v6004_v41  ;;  %v6088_v40 = vld [vmem:[%s6316_s27 + $0xc8] sm:$0xff]  }
 0x206   : > { %v6089_v41 = vld [vmem:[%s6316_s27 + $0x8] sm:$0xff]  }
 0x208   : > { %3782 = vmatpush1.bf16.msra.mxu0 %v5999_v42  ;;  %4126 = vmatpush1.bf16.msra.mxu1 %v6002_v43  ;;  %v6092_v42 = vld [vmem:[%s6316_s27 + $0xd0] sm:$0xff]  }
 0x209   : > { %3783 = vmatprep.subr.bf16.mxu0 %v6007_v44  ;;  %4127 = vmatprep.subr.bf16.mxu1 %v6010_v45  ;;  %v6093_v43 = vld [vmem:[%s6316_s27 + $0x10] sm:$0xff]   ;;  %v6095_v45 = vld [vmem:[%s6316_s27 + $0x58] sm:$0xff]  }
 0x20a   : > { %v6094_v44 = vld [vmem:[%s6316_s27 + $0x90] sm:$0xff]  }
 0x20c   : > { %3784 = vmatpush1.bf16.msra.mxu0 %v6005_v46  ;;  %4128 = vmatpush1.bf16.msra.mxu1 %v6008_v47  ;;  %v6096_v46 = vld [vmem:[%s6316_s27 + $0xd8] sm:$0xff]  }
 0x20d   : > { %3785 = vmatprep.subr.bf16.mxu0 %v6013_v48  ;;  %4129 = vmatprep.subr.bf16.mxu1 %v6016_v49  ;;  %v6097_v47 = vld [vmem:[%s6316_s27 + $0x18] sm:$0xff]   ;;  %v6099_v49 = vld [vmem:[%s6316_s27 + $0x60] sm:$0xff]  }
 0x20e   : > { %v6098_v48 = vld [vmem:[%s6316_s27 + $0x98] sm:$0xff]  }
 0x210   : > { %3786 = vmatpush1.bf16.msra.mxu0 %v6011_v50  ;;  %4130 = vmatpush1.bf16.msra.mxu1 %v6014_v51  ;;  %v6100_v50 = vld [vmem:[%s6316_s27 + $0xe0] sm:$0xff]  }
 0x211   : > { %3787 = vmatprep.subr.bf16.mxu0 %v6019_v52  ;;  %4131 = vmatprep.subr.bf16.mxu1 %v6022_v53  ;;  %v6101_v51 = vld [vmem:[%s6316_s27 + $0x20] sm:$0xff]   ;;  %v6103_v53 = vld [vmem:[%s6316_s27 + $0x68] sm:$0xff]  }
 0x212   : > { %v6102_v52 = vld [vmem:[%s6316_s27 + $0xa0] sm:$0xff]  }
 0x214   : > { %3788 = vmatpush1.bf16.msra.mxu0 %v6017_v54  ;;  %4132 = vmatpush1.bf16.msra.mxu1 %v6020_v55  ;;  %v6104_v54 = vld [vmem:[%s6316_s27 + $0xe8] sm:$0xff]  }
 0x215   : > { %3789 = vmatprep.subr.bf16.mxu0 %v6025_v56  ;;  %4133 = vmatprep.subr.bf16.mxu1 %v6028_v57  ;;  %v6105_v55 = vld [vmem:[%s6316_s27 + $0x28] sm:$0xff]   ;;  %v6107_v57 = vld [vmem:[%s6316_s27 + $0x70] sm:$0xff]  }
 0x216   : > { %v6106_v56 = vld [vmem:[%s6316_s27 + $0xa8] sm:$0xff]  }
 0x218   : > { %3790 = vmatpush1.bf16.msra.mxu0 %v6023_v58  ;;  %4134 = vmatpush1.bf16.msra.mxu1 %v6026_v59  ;;  %v6108_v58 = vld [vmem:[%s6316_s27 + $0xf0] sm:$0xff]  }
 0x219   : > { %3791 = vmatprep.subr.bf16.mxu0 %v6031_v60  ;;  %4135 = vmatprep.subr.bf16.mxu1 %v6034_v61  ;;  %v6109_v59 = vld [vmem:[%s6316_s27 + $0x30] sm:$0xff]   ;;  %v6111_v61 = vld [vmem:[%s6316_s27 + $0x78] sm:$0xff]  }
 0x21a   : > { %v6110_v60 = vld [vmem:[%s6316_s27 + $0xb0] sm:$0xff]  }
 0x21c   : > { %3792 = vmatpush1.bf16.msra.mxu0 %v6029_v62  ;;  %4136 = vmatpush1.bf16.msra.mxu1 %v6032_v63  ;;  %v6112_v62 = vld [vmem:[%s6316_s27 + $0xf8] sm:$0xff]  }
 0x21d   : > { %3793 = vmatprep.subr.bf16.mxu0 %v6037_v0  ;;  %4137 = vmatprep.subr.bf16.mxu1 %v6040_v1  ;;  %v6113_v63 = vld [vmem:[%s6316_s27 + $0x38] sm:$0xff]   ;;  %v816_v1 = vlaneseq }
 0x21e   : > { %v6114_v0 = vld [vmem:[%s6316_s27 + $0xb8] sm:$0xff]  }
 0x220   : > { %3794 = vmatpush1.bf16.msra.mxu0 %v6035_v2  ;;  %4138 = vmatpush1.bf16.msra.mxu1 %v6038_v3  ;;  %v817_v2 = vshrl.u32 %v816_v1, 7 }
 0x221   : > { %3795 = vmatprep.subr.bf16.mxu0 %v6043_v4  ;;  %4139 = vmatprep.subr.bf16.mxu1 %v6046_v5  ;;  %v814_v5 = vld [vmem:[%s264_s12] sm:$0xf] }
 0x222   : > { %v818_v3 = vsub.s32 0, %v817_v2  ;;  %v826_v4 = vsub.s32 2, %v817_v2 }
 0x224   : > { %3796 = vmatpush1.bf16.msra.mxu0 %v6041_v6  ;;  %4140 = vmatpush1.bf16.msra.mxu1 %v6044_v7  ;;  %v822_v6 = vsub.s32 1, %v817_v2  ;;  %v830_v7 = vsub.s32 3, %v817_v2 }
 0x225   : > { %3797 = vmatprep.subr.bf16.mxu0 %v6049_v8  ;;  %4141 = vmatprep.subr.bf16.mxu1 %v6052_v9  ;;  %v819_v8 = vrot.slane %v814_v5, %v818_v3  ;;  %v827_v9 = vrot.slane %v814_v5, %v826_v4 }
 0x228   : > { %3798 = vmatpush1.bf16.msra.mxu0 %v6047_v10  ;;  %4142 = vmatpush1.bf16.msra.mxu1 %v6050_v11  ;;  %v823_v10 = vrot.slane %v814_v5, %v822_v6  ;;  %v831_v11 = vrot.slane %v814_v5, %v830_v7 }
 0x229   : > { %3799 = vmatprep.subr.bf16.mxu0 %v6055_v12  ;;  %4143 = vmatprep.subr.bf16.mxu1 %v6058_v13 }
 0x22c   : > { %3800 = vmatpush1.bf16.msra.mxu0 %v6053_v14  ;;  %4144 = vmatpush1.bf16.msra.mxu1 %v6056_v17 }
 0x22d   : > { %3801 = vmatprep.subr.bf16.mxu0 %v6061_v18  ;;  %4145 = vmatprep.subr.bf16.mxu1 %v6064_v21 }
 0x230   : > { %3802 = vmatpush1.bf16.msra.mxu0 %v6059_v16  ;;  %4146 = vmatpush1.bf16.msra.mxu1 %v6062_v23 }
 0x231   : > { %3803 = vmatprep.subr.bf16.mxu0 %v6067_v24  ;;  %4147 = vmatprep.subr.bf16.mxu1 %v6070_v25 }
 0x234   : > { %3804 = vmatpush1.bf16.msra.mxu0 %v6065_v20  ;;  %4148 = vmatpush1.bf16.msra.mxu1 %v6068_v27 }
 0x235   : > { %3805 = vmatprep.subr.bf16.mxu0 %v6073_v28  ;;  %4149 = vmatprep.subr.bf16.mxu1 %v6076_v29 }
 0x238   : > { %3806 = vmatpush1.bf16.msra.mxu0 %v6071_v30  ;;  %4150 = vmatpush1.bf16.msra.mxu1 %v6074_v22 }
 0x239   : > { %3807 = vmatprep.subr.bf16.mxu0 %v6079_v32  ;;  %4151 = vmatprep.subr.bf16.mxu1 %v6082_v26 }
 0x23c   : > { %3808 = vmatpush1.bf16.msra.mxu0 %v6077_v19  ;;  %4152 = vmatpush1.bf16.msra.mxu1 %v6080_v35 }
 0x23d   : > { %5165 = vmatprep.subr.bf16.mxu0 %v6083_v36  ;;  %5187 = vmatprep.subr.bf16.mxu1 %v6084_v31 }
 0x23f   : > { %3810 = vmatmul.mubr.bf16.vlgmr.msra.gmra.mrb[0].mxu0 %v4615_v15  ;;  %4154 = vmatmul.mubr.bf16.vlgmr.msra.gmra.mrb[0].mxu1 %v4615_v15 }
 0x240   : > { %5166 = vmatpush3.bf16.msra.mxu0 %v6085_v37  ;;  %5188 = vmatpush3.bf16.msra.mxu1 %v6086_v38 }
 0x241   : > { %5167 = vmatprep.subr.bf16.mxu0 %v6087_v39  ;;  %5189 = vmatprep.subr.bf16.mxu1 %v6088_v40 }
 0x244   : > { %5168 = vmatpush3.bf16.msra.mxu0 %v6089_v41  ;;  %5190 = vmatpush3.bf16.msra.mxu1 %v6090_v33 }
 0x245   : > { %5169 = vmatprep.subr.bf16.mxu0 %v6091_v34  ;;  %5191 = vmatprep.subr.bf16.mxu1 %v6092_v42 }
 0x248   : > { %5170 = vmatpush3.bf16.msra.mxu0 %v6093_v43  ;;  %5192 = vmatpush3.bf16.msra.mxu1 %v6094_v44 }
 0x249   : > { %5171 = vmatprep.subr.bf16.mxu0 %v6095_v45  ;;  %5193 = vmatprep.subr.bf16.mxu1 %v6096_v46 }
 0x24c   : > { %5172 = vmatpush3.bf16.msra.mxu0 %v6097_v47  ;;  %5194 = vmatpush3.bf16.msra.mxu1 %v6098_v48  ;;  %v4176_v48 = vld [vmem:[#allocation2] sm:$0xff] }
 0x24d   : > { %5173 = vmatprep.subr.bf16.mxu0 %v6099_v49  ;;  %5195 = vmatprep.subr.bf16.mxu1 %v6100_v50 }
 0x250   : > { %5174 = vmatpush3.bf16.msra.mxu0 %v6101_v51  ;;  %5196 = vmatpush3.bf16.msra.mxu1 %v6102_v52 }
 0x251   : > { %5175 = vmatprep.subr.bf16.mxu0 %v6103_v53  ;;  %5197 = vmatprep.subr.bf16.mxu1 %v6104_v54  ;;  %v4177_v54 = vld [vmem:[#allocation2 + $0x8] sm:$0xff] }
 0x254   : > { %5176 = vmatpush3.bf16.msra.mxu0 %v6105_v55  ;;  %5198 = vmatpush3.bf16.msra.mxu1 %v6106_v56 }
 0x255   : > { %5177 = vmatprep.subr.bf16.mxu0 %v6107_v57  ;;  %5199 = vmatprep.subr.bf16.mxu1 %v6108_v58 }
 0x258   : > { %5178 = vmatpush3.bf16.msra.mxu0 %v6109_v59  ;;  %5200 = vmatpush3.bf16.msra.mxu1 %v6110_v60 }
 0x259   : > { %5179 = vmatprep.subr.bf16.mxu0 %v6111_v61  ;;  %5201 = vmatprep.subr.bf16.mxu1 %v6112_v62 }
 0x25c   : > { %5180 = vmatpush3.bf16.msra.mxu0 %v6113_v63  ;;  %5202 = vmatpush3.bf16.msra.mxu1 %v6114_v0 }
 0x312   : > { %v3811_v12 = vpop.f32.mrb[0].mxu0  ;;  %v4155_v13 = vpop.f32.mrb[0].mxu1 }
 0x313   : > { %v5209_v14 = vadd.f32 %v3811_v12, %v819_v8  ;;  %v5213_v17 = vadd.f32 %v4155_v13, %v827_v9  ;;  %v3813_v18 = vpop.f32.mrb[1].mxu0  ;;  %v4157_v21 = vpop.f32.mrb[1].mxu1 }
 0x314   : > { %v5210_v16 = vadd.f32 %v3813_v18, %v823_v10  ;;  %v5214_v23 = vadd.f32 %v4157_v21, %v831_v11  ;;  %v3815_v24 = vpop.f32.mrb[2].mxu0  ;;  %v4159_v25 = vpop.f32.mrb[2].mxu1 }
 0x315   : > { %v5211_v20 = vadd.f32 %v3815_v24, %v819_v8  ;;  %v5215_v27 = vadd.f32 %v4159_v25, %v827_v9  ;;  %v3817_v28 = vpop.f32.mrb[3].mxu0  ;;  %v4161_v29 = vpop.f32.mrb[3].mxu1  ;;  %v4164_v32 = vmax.f32 %v5209_v14, 0.0  ;;  %v4166_v26 = vmax.f32 %v5213_v17, 0.0 }
 0x316   : > { %v5212_v30 = vadd.f32 %v3817_v28, %v823_v10  ;;  %v5216_v22 = vadd.f32 %v4161_v29, %v831_v11  ;;  %v4165_v36 = vmax.f32 %v5210_v16, 0.0  ;;  %v4167_v31 = vmax.f32 %v5214_v23, 0.0 }
 0x317   : > { %v4168_v19 = vmax.f32 %v5211_v20, 0.0  ;;  %v4170_v35 = vmax.f32 %v5215_v27, 0.0 }
 0x318   : > { %v4169_v15 = vmax.f32 %v5212_v30, 0.0  ;;  %v4171_v37 = vmax.f32 %v5216_v22, 0.0 }
 0x319   : > { %v4172_v38 = vpack.c.bf16 %v4168_v19, %v4164_v32  ;;  %v4174_v39 = vpack.c.bf16 %v4170_v35, %v4166_v26 }
 0x31a   : > { %v4173_v40 = vpack.c.bf16 %v4169_v15, %v4165_v36  ;;  %v4175_v41 = vpack.c.bf16 %v4171_v37, %v4167_v31 }
 0x31c   : > { %4466 = vmatprep.mubr.bf16.mxu0 %v4173_v40  ;;  %4507 = vmatprep.mubr.bf16.mxu1 %v4175_v41 }
 0x31d   : > { %4467 = vmatmul.mubr.bf16.vlgmr.msra.gmra.mrb[4].mxu0 %v4172_v38  ;;  %4508 = vmatmul.mubr.bf16.vlgmr.msra.gmra.mrb[4].mxu1 %v4174_v39 }
 0x3f0   : > { %v5181_v33 = vpop.f32.mrb[4].mxu0  ;;  %v5203_v34 = vpop.f32.mrb[4].mxu1 }
 0x3f1   : > { %v5182_v42 = vpop.f32.mrb[5].mxu0  ;;  %v5204_v43 = vpop.f32.mrb[5].mxu1 }
 0x3f2   : > { %v5183_v44 = vadd.f32 %v5182_v42, %v5181_v33  ;;  %v5205_v45 = vadd.f32 %v5204_v43, %v5203_v34  ;;  %v5184_v46 = vpop.f32.mrb[6].mxu0  ;;  %v5206_v47 = vpop.f32.mrb[6].mxu1 }
 0x3f3   : > { %v5185_v49 = vpop.f32.mrb[7].mxu0  ;;  %v5207_v50 = vpop.f32.mrb[7].mxu1 }
 0x3f4   : > { %v4510_v51 = vadd.f32 %v5205_v45, %v5183_v44  ;;  %v5186_v52 = vadd.f32 %v5185_v49, %v5184_v46  ;;  %v5208_v53 = vadd.f32 %v5207_v50, %v5206_v47  ;;  %4523 = sbr.rel (%p5161_p4) target bundleno = 1027 (0x403), region = 52 }
 0x3f6   : > { %v4516_v55 = vadd.f32 %v4510_v51, %v4176_v48  ;;  %v4513_v56 = vadd.f32 %v5208_v53, %v5186_v52 }
 0x3f8   : > { %4518 = vst [vmem:[#allocation2] sm:$0xff] %v4516_v55  ;;  %v4517_v57 = vadd.f32 %v4513_v56, %v4177_v54 }
 0x3fa   : > { %4519 = vst [vmem:[#allocation2 + $0x8] sm:$0xff] %v4517_v57 }
 0x3ff   : > { %v4524_v58 = vld [vmem:[#allocation2] sm:$0xff] }
 0x400   : > { %4526 = vst [vmem:[%s7000_s5] sm:$0xff] %v4524_v58 }
 0x401   : > { %v4525_v59 = vld [vmem:[#allocation2 + $0x8] sm:$0xff] }
 0x402   : > { %4527 = vst [vmem:[%s7000_s5 + $0x8] sm:$0xff] %v4525_v59 }
 0x403 PF: > { %p15_p5 = scmp.ge.s32.totalorder %s6237_s23, 6   ;;  %s7003_s18 = smov %s6171_s19 }
 0x404   : > { %s7004_s19 = smov %s6175_s20  ;;  %s7005_s20 = smov %s6247_s26 }
 0x405   : > { %s7006_s21 = smov %s6237_s23  ;;  %17 = sbr.rel (!%p15_p5) target bundleno = 3 (0x3), region = 90 }
 0x40c   :  { %4539 = vsyncpa [#allocation4], 1 }
 0x40d   :  { %4541 = vsyncpa [#allocation4 + $0x1], 1 }

// kernel: cnn_forward.2
= control target key start
LH: loop header
LB: loop body
LE: loop exit
PB: predicated region body
PF: predicated region fallthrough
CT: control target
= control target key end

     0   :  { %s12582_s0 = inlined_call_operand.vmem [shape: bf16[80,32], index: 0, kind: input, shape index: {}]   ;;  %s12583_s1 = inlined_call_operand.hbm [shape: bf16[3,32,256], index: 1, kind: input, shape index: {}]   ;;  %s12584_s2 = inlined_call_operand.hbm [shape: bf16[15,256,256], index: 2, kind: input, shape index: {}]   ;;  %s12585_s3 = inlined_call_operand.hbm [shape: f32[6,256], index: 3, kind: input, shape index: {}]   ;;  %s12586_s4 = inlined_call_operand.hbm [shape: f32[4,80,80], index: 4, kind: input, shape index: {}]   ;;  %s12587_s5 = inlined_call_operand.hbm [shape: bf16[768,2048], index: 5, kind: input, shape index: {}]   ;;  %s12588_s6 = inlined_call_operand.hbm [shape: f32[1,2048], index: 6, kind: input, shape index: {}]   ;;  %s12589_s7 = inlined_call_operand.vmem [shape: bf16[16,2048], index: 7, kind: output, shape index: {}]  }
   0x1   :  { %12603 = sst [smem:[#allocation21_spill]] %s12583_s1 }
   0x2   :  { %12604 = sst [smem:[#allocation22_spill]] %s12589_s7 }
   0x3   :  { %12 = vsyncpa [#allocation6], 0 }
   0x4   :  { %13 = vsyncpa [#allocation8], 0 }
   0x5   :  { %14 = vsyncpa [#allocation11], 0  ;;  %s11346_s24 = smov 0   ;;  %s11348_s25 = smov 0  }
   0x6   :  { %s11350_s26 = smov 0   ;;  %s11352_s27 = smov 0  }
   0x7 LB: > { %s11365_s28 = sadd.s32 4294967295, %s11291_s27   ;;  %s11368_s29 = sadd.s32 1, %s11291_s27   ;;  %s11291_s27 = sphi %s11352_s27, %s12637_s27   ;;  %s11287_s26 = sphi %s11350_s26, %s12641_s26   ;;  %s11283_s25 = sphi %s11348_s25, %s12640_s25   ;;  %s11279_s24 = sphi %s11346_s24, %s12639_s24  }
   0x8   : > { %12605 = sst [smem:[#allocation19_spill]] %s11368_s29  ;;  %s129_s30 = ssub.s32 %s11291_s27, %s11368_s29 }
   0x9   : > { %s132_s8 = sadd.s32 1, %s11287_s26  ;;  %p130_p0 = scmp.eq.s32.totalorder %s129_s30, 0 }
   0xa   : > { %p139_p1 = scmp.ne.s32.totalorder %s11287_s26, %s11283_s25  ;;  %p140_p2 = scmp.eq.s32.totalorder %s11291_s27, 0 }
   0xb   : > { %p145_p3 = scmp.ne.s32.totalorder %s11283_s25, %s11279_s24  ;;  %p12590_p5 = scmp.eq.s32.totalorder %s11365_s28, 0 }
   0xc   : > { %s11378_s9 = scalar_select %p130_p0, %s11287_s26, %s132_s8  }
   0xd   : > { %p11380_p4 = por %p140_p2, %p139_p1  ;;  %p195_p6 = scmp.eq.s32.totalorder %s11365_s28, 3 }
   0xe   : > { %12606 = sst [smem:[#allocation20_spill]] %s11378_s9  ;;  %p8823_p7 = scmp.ge.s32.totalorder %s11291_s27, 1 }
   0xf   : > { %p11389_p8 = por %p12590_p5, %p145_p3  ;;  %p208_p9 = scmp.lt.s32.totalorder %s11291_s27, 5 }
  0x10   : > { %p11394_p10 = por %p195_p6, %p139_p1  ;;  %s11293_s14 = smov [#allocation5]  }
  0x11   : > { %s12608_s11 = scalar_select %p11389_p8, 1, 0 }
  0x12   : > { %s12609_s12 = scalar_select %p11394_p10, 1, 0 }
  0x13   : > { %p11399_p12 = pnand %p8823_p7, %p208_p9  ;;  %s223_s15 = sshll.u32 %s11293_s14, 4  ;;  %s224_s15 = int_to_ptr.vmem [resolvable:$true] %s223_s15 }
  0x14   : > { %p9992_p1 = scmp.lt.s32.totalorder %s11291_s27, 4  ;;  %s12613_s1 = sld [smem:[#allocation21_spill]] }
  0x15   : > { %s12610_s13 = scalar_select %p11399_p12, 1, 0 }
  0x16   : > { %p9968_p13 = pneg %p11399_p12  ;;  %p11415_p2 = pnand %p9992_p1, %p11380_p4 }
  0x18   : > { %p11407_p0 = pnand %p9968_p13, %p12590_p5 }
  0x19   : > { %s12612_s18 = scalar_select %p11415_p2, 1, 0 }
  0x1a   : > { %s12611_s16 = scalar_select %p11407_p0, 1, 0 }
  0x1b   : > { %s11073_s21 = scalar_lea.hbm %s12613_s1, 1536  ;;  %p11427_p6 = pneg %p11407_p0 }
  0x1c   : > { %p11074_p3 = scmp.ne.s32.totalorder %s12613_s1, %s11073_s21  ;;  %p11080_p9 = scmp.lt.u32.totalorder %s11073_s21, %s12613_s1 }
  0x1e   : > { %p11076_p7 = pnand %p11427_p6, %p11074_p3 }
  0x20   : > { %p11077_p4 = pneg %p11076_p7 }
  0x22   : > { %p11082_p13 = pnand %p11080_p9, %p11077_p4 }
  0x24   : > { %11085 = shalt.err (!%p11082_p13)
}
  0x25   : > { %s11086_s10 = scalar_lea.vmem %s224_s15, 1536  ;;  %p11094_p10 = scmp.lt.s32.totalorder %s224_s15, %s224_s15 }
  0x26   : > { %p11087_p1 = scmp.ne.s32.totalorder %s224_s15, %s11086_s10  ;;  %p11095_p8 = scmp.lt.s32.totalorder %s11086_s10, %s11086_s10 }
  0x28   : > { %p11089_p11 = pnand %p11087_p1, %p11427_p6  ;;  %p11096_p12 = por %p11095_p8, %p11094_p10 }
  0x2a   : > { %p11090_p5 = pneg %p11089_p11 }
  0x2c   : > { %p11097_p2 = pnand %p11096_p12, %p11090_p5 }
  0x2e   : > { %11100 = shalt.err (!%p11097_p2)
}
  0x2f   : > { %s12596_s14 = smov 128   ;;  %s12599_s19 = smov 8  }
  0x30   : > { %9971 = dma.hbm_to_vmem [thread:$0]  (!%p11407_p0), %s12613_s1, 1536, %s224_s15, [#allocation6], %s12596_s14, %s12596_s14, %s12599_s19  }
  0x31   : > { %s11296_s22 = smov [#allocation7]   ;;  %s11101_s10 = scalar_lea.hbm %s12584_s2, 61440 }
  0x32   : > { %s236_s23 = sshll.u32 %s11296_s22, 4  ;;  %p11102_p5 = scmp.ne.s32.totalorder %s12584_s2, %s11101_s10  ;;  %s237_s23 = int_to_ptr.vmem [resolvable:$true] %s236_s23 }
  0x33   : > { %p11108_p11 = scmp.lt.u32.totalorder %s11101_s10, %s12584_s2 }
  0x34   : > { %p11104_p8 = pnand %p11102_p5, %p11427_p6 }
  0x36   : > { %p11105_p10 = pneg %p11104_p8 }
  0x38   : > { %p11110_p12 = pnand %p11108_p11, %p11105_p10 }
  0x3a   : > { %11113 = shalt.err (!%p11110_p12)
}
  0x3b   : > { %s11114_s15 = scalar_lea.vmem %s237_s23, 61440  ;;  %p11122_p4 = scmp.lt.s32.totalorder %s237_s23, %s237_s23 }
  0x3c   : > { %p11115_p2 = scmp.ne.s32.totalorder %s237_s23, %s11114_s15  ;;  %p11123_p9 = scmp.lt.s32.totalorder %s11114_s15, %s11114_s15 }
  0x3e   : > { %p11117_p3 = pnand %p11115_p2, %p11427_p6  ;;  %p11124_p13 = por %p11123_p9, %p11122_p4 }
  0x40   : > { %p11118_p7 = pneg %p11117_p3 }
  0x42   : > { %p11125_p1 = pnand %p11124_p13, %p11118_p7 }
  0x44   : > { %11128 = shalt.err (!%p11125_p1)
}
  0x45   : > { %9974 = dma.hbm_to_vmem [thread:$0]  (!%p11407_p0), %s12584_s2, 61440, %s237_s23, [#allocation8], %s12596_s14, %s12596_s14, %s12599_s19  }
  0x46   : > { %s12600_s9 = sand.u32 1, %s11287_s26   ;;  %s9595_s17 = sshll.u32 %s11291_s27, 8 }
  0x47   : > { %s9946_s20 = smul.u32 1536, %s12600_s9  ;;  %s11474_s30 = scalar_lea.hbm %s12587_s5, %s9595_s17 }
  0x48   : > { %s11297_s15 = smov [#allocation9]   ;;  %s12615_s23 = sand.u32 1, %s11291_s27  }
  0x49   : > { %s278_s8 = scalar_lea.vmem [#allocation12], %s9946_s20  ;;  %s11478_s7 = sshll.u32 %s11297_s15, 4  ;;  %s251_s7 = int_to_ptr.vmem [resolvable:$true] %s11478_s7 }
  0x4a   : > { %s285_s10 = sshll.u32 %s278_s8, 4  ;;  %s11482_s29 = scalar_lea.sflag [#allocation6], %s12615_s23  ;;  %s11476_s10 = int_to_ptr.vmem [resolvable:$true] %s285_s10 }
  0x4b   : > { %s11129_s14 = scalar_lea.hbm %s11474_s30, 24576  ;;  %p12616_p8 = scmp.ne.s32.totalorder %s12612_s18, 0 }
  0x4c   : > { %p11130_p5 = scmp.ne.s32.totalorder %s11474_s30, %s11129_s14  ;;  %s11134_s20 = scalar_lea.hbm %s12587_s5, 98304 }
  0x4d   : > { %p12601_p10 = pneg %p12616_p8  ;;  %p11135_p2 = scmp.lt.u32.totalorder %s11474_s30, %s12587_s5 }
  0x4e   : > { %p11136_p3 = scmp.lt.u32.totalorder %s11134_s20, %s11129_s14  ;;  %p11138_p4 = scmp.lt.u32.totalorder %s11129_s14, %s11474_s30 }
  0x4f   : > { %p11132_p11 = pnand %p12601_p10, %p11130_p5 }
  0x50   : > { %p11137_p7 = por %p11136_p3, %p11135_p2 }
  0x51   : > { %p11133_p12 = pneg %p11132_p11 }
  0x52   : > { %p11139_p9 = por %p11138_p4, %p11137_p7 }
  0x54   : > { %p11140_p13 = pnand %p11139_p9, %p11133_p12 }
  0x56   : > { %11143 = shalt.err (!%p11140_p13)
}
  0x57   : > { %s11144_s15 = scalar_lea.vmem %s11476_s10, 24576  ;;  %s11298_s23 = smov [#allocation12]  }
  0x58   : > { %p11145_p1 = scmp.ne.s32.totalorder %s11476_s10, %s11144_s15  ;;  %s11149_s17 = sshll.u32 %s11298_s23, 4  ;;  %s11150_s17 = int_to_ptr.vmem [resolvable:$false] %s11149_s17 }
  0x59   : > { %s11151_s21 = scalar_lea.vmem %s11150_s17, 49152  ;;  %p11152_p0 = scmp.lt.s32.totalorder %s11476_s10, %s11150_s17 }
  0x5a   : > { %p11147_p5 = pnand %p11145_p1, %p12601_p10  ;;  %p11153_p2 = scmp.lt.s32.totalorder %s11151_s21, %s11144_s15 }
  0x5c   : > { %p11148_p11 = pneg %p11147_p5  ;;  %p11154_p3 = por %p11153_p2, %p11152_p0 }
  0x5e   : > { %p11155_p7 = pnand %p11154_p3, %p11148_p11 }
  0x60   : > { %11158 = shalt.err (!%p11155_p7)
}
  0x61   : > { %s11299_s14 = smov 1024   ;;  %s11300_s20 = smov 256  }
  0x62   : > { %s11301_s22 = smov 16   ;;  %s11159_s17 = scalar_lea.hbm %s12585_s3, 256 }
  0x63   : > { %9984 = dma.hbm_to_vmem [thread:$0]  (!%p12616_p8), %s11474_s30, 24576, %s11476_s10, %s11482_s29, %s11299_s14, %s11300_s20, %s11301_s22  }
  0x64   : > { %p11160_p0 = scmp.ne.s32.totalorder %s12585_s3, %s11159_s17  ;;  %p11166_p9 = scmp.lt.u32.totalorder %s11159_s17, %s12585_s3 }
  0x66   : > { %p11162_p12 = pnand %p11160_p0, %p11427_p6 }
  0x68   : > { %p11163_p4 = pneg %p11162_p12 }
  0x6a   : > { %p11168_p13 = pnand %p11166_p9, %p11163_p4 }
  0x6c   : > { %11171 = shalt.err (!%p11168_p13)
}
  0x6d   : > { %s11172_s1 = scalar_lea.vmem %s251_s7, 256  ;;  %p11180_p2 = scmp.lt.s32.totalorder %s251_s7, %s251_s7 }
  0x6e   : > { %p11173_p1 = scmp.ne.s32.totalorder %s251_s7, %s11172_s1  ;;  %p11181_p3 = scmp.lt.s32.totalorder %s11172_s1, %s11172_s1 }
  0x70   : > { %p11175_p5 = pnand %p11173_p1, %p11427_p6  ;;  %p11182_p7 = por %p11181_p3, %p11180_p2 }
  0x72   : > { %p11176_p11 = pneg %p11175_p5 }
  0x74   : > { %p11183_p10 = pnand %p11182_p7, %p11176_p11 }
  0x76   : > { %11186 = shalt.err (!%p11183_p10)
}
  0x77   : > { %p12617_p0 = scmp.ne.s32.totalorder %s12611_s16, 0  ;;  %s11302_s19 = smov [#allocation10]  }
  0x78   : > { %s260_s9 = sshll.u32 %s11302_s19, 4  ;;  %s12618_s14 = sand.u32 1, %s11287_s26   ;;  %s261_s9 = int_to_ptr.vmem [resolvable:$true] %s260_s9 }
  0x79   : > { %9977 = dma.hbm_to_vmem [thread:$0]  (!%p12617_p0), %s12585_s3, 256, %s251_s7, [#allocation8]  }
  0x7a   : > { %s8831_s20 = sshll.u32 %s12618_s14, 2  ;;  %s11187_s1 = scalar_lea.hbm %s12586_s4, 5120 }
  0x7b   : > { %p11188_p10 = scmp.ne.s32.totalorder %s12586_s4, %s11187_s1  ;;  %p11194_p9 = scmp.lt.u32.totalorder %s11187_s1, %s12586_s4 }
  0x7d   : > { %p11190_p12 = pnand %p11188_p10, %p11427_p6 }
  0x7f   : > { %p11191_p4 = pneg %p11190_p12 }
  0x81   : > { %p11196_p13 = pnand %p11194_p9, %p11191_p4 }
  0x83   : > { %11199 = shalt.err (!%p11196_p13)
}
  0x84   : > { %s11200_s7 = scalar_lea.vmem %s261_s9, 5120  ;;  %p11208_p2 = scmp.lt.s32.totalorder %s261_s9, %s261_s9 }
  0x85   : > { %p11201_p1 = scmp.ne.s32.totalorder %s261_s9, %s11200_s7  ;;  %p11209_p3 = scmp.lt.s32.totalorder %s11200_s7, %s11200_s7 }
  0x87   : > { %p11203_p5 = pnand %p11201_p1, %p11427_p6  ;;  %p11210_p7 = por %p11209_p3, %p11208_p2 }
  0x89   : > { %p11204_p11 = pneg %p11203_p5 }
  0x8b   : > { %p11211_p8 = pnand %p11210_p7, %p11204_p11 }
  0x8d   : > { %11214 = shalt.err (!%p11211_p8)
}
  0x8e   : > { %s12619_s30 = smov 8   ;;  %s12620_s10 = smov 128  }
  0x8f   : > { %9980 = dma.hbm_to_vmem [thread:$0]  (!%p12617_p0), %s12586_s4, 5120, %s261_s9, [#allocation11], %s12620_s10, %s12620_s10, %s12619_s30  }
  0x90   : > { %s9596_s22 = sshll.u32 %s11291_s27, 6  ;;  %s299_s24 = scalar_lea.vmem [#allocation13], %s8831_s20 }
  0x91   : > { %s307_s8 = sshll.u32 %s299_s24, 4  ;;  %s305_s17 = scalar_lea.hbm %s12588_s6, %s9596_s22  ;;  %s308_s8 = int_to_ptr.vmem [resolvable:$true] %s307_s8 }
  0x92   : > { %s11215_s15 = scalar_lea.hbm %s305_s17, 64  ;;  %p12621_p8 = scmp.ne.s32.totalorder %s12612_s18, 0 }
  0x93   : > { %p11216_p6 = scmp.ne.s32.totalorder %s305_s17, %s11215_s15  ;;  %s11220_s7 = scalar_lea.hbm %s12588_s6, 256 }
  0x94   : > { %p12622_p10 = pneg %p12621_p8  ;;  %p11221_p0 = scmp.lt.u32.totalorder %s305_s17, %s12588_s6 }
  0x95   : > { %p11222_p9 = scmp.lt.u32.totalorder %s11220_s7, %s11215_s15  ;;  %p11224_p1 = scmp.lt.u32.totalorder %s11215_s15, %s305_s17 }
  0x96   : > { %p11218_p12 = pnand %p11216_p6, %p12622_p10 }
  0x97   : > { %p11223_p13 = por %p11222_p9, %p11221_p0 }
  0x98   : > { %p11219_p4 = pneg %p11218_p12 }
  0x99   : > { %p11225_p5 = por %p11224_p1, %p11223_p13 }
  0x9b   : > { %p11226_p11 = pnand %p11225_p5, %p11219_p4 }
  0x9d   : > { %11229 = shalt.err (!%p11226_p11)
}
  0x9e   : > { %s11230_s27 = scalar_lea.vmem %s308_s8, 64  ;;  %p12623_p3 = pmov %p12622_p10 }
  0x9f   : > { %p11231_p2 = scmp.ne.s32.totalorder %s308_s8, %s11230_s27  ;;  %s11303_s20 = smov [#allocation13]  }
  0xa0   : > { %s11235_s30 = sshll.u32 %s11303_s20, 4  ;;  %s11236_s30 = int_to_ptr.vmem [resolvable:$false] %s11235_s30 }
  0xa1   : > { %p11233_p7 = pnand %p11231_p2, %p12623_p3  ;;  %s11237_s10 = scalar_lea.vmem %s11236_s30, 128 }
  0xa2   : > { %p11238_p10 = scmp.lt.s32.totalorder %s308_s8, %s11236_s30  ;;  %p11239_p12 = scmp.lt.s32.totalorder %s11237_s10, %s11230_s27 }
  0xa3   : > { %p11234_p6 = pneg %p11233_p7 }
  0xa4   : > { %p11240_p0 = por %p11239_p12, %p11238_p10 }
  0xa6   : > { %p11241_p9 = pnand %p11240_p0, %p11234_p6 }
  0xa8   : > { %11244 = shalt.err (!%p11241_p9)
}
  0xa9   : > { %9987 = dma.hbm_to_vmem [thread:$0]  (!%p12621_p8), %s305_s17, 64, %s308_s8, %s11482_s29  }
  0xaa   : > { %p12624_p4 = scmp.ne.s32.totalorder %s12610_s13, 0 }
  0xab   : > { %p12625_p13 = scmp.eq.s32.totalorder (!%p12624_p4), %s11365_s28, 0 }
  0xac   : > { %316 = sbr.rel (%p12624_p4) target bundleno = 3345 (0xd11), region = 48 }
  0xb3   : > { %11262 = dma.done.wait (%p12625_p13), [#allocation6], 1536   ;;  %p12626_p1 = pmov %p12625_p13 }
  0xb5   : > { %11264 = vsyncadd (%p12626_p1), [#allocation6], 4294965760  ;;  %p12627_p5 = pmov %p12626_p1 }
  0xb6   : > { %p12628_p11 = pmov %p12626_p1 }
  0xb7   : > { %11266 = dma.done.wait (%p12627_p5), [#allocation8], 61696  }
  0xb8   : > { %11268 = vsyncadd (%p12628_p11), [#allocation8], 4294905600  ;;  %p12629_p2 = pmov %p12626_p1 }
  0xb9   : > { %p12630_p8 = pmov %p12626_p1 }
  0xba   : > { %11270 = dma.done.wait (%p12629_p2), [#allocation11], 5120  }
  0xbb   : > { %11272 = vsyncadd (%p12630_p8), [#allocation11], 4294962176  ;;  %s334_s13 = sand.u32 1, %s11365_s28   ;;  %s336_s18 = sand.u32 1, %s11283_s25  }
  0xbc   : > { %s9947_s29 = smul.u32 1536, %s336_s18  ;;  %s335_s14 = scalar_lea.sflag [#allocation6], %s334_s13 }
  0xbd   : > { %p12631_p3 = scmp.ne.s32.totalorder %s12608_s11, 0 }
  0xbe   : > { %s11587_s22 = scalar_lea.vmem [#allocation12], %s9947_s29 }
  0xbf   : > { %11274 = dma.done.wait (%p12631_p3), %s335_s14, 24640  }
  0xc0   : > { %11276 = vsyncadd (%p12631_p3), %s335_s14, 4294942656  ;;  %s8839_s24 = sshll.u32 %s336_s18, 2  ;;  %s8840_s8 = sshll.u32 %s336_s18, 5 }
  0xc1   : > { %s11593_s1 = scalar_lea.vmem [#allocation13], %s8839_s24  ;;  %s11595_s23 = scalar_lea.vmem [#allocation14], %s8840_s8 }
  0xc2   : > { %p12632_p7 = scmp.ne.s32.totalorder %s11365_s28, 0 }
  0xc3   : > { %v10040_v0 = vld [vmem:[#allocation5 + $0x24] ss:$8 sps:$4 sm:$0xff] (!%p12632_p7)   ;;  %v10042_v1 = vld [vmem:[#allocation5 + $0x20] ss:$8 sps:$4 sm:$0xff] (!%p12632_p7)   ;;  %v11304_v2 = vmov (!%p12632_p7), 0   ;;  %v11305_v8 = vmov (!%p12632_p7), 0.0  }
  0xc4   : > { %389 = sbr.rel (%p12632_p7) target bundleno = 2922 (0xb6a), region = 76  ;;  %600 = vmatprep.mubr.bf16.mxu0 (!%p12632_p7), %v11304_v2  ;;  %568 = vmatprep.subr.bf16.mxu0 (!%p12632_p7), %v10040_v0  ;;  %v10043_v3 = vld [vmem:[#allocation5 + $0x34] ss:$8 sps:$4 sm:$0xff] (!%p12632_p7)   ;;  %v10045_v4 = vld [vmem:[#allocation5 + $0x30] ss:$8 sps:$4 sm:$0xff] (!%p12632_p7)   ;;  %v11603_v5 = vld [vmem:[%s12582_s0] sm:$0xff] (!%p12632_p7)  }
  0xc5   : > { %569 = vmatpush1.bf16.msra.mxu0 (!%p12632_p7), %v10042_v1  ;;  %v11608_v6 = vld [vmem:[%s12582_s0 + $0x8] sm:$0xff] (!%p12632_p7)   ;;  %436 = vst [vmem:[#allocation4 + $0x30] sm:$0xff] (!%p12632_p7), %v11305_v8  ;;  %437 = vst [vmem:[#allocation4 + $0x38] sm:$0xff] (!%p12632_p7), %v11305_v8  ;;  %v494_v9 = vshrl.u32 (!%p12632_p7), %v11603_v5, 16  ;;  %v496_v10 = vshll.u32 (!%p12632_p7), %v11603_v5, 16  ;;  %v11632_v12 = vld [vmem:[%s12582_s0 + $0x10] sm:$0xff] (!%p12632_p7)  }
  0xc6   : > { %570 = vmatprep.subr.bf16.mxu0 (!%p12632_p7), %v10043_v3  ;;  %v10050_v7 = vld [vmem:[#allocation5 + $0x4] ss:$8 sps:$4 sm:$0xff] (!%p12632_p7)   ;;  %438 = vst [vmem:[#allocation4 + $0x40] sm:$0xff] (!%p12632_p7), %v11305_v8  ;;  %439 = vst [vmem:[#allocation4 + $0x48] sm:$0xff] (!%p12632_p7), %v11305_v8  ;;  %v501_v11 = vshll.u32 (!%p12632_p7), %v11608_v6, 16  ;;  %v509_v15 = vshll.u32 (!%p12632_p7), %v11632_v12, 16 }
  0xc7   : > { %440 = vst [vmem:[#allocation4 + $0x50] sm:$0xff] (!%p12632_p7), %v11305_v8  ;;  %441 = vst [vmem:[#allocation4 + $0x58] sm:$0xff] (!%p12632_p7), %v11305_v8  ;;  %vm492_vm0 = vsmask.f32 (!%p12632_p7), 7424  ;;  %v498_v13 = vrot.slane (!%p12632_p7), %v496_v10, 1  ;;  %vm552_vm1 = vcmask (!%p12632_p7), 261120  }
  0xc8   : > { %408 = vst [vmem:[#allocation2 + $0x90] sm:$0xff] (!%p12632_p7), %v11305_v8  ;;  %409 = vst [vmem:[#allocation2 + $0x98] sm:$0xff] (!%p12632_p7), %v11305_v8  ;;  %v503_v14 = vrot.slane (!%p12632_p7), %v501_v11, 1  ;;  %v10048_v17 = vld [vmem:[#allocation5] ss:$8 sps:$4 sm:$0xff] (!%p12632_p7)   ;;  %v505_v18 = vshrl.u32 (!%p12632_p7), %v11608_v6, 16 }
  0xc9   : > { %428 = vst [vmem:[#allocation3 + $0x90] sm:$0xff] (!%p12632_p7), %v11305_v8  ;;  %429 = vst [vmem:[#allocation3 + $0x98] sm:$0xff] (!%p12632_p7), %v11305_v8  ;;  %571 = vmatpush1.bf16.msra.mxu0 (!%p12632_p7), %v10045_v4  ;;  %v499_v16 = vor.u32 (!%p12632_p7), %v498_v13, %v494_v9  ;;  %v10056_v19 = vld [vmem:[#allocation5 + $0x14] ss:$8 sps:$4 sm:$0xff] (!%p12632_p7)   ;;  %vm764_vm2 = vcmask (!%p12632_p7), 1046528   ;;  %v765_v21 = vrot.slane (!%p12632_p7), %v11603_v5, 1 }
  0xca   : > { %430 = vst [vmem:[#allocation4] sm:$0xff] (!%p12632_p7), %v11305_v8  ;;  %431 = vst [vmem:[#allocation4 + $0x8] sm:$0xff] (!%p12632_p7), %v11305_v8  ;;  %681 = vmatprep.subr.bf16.mxu0 (!%p12632_p7), %v10050_v7  ;;  %v511_v22 = vrot.slane (!%p12632_p7), %v509_v15, 1  ;;  %v11642_v23 = vld [vmem:[%s12582_s0 + $0x18] sm:$0xff] (!%p12632_p7)   ;;  %v766_v24 = vrot.slane (!%p12632_p7), %v11608_v6, 1  ;;  %v507_v25 = vor.u32 (!%p12632_p7), %v505_v18, %v503_v14  ;;  %v768_v28 = vrot.slane (!%p12632_p7), %v11632_v12, 1 }
  0xcb   : > { %432 = vst [vmem:[#allocation4 + $0x10] sm:$0xff] %v11305_v8  ;;  %433 = vst [vmem:[#allocation4 + $0x18] sm:$0xff] %v11305_v8  ;;  %v504_v20 = vsel %vm492_vm0, %v499_v16, %v503_v14  ;;  %v10054_v26 = vld [vmem:[#allocation5 + $0x10] ss:$8 sps:$4 sm:$0xff]   ;;  %v10059_v27 = vld [vmem:[#allocation5 + $0x44] ss:$8 sps:$4 sm:$0xff]  }
  0xcc   : > { %434 = vst [vmem:[#allocation4 + $0x20] sm:$0xff] %v11305_v8  ;;  %435 = vst [vmem:[#allocation4 + $0x28] sm:$0xff] %v11305_v8  ;;  %8851 = vmatmul.mubr.msk.bf16.vlgmr.msra.gmra.mrb[0].mxu0 %vm552_vm1, %v504_v20  ;;  %v11648_v29 = vsel %vm764_vm2, %v765_v21, %v766_v24  ;;  %v10063_v30 = vld [vmem:[#allocation7 + $0x104] ss:$8 sps:$4 sm:$0xff]   ;;  %v10065_v31 = vld [vmem:[#allocation7 + $0x100] ss:$8 sps:$4 sm:$0xff]   ;;  %v11653_v32 = vsel %vm764_vm2, %v766_v24, %v768_v28  ;;  %v512_v34 = vsel %vm492_vm0, %v507_v25, %v511_v22  ;;  %v913_v21 = vlaneseq }
  0xcd   : > { %682 = vmatpush1.bf16.msra.mxu0 %v10048_v17  ;;  %610 = vmatprep.mubr.bf16.mxu0 %v11304_v2  ;;  %v10066_v33 = vld [vmem:[#allocation7 + $0x114] ss:$8 sps:$4 sm:$0xff]   ;;  %v513_v35 = vshrl.u32 %v11632_v12, 16  ;;  %v517_v36 = vshll.u32 %v11642_v23, 16  ;;  %v10068_v37 = vld [vmem:[#allocation7 + $0x110] ss:$8 sps:$4 sm:$0xff]  }
  0xce   : > { %683 = vmatprep.subr.bf16.mxu0 %v10056_v19  ;;  %1361 = vmatprep.subr.bf16.mxu1 %v10063_v30  ;;  %v10069_v38 = vld [vmem:[#allocation7 + $0x124] ss:$8 sps:$4 sm:$0xff]   ;;  %v10071_v42 = vld [vmem:[#allocation7 + $0x120] ss:$8 sps:$4 sm:$0xff]   ;;  %v10072_v43 = vld [vmem:[#allocation7 + $0x134] ss:$8 sps:$4 sm:$0xff]  }
  0xcf   : > { %1362 = vmatpush1.bf16.msra.mxu1 %v10065_v31  ;;  %v515_v39 = vor.u32 %v513_v35, %v511_v22  ;;  %v519_v40 = vrot.slane %v517_v36, 1  ;;  %v11663_v41 = vld [vmem:[%s12582_s0 + $0x20] sm:$0xff]   ;;  %v521_v44 = vshrl.u32 %v11642_v23, 16  ;;  %v10074_v47 = vld [vmem:[#allocation7 + $0x130] ss:$8 sps:$4 sm:$0xff]   ;;  %v770_v1 = vrot.slane %v11642_v23, 1 }
  0xd0   : > { %1363 = vmatprep.subr.bf16.mxu1 %v10066_v33  ;;  %v525_v46 = vshll.u32 %v11663_v41, 16  ;;  %v10075_v48 = vld [vmem:[#allocation7 + $0x144] ss:$8 sps:$4 sm:$0xff]   ;;  %v10077_v49 = vld [vmem:[#allocation7 + $0x140] ss:$8 sps:$4 sm:$0xff]   ;;  %v529_v57 = vshrl.u32 %v11663_v41, 16 }
  0xd1   : > { %684 = vmatpush1.bf16.msra.mxu0 %v10054_v26  ;;  %v520_v45 = vsel %vm492_vm0, %v515_v39, %v519_v40  ;;  %v10078_v50 = vld [vmem:[#allocation7 + $0x154] ss:$8 sps:$4 sm:$0xff]   ;;  %v523_v51 = vor.u32 %v521_v44, %v519_v40  ;;  %v10080_v53 = vld [vmem:[#allocation7 + $0x150] ss:$8 sps:$4 sm:$0xff]   ;;  %v10081_v54 = vld [vmem:[#allocation7 + $0x164] ss:$8 sps:$4 sm:$0xff]   ;;  %v771_v3 = vsel %vm764_vm2, %v768_v28, %v770_v1 }
  0xd2   : > { %809 = vmatprep.subr.bf16.mxu0 %v10059_v27  ;;  %v527_v52 = vrot.slane %v525_v46, 1  ;;  %v10083_v56 = vld [vmem:[#allocation7 + $0x160] ss:$8 sps:$4 sm:$0xff]   ;;  %v10084_v58 = vld [vmem:[#allocation7 + $0x174] ss:$8 sps:$4 sm:$0xff]   ;;  %v772_v4 = vrot.slane %v11663_v41, 1 }
  0xd3   : > { %1364 = vmatpush1.bf16.msra.mxu1 %v10068_v37  ;;  %v10086_v59 = vld [vmem:[#allocation7 + $0x170] ss:$8 sps:$4 sm:$0xff]   ;;  %v10087_v61 = vld [vmem:[#allocation7 + $0x184] ss:$8 sps:$4 sm:$0xff]   ;;  %v10057_v62 = vld [vmem:[#allocation5 + $0x40] ss:$8 sps:$4 sm:$0xff]  }
  0xd4   : > { %8852 = vmatmul.mubr.msk.bf16.gmra.mrb[4].mxu0 %vm552_vm1, %v512_v34  ;;  %1365 = vmatprep.subr.bf16.mxu1 %v10069_v38  ;;  %v528_v55 = vsel %vm492_vm0, %v523_v51, %v527_v52  ;;  %v531_v60 = vor.u32 %v529_v57, %v527_v52  ;;  %v10062_v63 = vld [vmem:[#allocation5 + $0x54] ss:$8 sps:$4 sm:$0xff]   ;;  %v10060_v0 = vld [vmem:[#allocation5 + $0x50] ss:$8 sps:$4 sm:$0xff]   ;;  %v10093_v10 = vld [vmem:[#allocation7 + $0x1a4] ss:$8 sps:$4 sm:$0xff]  }
  0xd5   : > { %620 = vmatprep.mubr.bf16.mxu0 %v11304_v2  ;;  %v10090_v7 = vld [vmem:[#allocation7 + $0x194] ss:$8 sps:$4 sm:$0xff]   ;;  %v10092_v9 = vld [vmem:[#allocation7 + $0x190] ss:$8 sps:$4 sm:$0xff]   ;;  %v10095_v11 = vld [vmem:[#allocation7 + $0x1a0] ss:$8 sps:$4 sm:$0xff]  }
  0xd6   : > { %v10098_v13 = vld [vmem:[#allocation7 + $0x1b0] ss:$8 sps:$4 sm:$0xff]   ;;  %v10099_v14 = vld [vmem:[#allocation7 + $0x1c4] ss:$8 sps:$4 sm:$0xff]   ;;  %v10102_v15 = vld [vmem:[#allocation7 + $0x1d4] ss:$8 sps:$4 sm:$0xff]  }
  0xd7   : > { %1366 = vmatpush1.bf16.msra.mxu1 %v10071_v42  ;;  %v10105_v16 = vld [vmem:[#allocation7 + $0x1e4] ss:$8 sps:$4 sm:$0xff]   ;;  %v10107_v17 = vld [vmem:[#allocation7 + $0x1e0] ss:$8 sps:$4 sm:$0xff]   ;;  %v10108_v18 = vld [vmem:[#allocation7 + $0x1f4] ss:$8 sps:$4 sm:$0xff]  }
  0xd8   : > { %1367 = vmatprep.subr.bf16.mxu1 %v10072_v43  ;;  %v10110_v19 = vld [vmem:[#allocation7 + $0x1f0] ss:$8 sps:$4 sm:$0xff]   ;;  %v10113_v20 = vld [vmem:[#allocation7 + $0x4] ss:$8 sps:$4 sm:$0xff]   ;;  %v914_v22 = vshrl.u32 %v913_v21, 7  ;;  %vm2089_vm3 = vcmask 654336  }
  0xd9   : > { %v466_v24 = vld [vmem:[#allocation9] ss:$8 sm:$0x3]  ;;  %vm12346_vm4 = vcmp.lt.s32.totalorder %v913_v21, 256 }
  0xda   : > { %v11712_v25 = vsub.s32 1, %v914_v22 }
  0xdb   : > { %1368 = vmatpush1.bf16.msra.mxu1 %v10074_v47 }
  0xdc   : > { %8853 = vmatmul.mubr.msk.bf16.gmra.mrb[8].mxu0 %vm552_vm1, %v520_v45  ;;  %1369 = vmatprep.subr.bf16.mxu1 %v10075_v48  ;;  %v11718_v27 = vrot.slane %v466_v24, %v11712_v25 }
  0xdd   : > { %630 = vmatprep.mubr.bf16.mxu0 %v11304_v2 }
  0xdf   : > { %1370 = vmatpush1.bf16.msra.mxu1 %v10077_v49 }
  0xe0   : > { %1371 = vmatprep.subr.bf16.mxu1 %v10078_v50 }
  0xe3   : > { %1372 = vmatpush1.bf16.msra.mxu1 %v10080_v53 }
  0xe4   : > { %8854 = vmatmul.mubr.msk.bf16.gmra.mrb[12].mxu0 %vm552_vm1, %v528_v55  ;;  %1373 = vmatprep.subr.bf16.mxu1 %v10081_v54 }
  0xe5   : > { %640 = vmatprep.mubr.bf16.mxu0 %v11304_v2 }
  0xe7   : > { %1374 = vmatpush1.bf16.msra.mxu1 %v10083_v56 }
  0xe8   : > { %1375 = vmatprep.subr.bf16.mxu1 %v10084_v58 }
  0xeb   : > { %1376 = vmatpush1.bf16.msra.mxu1 %v10086_v59 }
  0xec   : > { %8855 = vmatmul.mubr.msk.bf16.gmra.mrb[16].mxu0 %vm552_vm1, %v531_v60  ;;  %1377 = vmatprep.subr.bf16.mxu1 %v10087_v61 }
  0xed   : > { %713 = vmatprep.mubr.bf16.mxu0 %v11304_v2 }
  0xf4   : > { %8860 = vmatmul.mubr.msk.bf16.vlgmr.msra.gmra.mrb[0].mxu0 %vm552_vm1, %v11603_v5  ;;  %v773_v5 = vsel %vm764_vm2, %v770_v1, %v772_v4 }
  0xf5   : > { %810 = vmatpush1.bf16.msra.mxu0 %v10057_v62  ;;  %723 = vmatprep.mubr.bf16.mxu0 %v11304_v2 }
  0xf6   : > { %811 = vmatprep.subr.bf16.mxu0 %v10062_v63 }
  0xf9   : > { %812 = vmatpush1.bf16.msra.mxu0 %v10060_v0 }
  0xfc   : > { %8861 = vmatmul.mubr.msk.bf16.gmra.mrb[4].mxu0 %vm552_vm1, %v11608_v6  ;;  %v10089_v6 = vld [vmem:[#allocation7 + $0x180] ss:$8 sps:$4 sm:$0xff]  }
  0xfd   : > { %733 = vmatprep.mubr.bf16.mxu0 %v11304_v2  ;;  %1378 = vmatpush1.bf16.msra.mxu1 %v10089_v6 }
  0xfe   : > { %1379 = vmatprep.subr.bf16.mxu1 %v10090_v7 }
 0x101   : > { %1380 = vmatpush1.bf16.msra.mxu1 %v10092_v9 }
 0x102   : > { %1381 = vmatprep.subr.bf16.mxu1 %v10093_v10 }
 0x104   : > { %8862 = vmatmul.mubr.msk.bf16.gmra.mrb[8].mxu0 %vm552_vm1, %v11632_v12  ;;  %v10096_v12 = vld [vmem:[#allocation7 + $0x1b4] ss:$8 sps:$4 sm:$0xff]  }
 0x105   : > { %743 = vmatprep.mubr.bf16.mxu0 %v11304_v2  ;;  %1382 = vmatpush1.bf16.msra.mxu1 %v10095_v11 }
 0x106   : > { %1383 = vmatprep.subr.bf16.mxu1 %v10096_v12 }
 0x109   : > { %1384 = vmatpush1.bf16.msra.mxu1 %v10098_v13 }
 0x10a   : > { %1385 = vmatprep.subr.bf16.mxu1 %v10099_v14 }
 0x10c   : > { %8863 = vmatmul.mubr.msk.bf16.gmra.mrb[12].mxu0 %vm552_vm1, %v11642_v23  ;;  %v11710_v23 = vsub.s32 0, %v914_v22 }
 0x10d   : > { %753 = vmatprep.mubr.bf16.mxu0 %v11304_v2 }
 0x10e   : > { %v11715_v26 = vrot.slane %v466_v24, %v11710_v23 }
 0x114   : > { %8864 = vmatmul.mubr.msk.bf16.gmra.mrb[16].mxu0 %vm552_vm1, %v11663_v41 }
 0x115   : > { %841 = vmatprep.mubr.bf16.mxu0 %v11304_v2 }
 0x11c   : > { %8869 = vmatmul.mubr.msk.bf16.vlgmr.msra.gmra.mrb[0].mxu0 %vm552_vm1, %v11648_v29 }
 0x11d   : > { %851 = vmatprep.mubr.bf16.mxu0 %v11304_v2 }
 0x124   : > { %8870 = vmatmul.mubr.msk.bf16.gmra.mrb[4].mxu0 %vm552_vm1, %v11653_v32 }
 0x125   : > { %861 = vmatprep.mubr.bf16.mxu0 %v11304_v2 }
 0x12c   : > { %8871 = vmatmul.mubr.msk.bf16.gmra.mrb[8].mxu0 %vm552_vm1, %v771_v3 }
 0x12d   : > { %871 = vmatprep.mubr.bf16.mxu0 %v11304_v2 }
 0x134   : > { %8872 = vmatmul.mubr.msk.bf16.gmra.mrb[12].mxu0 %vm552_vm1, %v773_v5 }
 0x135   : > { %881 = vmatprep.mubr.bf16.mxu0 %v11304_v2  ;;  %v10101_v2 = vld [vmem:[#allocation7 + $0x1c0] ss:$8 sps:$4 sm:$0xff]  }
 0x136   : > { %1386 = vmatpush1.bf16.msra.mxu1 %v10101_v2  ;;  %v10111_v2 = vld [vmem:[#allocation7] ss:$8 sps:$4 sm:$0xff]  }
 0x137   : > { %1387 = vmatprep.subr.bf16.mxu1 %v10102_v15 }
 0x13c   : > { %8873 = vmatmul.mubr.msk.bf16.gmra.mrb[16].mxu0 %vm552_vm1, %v772_v4 }
 0x13d   : > { %2184 = vmatprep.mubr.f32.mxu0 %v11305_v8  ;;  %v10104_v8 = vld [vmem:[#allocation7 + $0x1d0] ss:$8 sps:$4 sm:$0xff]  }
 0x13e   : > { %1388 = vmatpush1.bf16.msra.mxu1 %v10104_v8 }
 0x13f   : > { %1389 = vmatprep.subr.bf16.mxu1 %v10105_v16 }
 0x142   : > { %1390 = vmatpush1.bf16.msra.mxu1 %v10107_v17 }
 0x143   : > { %1391 = vmatprep.subr.bf16.mxu1 %v10108_v18  ;;  %v10116_v18 = vld [vmem:[#allocation7 + $0x14] ss:$8 sps:$4 sm:$0xff]  }
 0x146   : > { %1392 = vmatpush1.bf16.msra.mxu1 %v10110_v19 }
 0x147   : > { %1604 = vmatprep.subr.bf16.mxu1 %v10113_v20 }
 0x1ef   : > { %v843_v28 = vpop.f32.mrb[0].mxu0 }
 0x1f0   : > { %v923_v29 = vadd.f32 %v11715_v26, %v843_v28  ;;  %v845_v30 = vpop.f32.mrb[1].mxu0 }
 0x1f1   : > { %v924_v31 = vadd.f32 %v11718_v27, %v845_v30  ;;  %v847_v32 = vpop.f32.mrb[2].mxu0  ;;  %v10114_v30 = vld [vmem:[#allocation7 + $0x10] ss:$8 sps:$4 sm:$0xff]  }
 0x1f2   : > { %v925_v33 = vadd.f32 %v11715_v26, %v847_v32  ;;  %v849_v34 = vpop.f32.mrb[3].mxu0  ;;  %v943_v36 = vmax.f32 %v923_v29, 0.0 }
 0x1f3   : > { %v926_v35 = vadd.f32 %v11718_v27, %v849_v34  ;;  %v944_v38 = vmax.f32 %v924_v31, 0.0 }
 0x1f4   : > { %v945_v37 = vmax.f32 %v925_v33, 0.0 }
 0x1f5   : > { %v946_v39 = vmax.f32 %v926_v35, 0.0 }
 0x1f6   : > { %v11724_v40 = vpack.c.bf16 %v945_v37, %v943_v36  ;;  %v10119_v36 = vld [vmem:[#allocation7 + $0x24] ss:$8 sps:$4 sm:$0xff]  }
 0x1f7   : > { %v853_v41 = vpop.f32.mrb[4].mxu0  ;;  %v11726_v42 = vpack.c.bf16 %v946_v39, %v944_v38 }
 0x1f8   : > { %v927_v43 = vadd.f32 %v11715_v26, %v853_v41  ;;  %v855_v44 = vpop.f32.mrb[5].mxu0  ;;  %v1116_v53 = vshll.u32 %v11724_v40, 16  ;;  %v1114_v7 = vshrl.u32 %v11724_v40, 16 }
 0x1f9   : > { %v928_v45 = vadd.f32 %v11718_v27, %v855_v44  ;;  %v857_v46 = vpop.f32.mrb[6].mxu0  ;;  %v1128_v50 = vshll.u32 %v11726_v42, 16  ;;  %v1126_v3 = vshrl.u32 %v11726_v42, 16 }
 0x1fa   : > { %v929_v47 = vadd.f32 %v11715_v26, %v857_v46  ;;  %v859_v48 = vpop.f32.mrb[7].mxu0  ;;  %v947_v51 = vmax.f32 %v927_v43, 0.0  ;;  %v1118_v62 = vrot.slane %v1116_v53, 1  ;;  %v10122_v53 = vld [vmem:[#allocation7 + $0x34] ss:$8 sps:$4 sm:$0xff]  }
 0x1fb   : > { %v930_v49 = vadd.f32 %v11718_v27, %v859_v48  ;;  %v948_v54 = vmax.f32 %v928_v45, 0.0  ;;  %v1130_v59 = vrot.slane %v1128_v50, 1  ;;  %v10117_v48 = vld [vmem:[#allocation7 + $0x20] ss:$8 sps:$4 sm:$0xff]  }
 0x1fc   : > { %v949_v52 = vmax.f32 %v929_v47, 0.0  ;;  %v1119_v15 = vor.u32 %v1118_v62, %v1114_v7 }
 0x1fd   : > { %v950_v55 = vmax.f32 %v930_v49, 0.0  ;;  %v1131_v11 = vor.u32 %v1130_v59, %v1126_v3  ;;  %v10125_v3 = vld [vmem:[#allocation7 + $0x44] ss:$8 sps:$4 sm:$0xff]  }
 0x1fe   : > { %v11734_v56 = vpack.c.bf16 %v949_v52, %v947_v51 }
 0x1ff   : > { %v863_v57 = vpop.f32.mrb[8].mxu0  ;;  %v11736_v58 = vpack.c.bf16 %v950_v55, %v948_v54 }
 0x200   : > { %v931_v60 = vadd.f32 %v11715_v26, %v863_v57  ;;  %v865_v61 = vpop.f32.mrb[9].mxu0  ;;  %v1121_v63 = vshll.u32 %v11734_v56, 16  ;;  %v1137_v39 = vshrl.u32 %v11734_v56, 16 }
 0x201   : > { %v932_v0 = vadd.f32 %v11718_v27, %v865_v61  ;;  %v867_v1 = vpop.f32.mrb[10].mxu0  ;;  %v1133_v4 = vshll.u32 %v11736_v58, 16  ;;  %v1145_v34 = vshrl.u32 %v11736_v58, 16  ;;  %v10120_v61 = vld [vmem:[#allocation7 + $0x30] ss:$8 sps:$4 sm:$0xff]  }
 0x202   : > { %v933_v5 = vadd.f32 %v11715_v26, %v867_v1  ;;  %v869_v6 = vpop.f32.mrb[11].mxu0  ;;  %v1123_v9 = vrot.slane %v1121_v63, 1  ;;  %v951_v13 = vmax.f32 %v931_v60, 0.0 }
 0x203   : > { %v934_v10 = vadd.f32 %v11718_v27, %v869_v6  ;;  %v1135_v12 = vrot.slane %v1133_v4, 1  ;;  %v952_v8 = vmax.f32 %v932_v0, 0.0 }
 0x204   : > { %v953_v14 = vmax.f32 %v933_v5, 0.0  ;;  %v1124_v19 = vsel %vm492_vm0, %v1119_v15, %v1123_v9  ;;  %v1139_v49 = vor.u32 %v1137_v39, %v1123_v9 }
 0x205   : > { %v954_v16 = vmax.f32 %v934_v10, 0.0  ;;  %v1136_v17 = vsel %vm492_vm0, %v1131_v11, %v1135_v12  ;;  %v1147_v44 = vor.u32 %v1145_v34, %v1135_v12 }
 0x206   : > { %1393 = vmatprep.mubr.bf16.mxu1 %v1136_v17  ;;  %v11748_v20 = vpack.c.bf16 %v953_v14, %v951_v13  ;;  %v10123_v13 = vld [vmem:[#allocation7 + $0x40] ss:$8 sps:$4 sm:$0xff]  }
 0x207   : > { %v873_v22 = vpop.f32.mrb[12].mxu0  ;;  %1394 = vmatmul.mubr.bf16.vlgmr.msra.gmra.mrb[0].mxu1 %v1124_v19  ;;  %v11750_v24 = vpack.c.bf16 %v954_v16, %v952_v8  ;;  %v10128_v8 = vld [vmem:[#allocation7 + $0x54] ss:$8 sps:$4 sm:$0xff]  }
 0x208   : > { %v935_v28 = vadd.f32 %v11715_v26, %v873_v22  ;;  %v875_v29 = vpop.f32.mrb[13].mxu0  ;;  %1605 = vmatpush1.bf16.msra.mxu1 %v10111_v2  ;;  %v1141_v31 = vshll.u32 %v11748_v20, 16  ;;  %v1153_v6 = vshrl.u32 %v11748_v20, 16  ;;  %v10131_v22 = vld [vmem:[#allocation7 + $0x64] ss:$8 sps:$4 sm:$0xff]  }
 0x209   : > { %v936_v32 = vadd.f32 %v11718_v27, %v875_v29  ;;  %v877_v33 = vpop.f32.mrb[14].mxu0  ;;  %1606 = vmatprep.subr.bf16.mxu1 %v10116_v18  ;;  %v1149_v35 = vshll.u32 %v11750_v24, 16  ;;  %v1161_v0 = vshrl.u32 %v11750_v24, 16  ;;  %v10126_v18 = vld [vmem:[#allocation7 + $0x50] ss:$8 sps:$4 sm:$0xff]  }
 0x20a   : > { %v937_v37 = vadd.f32 %v11715_v26, %v877_v33  ;;  %v879_v38 = vpop.f32.mrb[15].mxu0  ;;  %v1143_v41 = vrot.slane %v1141_v31, 1  ;;  %v955_v46 = vmax.f32 %v935_v28, 0.0  ;;  %v10129_v29 = vld [vmem:[#allocation7 + $0x60] ss:$8 sps:$4 sm:$0xff]  }
 0x20b   : > { %v938_v43 = vadd.f32 %v11718_v27, %v879_v38  ;;  %v1151_v45 = vrot.slane %v1149_v35, 1  ;;  %v956_v50 = vmax.f32 %v936_v32, 0.0  ;;  %v10134_v32 = vld [vmem:[#allocation7 + $0x74] ss:$8 sps:$4 sm:$0xff]   ;;  %v10137_v38 = vld [vmem:[#allocation7 + $0x84] ss:$8 sps:$4 sm:$0xff]  }
 0x20c   : > { %v957_v47 = vmax.f32 %v937_v37, 0.0  ;;  %1607 = vmatpush1.bf16.msra.mxu1 %v10114_v30  ;;  %v1144_v54 = vsel %vm492_vm0, %v1139_v49, %v1143_v41  ;;  %v1155_v14 = vor.u32 %v1153_v6, %v1143_v41  ;;  %v10158_v6 = vld [vmem:[#allocation7 + $0xf4] ss:$8 sps:$4 sm:$0xff]  }
 0x20d   : > { %v958_v51 = vmax.f32 %v938_v43, 0.0  ;;  %v1152_v52 = vsel %vm492_vm0, %v1147_v44, %v1151_v45  ;;  %1608 = vmatprep.subr.bf16.mxu1 %v10119_v36  ;;  %v1163_v10 = vor.u32 %v1161_v0, %v1151_v45  ;;  %v10132_v36 = vld [vmem:[#allocation7 + $0x70] ss:$8 sps:$4 sm:$0xff]   ;;  %v10147_v0 = vld [vmem:[#allocation7 + $0xc0] ss:$8 sps:$4 sm:$0xff]  }
 0x20e   : > { %1403 = vmatprep.mubr.bf16.mxu1 %v1152_v52  ;;  %v11762_v55 = vpack.c.bf16 %v957_v47, %v955_v46  ;;  %v10135_v47 = vld [vmem:[#allocation7 + $0x80] ss:$8 sps:$4 sm:$0xff]   ;;  %v10138_v52 = vld [vmem:[#allocation7 + $0x90] ss:$8 sps:$4 sm:$0xff]  }
 0x20f   : > { %v883_v57 = vpop.f32.mrb[16].mxu0  ;;  %1404 = vmatmul.mubr.bf16.gmra.mrb[4].mxu1 %v1144_v54  ;;  %v11764_v59 = vpack.c.bf16 %v958_v51, %v956_v50  ;;  %v10140_v50 = vld [vmem:[#allocation7 + $0x94] ss:$8 sps:$4 sm:$0xff]  }
 0x210   : > { %v885_v60 = vpop.f32.mrb[17].mxu0  ;;  %1609 = vmatpush1.bf16.msra.mxu1 %v10117_v48  ;;  %v1157_v62 = vshll.u32 %v11762_v55, 16  ;;  %v939_v17 = vadd.f32 %v11715_v26, %v883_v57  ;;  %v1169_v39 = vshrl.u32 %v11762_v55, 16  ;;  %v10141_v57 = vld [vmem:[#allocation7 + $0xa0] ss:$8 sps:$4 sm:$0xff]  }
 0x211   : > { %v887_v63 = vpop.f32.mrb[18].mxu0  ;;  %1610 = vmatprep.subr.bf16.mxu1 %v10122_v53  ;;  %v1165_v1 = vshll.u32 %v11764_v59, 16  ;;  %v940_v19 = vadd.f32 %v11718_v27, %v885_v60  ;;  %v10143_v53 = vld [vmem:[#allocation7 + $0xa4] ss:$8 sps:$4 sm:$0xff]  }
 0x212   : > { %v941_v4 = vadd.f32 %v11715_v26, %v887_v63  ;;  %v889_v5 = vpop.f32.mrb[19].mxu0  ;;  %v1159_v7 = vrot.slane %v1157_v62, 1  ;;  %v959_v28 = vmax.f32 %v939_v17, 0.0  ;;  %v10144_v62 = vld [vmem:[#allocation7 + $0xb0] ss:$8 sps:$4 sm:$0xff]  }
 0x213   : > { %v942_v9 = vadd.f32 %v11718_v27, %v889_v5  ;;  %v1167_v11 = vrot.slane %v1165_v1, 1  ;;  %v960_v30 = vmax.f32 %v940_v19, 0.0  ;;  %v1177_v27 = vshrl.u32 %v11764_v59, 16  ;;  %v10149_v63 = vld [vmem:[#allocation7 + $0xc4] ss:$8 sps:$4 sm:$0xff]  }
 0x214   : > { %v961_v12 = vmax.f32 %v941_v4, 0.0  ;;  %1611 = vmatpush1.bf16.msra.mxu1 %v10120_v61  ;;  %v1160_v16 = vsel %vm492_vm0, %v1155_v14, %v1159_v7  ;;  %v1171_v46 = vor.u32 %v1169_v39, %v1159_v7  ;;  %v10146_v61 = vld [vmem:[#allocation7 + $0xb4] ss:$8 sps:$4 sm:$0xff]   ;;  %v10155_v4 = vld [vmem:[#allocation7 + $0xe4] ss:$8 sps:$4 sm:$0xff]  }
 0x215   : > { %v962_v2 = vmax.f32 %v942_v9, 0.0  ;;  %v1168_v15 = vsel %vm492_vm0, %v1163_v10, %v1167_v11  ;;  %1612 = vmatprep.subr.bf16.mxu1 %v10125_v3  ;;  %v1179_v43 = vor.u32 %v1177_v27, %v1167_v11  ;;  %v10152_v1 = vld [vmem:[#allocation7 + $0xd4] ss:$8 sps:$4 sm:$0xff]   ;;  %v10150_v3 = vld [vmem:[#allocation7 + $0xd0] ss:$8 sps:$4 sm:$0xff]  }
 0x216   : > { %981 = vst [vmem:[#allocation2 + $0x90] sm:$0x3f] %v961_v12  ;;  %1413 = vmatprep.mubr.bf16.mxu1 %v1168_v15  ;;  %v10153_v5 = vld [vmem:[#allocation7 + $0xe0] ss:$8 sps:$4 sm:$0xff]   ;;  %v10156_v7 = vld [vmem:[#allocation7 + $0xf0] ss:$8 sps:$4 sm:$0xff]  }
 0x217   : > { %982 = vst [vmem:[#allocation2 + $0x98] sm:$0x3f] %v962_v2  ;;  %1414 = vmatmul.mubr.bf16.gmra.mrb[8].mxu1 %v1160_v16  ;;  %v10161_v9 = vld [vmem:[#allocation7 + $0x204] ss:$8 sps:$4 sm:$0xff]   ;;  %v10159_v10 = vld [vmem:[#allocation7 + $0x200] ss:$8 sps:$4 sm:$0xff]  }
 0x218   : > { %1613 = vmatpush1.bf16.msra.mxu1 %v10123_v13  ;;  %v10164_v11 = vld [vmem:[#allocation7 + $0x214] ss:$8 sps:$4 sm:$0xff]   ;;  %v10162_v12 = vld [vmem:[#allocation7 + $0x210] ss:$8 sps:$4 sm:$0xff]   ;;  %v10167_v13 = vld [vmem:[#allocation7 + $0x224] ss:$8 sps:$4 sm:$0xff]  }
 0x219   : > { %1614 = vmatprep.subr.bf16.mxu1 %v10128_v8  ;;  %v10165_v14 = vld [vmem:[#allocation7 + $0x220] ss:$8 sps:$4 sm:$0xff]   ;;  %v10170_v2 = vld [vmem:[#allocation7 + $0x234] ss:$8 sps:$4 sm:$0xff]   ;;  %v10168_v15 = vld [vmem:[#allocation7 + $0x230] ss:$8 sps:$4 sm:$0xff]  }
 0x21a   : > { %v10173_v8 = vld [vmem:[#allocation7 + $0x244] ss:$8 sps:$4 sm:$0xff]   ;;  %v10171_v16 = vld [vmem:[#allocation7 + $0x240] ss:$8 sps:$4 sm:$0xff]   ;;  %v10176_v17 = vld [vmem:[#allocation7 + $0x254] ss:$8 sps:$4 sm:$0xff]  }
 0x21b   : > { %v10179_v19 = vld [vmem:[#allocation7 + $0x264] ss:$8 sps:$4 sm:$0xff]   ;;  %v10186_v27 = vld [vmem:[#allocation7 + $0x290] ss:$8 sps:$4 sm:$0xff]   ;;  %v10194_v39 = vld [vmem:[#allocation7 + $0x2b4] ss:$8 sps:$4 sm:$0xff]  }
 0x21c   : > { %1615 = vmatpush1.bf16.msra.mxu1 %v10126_v18  ;;  %v10174_v18 = vld [vmem:[#allocation7 + $0x250] ss:$8 sps:$4 sm:$0xff]  }
 0x21d   : > { %1616 = vmatprep.subr.bf16.mxu1 %v10131_v22  ;;  %v1001_v31 = vld [vmem:[#allocation2 + $0x90] sm:$0xff]  ;;  %v10177_v22 = vld [vmem:[#allocation7 + $0x260] ss:$8 sps:$4 sm:$0xff]  }
 0x21e   : > { %v1002_v33 = vld [vmem:[#allocation2 + $0x98] sm:$0xff]  ;;  %v11776_v34 = vpack.c.bf16 %v1001_v31, %v959_v28  ;;  %v1701_v31 = vrot.slane %v11736_v58, 1 }
 0x21f   : > { %v11778_v35 = vpack.c.bf16 %v1002_v33, %v960_v30  ;;  %v10182_v28 = vld [vmem:[#allocation7 + $0x274] ss:$8 sps:$4 sm:$0xff]   ;;  %v10185_v30 = vld [vmem:[#allocation7 + $0x284] ss:$8 sps:$4 sm:$0xff]   ;;  %v1700_v33 = vrot.slane %v11726_v42, 1 }
 0x220   : > { %v1173_v26 = vshll.u32 %v11776_v34, 16  ;;  %1617 = vmatpush1.bf16.msra.mxu1 %v10129_v29  ;;  %v1185_v54 = vshrl.u32 %v11776_v34, 16  ;;  %v10180_v29 = vld [vmem:[#allocation7 + $0x270] ss:$8 sps:$4 sm:$0xff]  }
 0x221   : > { %v1181_v37 = vshll.u32 %v11778_v35, 16  ;;  %1618 = vmatprep.subr.bf16.mxu1 %v10134_v32  ;;  %v1188_v45 = vshrl.u32 %v11778_v35, 16  ;;  %v10183_v32 = vld [vmem:[#allocation7 + $0x280] ss:$8 sps:$4 sm:$0xff]  }
 0x222   : > { %v1175_v41 = vrot.slane %v1173_v26, 1  ;;  %v10188_v26 = vld [vmem:[#allocation7 + $0x294] ss:$8 sps:$4 sm:$0xff]  }
 0x223   : > { %v1183_v44 = vrot.slane %v1181_v37, 1  ;;  %v10191_v37 = vld [vmem:[#allocation7 + $0x2a4] ss:$8 sps:$4 sm:$0xff]  }
 0x224   : > { %1619 = vmatpush1.bf16.msra.mxu1 %v10132_v36  ;;  %v1176_v51 = vsel %vm492_vm0, %v1171_v46, %v1175_v41  ;;  %v1187_v60 = vor.u32 %v1185_v54, %v1175_v41  ;;  %v1702_v36 = vsel %vm764_vm2, %v1700_v33, %v1701_v31  ;;  %v10197_v41 = vld [vmem:[#allocation7 + $0x2c4] ss:$8 sps:$4 sm:$0xff]   ;;  %v10201_v46 = vld [vmem:[#allocation7 + $0x2e0] ss:$8 sps:$4 sm:$0xff]   ;;  %v1703_v54 = vrot.slane %v11748_v20, 1 }
 0x225   : > { %v1184_v48 = vsel %vm492_vm0, %v1179_v43, %v1183_v44  ;;  %v1190_v49 = vor.u32 %v1188_v45, %v1183_v44  ;;  %1620 = vmatprep.subr.bf16.mxu1 %v10137_v38  ;;  %v10189_v38 = vld [vmem:[#allocation7 + $0x2a0] ss:$8 sps:$4 sm:$0xff]   ;;  %v10200_v43 = vld [vmem:[#allocation7 + $0x2d4] ss:$8 sps:$4 sm:$0xff]   ;;  %v10198_v44 = vld [vmem:[#allocation7 + $0x2d0] ss:$8 sps:$4 sm:$0xff]  }
 0x226   : > { %1423 = vmatprep.mubr.bf16.mxu1 %v1184_v48  ;;  %v10203_v45 = vld [vmem:[#allocation7 + $0x2e4] ss:$8 sps:$4 sm:$0xff]   ;;  %v10204_v48 = vld [vmem:[#allocation7 + $0x2f0] ss:$8 sps:$4 sm:$0xff]  }
 0x227   : > { %1424 = vmatmul.mubr.bf16.gmra.mrb[12].mxu1 %v1176_v51  ;;  %v1697_v51 = vrot.slane %v11724_v40, 1 }
 0x228   : > { %1433 = vmatprep.mubr.bf16.mxu1 %v1190_v49  ;;  %1621 = vmatpush1.bf16.msra.mxu1 %v10135_v47  ;;  %v10206_v47 = vld [vmem:[#allocation7 + $0x2f4] ss:$8 sps:$4 sm:$0xff]   ;;  %v1698_v49 = vrot.slane %v11734_v56, 1 }
 0x229   : > { %1622 = vmatprep.subr.bf16.mxu1 %v10140_v50  ;;  %v1705_v50 = vrot.slane %v11750_v24, 1 }
 0x22c   : > { %1623 = vmatpush1.bf16.msra.mxu1 %v10138_v52  ;;  %v1699_v52 = vsel %vm764_vm2, %v1697_v51, %v1698_v49 }
 0x22d   : > { %1624 = vmatprep.subr.bf16.mxu1 %v10143_v53  ;;  %v1706_v53 = vsel %vm764_vm2, %v1701_v31, %v1705_v50 }
 0x22f   : > { %1434 = vmatmul.mubr.bf16.gmra.mrb[16].mxu1 %v1187_v60  ;;  %v1704_v60 = vsel %vm764_vm2, %v1698_v49, %v1703_v54 }
 0x230   : > { %1636 = vmatprep.mubr.bf16.mxu1 %v11726_v42  ;;  %1625 = vmatpush1.bf16.msra.mxu1 %v10141_v57  ;;  %v10195_v42 = vld [vmem:[#allocation7 + $0x2c0] ss:$8 sps:$4 sm:$0xff]   ;;  %v1709_v57 = vrot.slane %v11764_v59, 1 }
 0x231   : > { %1626 = vmatprep.subr.bf16.mxu1 %v10146_v61 }
 0x234   : > { %1627 = vmatpush1.bf16.msra.mxu1 %v10144_v62 }
 0x235   : > { %1628 = vmatprep.subr.bf16.mxu1 %v10149_v63  ;;  %v1112_v63 = vld [vmem:[#allocation9 + $0x1] ss:$8 sm:$0x3] }
 0x238   : > { %1629 = vmatpush1.bf16.msra.mxu1 %v10147_v0  ;;  %v11817_v0 = vrot.slane %v1112_v63, %v11710_v23 }
 0x239   : > { %1630 = vmatprep.subr.bf16.mxu1 %v10152_v1 }
 0x23c   : > { %1631 = vmatpush1.bf16.msra.mxu1 %v10150_v3 }
 0x23d   : > { %1632 = vmatprep.subr.bf16.mxu1 %v10155_v4 }
 0x240   : > { %1633 = vmatpush1.bf16.msra.mxu1 %v10153_v5 }
 0x241   : > { %1634 = vmatprep.subr.bf16.mxu1 %v10158_v6 }
 0x244   : > { %1635 = vmatpush1.bf16.msra.mxu1 %v10156_v7 }
 0x245   : > { %1885 = vmatprep.subr.bf16.mxu1 %v10161_v9 }
 0x247   : > { %1637 = vmatmul.mubr.bf16.vlgmr.msra.gmra.mrb[0].mxu1 %v11724_v40  ;;  %v1713_v40 = vrot.slane %v11778_v35, 1 }
 0x248   : > { %1646 = vmatprep.mubr.bf16.mxu1 %v11736_v58  ;;  %1886 = vmatpush1.bf16.msra.mxu1 %v10159_v10  ;;  %v10192_v58 = vld [vmem:[#allocation7 + $0x2b0] ss:$8 sps:$4 sm:$0xff]  }
 0x249   : > { %1887 = vmatprep.subr.bf16.mxu1 %v10164_v11  ;;  %v1714_v62 = vsel %vm764_vm2, %v1709_v57, %v1713_v40 }
 0x24c   : > { %1888 = vmatpush1.bf16.msra.mxu1 %v10162_v12 }
 0x24d   : > { %1889 = vmatprep.subr.bf16.mxu1 %v10167_v13 }
 0x24f   : > { %1647 = vmatmul.mubr.bf16.gmra.mrb[4].mxu1 %v11734_v56  ;;  %v1710_v56 = vsel %vm764_vm2, %v1705_v50, %v1709_v57 }
 0x250   : > { %1656 = vmatprep.mubr.bf16.mxu1 %v11750_v24  ;;  %1890 = vmatpush1.bf16.msra.mxu1 %v10165_v14  ;;  %v1707_v24 = vrot.slane %v11762_v55, 1 }
 0x251   : > { %1891 = vmatprep.subr.bf16.mxu1 %v10170_v2 }
 0x252   : > { %v1708_v61 = vsel %vm764_vm2, %v1703_v54, %v1707_v24 }
 0x254   : > { %1892 = vmatpush1.bf16.msra.mxu1 %v10168_v15 }
 0x255   : > { %1893 = vmatprep.subr.bf16.mxu1 %v10173_v8 }
 0x257   : > { %1657 = vmatmul.mubr.bf16.gmra.mrb[8].mxu1 %v11748_v20  ;;  %v1711_v20 = vrot.slane %v11776_v34, 1 }
 0x258   : > { %1666 = vmatprep.mubr.bf16.mxu1 %v11764_v59  ;;  %1894 = vmatpush1.bf16.msra.mxu1 %v10171_v16 }
 0x259   : > { %1895 = vmatprep.subr.bf16.mxu1 %v10176_v17  ;;  %v1712_v59 = vsel %vm764_vm2, %v1707_v24, %v1711_v20 }
 0x25c   : > { %1896 = vmatpush1.bf16.msra.mxu1 %v10174_v18 }
 0x25d   : > { %1897 = vmatprep.subr.bf16.mxu1 %v10179_v19 }
 0x25f   : > { %1667 = vmatmul.mubr.bf16.gmra.mrb[12].mxu1 %v11762_v55  ;;  %v11820_v55 = vrot.slane %v1112_v63, %v11712_v25 }
 0x260   : > { %1676 = vmatprep.mubr.bf16.mxu1 %v11778_v35  ;;  %1898 = vmatpush1.bf16.msra.mxu1 %v10177_v22 }
 0x261   : > { %1899 = vmatprep.subr.bf16.mxu1 %v10182_v28 }
 0x264   : > { %1900 = vmatpush1.bf16.msra.mxu1 %v10180_v29 }
 0x265   : > { %1901 = vmatprep.subr.bf16.mxu1 %v10185_v30 }
 0x267   : > { %1677 = vmatmul.mubr.bf16.gmra.mrb[16].mxu1 %v11776_v34 }
 0x268   : > { %1902 = vmatpush1.bf16.msra.mxu1 %v10183_v32  ;;  %1917 = vmatprep.mubr.bf16.mxu1 %v1702_v36 }
 0x269   : > { %1903 = vmatprep.subr.bf16.mxu1 %v10188_v26 }
 0x26c   : > { %1904 = vmatpush1.bf16.msra.mxu1 %v10186_v27 }
 0x26d   : > { %1905 = vmatprep.subr.bf16.mxu1 %v10191_v37 }
 0x270   : > { %1906 = vmatpush1.bf16.msra.mxu1 %v10189_v38 }
 0x271   : > { %1907 = vmatprep.subr.bf16.mxu1 %v10194_v39 }
 0x274   : > { %1908 = vmatpush1.bf16.msra.mxu1 %v10192_v58 }
 0x275   : > { %1909 = vmatprep.subr.bf16.mxu1 %v10197_v41 }
 0x278   : > { %1910 = vmatpush1.bf16.msra.mxu1 %v10195_v42 }
 0x279   : > { %1911 = vmatprep.subr.bf16.mxu1 %v10200_v43 }
 0x27c   : > { %1912 = vmatpush1.bf16.msra.mxu1 %v10198_v44 }
 0x27d   : > { %1913 = vmatprep.subr.bf16.mxu1 %v10203_v45 }
 0x280   : > { %1914 = vmatpush1.bf16.msra.mxu1 %v10201_v46 }
 0x281   : > { %1915 = vmatprep.subr.bf16.mxu1 %v10206_v47 }
 0x284   : > { %1916 = vmatpush1.bf16.msra.mxu1 %v10204_v48 }
 0x287   : > { %1918 = vmatmul.mubr.bf16.vlgmr.msra.gmra.mrb[0].mxu1 %v1699_v52 }
 0x288   : > { %1927 = vmatprep.mubr.bf16.mxu1 %v1706_v53 }
 0x28f   : > { %1928 = vmatmul.mubr.bf16.gmra.mrb[4].mxu1 %v1704_v60 }
 0x290   : > { %1937 = vmatprep.mubr.bf16.mxu1 %v1710_v56 }
 0x297   : > { %1938 = vmatmul.mubr.bf16.gmra.mrb[8].mxu1 %v1708_v61 }
 0x298   : > { %1947 = vmatprep.mubr.bf16.mxu1 %v1714_v62 }
 0x29f   : > { %1948 = vmatmul.mubr.bf16.gmra.mrb[12].mxu1 %v1712_v59 }
 0x2a0   : > { %1957 = vmatprep.mubr.bf16.mxu1 %v1713_v40 }
 0x2a7   : > { %1958 = vmatmul.mubr.bf16.gmra.mrb[16].mxu1 %v1711_v20 }
 0x35a   : > { %v1919_v35 = vpop.f32.mrb[0].mxu1 }
 0x35b   : > { %v1999_v1 = vadd.f32 %v11817_v0, %v1919_v35  ;;  %v1921_v3 = vpop.f32.mrb[1].mxu1 }
 0x35c   : > { %v2000_v4 = vadd.f32 %v11820_v55, %v1921_v3  ;;  %v1923_v5 = vpop.f32.mrb[2].mxu1 }
 0x35d   : > { %v2001_v34 = vadd.f32 %v11817_v0, %v1923_v5  ;;  %v1925_v6 = vpop.f32.mrb[3].mxu1  ;;  %v2019_v9 = vmax.f32 %v1999_v1, 0.0 }
 0x35e   : > { %v2002_v7 = vadd.f32 %v11820_v55, %v1925_v6  ;;  %v2020_v11 = vmax.f32 %v2000_v4, 0.0 }
 0x35f   : > { %v2021_v10 = vmax.f32 %v2001_v34, 0.0 }
 0x360   : > { %v2022_v12 = vmax.f32 %v2002_v7, 0.0 }
 0x361   : > { %v11826_v13 = vpack.c.bf16 %v2021_v10, %v2019_v9 }
 0x362   : > { %v1929_v14 = vpop.f32.mrb[4].mxu1  ;;  %v11828_v2 = vpack.c.bf16 %v2022_v12, %v2020_v11 }
 0x363   : > { %v2003_v15 = vadd.f32 %v11817_v0, %v1929_v14  ;;  %v1931_v8 = vpop.f32.mrb[5].mxu1 }
 0x364   : > { %v2004_v16 = vadd.f32 %v11820_v55, %v1931_v8  ;;  %v1933_v17 = vpop.f32.mrb[6].mxu1  ;;  %9603 = vmatprep.subr.bf16.mxu0 %v11828_v2  ;;  %v11854_v8 = vld [vmem:[#allocation4 + $0x30] sm:$0xff] }
 0x365   : > { %v2005_v18 = vadd.f32 %v11817_v0, %v1933_v17  ;;  %v1935_v19 = vpop.f32.mrb[7].mxu1  ;;  %9605 = vmatpush1.bf16.msra.mxu0 %v11826_v13  ;;  %v2023_v28 = vmax.f32 %v2003_v15, 0.0  ;;  %v2079_v15 = vld [vmem:[#allocation10] sm:$0xff]  ;;  %v2085_v17 = vld [vmem:[#allocation10 + $0x30] sm:$0xff] }
 0x366   : > { %v2006_v22 = vadd.f32 %v11820_v55, %v1935_v19  ;;  %v2024_v30 = vmax.f32 %v2004_v16, 0.0  ;;  %v2084_v16 = vld [vmem:[#allocation10 + $0x28] sm:$0xff]  ;;  %v2087_v19 = vld [vmem:[#allocation10 + $0x40] sm:$0xff] }
 0x367   : > { %v2025_v29 = vmax.f32 %v2005_v18, 0.0  ;;  %v2086_v18 = vld [vmem:[#allocation10 + $0x38] sm:$0xff] }
 0x368   : > { %v2026_v31 = vmax.f32 %v2006_v22, 0.0  ;;  %v2088_v22 = vld [vmem:[#allocation10 + $0x48] sm:$0xff] }
 0x369   : > { %v11836_v32 = vpack.c.bf16 %v2025_v29, %v2023_v28  ;;  %v2246_v28 = vld [vmem:[#allocation10 + $0x50] sm:$0xff]  ;;  %v2247_v29 = vld [vmem:[#allocation10 + $0x58] sm:$0xff] }
 0x36a   : > { %v1939_v33 = vpop.f32.mrb[8].mxu1  ;;  %v9606_v26 = vpack.c.bf16 %v2026_v31, %v2024_v30  ;;  %v2248_v30 = vld [vmem:[#allocation10 + $0x60] sm:$0xff]  ;;  %v2249_v31 = vld [vmem:[#allocation10 + $0x68] sm:$0xff] }
 0x36b   : > { %v2007_v36 = vadd.f32 %v11817_v0, %v1939_v33  ;;  %v1941_v27 = vpop.f32.mrb[9].mxu1  ;;  %v2251_v33 = vld [vmem:[#allocation10 + $0x78] sm:$0xff] }
 0x36c   : > { %v2008_v37 = vadd.f32 %v11820_v55, %v1941_v27  ;;  %v1943_v38 = vpop.f32.mrb[10].mxu1  ;;  %9607 = vmatprep.subr.bf16.mxu0 %v9606_v26  ;;  %v2254_v27 = vld [vmem:[#allocation10 + $0x90] sm:$0xff] }
 0x36d   : > { %v2009_v39 = vadd.f32 %v11817_v0, %v1943_v38  ;;  %v1945_v58 = vpop.f32.mrb[11].mxu1  ;;  %9609 = vmatpush1.bf16.msra.mxu0 %v11836_v32  ;;  %v2027_v42 = vmax.f32 %v2007_v36, 0.0  ;;  %v2253_v36 = vld [vmem:[#allocation10 + $0x88] sm:$0xff]  ;;  %v10209_v38 = vld [vmem:[#allocation7 + $0x404] ss:$8 sps:$4 sm:$0xff]  }
 0x36e   : > { %v2010_v41 = vadd.f32 %v11820_v55, %v1945_v58  ;;  %v2028_v44 = vmax.f32 %v2008_v37, 0.0  ;;  %v2255_v37 = vld [vmem:[#allocation10 + $0x98] sm:$0xff]  ;;  %v10212_v58 = vld [vmem:[#allocation7 + $0x414] ss:$8 sps:$4 sm:$0xff]  }
 0x36f   : > { %v2029_v43 = vmax.f32 %v2009_v39, 0.0  ;;  %v10207_v39 = vld [vmem:[#allocation7 + $0x400] ss:$8 sps:$4 sm:$0xff]  }
 0x370   : > { %v2030_v45 = vmax.f32 %v2010_v41, 0.0  ;;  %v10210_v41 = vld [vmem:[#allocation7 + $0x410] ss:$8 sps:$4 sm:$0xff]  }
 0x371   : > { %v9612_v46 = vpack.c.bf16 %v2029_v43, %v2027_v42  ;;  %v10215_v42 = vld [vmem:[#allocation7 + $0x424] ss:$8 sps:$4 sm:$0xff]   ;;  %v10213_v43 = vld [vmem:[#allocation7 + $0x420] ss:$8 sps:$4 sm:$0xff]  }
 0x372   : > { %v1949_v47 = vpop.f32.mrb[12].mxu1  ;;  %v9610_v48 = vpack.c.bf16 %v2030_v45, %v2028_v44  ;;  %v10218_v44 = vld [vmem:[#allocation7 + $0x434] ss:$8 sps:$4 sm:$0xff]   ;;  %v10216_v45 = vld [vmem:[#allocation7 + $0x430] ss:$8 sps:$4 sm:$0xff]  }
 0x373   : > { %v2011_v49 = vadd.f32 %v11817_v0, %v1949_v47  ;;  %v1951_v50 = vpop.f32.mrb[13].mxu1  ;;  %v10219_v47 = vld [vmem:[#allocation7 + $0x440] ss:$8 sps:$4 sm:$0xff]  }
 0x374   : > { %v2012_v51 = vadd.f32 %v11820_v55, %v1951_v50  ;;  %v1953_v52 = vpop.f32.mrb[14].mxu1  ;;  %9611 = vmatprep.subr.bf16.mxu0 %v9610_v48  ;;  %v10227_v50 = vld [vmem:[#allocation7 + $0x464] ss:$8 sps:$4 sm:$0xff]  }
 0x375   : > { %v2013_v53 = vadd.f32 %v11817_v0, %v1953_v52  ;;  %v1955_v54 = vpop.f32.mrb[15].mxu1  ;;  %9613 = vmatpush1.bf16.msra.mxu0 %v9612_v46  ;;  %v2031_v60 = vmax.f32 %v2011_v49, 0.0  ;;  %v10222_v49 = vld [vmem:[#allocation7 + $0x450] ss:$8 sps:$4 sm:$0xff]   ;;  %v10230_v52 = vld [vmem:[#allocation7 + $0x474] ss:$8 sps:$4 sm:$0xff]  }
 0x376   : > { %v2014_v57 = vadd.f32 %v11820_v55, %v1955_v54  ;;  %v2032_v24 = vmax.f32 %v2012_v51, 0.0  ;;  %v10225_v51 = vld [vmem:[#allocation7 + $0x460] ss:$8 sps:$4 sm:$0xff]   ;;  %v10233_v54 = vld [vmem:[#allocation7 + $0x484] ss:$8 sps:$4 sm:$0xff]  }
 0x377   : > { %v2033_v56 = vmax.f32 %v2013_v53, 0.0  ;;  %v10228_v53 = vld [vmem:[#allocation7 + $0x470] ss:$8 sps:$4 sm:$0xff]  }
 0x378   : > { %v2034_v40 = vmax.f32 %v2014_v57, 0.0  ;;  %v10231_v57 = vld [vmem:[#allocation7 + $0x480] ss:$8 sps:$4 sm:$0xff]  }
 0x379   : > { %v9616_v61 = vpack.c.bf16 %v2033_v56, %v2031_v60  ;;  %v10236_v60 = vld [vmem:[#allocation7 + $0x494] ss:$8 sps:$4 sm:$0xff]   ;;  %v10234_v56 = vld [vmem:[#allocation7 + $0x490] ss:$8 sps:$4 sm:$0xff]  }
 0x37a   : > { %v1959_v62 = vpop.f32.mrb[16].mxu1  ;;  %v9614_v20 = vpack.c.bf16 %v2034_v40, %v2032_v24  ;;  %v10239_v24 = vld [vmem:[#allocation7 + $0x4a4] ss:$8 sps:$4 sm:$0xff]   ;;  %v10237_v40 = vld [vmem:[#allocation7 + $0x4a0] ss:$8 sps:$4 sm:$0xff]  }
 0x37b   : > { %v1961_v59 = vpop.f32.mrb[17].mxu1  ;;  %v2015_v6 = vadd.f32 %v11817_v0, %v1959_v62  ;;  %v10240_v62 = vld [vmem:[#allocation7 + $0x4b0] ss:$8 sps:$4 sm:$0xff]  }
 0x37c   : > { %v1963_v63 = vpop.f32.mrb[18].mxu1  ;;  %9615 = vmatprep.subr.bf16.mxu0 %v9614_v20  ;;  %v2016_v34 = vadd.f32 %v11820_v55, %v1961_v59  ;;  %v10243_v59 = vld [vmem:[#allocation7 + $0x4c0] ss:$8 sps:$4 sm:$0xff]  }
 0x37d   : > { %v2017_v35 = vadd.f32 %v11817_v0, %v1963_v63  ;;  %v1965_v1 = vpop.f32.mrb[19].mxu1  ;;  %9617 = vmatpush1.bf16.msra.mxu0 %v9616_v61  ;;  %v2035_v10 = vmax.f32 %v2015_v6, 0.0  ;;  %v2080_v0 = vld [vmem:[#allocation10 + $0x8] sm:$0xff] }
 0x37e   : > { %v2018_v3 = vadd.f32 %v11820_v55, %v1965_v1  ;;  %v2036_v7 = vmax.f32 %v2016_v34, 0.0  ;;  %v2081_v55 = vld [vmem:[#allocation10 + $0x10] sm:$0xff]  ;;  %v10248_v63 = vld [vmem:[#allocation7 + $0x4d4] ss:$8 sps:$4 sm:$0xff]  }
 0x37f   : > { %v2037_v4 = vmax.f32 %v2017_v35, 0.0  ;;  %v10246_v35 = vld [vmem:[#allocation7 + $0x4d0] ss:$8 sps:$4 sm:$0xff]   ;;  %v10251_v1 = vld [vmem:[#allocation7 + $0x4e4] ss:$8 sps:$4 sm:$0xff]  }
 0x380   : > { %v2038_v5 = vmax.f32 %v2018_v3, 0.0  ;;  %v10249_v3 = vld [vmem:[#allocation7 + $0x4e0] ss:$8 sps:$4 sm:$0xff]   ;;  %v10257_v34 = vld [vmem:[#allocation7 + $0x304] ss:$8 sps:$4 sm:$0xff]  }
 0x381   : > { %2057 = vst [vmem:[#allocation3 + $0x90] sm:$0x3f] %v2037_v4  ;;  %v10254_v4 = vld [vmem:[#allocation7 + $0x4f4] ss:$8 sps:$4 sm:$0xff]  }
 0x382   : > { %2058 = vst [vmem:[#allocation3 + $0x98] sm:$0x3f] %v2038_v5  ;;  %v10252_v5 = vld [vmem:[#allocation7 + $0x4f0] ss:$8 sps:$4 sm:$0xff]  }
 0x388   : > { %v2077_v9 = vld [vmem:[#allocation3 + $0x90] sm:$0xff] }
 0x389   : > { %v2078_v11 = vld [vmem:[#allocation3 + $0x98] sm:$0xff]  ;;  %v9620_v14 = vpack.c.bf16 %v2077_v9, %v2035_v10 }
 0x38a   : > { %v9618_v12 = vpack.c.bf16 %v2078_v11, %v2036_v7 }
 0x38c   : > { %9619 = vmatprep.subr.bf16.mxu0 %v9618_v12 }
 0x38d   : > { %9621 = vmatpush1.bf16.msra.mxu0 %v9620_v14 }
 0x38e   : > { %9623 = vmatprep.subr.bf16.mxu0 %v11828_v2  ;;  %v2083_v2 = vld [vmem:[#allocation10 + $0x20] sm:$0xff] }
 0x390   : > { %8970 = vmatmul.mubr.msk.f32.vlgmr.msra.gmra.mrb[20].mxu0 %vm2089_vm3, %v2079_v15 }
 0x391   : > { %9625 = vmatpush1.bf16.msra.mxu0 %v11826_v13  ;;  %2190 = vmatprep.mubr.f32.mxu0 %v11854_v8  ;;  %v2082_v13 = vld [vmem:[#allocation10 + $0x18] sm:$0xff] }
 0x392   : > { %9627 = vmatprep.subr.bf16.mxu0 %v9606_v26  ;;  %v2252_v26 = vld [vmem:[#allocation10 + $0x80] sm:$0xff] }
 0x394   : > { %8971 = vmatmul.mubr.msk.f32.gmra.mrb[22].mxu0 %vm2089_vm3, %v2080_v0 }
 0x395   : > { %9629 = vmatpush1.bf16.msra.mxu0 %v11836_v32  ;;  %2196 = vmatprep.mubr.f32.mxu0 %v11854_v8  ;;  %v2250_v32 = vld [vmem:[#allocation10 + $0x70] sm:$0xff] }
 0x396   : > { %9631 = vmatprep.subr.bf16.mxu0 %v9610_v48  ;;  %v10224_v48 = vld [vmem:[#allocation7 + $0x454] ss:$8 sps:$4 sm:$0xff]  }
 0x398   : > { %8972 = vmatmul.mubr.msk.f32.gmra.mrb[24].mxu0 %vm2089_vm3, %v2081_v55 }
 0x399   : > { %9633 = vmatpush1.bf16.msra.mxu0 %v9612_v46  ;;  %2202 = vmatprep.mubr.f32.mxu0 %v11854_v8  ;;  %v10221_v46 = vld [vmem:[#allocation7 + $0x444] ss:$8 sps:$4 sm:$0xff]  }
 0x39a   : > { %9635 = vmatprep.subr.bf16.mxu0 %v9614_v20  ;;  %v10245_v20 = vld [vmem:[#allocation7 + $0x4c4] ss:$8 sps:$4 sm:$0xff]  }
 0x39c   : > { %8973 = vmatmul.mubr.msk.f32.gmra.mrb[26].mxu0 %vm2089_vm3, %v2082_v13 }
 0x39d   : > { %9637 = vmatpush1.bf16.msra.mxu0 %v9616_v61  ;;  %2208 = vmatprep.mubr.f32.mxu0 %v11854_v8  ;;  %v10242_v61 = vld [vmem:[#allocation7 + $0x4b4] ss:$8 sps:$4 sm:$0xff]  }
 0x39e   : > { %9639 = vmatprep.subr.bf16.mxu0 %v9618_v12 }
 0x3a0   : > { %8974 = vmatmul.mubr.msk.f32.gmra.mrb[28].mxu0 %vm2089_vm3, %v2083_v2 }
 0x3a1   : > { %9641 = vmatpush1.bf16.msra.mxu0 %v9620_v14  ;;  %2214 = vmatprep.mubr.f32.mxu0 %v11854_v8 }
 0x3a2   : > { %2830 = vmatprep.subr.bf16.mxu0 %v10209_v38 }
 0x3a4   : > { %8975 = vmatmul.mubr.msk.f32.gmra.mrb[30].mxu0 %vm2089_vm3, %v2084_v16 }
 0x3a5   : > { %2220 = vmatprep.mubr.f32.mxu0 %v11854_v8 }
 0x3a8   : > { %8976 = vmatmul.mubr.msk.f32.gmra.mrb[32].mxu0 %vm2089_vm3, %v2085_v17 }
 0x3a9   : > { %2226 = vmatprep.mubr.f32.mxu0 %v11854_v8 }
 0x3ac   : > { %8977 = vmatmul.mubr.msk.f32.gmra.mrb[34].mxu0 %vm2089_vm3, %v2086_v18 }
 0x3ad   : > { %2232 = vmatprep.mubr.f32.mxu0 %v11854_v8 }
 0x3b0   : > { %8978 = vmatmul.mubr.msk.f32.gmra.mrb[36].mxu0 %vm2089_vm3, %v2087_v19 }
 0x3b1   : > { %2238 = vmatprep.mubr.f32.mxu0 %v11854_v8 }
 0x3b4   : > { %8979 = vmatmul.mubr.msk.f32.gmra.mrb[38].mxu0 %vm2089_vm3, %v2088_v22 }
 0x3b5   : > { %2350 = vmatprep.mubr.f32.mxu0 %v11854_v8 }
 0x3b8   : > { %8980 = vmatmul.mubr.msk.f32.vlgmr.msra.gmra.mrb[40].mxu0 %vm2089_vm3, %v2246_v28 }
 0x3b9   : > { %2356 = vmatprep.mubr.f32.mxu0 %v11854_v8  ;;  %2831 = vmatpush1.bf16.msra.mxu0 %v10207_v39 }
 0x3ba   : > { %2832 = vmatprep.subr.bf16.mxu0 %v10212_v58 }
 0x3bc   : > { %8981 = vmatmul.mubr.msk.f32.gmra.mrb[42].mxu0 %vm2089_vm3, %v2247_v29 }
 0x3bd   : > { %2362 = vmatprep.mubr.f32.mxu0 %v11854_v8  ;;  %2833 = vmatpush1.bf16.msra.mxu0 %v10210_v41 }
 0x3be   : > { %2834 = vmatprep.subr.bf16.mxu0 %v10215_v42 }
 0x3c0   : > { %8982 = vmatmul.mubr.msk.f32.gmra.mrb[44].mxu0 %vm2089_vm3, %v2248_v30 }
 0x3c1   : > { %2368 = vmatprep.mubr.f32.mxu0 %v11854_v8  ;;  %2835 = vmatpush1.bf16.msra.mxu0 %v10213_v43 }
 0x3c2   : > { %2836 = vmatprep.subr.bf16.mxu0 %v10218_v44 }
 0x3c4   : > { %8983 = vmatmul.mubr.msk.f32.gmra.mrb[46].mxu0 %vm2089_vm3, %v2249_v31 }
 0x3c5   : > { %2374 = vmatprep.mubr.f32.mxu0 %v11854_v8  ;;  %2837 = vmatpush1.bf16.msra.mxu0 %v10216_v45 }
 0x3c6   : > { %2838 = vmatprep.subr.bf16.mxu0 %v10221_v46 }
 0x3c8   : > { %8984 = vmatmul.mubr.msk.f32.gmra.mrb[48].mxu0 %vm2089_vm3, %v2250_v32 }
 0x3c9   : > { %2380 = vmatprep.mubr.f32.mxu0 %v11854_v8  ;;  %2839 = vmatpush1.bf16.msra.mxu0 %v10219_v47 }
 0x3ca   : > { %2840 = vmatprep.subr.bf16.mxu0 %v10224_v48 }
 0x3cc   : > { %8985 = vmatmul.mubr.msk.f32.gmra.mrb[50].mxu0 %vm2089_vm3, %v2251_v33 }
 0x3cd   : > { %2386 = vmatprep.mubr.f32.mxu0 %v11854_v8  ;;  %2841 = vmatpush1.bf16.msra.mxu0 %v10222_v49 }
 0x3ce   : > { %2842 = vmatprep.subr.bf16.mxu0 %v10227_v50 }
 0x3d0   : > { %8986 = vmatmul.mubr.msk.f32.gmra.mrb[52].mxu0 %vm2089_vm3, %v2252_v26 }
 0x3d1   : > { %2392 = vmatprep.mubr.f32.mxu0 %v11854_v8  ;;  %2843 = vmatpush1.bf16.msra.mxu0 %v10225_v51 }
 0x3d2   : > { %2844 = vmatprep.subr.bf16.mxu0 %v10230_v52 }
 0x3d4   : > { %8987 = vmatmul.mubr.msk.f32.gmra.mrb[54].mxu0 %vm2089_vm3, %v2253_v36 }
 0x3d5   : > { %2398 = vmatprep.mubr.f32.mxu0 %v11854_v8  ;;  %2845 = vmatpush1.bf16.msra.mxu0 %v10228_v53 }
 0x3d6   : > { %2846 = vmatprep.subr.bf16.mxu0 %v10233_v54 }
 0x3d8   : > { %8988 = vmatmul.mubr.msk.f32.gmra.mrb[56].mxu0 %vm2089_vm3, %v2254_v27 }
 0x3d9   : > { %2404 = vmatprep.mubr.f32.mxu0 %v11854_v8  ;;  %2847 = vmatpush1.bf16.msra.mxu0 %v10231_v57 }
 0x3da   : > { %2848 = vmatprep.subr.bf16.mxu0 %v10236_v60 }
 0x3dc   : > { %8989 = vmatmul.mubr.msk.f32.gmra.mrb[58].mxu0 %vm2089_vm3, %v2255_v37 }
 0x3dd   : > { %2849 = vmatpush1.bf16.msra.mxu0 %v10234_v56 }
 0x3de   : > { %2850 = vmatprep.subr.bf16.mxu0 %v10239_v24 }
 0x3e1   : > { %2851 = vmatpush1.bf16.msra.mxu0 %v10237_v40 }
 0x3e2   : > { %2852 = vmatprep.subr.bf16.mxu0 %v10242_v61 }
 0x3e5   : > { %2853 = vmatpush1.bf16.msra.mxu0 %v10240_v62 }
 0x3e6   : > { %2854 = vmatprep.subr.bf16.mxu0 %v10245_v20 }
 0x3e9   : > { %2855 = vmatpush1.bf16.msra.mxu0 %v10243_v59 }
 0x3ea   : > { %2856 = vmatprep.subr.bf16.mxu0 %v10248_v63 }
 0x3ed   : > { %2857 = vmatpush1.bf16.msra.mxu0 %v10246_v35 }
 0x3ee   : > { %2858 = vmatprep.subr.bf16.mxu0 %v10251_v1 }
 0x3f1   : > { %2859 = vmatpush1.bf16.msra.mxu0 %v10249_v3 }
 0x3f2   : > { %2860 = vmatprep.subr.bf16.mxu0 %v10254_v4 }
 0x3f5   : > { %2861 = vmatpush1.bf16.msra.mxu0 %v10252_v5  ;;  %v10255_v5 = vld [vmem:[#allocation7 + $0x300] ss:$8 sps:$4 sm:$0xff]  }
 0x3f6   : > { %3073 = vmatprep.subr.bf16.mxu0 %v10257_v34 }
 0x463   : > { %v2186_v6 = vpop.f32.mrb[20].mxu0 }
 0x464   : > { %v2188_v7 = vpop.f32.mrb[21].mxu0 }
 0x467   : > { %v2192_v9 = vpop.f32.mrb[22].mxu0 }
 0x468   : > { %v2194_v10 = vpop.f32.mrb[23].mxu0 }
 0x46b   : > { %v2198_v11 = vpop.f32.mrb[24].mxu0 }
 0x46c   : > { %v2200_v12 = vpop.f32.mrb[25].mxu0 }
 0x46f   : > { %v2204_v14 = vpop.f32.mrb[26].mxu0 }
 0x470   : > { %v2206_v15 = vpop.f32.mrb[27].mxu0 }
 0x473   : > { %v2210_v0 = vpop.f32.mrb[28].mxu0 }
 0x474   : > { %v2212_v55 = vpop.f32.mrb[29].mxu0 }
 0x477   : > { %v2216_v13 = vpop.f32.mrb[30].mxu0 }
 0x478   : > { %v2218_v2 = vpop.f32.mrb[31].mxu0 }
 0x47b   : > { %v11895_v16 = vpop.f32.mrb[32].mxu0 }
 0x47c   : > { %v11897_v17 = vpop.f32.mrb[33].mxu0 }
 0x47f   : > { %v11899_v18 = vpop.f32.mrb[34].mxu0 }
 0x480   : > { %v11901_v19 = vpop.f32.mrb[35].mxu0 }
 0x483   : > { %v11903_v22 = vpop.f32.mrb[36].mxu0 }
 0x484   : > { %v11905_v28 = vpop.f32.mrb[37].mxu0 }
 0x487   : > { %v11907_v29 = vpop.f32.mrb[38].mxu0 }
 0x488   : > { %v11909_v30 = vpop.f32.mrb[39].mxu0 }
 0x48b   : > { %v2352_v31 = vpop.f32.mrb[40].mxu0 }
 0x48c   : > { %v2411_v32 = vmax.f32 %v2186_v6, %v2352_v31  ;;  %v2354_v33 = vpop.f32.mrb[41].mxu0 }
 0x48d   : > { %v2412_v26 = vmax.f32 %v2188_v7, %v2354_v33  ;;  %v10263_v33 = vld [vmem:[#allocation7 + $0x324] ss:$8 sps:$4 sm:$0xff]  }
 0x48f   : > { %v2358_v36 = vpop.f32.mrb[42].mxu0 }
 0x490   : > { %v2413_v27 = vmax.f32 %v2192_v9, %v2358_v36  ;;  %v2360_v37 = vpop.f32.mrb[43].mxu0  ;;  %v10260_v9 = vld [vmem:[#allocation7 + $0x314] ss:$8 sps:$4 sm:$0xff]  }
 0x491   : > { %v2414_v38 = vmax.f32 %v2194_v10, %v2360_v37 }
 0x492   : > { %v11911_v39 = vpack.c.bf16 %v2413_v27, %v2411_v32 }
 0x493   : > { %v2364_v58 = vpop.f32.mrb[44].mxu0  ;;  %v11913_v41 = vpack.c.bf16 %v2414_v38, %v2412_v26 }
 0x494   : > { %v2415_v42 = vmax.f32 %v2198_v11, %v2364_v58  ;;  %v2366_v43 = vpop.f32.mrb[45].mxu0  ;;  %v2585_v49 = vshll.u32 %v11911_v39, 16  ;;  %v2583_v20 = vshrl.u32 %v11911_v39, 16 }
 0x495   : > { %v2416_v44 = vmax.f32 %v2200_v12, %v2366_v43  ;;  %v2597_v46 = vshll.u32 %v11913_v41, 16  ;;  %v2595_v61 = vshrl.u32 %v11913_v41, 16 }
 0x496   : > { %v2587_v56 = vrot.slane %v2585_v49, 1 }
 0x497   : > { %v2370_v45 = vpop.f32.mrb[46].mxu0  ;;  %v2599_v54 = vrot.slane %v2597_v46, 1 }
 0x498   : > { %v2417_v47 = vmax.f32 %v2204_v14, %v2370_v45  ;;  %v2372_v48 = vpop.f32.mrb[47].mxu0  ;;  %v2588_v34 = vor.u32 %v2587_v56, %v2583_v20  ;;  %v10266_v45 = vld [vmem:[#allocation7 + $0x334] ss:$8 sps:$4 sm:$0xff]   ;;  %v10269_v56 = vld [vmem:[#allocation7 + $0x344] ss:$8 sps:$4 sm:$0xff]  }
 0x499   : > { %v2418_v50 = vmax.f32 %v2206_v15, %v2372_v48  ;;  %v2600_v35 = vor.u32 %v2599_v54, %v2595_v61 }
 0x49a   : > { %v11917_v51 = vpack.c.bf16 %v2417_v47, %v2415_v42  ;;  %v10261_v42 = vld [vmem:[#allocation7 + $0x320] ss:$8 sps:$4 sm:$0xff]  }
 0x49b   : > { %v2376_v52 = vpop.f32.mrb[48].mxu0  ;;  %v11919_v53 = vpack.c.bf16 %v2418_v50, %v2416_v44 }
 0x49c   : > { %v2419_v57 = vmax.f32 %v2210_v0, %v2376_v52  ;;  %v2378_v60 = vpop.f32.mrb[49].mxu0  ;;  %v2590_v24 = vshll.u32 %v11917_v51, 16  ;;  %v2606_v26 = vshrl.u32 %v11917_v51, 16  ;;  %v10264_v52 = vld [vmem:[#allocation7 + $0x330] ss:$8 sps:$4 sm:$0xff]  }
 0x49d   : > { %v2420_v40 = vmax.f32 %v2212_v55, %v2378_v60  ;;  %v2602_v62 = vshll.u32 %v11919_v53, 16  ;;  %v10258_v55 = vld [vmem:[#allocation7 + $0x310] ss:$8 sps:$4 sm:$0xff]   ;;  %v2614_v31 = vshrl.u32 %v11919_v53, 16 }
 0x49e   : > { %v2592_v59 = vrot.slane %v2590_v24, 1 }
 0x49f   : > { %v2382_v63 = vpop.f32.mrb[50].mxu0  ;;  %v2604_v1 = vrot.slane %v2602_v62, 1 }
 0x4a0   : > { %v2421_v3 = vmax.f32 %v2216_v13, %v2382_v63  ;;  %v2384_v4 = vpop.f32.mrb[51].mxu0  ;;  %v2593_v10 = vsel %vm492_vm0, %v2588_v34, %v2592_v59  ;;  %v2608_v43 = vor.u32 %v2606_v26, %v2592_v59  ;;  %v10267_v63 = vld [vmem:[#allocation7 + $0x340] ss:$8 sps:$4 sm:$0xff]  }
 0x4a1   : > { %v2422_v6 = vmax.f32 %v2218_v2, %v2384_v4  ;;  %v2605_v7 = vsel %vm492_vm0, %v2600_v35, %v2604_v1  ;;  %v2616_v37 = vor.u32 %v2614_v31, %v2604_v1 }
 0x4a2   : > { %2862 = vmatprep.mubr.bf16.mxu0 %v2605_v7  ;;  %v11927_v11 = vpack.c.bf16 %v2421_v3, %v2419_v57  ;;  %v10272_v3 = vld [vmem:[#allocation7 + $0x354] ss:$8 sps:$4 sm:$0xff]  }
 0x4a3   : > { %v2388_v12 = vpop.f32.mrb[52].mxu0  ;;  %2863 = vmatmul.mubr.bf16.vlgmr.msra.gmra.mrb[60].mxu0 %v2593_v10  ;;  %v11929_v14 = vpack.c.bf16 %v2422_v6, %v2420_v40 }
 0x4a4   : > { %v2423_v15 = vmax.f32 %v11895_v16, %v2388_v12  ;;  %v2390_v0 = vpop.f32.mrb[53].mxu0  ;;  %3074 = vmatpush1.bf16.msra.mxu0 %v10255_v5  ;;  %v2610_v13 = vshll.u32 %v11927_v11, 16  ;;  %v2622_v24 = vshrl.u32 %v11927_v11, 16 }
 0x4a5   : > { %v2424_v2 = vmax.f32 %v11897_v17, %v2390_v0  ;;  %3075 = vmatprep.subr.bf16.mxu0 %v10260_v9  ;;  %v2618_v32 = vshll.u32 %v11929_v14, 16  ;;  %v2630_v57 = vshrl.u32 %v11929_v14, 16  ;;  %v10275_v9 = vld [vmem:[#allocation7 + $0x364] ss:$8 sps:$4 sm:$0xff]  }
 0x4a6   : > { %v2612_v36 = vrot.slane %v2610_v13, 1  ;;  %v10273_v13 = vld [vmem:[#allocation7 + $0x360] ss:$8 sps:$4 sm:$0xff]  }
 0x4a7   : > { %v2394_v27 = vpop.f32.mrb[54].mxu0  ;;  %v2620_v38 = vrot.slane %v2618_v32, 1 }
 0x4a8   : > { %v2425_v16 = vmax.f32 %v11899_v18, %v2394_v27  ;;  %v2396_v58 = vpop.f32.mrb[55].mxu0  ;;  %3076 = vmatpush1.bf16.msra.mxu0 %v10258_v55  ;;  %v2613_v46 = vsel %vm492_vm0, %v2608_v43, %v2612_v36  ;;  %v2624_v35 = vor.u32 %v2622_v24, %v2612_v36  ;;  %v10276_v36 = vld [vmem:[#allocation7 + $0x370] ss:$8 sps:$4 sm:$0xff]   ;;  %v10281_v27 = vld [vmem:[#allocation7 + $0x384] ss:$8 sps:$4 sm:$0xff]  }
 0x4a9   : > { %v2426_v17 = vmax.f32 %v11901_v19, %v2396_v58  ;;  %v2621_v44 = vsel %vm492_vm0, %v2616_v37, %v2620_v38  ;;  %3077 = vmatprep.subr.bf16.mxu0 %v10263_v33  ;;  %v2632_v62 = vor.u32 %v2630_v57, %v2620_v38  ;;  %v10278_v33 = vld [vmem:[#allocation7 + $0x374] ss:$8 sps:$4 sm:$0xff]   ;;  %v10279_v38 = vld [vmem:[#allocation7 + $0x380] ss:$8 sps:$4 sm:$0xff]   ;;  %v10353_v43 = vld [vmem:[#allocation7 + $0x704] ss:$8 sps:$4 sm:$0xff]  }
 0x4aa   : > { %2872 = vmatprep.mubr.bf16.mxu0 %v2621_v44  ;;  %v11941_v47 = vpack.c.bf16 %v2425_v16, %v2423_v15  ;;  %v10284_v58 = vld [vmem:[#allocation7 + $0x394] ss:$8 sps:$4 sm:$0xff]   ;;  %3907 = vmatprep.subr.bf16.mxu1 %v10353_v43  ;;  %v10293_v57 = vld [vmem:[#allocation7 + $0x3c4] ss:$8 sps:$4 sm:$0xff]   ;;  %v10291_v24 = vld [vmem:[#allocation7 + $0x3c0] ss:$8 sps:$4 sm:$0xff]  }
 0x4ab   : > { %v2400_v48 = vpop.f32.mrb[56].mxu0  ;;  %2873 = vmatmul.mubr.bf16.gmra.mrb[64].mxu0 %v2613_v46  ;;  %v11943_v49 = vpack.c.bf16 %v2426_v17, %v2424_v2  ;;  %v10282_v17 = vld [vmem:[#allocation7 + $0x390] ss:$8 sps:$4 sm:$0xff]   ;;  %v10356_v44 = vld [vmem:[#allocation7 + $0x714] ss:$8 sps:$4 sm:$0xff]  }
 0x4ac   : > { %v2427_v18 = vmax.f32 %v11903_v22, %v2400_v48  ;;  %v2402_v50 = vpop.f32.mrb[57].mxu0  ;;  %3078 = vmatpush1.bf16.msra.mxu0 %v10261_v42  ;;  %v2626_v19 = vshll.u32 %v11941_v47, 16  ;;  %v2638_v10 = vshrl.u32 %v11941_v47, 16  ;;  %v10351_v42 = vld [vmem:[#allocation7 + $0x700] ss:$8 sps:$4 sm:$0xff]  }
 0x4ad   : > { %v2428_v54 = vmax.f32 %v11905_v28, %v2402_v50  ;;  %3079 = vmatprep.subr.bf16.mxu0 %v10266_v45  ;;  %v2634_v60 = vshll.u32 %v11943_v49, 16  ;;  %v10287_v45 = vld [vmem:[#allocation7 + $0x3a4] ss:$8 sps:$4 sm:$0xff]   ;;  %3908 = vmatpush1.bf16.msra.mxu1 %v10351_v42  ;;  %v10354_v46 = vld [vmem:[#allocation7 + $0x710] ss:$8 sps:$4 sm:$0xff]   ;;  %v3169_v42 = vrot.slane %v11913_v41, 1 }
 0x4ae   : > { %v2628_v40 = vrot.slane %v2626_v19, 1  ;;  %3909 = vmatprep.subr.bf16.mxu1 %v10356_v44  ;;  %v10359_v48 = vld [vmem:[#allocation7 + $0x724] ss:$8 sps:$4 sm:$0xff]   ;;  %v10290_v50 = vld [vmem:[#allocation7 + $0x3b4] ss:$8 sps:$4 sm:$0xff]  }
 0x4af   : > { %v2406_v61 = vpop.f32.mrb[58].mxu0  ;;  %v2636_v20 = vrot.slane %v2634_v60, 1  ;;  %v10362_v19 = vld [vmem:[#allocation7 + $0x734] ss:$8 sps:$4 sm:$0xff]   ;;  %v10360_v60 = vld [vmem:[#allocation7 + $0x730] ss:$8 sps:$4 sm:$0xff]  }
 0x4b0   : > { %v2429_v22 = vmax.f32 %v11907_v29, %v2406_v61  ;;  %v2408_v59 = vpop.f32.mrb[59].mxu0  ;;  %3080 = vmatpush1.bf16.msra.mxu0 %v10264_v52  ;;  %v2629_v4 = vsel %vm492_vm0, %v2624_v35, %v2628_v40  ;;  %v10270_v29 = vld [vmem:[#allocation7 + $0x350] ss:$8 sps:$4 sm:$0xff]   ;;  %v2640_v2 = vor.u32 %v2638_v10, %v2628_v40  ;;  %v10357_v52 = vld [vmem:[#allocation7 + $0x720] ss:$8 sps:$4 sm:$0xff]  }
 0x4b1   : > { %v2430_v28 = vmax.f32 %v11909_v30, %v2408_v59  ;;  %v2637_v1 = vsel %vm492_vm0, %v2632_v62, %v2636_v20  ;;  %3081 = vmatprep.subr.bf16.mxu0 %v10269_v56  ;;  %v2646_v30 = vshrl.u32 %v11943_v49, 16  ;;  %3910 = vmatpush1.bf16.msra.mxu1 %v10354_v46  ;;  %v10365_v56 = vld [vmem:[#allocation7 + $0x744] ss:$8 sps:$4 sm:$0xff]   ;;  %v10296_v40 = vld [vmem:[#allocation7 + $0x3d4] ss:$8 sps:$4 sm:$0xff]  }
 0x4b2   : > { %2449 = vst [vmem:[#allocation2 + $0x90] sm:$0xff] %v2429_v22  ;;  %2882 = vmatprep.mubr.bf16.mxu0 %v2637_v1  ;;  %v11955_v5 = vpack.c.bf16 %v2429_v22, %v2427_v18  ;;  %v10285_v18 = vld [vmem:[#allocation7 + $0x3a0] ss:$8 sps:$4 sm:$0xff]   ;;  %3911 = vmatprep.subr.bf16.mxu1 %v10359_v48  ;;  %v10368_v62 = vld [vmem:[#allocation7 + $0x754] ss:$8 sps:$4 sm:$0xff]  }
 0x4b3   : > { %2450 = vst [vmem:[#allocation2 + $0x98] sm:$0xff] %v2430_v28  ;;  %2883 = vmatmul.mubr.bf16.gmra.mrb[68].mxu0 %v2629_v4  ;;  %v11957_v34 = vpack.c.bf16 %v2430_v28, %v2428_v54  ;;  %v2648_v15 = vor.u32 %v2646_v30, %v2636_v20  ;;  %v10288_v54 = vld [vmem:[#allocation7 + $0x3b0] ss:$8 sps:$4 sm:$0xff]   ;;  %v10363_v61 = vld [vmem:[#allocation7 + $0x740] ss:$8 sps:$4 sm:$0xff]  }
 0x4b4   : > { %3082 = vmatpush1.bf16.msra.mxu0 %v10267_v63  ;;  %v2642_v6 = vshll.u32 %v11955_v5, 16  ;;  %v2654_v37 = vshrl.u32 %v11955_v5, 16  ;;  %v10294_v20 = vld [vmem:[#allocation7 + $0x3d0] ss:$8 sps:$4 sm:$0xff]   ;;  %v10299_v22 = vld [vmem:[#allocation7 + $0x3e4] ss:$8 sps:$4 sm:$0xff]  }
 0x4b5   : > { %3083 = vmatprep.subr.bf16.mxu0 %v10272_v3  ;;  %v2650_v7 = vshll.u32 %v11957_v34, 16  ;;  %v2657_v55 = vshrl.u32 %v11957_v34, 16  ;;  %3912 = vmatpush1.bf16.msra.mxu1 %v10357_v52  ;;  %v10366_v59 = vld [vmem:[#allocation7 + $0x750] ss:$8 sps:$4 sm:$0xff]   ;;  %v10371_v63 = vld [vmem:[#allocation7 + $0x764] ss:$8 sps:$4 sm:$0xff]  }
 0x4b6   : > { %v2644_v12 = vrot.slane %v2642_v6, 1  ;;  %3913 = vmatprep.subr.bf16.mxu1 %v10362_v19  ;;  %v10297_v35 = vld [vmem:[#allocation7 + $0x3e0] ss:$8 sps:$4 sm:$0xff]   ;;  %v10302_v28 = vld [vmem:[#allocation7 + $0x3f4] ss:$8 sps:$4 sm:$0xff]  }
 0x4b7   : > { %v2652_v0 = vrot.slane %v2650_v7, 1  ;;  %v10369_v1 = vld [vmem:[#allocation7 + $0x760] ss:$8 sps:$4 sm:$0xff]   ;;  %v10374_v3 = vld [vmem:[#allocation7 + $0x774] ss:$8 sps:$4 sm:$0xff]  }
 0x4b8   : > { %3084 = vmatpush1.bf16.msra.mxu0 %v10270_v29  ;;  %v2645_v26 = vsel %vm492_vm0, %v2640_v2, %v2644_v12  ;;  %v2656_v16 = vor.u32 %v2654_v37, %v2644_v12  ;;  %v10300_v4 = vld [vmem:[#allocation7 + $0x3f0] ss:$8 sps:$4 sm:$0xff]   ;;  %v10305_v29 = vld [vmem:[#allocation7 + $0x504] ss:$8 sps:$4 sm:$0xff]   ;;  %v10303_v7 = vld [vmem:[#allocation7 + $0x500] ss:$8 sps:$4 sm:$0xff]  }
 0x4b9   : > { %v2653_v31 = vsel %vm492_vm0, %v2648_v15, %v2652_v0  ;;  %3085 = vmatprep.subr.bf16.mxu0 %v10275_v9  ;;  %v2659_v32 = vor.u32 %v2657_v55, %v2652_v0  ;;  %3914 = vmatpush1.bf16.msra.mxu1 %v10360_v60  ;;  %v10372_v6 = vld [vmem:[#allocation7 + $0x770] ss:$8 sps:$4 sm:$0xff]   ;;  %v10377_v30 = vld [vmem:[#allocation7 + $0x784] ss:$8 sps:$4 sm:$0xff]   ;;  %v10308_v9 = vld [vmem:[#allocation7 + $0x514] ss:$8 sps:$4 sm:$0xff]  }
 0x4ba   : > { %2892 = vmatprep.mubr.bf16.mxu0 %v2653_v31  ;;  %3915 = vmatprep.subr.bf16.mxu1 %v10365_v56  ;;  %v10375_v10 = vld [vmem:[#allocation7 + $0x780] ss:$8 sps:$4 sm:$0xff]   ;;  %v10306_v12 = vld [vmem:[#allocation7 + $0x510] ss:$8 sps:$4 sm:$0xff]   ;;  %v10311_v15 = vld [vmem:[#allocation7 + $0x524] ss:$8 sps:$4 sm:$0xff]  }
 0x4bb   : > { %2893 = vmatmul.mubr.bf16.gmra.mrb[72].mxu0 %v2645_v26  ;;  %v10309_v0 = vld [vmem:[#allocation7 + $0x520] ss:$8 sps:$4 sm:$0xff]   ;;  %v10314_v55 = vld [vmem:[#allocation7 + $0x534] ss:$8 sps:$4 sm:$0xff]   ;;  %v10317_v2 = vld [vmem:[#allocation7 + $0x544] ss:$8 sps:$4 sm:$0xff]  }
 0x4bc   : > { %3086 = vmatpush1.bf16.msra.mxu0 %v10273_v13  ;;  %2902 = vmatprep.mubr.bf16.mxu0 %v2659_v32  ;;  %v10312_v13 = vld [vmem:[#allocation7 + $0x530] ss:$8 sps:$4 sm:$0xff]   ;;  %v10315_v31 = vld [vmem:[#allocation7 + $0x540] ss:$8 sps:$4 sm:$0xff]   ;;  %v10320_v32 = vld [vmem:[#allocation7 + $0x554] ss:$8 sps:$4 sm:$0xff]  }
 0x4bd   : > { %3087 = vmatprep.subr.bf16.mxu0 %v10278_v33  ;;  %3916 = vmatpush1.bf16.msra.mxu1 %v10363_v61  ;;  %v10318_v33 = vld [vmem:[#allocation7 + $0x550] ss:$8 sps:$4 sm:$0xff]   ;;  %v10323_v26 = vld [vmem:[#allocation7 + $0x564] ss:$8 sps:$4 sm:$0xff]   ;;  %v10332_v43 = vld [vmem:[#allocation7 + $0x594] ss:$8 sps:$4 sm:$0xff]  }
 0x4be   : > { %3917 = vmatprep.subr.bf16.mxu1 %v10368_v62  ;;  %v10324_v37 = vld [vmem:[#allocation7 + $0x570] ss:$8 sps:$4 sm:$0xff]   ;;  %v10333_v46 = vld [vmem:[#allocation7 + $0x5a0] ss:$8 sps:$4 sm:$0xff]   ;;  %v10338_v48 = vld [vmem:[#allocation7 + $0x5b4] ss:$8 sps:$4 sm:$0xff]  }
 0x4bf   : > { %v10330_v44 = vld [vmem:[#allocation7 + $0x590] ss:$8 sps:$4 sm:$0xff]   ;;  %v10347_v19 = vld [vmem:[#allocation7 + $0x5e4] ss:$8 sps:$4 sm:$0xff]   ;;  %v3167_v56 = vrot.slane %v11917_v51, 1 }
 0x4c0   : > { %3088 = vmatpush1.bf16.msra.mxu0 %v10276_v36  ;;  %v10321_v36 = vld [vmem:[#allocation7 + $0x560] ss:$8 sps:$4 sm:$0xff]   ;;  %v10342_v52 = vld [vmem:[#allocation7 + $0x5d0] ss:$8 sps:$4 sm:$0xff]  }
 0x4c1   : > { %3089 = vmatprep.subr.bf16.mxu0 %v10281_v27  ;;  %3918 = vmatpush1.bf16.msra.mxu1 %v10366_v59  ;;  %v10326_v27 = vld [vmem:[#allocation7 + $0x574] ss:$8 sps:$4 sm:$0xff]   ;;  %v10348_v60 = vld [vmem:[#allocation7 + $0x5f0] ss:$8 sps:$4 sm:$0xff]  }
 0x4c2   : > { %3919 = vmatprep.subr.bf16.mxu1 %v10371_v63 }
 0x4c3   : > { %2903 = vmatmul.mubr.bf16.gmra.mrb[76].mxu0 %v2656_v16  ;;  %v3170_v16 = vrot.slane %v11919_v53, 1 }
 0x4c4   : > { %3090 = vmatpush1.bf16.msra.mxu0 %v10279_v38  ;;  %3105 = vmatprep.mubr.bf16.mxu0 %v11913_v41  ;;  %v10329_v38 = vld [vmem:[#allocation7 + $0x584] ss:$8 sps:$4 sm:$0xff]   ;;  %v10339_v41 = vld [vmem:[#allocation7 + $0x5c0] ss:$8 sps:$4 sm:$0xff]  }
 0x4c5   : > { %3091 = vmatprep.subr.bf16.mxu0 %v10284_v58  ;;  %3920 = vmatpush1.bf16.msra.mxu1 %v10369_v1  ;;  %v10327_v58 = vld [vmem:[#allocation7 + $0x580] ss:$8 sps:$4 sm:$0xff]   ;;  %v10378_v1 = vld [vmem:[#allocation7 + $0x790] ss:$8 sps:$4 sm:$0xff]  }
 0x4c6   : > { %3921 = vmatprep.subr.bf16.mxu1 %v10374_v3  ;;  %v10386_v3 = vld [vmem:[#allocation7 + $0x7b4] ss:$8 sps:$4 sm:$0xff]  }
 0x4c8   : > { %3092 = vmatpush1.bf16.msra.mxu0 %v10282_v17  ;;  %v3171_v17 = vsel %vm764_vm2, %v3169_v42, %v3170_v16 }
 0x4c9   : > { %3093 = vmatprep.subr.bf16.mxu0 %v10287_v45  ;;  %3922 = vmatpush1.bf16.msra.mxu1 %v10372_v6  ;;  %v10335_v45 = vld [vmem:[#allocation7 + $0x5a4] ss:$8 sps:$4 sm:$0xff]   ;;  %v10392_v6 = vld [vmem:[#allocation7 + $0x7d4] ss:$8 sps:$4 sm:$0xff]  }
 0x4ca   : > { %3923 = vmatprep.subr.bf16.mxu1 %v10377_v30  ;;  %v10390_v30 = vld [vmem:[#allocation7 + $0x7d0] ss:$8 sps:$4 sm:$0xff]  }
 0x4cc   : > { %3094 = vmatpush1.bf16.msra.mxu0 %v10285_v18  ;;  %v10341_v18 = vld [vmem:[#allocation7 + $0x5c4] ss:$8 sps:$4 sm:$0xff]  }
 0x4cd   : > { %3095 = vmatprep.subr.bf16.mxu0 %v10290_v50  ;;  %3924 = vmatpush1.bf16.msra.mxu1 %v10375_v10  ;;  %v10344_v50 = vld [vmem:[#allocation7 + $0x5d4] ss:$8 sps:$4 sm:$0xff]   ;;  %v10396_v10 = vld [vmem:[#allocation7 + $0x7f0] ss:$8 sps:$4 sm:$0xff]  }
 0x4d0   : > { %3096 = vmatpush1.bf16.msra.mxu0 %v10288_v54  ;;  %v10345_v54 = vld [vmem:[#allocation7 + $0x5e0] ss:$8 sps:$4 sm:$0xff]  }
 0x4d1   : > { %3097 = vmatprep.subr.bf16.mxu0 %v10293_v57  ;;  %v10350_v57 = vld [vmem:[#allocation7 + $0x5f4] ss:$8 sps:$4 sm:$0xff]  }
 0x4d4   : > { %3098 = vmatpush1.bf16.msra.mxu0 %v10291_v24  ;;  %v3174_v24 = vrot.slane %v11929_v14, 1 }
 0x4d5   : > { %3099 = vmatprep.subr.bf16.mxu0 %v10296_v40  ;;  %v3166_v40 = vrot.slane %v11911_v39, 1 }
 0x4d6   : > { %v3175_v62 = vsel %vm764_vm2, %v3170_v16, %v3174_v24 }
 0x4d7   : > { %v3168_v61 = vsel %vm764_vm2, %v3166_v40, %v3167_v56 }
 0x4d8   : > { %3100 = vmatpush1.bf16.msra.mxu0 %v10294_v20  ;;  %v3172_v20 = vrot.slane %v11927_v11, 1 }
 0x4d9   : > { %3101 = vmatprep.subr.bf16.mxu0 %v10299_v22  ;;  %v3178_v22 = vrot.slane %v11943_v49, 1 }
 0x4da   : > { %v3173_v59 = vsel %vm764_vm2, %v3167_v56, %v3172_v20 }
 0x4dc   : > { %3102 = vmatpush1.bf16.msra.mxu0 %v10297_v35 }
 0x4dd   : > { %3103 = vmatprep.subr.bf16.mxu0 %v10302_v28  ;;  %v10380_v28 = vld [vmem:[#allocation7 + $0x794] ss:$8 sps:$4 sm:$0xff]  }
 0x4de   : > { %3925 = vmatprep.subr.bf16.mxu1 %v10380_v28 }
 0x4df   : > { %3926 = vmatpush1.bf16.msra.mxu1 %v10378_v1 }
 0x4e0   : > { %3104 = vmatpush1.bf16.msra.mxu0 %v10300_v4  ;;  %v10384_v4 = vld [vmem:[#allocation7 + $0x7b0] ss:$8 sps:$4 sm:$0xff]  }
 0x4e1   : > { %3354 = vmatprep.subr.bf16.mxu0 %v10305_v29  ;;  %v10387_v29 = vld [vmem:[#allocation7 + $0x7c0] ss:$8 sps:$4 sm:$0xff]  }
 0x4e3   : > { %3106 = vmatmul.mubr.bf16.vlgmr.msra.gmra.mrb[60].mxu0 %v11911_v39  ;;  %v3182_v39 = vrot.slane %v11957_v34, 1 }
 0x4e4   : > { %3115 = vmatprep.mubr.bf16.mxu0 %v11919_v53  ;;  %3355 = vmatpush1.bf16.msra.mxu0 %v10303_v7  ;;  %v10336_v53 = vld [vmem:[#allocation7 + $0x5b0] ss:$8 sps:$4 sm:$0xff]   ;;  %v10393_v7 = vld [vmem:[#allocation7 + $0x7e0] ss:$8 sps:$4 sm:$0xff]  }
 0x4e5   : > { %3356 = vmatprep.subr.bf16.mxu0 %v10308_v9  ;;  %v3183_v35 = vsel %vm764_vm2, %v3178_v22, %v3182_v39  ;;  %v10398_v9 = vld [vmem:[#allocation7 + $0x7f4] ss:$8 sps:$4 sm:$0xff]  }
 0x4e8   : > { %3357 = vmatpush1.bf16.msra.mxu0 %v10306_v12  ;;  %v10401_v12 = vld [vmem:[#allocation7 + $0x604] ss:$8 sps:$4 sm:$0xff]  }
 0x4e9   : > { %3358 = vmatprep.subr.bf16.mxu0 %v10311_v15  ;;  %v2581_v15 = vld [vmem:[#allocation9 + $0x2] ss:$8 sm:$0x3] }
 0x4eb   : > { %3116 = vmatmul.mubr.bf16.gmra.mrb[64].mxu0 %v11917_v51  ;;  %v3179_v51 = vsel %vm764_vm2, %v3174_v24, %v3178_v22 }
 0x4ec   : > { %3125 = vmatprep.mubr.bf16.mxu0 %v11929_v14  ;;  %3359 = vmatpush1.bf16.msra.mxu0 %v10309_v0  ;;  %v3176_v14 = vrot.slane %v11941_v47, 1  ;;  %v11997_v0 = vrot.slane %v2581_v15, %v11710_v23 }
 0x4ed   : > { %3360 = vmatprep.subr.bf16.mxu0 %v10314_v55  ;;  %v12000_v55 = vrot.slane %v2581_v15, %v11712_v25 }
 0x4ee   : > { %v3177_v63 = vsel %vm764_vm2, %v3172_v20, %v3176_v14 }
 0x4f0   : > { %3361 = vmatpush1.bf16.msra.mxu0 %v10312_v13 }
 0x4f1   : > { %3362 = vmatprep.subr.bf16.mxu0 %v10317_v2 }
 0x4f3   : > { %3126 = vmatmul.mubr.bf16.gmra.mrb[68].mxu0 %v11927_v11  ;;  %v3180_v11 = vrot.slane %v11955_v5, 1 }
 0x4f4   : > { %3135 = vmatprep.mubr.bf16.mxu0 %v11943_v49  ;;  %3363 = vmatpush1.bf16.msra.mxu0 %v10315_v31 }
 0x4f5   : > { %3364 = vmatprep.subr.bf16.mxu0 %v10320_v32  ;;  %v3181_v49 = vsel %vm764_vm2, %v3176_v14, %v3180_v11 }
 0x4f8   : > { %3365 = vmatpush1.bf16.msra.mxu0 %v10318_v33 }
 0x4f9   : > { %3366 = vmatprep.subr.bf16.mxu0 %v10323_v26 }
 0x4fb   : > { %3136 = vmatmul.mubr.bf16.gmra.mrb[72].mxu0 %v11941_v47  ;;  %v10383_v47 = vld [vmem:[#allocation7 + $0x7a4] ss:$8 sps:$4 sm:$0xff]  }
 0x4fc   : > { %3145 = vmatprep.mubr.bf16.mxu0 %v11957_v34  ;;  %3367 = vmatpush1.bf16.msra.mxu0 %v10321_v36  ;;  %v10381_v34 = vld [vmem:[#allocation7 + $0x7a0] ss:$8 sps:$4 sm:$0xff]  }
 0x4fd   : > { %3368 = vmatprep.subr.bf16.mxu0 %v10326_v27  ;;  %3927 = vmatprep.subr.bf16.mxu1 %v10383_v47 }
 0x4fe   : > { %3928 = vmatpush1.bf16.msra.mxu1 %v10381_v34 }
 0x4ff   : > { %3929 = vmatprep.subr.bf16.mxu1 %v10386_v3 }
 0x500   : > { %3369 = vmatpush1.bf16.msra.mxu0 %v10324_v37 }
 0x501   : > { %3370 = vmatprep.subr.bf16.mxu0 %v10329_v38 }
 0x502   : > { %3930 = vmatpush1.bf16.msra.mxu1 %v10384_v4 }
 0x503   : > { %3146 = vmatmul.mubr.bf16.gmra.mrb[76].mxu0 %v11955_v5  ;;  %v10389_v5 = vld [vmem:[#allocation7 + $0x7c4] ss:$8 sps:$4 sm:$0xff]  }
 0x504   : > { %3371 = vmatpush1.bf16.msra.mxu0 %v10327_v58  ;;  %3386 = vmatprep.mubr.bf16.mxu0 %v3171_v17 }
 0x505   : > { %3372 = vmatprep.subr.bf16.mxu0 %v10332_v43  ;;  %3931 = vmatprep.subr.bf16.mxu1 %v10389_v5  ;;  %v10399_v5 = vld [vmem:[#allocation7 + $0x600] ss:$8 sps:$4 sm:$0xff]  }
 0x506   : > { %3932 = vmatpush1.bf16.msra.mxu1 %v10387_v29 }
 0x507   : > { %3933 = vmatprep.subr.bf16.mxu1 %v10392_v6 }
 0x508   : > { %3373 = vmatpush1.bf16.msra.mxu0 %v10330_v44 }
 0x509   : > { %3374 = vmatprep.subr.bf16.mxu0 %v10335_v45 }
 0x50a   : > { %3934 = vmatpush1.bf16.msra.mxu1 %v10390_v30 }
 0x50c   : > { %3375 = vmatpush1.bf16.msra.mxu0 %v10333_v46 }
 0x50d   : > { %3376 = vmatprep.subr.bf16.mxu0 %v10338_v48 }
 0x510   : > { %3377 = vmatpush1.bf16.msra.mxu0 %v10336_v53 }
 0x511   : > { %3378 = vmatprep.subr.bf16.mxu0 %v10341_v18 }
 0x514   : > { %3379 = vmatpush1.bf16.msra.mxu0 %v10339_v41 }
 0x515   : > { %3380 = vmatprep.subr.bf16.mxu0 %v10344_v50 }
 0x518   : > { %3381 = vmatpush1.bf16.msra.mxu0 %v10342_v52 }
 0x519   : > { %3382 = vmatprep.subr.bf16.mxu0 %v10347_v19 }
 0x51c   : > { %3383 = vmatpush1.bf16.msra.mxu0 %v10345_v54 }
 0x51d   : > { %3384 = vmatprep.subr.bf16.mxu0 %v10350_v57 }
 0x520   : > { %3385 = vmatpush1.bf16.msra.mxu0 %v10348_v60 }
 0x523   : > { %3387 = vmatmul.mubr.bf16.vlgmr.msra.gmra.mrb[60].mxu0 %v3168_v61 }
 0x524   : > { %3396 = vmatprep.mubr.bf16.mxu0 %v3175_v62 }
 0x52b   : > { %3397 = vmatmul.mubr.bf16.gmra.mrb[64].mxu0 %v3173_v59 }
 0x52c   : > { %3406 = vmatprep.mubr.bf16.mxu0 %v3179_v51 }
 0x533   : > { %3407 = vmatmul.mubr.bf16.gmra.mrb[68].mxu0 %v3177_v63 }
 0x534   : > { %3416 = vmatprep.mubr.bf16.mxu0 %v3183_v35 }
 0x53b   : > { %3417 = vmatmul.mubr.bf16.gmra.mrb[72].mxu0 %v3181_v49 }
 0x53c   : > { %3426 = vmatprep.mubr.bf16.mxu0 %v3182_v39 }
 0x543   : > { %3427 = vmatmul.mubr.bf16.gmra.mrb[76].mxu0 %v3180_v11 }
 0x544   : > { %4730 = vmatprep.mubr.f32.mxu0 %v11854_v8  ;;  %v10395_v8 = vld [vmem:[#allocation7 + $0x7e4] ss:$8 sps:$4 sm:$0xff]  }
 0x545   : > { %3935 = vmatprep.subr.bf16.mxu1 %v10395_v8 }
 0x546   : > { %3936 = vmatpush1.bf16.msra.mxu1 %v10393_v7  ;;  %v10404_v7 = vld [vmem:[#allocation7 + $0x614] ss:$8 sps:$4 sm:$0xff]  }
 0x547   : > { %3937 = vmatprep.subr.bf16.mxu1 %v10398_v9 }
 0x54a   : > { %3938 = vmatpush1.bf16.msra.mxu1 %v10396_v10 }
 0x54b   : > { %4150 = vmatprep.subr.bf16.mxu1 %v10401_v12 }
 0x5f6   : > { %v3388_v13 = vpop.f32.mrb[60].mxu0 }
 0x5f7   : > { %v3468_v2 = vadd.f32 %v11997_v0, %v3388_v13  ;;  %v3390_v31 = vpop.f32.mrb[61].mxu0 }
 0x5f8   : > { %v3469_v32 = vadd.f32 %v12000_v55, %v3390_v31  ;;  %v3392_v33 = vpop.f32.mrb[62].mxu0  ;;  %v10402_v31 = vld [vmem:[#allocation7 + $0x610] ss:$8 sps:$4 sm:$0xff]  }
 0x5f9   : > { %v3470_v26 = vadd.f32 %v11997_v0, %v3392_v33  ;;  %v3394_v36 = vpop.f32.mrb[63].mxu0  ;;  %v3488_v37 = vmax.f32 %v3468_v2, 0.0 }
 0x5fa   : > { %v3471_v27 = vadd.f32 %v12000_v55, %v3394_v36  ;;  %v3489_v16 = vmax.f32 %v3469_v32, 0.0 }
 0x5fb   : > { %v3490_v38 = vmax.f32 %v3470_v26, 0.0 }
 0x5fc   : > { %v3491_v58 = vmax.f32 %v3471_v27, 0.0 }
 0x5fd   : > { %v12006_v42 = vpack.c.bf16 %v3490_v38, %v3488_v37  ;;  %v10407_v37 = vld [vmem:[#allocation7 + $0x624] ss:$8 sps:$4 sm:$0xff]  }
 0x5fe   : > { %v3398_v43 = vpop.f32.mrb[64].mxu0  ;;  %v12008_v17 = vpack.c.bf16 %v3491_v58, %v3489_v16 }
 0x5ff   : > { %v3472_v44 = vadd.f32 %v11997_v0, %v3398_v43  ;;  %v3400_v45 = vpop.f32.mrb[65].mxu0  ;;  %v3662_v54 = vshll.u32 %v12006_v42, 16  ;;  %v3660_v49 = vshrl.u32 %v12006_v42, 16 }
 0x600   : > { %v3473_v46 = vadd.f32 %v12000_v55, %v3400_v45  ;;  %v3402_v48 = vpop.f32.mrb[66].mxu0  ;;  %v3674_v50 = vshll.u32 %v12008_v17, 16  ;;  %v3672_v39 = vshrl.u32 %v12008_v17, 16 }
 0x601   : > { %v3474_v53 = vadd.f32 %v11997_v0, %v3402_v48  ;;  %v3404_v18 = vpop.f32.mrb[67].mxu0  ;;  %v3492_v52 = vmax.f32 %v3472_v44, 0.0  ;;  %v3664_v22 = vrot.slane %v3662_v54, 1  ;;  %v10410_v54 = vld [vmem:[#allocation7 + $0x634] ss:$8 sps:$4 sm:$0xff]  }
 0x602   : > { %v3475_v41 = vadd.f32 %v12000_v55, %v3404_v18  ;;  %v3493_v57 = vmax.f32 %v3473_v46, 0.0  ;;  %v3676_v61 = vrot.slane %v3674_v50, 1  ;;  %v10405_v18 = vld [vmem:[#allocation7 + $0x620] ss:$8 sps:$4 sm:$0xff]  }
 0x603   : > { %v3494_v19 = vmax.f32 %v3474_v53, 0.0  ;;  %v3665_v29 = vor.u32 %v3664_v22, %v3660_v49 }
 0x604   : > { %v3495_v60 = vmax.f32 %v3475_v41, 0.0  ;;  %v3677_v47 = vor.u32 %v3676_v61, %v3672_v39  ;;  %v10413_v39 = vld [vmem:[#allocation7 + $0x644] ss:$8 sps:$4 sm:$0xff]  }
 0x605   : > { %v12016_v56 = vpack.c.bf16 %v3494_v19, %v3492_v52 }
 0x606   : > { %v3408_v24 = vpop.f32.mrb[68].mxu0  ;;  %v12018_v40 = vpack.c.bf16 %v3495_v60, %v3493_v57 }
 0x607   : > { %v3476_v62 = vadd.f32 %v11997_v0, %v3408_v24  ;;  %v3410_v20 = vpop.f32.mrb[69].mxu0  ;;  %v3667_v59 = vshll.u32 %v12016_v56, 16  ;;  %v3683_v58 = vshrl.u32 %v12016_v56, 16 }
 0x608   : > { %v3477_v51 = vadd.f32 %v12000_v55, %v3410_v20  ;;  %v3412_v14 = vpop.f32.mrb[70].mxu0  ;;  %v3679_v63 = vshll.u32 %v12018_v40, 16  ;;  %v3691_v36 = vshrl.u32 %v12018_v40, 16  ;;  %v10408_v20 = vld [vmem:[#allocation7 + $0x630] ss:$8 sps:$4 sm:$0xff]  }
 0x609   : > { %v3478_v35 = vadd.f32 %v11997_v0, %v3412_v14  ;;  %v3414_v11 = vpop.f32.mrb[71].mxu0  ;;  %v3669_v28 = vrot.slane %v3667_v59, 1  ;;  %v3496_v3 = vmax.f32 %v3476_v62, 0.0 }
 0x60a   : > { %v3479_v1 = vadd.f32 %v12000_v55, %v3414_v11  ;;  %v3681_v34 = vrot.slane %v3679_v63, 1  ;;  %v3497_v6 = vmax.f32 %v3477_v51, 0.0 }
 0x60b   : > { %v3498_v4 = vmax.f32 %v3478_v35, 0.0  ;;  %v3670_v9 = vsel %vm492_vm0, %v3665_v29, %v3669_v28  ;;  %v3685_v41 = vor.u32 %v3683_v58, %v3669_v28 }
 0x60c   : > { %v3499_v30 = vmax.f32 %v3479_v1, 0.0  ;;  %v3682_v8 = vsel %vm492_vm0, %v3677_v47, %v3681_v34  ;;  %v3693_v45 = vor.u32 %v3691_v36, %v3681_v34 }
 0x60d   : > { %3939 = vmatprep.mubr.bf16.mxu1 %v3682_v8  ;;  %v12030_v10 = vpack.c.bf16 %v3498_v4, %v3496_v3  ;;  %v10411_v3 = vld [vmem:[#allocation7 + $0x640] ss:$8 sps:$4 sm:$0xff]  }
 0x60e   : > { %v3418_v12 = vpop.f32.mrb[72].mxu0  ;;  %3940 = vmatmul.mubr.bf16.vlgmr.msra.gmra.mrb[20].mxu1 %v3670_v9  ;;  %v12032_v15 = vpack.c.bf16 %v3499_v30, %v3497_v6  ;;  %v10416_v6 = vld [vmem:[#allocation7 + $0x654] ss:$8 sps:$4 sm:$0xff]  }
 0x60f   : > { %v3480_v13 = vadd.f32 %v11997_v0, %v3418_v12  ;;  %v3420_v2 = vpop.f32.mrb[73].mxu0  ;;  %4151 = vmatpush1.bf16.msra.mxu1 %v10399_v5  ;;  %v3687_v32 = vshll.u32 %v12030_v10, 16  ;;  %v3699_v11 = vshrl.u32 %v12030_v10, 16  ;;  %v10419_v12 = vld [vmem:[#allocation7 + $0x664] ss:$8 sps:$4 sm:$0xff]  }
 0x610   : > { %v3481_v33 = vadd.f32 %v12000_v55, %v3420_v2  ;;  %v3422_v26 = vpop.f32.mrb[74].mxu0  ;;  %4152 = vmatprep.subr.bf16.mxu1 %v10404_v7  ;;  %v3695_v27 = vshll.u32 %v12032_v15, 16  ;;  %v3707_v51 = vshrl.u32 %v12032_v15, 16  ;;  %v10414_v7 = vld [vmem:[#allocation7 + $0x650] ss:$8 sps:$4 sm:$0xff]  }
 0x611   : > { %v3482_v38 = vadd.f32 %v11997_v0, %v3422_v26  ;;  %v3424_v16 = vpop.f32.mrb[75].mxu0  ;;  %v3689_v43 = vrot.slane %v3687_v32, 1  ;;  %v3500_v48 = vmax.f32 %v3480_v13, 0.0  ;;  %v10417_v2 = vld [vmem:[#allocation7 + $0x660] ss:$8 sps:$4 sm:$0xff]  }
 0x612   : > { %v3483_v44 = vadd.f32 %v12000_v55, %v3424_v16  ;;  %v3697_v46 = vrot.slane %v3695_v27, 1  ;;  %v3501_v50 = vmax.f32 %v3481_v33, 0.0  ;;  %v10422_v33 = vld [vmem:[#allocation7 + $0x674] ss:$8 sps:$4 sm:$0xff]   ;;  %v10425_v16 = vld [vmem:[#allocation7 + $0x684] ss:$8 sps:$4 sm:$0xff]  }
 0x613   : > { %v3502_v53 = vmax.f32 %v3482_v38, 0.0  ;;  %4153 = vmatpush1.bf16.msra.mxu1 %v10402_v31  ;;  %v3690_v57 = vsel %vm492_vm0, %v3685_v41, %v3689_v43  ;;  %v3701_v4 = vor.u32 %v3699_v11, %v3689_v43  ;;  %v10446_v11 = vld [vmem:[#allocation7 + $0x6f4] ss:$8 sps:$4 sm:$0xff]  }
 0x614   : > { %v3503_v52 = vmax.f32 %v3483_v44, 0.0  ;;  %v3698_v19 = vsel %vm492_vm0, %v3693_v45, %v3697_v46  ;;  %4154 = vmatprep.subr.bf16.mxu1 %v10407_v37  ;;  %v3709_v1 = vor.u32 %v3707_v51, %v3697_v46  ;;  %v10420_v37 = vld [vmem:[#allocation7 + $0x670] ss:$8 sps:$4 sm:$0xff]   ;;  %v10435_v51 = vld [vmem:[#allocation7 + $0x6c0] ss:$8 sps:$4 sm:$0xff]  }
 0x615   : > { %3949 = vmatprep.mubr.bf16.mxu1 %v3698_v19  ;;  %v12044_v60 = vpack.c.bf16 %v3502_v53, %v3500_v48  ;;  %v10423_v53 = vld [vmem:[#allocation7 + $0x680] ss:$8 sps:$4 sm:$0xff]   ;;  %v10426_v19 = vld [vmem:[#allocation7 + $0x690] ss:$8 sps:$4 sm:$0xff]  }
 0x616   : > { %v3428_v24 = vpop.f32.mrb[76].mxu0  ;;  %3950 = vmatmul.mubr.bf16.gmra.mrb[24].mxu1 %v3690_v57  ;;  %v12046_v61 = vpack.c.bf16 %v3503_v52, %v3501_v50  ;;  %v10428_v50 = vld [vmem:[#allocation7 + $0x694] ss:$8 sps:$4 sm:$0xff]  }
 0x617   : > { %v3430_v62 = vpop.f32.mrb[77].mxu0  ;;  %4155 = vmatpush1.bf16.msra.mxu1 %v10405_v18  ;;  %v3703_v22 = vshll.u32 %v12044_v60, 16  ;;  %v3484_v8 = vadd.f32 %v11997_v0, %v3428_v24  ;;  %v3715_v58 = vshrl.u32 %v12044_v60, 16  ;;  %v10429_v24 = vld [vmem:[#allocation7 + $0x6a0] ss:$8 sps:$4 sm:$0xff]  }
 0x618   : > { %v3432_v59 = vpop.f32.mrb[78].mxu0  ;;  %4156 = vmatprep.subr.bf16.mxu1 %v10410_v54  ;;  %v3711_v14 = vshll.u32 %v12046_v61, 16  ;;  %v3485_v9 = vadd.f32 %v12000_v55, %v3430_v62  ;;  %v10431_v54 = vld [vmem:[#allocation7 + $0x6a4] ss:$8 sps:$4 sm:$0xff]  }
 0x619   : > { %v3486_v63 = vadd.f32 %v11997_v0, %v3432_v59  ;;  %v3434_v35 = vpop.f32.mrb[79].mxu0  ;;  %v3705_v49 = vrot.slane %v3703_v22, 1  ;;  %v3504_v13 = vmax.f32 %v3484_v8, 0.0  ;;  %v10432_v22 = vld [vmem:[#allocation7 + $0x6b0] ss:$8 sps:$4 sm:$0xff]  }
 0x61a   : > { %v3487_v28 = vadd.f32 %v12000_v55, %v3434_v35  ;;  %v3713_v47 = vrot.slane %v3711_v14, 1  ;;  %v3505_v31 = vmax.f32 %v3485_v9, 0.0  ;;  %v3723_v55 = vshrl.u32 %v12046_v61, 16  ;;  %v10437_v59 = vld [vmem:[#allocation7 + $0x6c4] ss:$8 sps:$4 sm:$0xff]  }
 0x61b   : > { %v3506_v34 = vmax.f32 %v3486_v63, 0.0  ;;  %4157 = vmatpush1.bf16.msra.mxu1 %v10408_v20  ;;  %v3706_v30 = vsel %vm492_vm0, %v3701_v4, %v3705_v49  ;;  %v3717_v48 = vor.u32 %v3715_v58, %v3705_v49  ;;  %v10434_v20 = vld [vmem:[#allocation7 + $0x6b4] ss:$8 sps:$4 sm:$0xff]   ;;  %v10443_v63 = vld [vmem:[#allocation7 + $0x6e4] ss:$8 sps:$4 sm:$0xff]  }
 0x61c   : > { %v3507_v5 = vmax.f32 %v3487_v28, 0.0  ;;  %v3714_v29 = vsel %vm492_vm0, %v3709_v1, %v3713_v47  ;;  %4158 = vmatprep.subr.bf16.mxu1 %v10413_v39  ;;  %v3725_v44 = vor.u32 %v3723_v55, %v3713_v47  ;;  %v10440_v14 = vld [vmem:[#allocation7 + $0x6d4] ss:$8 sps:$4 sm:$0xff]   ;;  %v10438_v39 = vld [vmem:[#allocation7 + $0x6d0] ss:$8 sps:$4 sm:$0xff]  }
 0x61d   : > { %3526 = vst [vmem:[#allocation3 + $0x90] sm:$0x3f] %v3506_v34  ;;  %3959 = vmatprep.mubr.bf16.mxu1 %v3714_v29  ;;  %v10441_v35 = vld [vmem:[#allocation7 + $0x6e0] ss:$8 sps:$4 sm:$0xff]   ;;  %v10444_v49 = vld [vmem:[#allocation7 + $0x6f0] ss:$8 sps:$4 sm:$0xff]  }
 0x61e   : > { %3527 = vst [vmem:[#allocation3 + $0x98] sm:$0x3f] %v3507_v5  ;;  %3960 = vmatmul.mubr.bf16.gmra.mrb[28].mxu1 %v3706_v30  ;;  %v10449_v28 = vld [vmem:[#allocation7 + $0x804] ss:$8 sps:$4 sm:$0xff]   ;;  %v10447_v1 = vld [vmem:[#allocation7 + $0x800] ss:$8 sps:$4 sm:$0xff]  }
 0x61f   : > { %4159 = vmatpush1.bf16.msra.mxu1 %v10411_v3  ;;  %v10452_v47 = vld [vmem:[#allocation7 + $0x814] ss:$8 sps:$4 sm:$0xff]   ;;  %v10450_v34 = vld [vmem:[#allocation7 + $0x810] ss:$8 sps:$4 sm:$0xff]   ;;  %v10455_v3 = vld [vmem:[#allocation7 + $0x824] ss:$8 sps:$4 sm:$0xff]  }
 0x620   : > { %4160 = vmatprep.subr.bf16.mxu1 %v10416_v6  ;;  %v10453_v4 = vld [vmem:[#allocation7 + $0x820] ss:$8 sps:$4 sm:$0xff]   ;;  %v10458_v5 = vld [vmem:[#allocation7 + $0x834] ss:$8 sps:$4 sm:$0xff]   ;;  %v10456_v29 = vld [vmem:[#allocation7 + $0x830] ss:$8 sps:$4 sm:$0xff]  }
 0x621   : > { %v10461_v6 = vld [vmem:[#allocation7 + $0x844] ss:$8 sps:$4 sm:$0xff]   ;;  %v10459_v30 = vld [vmem:[#allocation7 + $0x840] ss:$8 sps:$4 sm:$0xff]   ;;  %v10464_v8 = vld [vmem:[#allocation7 + $0x854] ss:$8 sps:$4 sm:$0xff]  }
 0x622   : > { %v10467_v9 = vld [vmem:[#allocation7 + $0x864] ss:$8 sps:$4 sm:$0xff]   ;;  %v10474_v55 = vld [vmem:[#allocation7 + $0x890] ss:$8 sps:$4 sm:$0xff]   ;;  %v10482_v58 = vld [vmem:[#allocation7 + $0x8b4] ss:$8 sps:$4 sm:$0xff]  }
 0x623   : > { %4161 = vmatpush1.bf16.msra.mxu1 %v10414_v7  ;;  %v10462_v7 = vld [vmem:[#allocation7 + $0x850] ss:$8 sps:$4 sm:$0xff]  }
 0x624   : > { %4162 = vmatprep.subr.bf16.mxu1 %v10419_v12  ;;  %v3546_v32 = vld [vmem:[#allocation3 + $0x90] sm:$0xff]  ;;  %v10465_v12 = vld [vmem:[#allocation7 + $0x860] ss:$8 sps:$4 sm:$0xff]  }
 0x625   : > { %v3547_v26 = vld [vmem:[#allocation3 + $0x98] sm:$0xff]  ;;  %v12058_v36 = vpack.c.bf16 %v3546_v32, %v3504_v13  ;;  %v4247_v32 = vrot.slane %v12018_v40, 1 }
 0x626   : > { %v12060_v27 = vpack.c.bf16 %v3547_v26, %v3505_v31  ;;  %v10470_v13 = vld [vmem:[#allocation7 + $0x874] ss:$8 sps:$4 sm:$0xff]   ;;  %v10473_v31 = vld [vmem:[#allocation7 + $0x884] ss:$8 sps:$4 sm:$0xff]   ;;  %v4246_v26 = vrot.slane %v12008_v17, 1 }
 0x627   : > { %v3719_v0 = vshll.u32 %v12058_v36, 16  ;;  %4163 = vmatpush1.bf16.msra.mxu1 %v10417_v2  ;;  %v3731_v57 = vshrl.u32 %v12058_v36, 16  ;;  %v10468_v2 = vld [vmem:[#allocation7 + $0x870] ss:$8 sps:$4 sm:$0xff]  }
 0x628   : > { %v3727_v38 = vshll.u32 %v12060_v27, 16  ;;  %4164 = vmatprep.subr.bf16.mxu1 %v10422_v33  ;;  %v3734_v46 = vshrl.u32 %v12060_v27, 16  ;;  %v10471_v33 = vld [vmem:[#allocation7 + $0x880] ss:$8 sps:$4 sm:$0xff]  }
 0x629   : > { %v3721_v43 = vrot.slane %v3719_v0, 1  ;;  %v10476_v0 = vld [vmem:[#allocation7 + $0x894] ss:$8 sps:$4 sm:$0xff]  }
 0x62a   : > { %v3729_v45 = vrot.slane %v3727_v38, 1  ;;  %v10479_v38 = vld [vmem:[#allocation7 + $0x8a4] ss:$8 sps:$4 sm:$0xff]  }
 0x62b   : > { %4165 = vmatpush1.bf16.msra.mxu1 %v10420_v37  ;;  %v3722_v52 = vsel %vm492_vm0, %v3717_v48, %v3721_v43  ;;  %v3733_v62 = vor.u32 %v3731_v57, %v3721_v43  ;;  %v4248_v37 = vsel %vm764_vm2, %v4246_v26, %v4247_v32  ;;  %v10485_v43 = vld [vmem:[#allocation7 + $0x8c4] ss:$8 sps:$4 sm:$0xff]   ;;  %v10489_v48 = vld [vmem:[#allocation7 + $0x8e0] ss:$8 sps:$4 sm:$0xff]   ;;  %v4249_v57 = vrot.slane %v12030_v10, 1 }
 0x62c   : > { %v3730_v18 = vsel %vm492_vm0, %v3725_v44, %v3729_v45  ;;  %v3736_v41 = vor.u32 %v3734_v46, %v3729_v45  ;;  %4166 = vmatprep.subr.bf16.mxu1 %v10425_v16  ;;  %v10477_v16 = vld [vmem:[#allocation7 + $0x8a0] ss:$8 sps:$4 sm:$0xff]   ;;  %v10488_v44 = vld [vmem:[#allocation7 + $0x8d4] ss:$8 sps:$4 sm:$0xff]   ;;  %v10486_v45 = vld [vmem:[#allocation7 + $0x8d0] ss:$8 sps:$4 sm:$0xff]  }
 0x62d   : > { %3969 = vmatprep.mubr.bf16.mxu1 %v3730_v18  ;;  %v10491_v46 = vld [vmem:[#allocation7 + $0x8e4] ss:$8 sps:$4 sm:$0xff]   ;;  %v10492_v18 = vld [vmem:[#allocation7 + $0x8f0] ss:$8 sps:$4 sm:$0xff]  }
 0x62e   : > { %3970 = vmatmul.mubr.bf16.gmra.mrb[32].mxu1 %v3722_v52  ;;  %v4243_v52 = vrot.slane %v12006_v42, 1 }
 0x62f   : > { %3979 = vmatprep.mubr.bf16.mxu1 %v3736_v41  ;;  %4167 = vmatpush1.bf16.msra.mxu1 %v10423_v53  ;;  %v10494_v53 = vld [vmem:[#allocation7 + $0x8f4] ss:$8 sps:$4 sm:$0xff]   ;;  %v4244_v41 = vrot.slane %v12016_v56, 1 }
 0x630   : > { %4168 = vmatprep.subr.bf16.mxu1 %v10428_v50  ;;  %v4251_v50 = vrot.slane %v12032_v15, 1 }
 0x633   : > { %4169 = vmatpush1.bf16.msra.mxu1 %v10426_v19  ;;  %v4245_v19 = vsel %vm764_vm2, %v4243_v52, %v4244_v41 }
 0x634   : > { %4170 = vmatprep.subr.bf16.mxu1 %v10431_v54  ;;  %v4252_v54 = vsel %vm764_vm2, %v4247_v32, %v4251_v50 }
 0x636   : > { %3980 = vmatmul.mubr.bf16.gmra.mrb[36].mxu1 %v3733_v62  ;;  %v4250_v62 = vsel %vm764_vm2, %v4244_v41, %v4249_v57 }
 0x637   : > { %4182 = vmatprep.mubr.bf16.mxu1 %v12008_v17  ;;  %4171 = vmatpush1.bf16.msra.mxu1 %v10429_v24  ;;  %v10483_v17 = vld [vmem:[#allocation7 + $0x8c0] ss:$8 sps:$4 sm:$0xff]   ;;  %v4255_v24 = vrot.slane %v12046_v61, 1 }
 0x638   : > { %4172 = vmatprep.subr.bf16.mxu1 %v10434_v20 }
 0x63b   : > { %4173 = vmatpush1.bf16.msra.mxu1 %v10432_v22 }
 0x63c   : > { %4174 = vmatprep.subr.bf16.mxu1 %v10437_v59  ;;  %v12098_v59 = vld [vmem:[#allocation4 + $0x30] sm:$0xff] }
 0x63f   : > { %4175 = vmatpush1.bf16.msra.mxu1 %v10435_v51 }
 0x640   : > { %4176 = vmatprep.subr.bf16.mxu1 %v10440_v14 }
 0x643   : > { %4177 = vmatpush1.bf16.msra.mxu1 %v10438_v39 }
 0x644   : > { %4178 = vmatprep.subr.bf16.mxu1 %v10443_v63 }
 0x647   : > { %4179 = vmatpush1.bf16.msra.mxu1 %v10441_v35 }
 0x648   : > { %4180 = vmatprep.subr.bf16.mxu1 %v10446_v11 }
 0x64b   : > { %4181 = vmatpush1.bf16.msra.mxu1 %v10444_v49 }
 0x64c   : > { %4431 = vmatprep.subr.bf16.mxu1 %v10449_v28 }
 0x64e   : > { %4183 = vmatmul.mubr.bf16.vlgmr.msra.gmra.mrb[20].mxu1 %v12006_v42  ;;  %v4259_v42 = vrot.slane %v12060_v27, 1 }
 0x64f   : > { %4192 = vmatprep.mubr.bf16.mxu1 %v12018_v40  ;;  %4432 = vmatpush1.bf16.msra.mxu1 %v10447_v1  ;;  %v10480_v40 = vld [vmem:[#allocation7 + $0x8b0] ss:$8 sps:$4 sm:$0xff]  }
 0x650   : > { %4433 = vmatprep.subr.bf16.mxu1 %v10452_v47  ;;  %v4260_v22 = vsel %vm764_vm2, %v4255_v24, %v4259_v42 }
 0x653   : > { %4434 = vmatpush1.bf16.msra.mxu1 %v10450_v34 }
 0x654   : > { %4435 = vmatprep.subr.bf16.mxu1 %v10455_v3 }
 0x656   : > { %4193 = vmatmul.mubr.bf16.gmra.mrb[24].mxu1 %v12016_v56  ;;  %v4256_v56 = vsel %vm764_vm2, %v4251_v50, %v4255_v24 }
 0x657   : > { %4202 = vmatprep.mubr.bf16.mxu1 %v12032_v15  ;;  %4436 = vmatpush1.bf16.msra.mxu1 %v10453_v4  ;;  %v4253_v15 = vrot.slane %v12044_v60, 1 }
 0x658   : > { %4437 = vmatprep.subr.bf16.mxu1 %v10458_v5 }
 0x659   : > { %v4254_v20 = vsel %vm764_vm2, %v4249_v57, %v4253_v15 }
 0x65b   : > { %4438 = vmatpush1.bf16.msra.mxu1 %v10456_v29 }
 0x65c   : > { %4439 = vmatprep.subr.bf16.mxu1 %v10461_v6 }
 0x65e   : > { %4203 = vmatmul.mubr.bf16.gmra.mrb[28].mxu1 %v12030_v10  ;;  %v4257_v10 = vrot.slane %v12058_v36, 1 }
 0x65f   : > { %4212 = vmatprep.mubr.bf16.mxu1 %v12046_v61  ;;  %4440 = vmatpush1.bf16.msra.mxu1 %v10459_v30 }
 0x660   : > { %4441 = vmatprep.subr.bf16.mxu1 %v10464_v8  ;;  %v4258_v61 = vsel %vm764_vm2, %v4253_v15, %v4257_v10 }
 0x663   : > { %4442 = vmatpush1.bf16.msra.mxu1 %v10462_v7 }
 0x664   : > { %4443 = vmatprep.subr.bf16.mxu1 %v10467_v9 }
 0x666   : > { %4213 = vmatmul.mubr.bf16.gmra.mrb[32].mxu1 %v12044_v60  ;;  %v3658_v60 = vld [vmem:[#allocation9 + $0x3] ss:$8 sm:$0x3] }
 0x667   : > { %4222 = vmatprep.mubr.bf16.mxu1 %v12060_v27  ;;  %4444 = vmatpush1.bf16.msra.mxu1 %v10465_v12  ;;  %v12102_v27 = vrot.slane %v3658_v60, %v11710_v23  ;;  %v12105_v51 = vrot.slane %v3658_v60, %v11712_v25 }
 0x668   : > { %4445 = vmatprep.subr.bf16.mxu1 %v10470_v13 }
 0x66b   : > { %4446 = vmatpush1.bf16.msra.mxu1 %v10468_v2 }
 0x66c   : > { %4447 = vmatprep.subr.bf16.mxu1 %v10473_v31 }
 0x66e   : > { %4223 = vmatmul.mubr.bf16.gmra.mrb[36].mxu1 %v12058_v36 }
 0x66f   : > { %4448 = vmatpush1.bf16.msra.mxu1 %v10471_v33  ;;  %4463 = vmatprep.mubr.bf16.mxu1 %v4248_v37 }
 0x670   : > { %4449 = vmatprep.subr.bf16.mxu1 %v10476_v0 }
 0x673   : > { %4450 = vmatpush1.bf16.msra.mxu1 %v10474_v55 }
 0x674   : > { %4451 = vmatprep.subr.bf16.mxu1 %v10479_v38 }
 0x677   : > { %4452 = vmatpush1.bf16.msra.mxu1 %v10477_v16 }
 0x678   : > { %4453 = vmatprep.subr.bf16.mxu1 %v10482_v58 }
 0x67b   : > { %4454 = vmatpush1.bf16.msra.mxu1 %v10480_v40 }
 0x67c   : > { %4455 = vmatprep.subr.bf16.mxu1 %v10485_v43 }
 0x67f   : > { %4456 = vmatpush1.bf16.msra.mxu1 %v10483_v17 }
 0x680   : > { %4457 = vmatprep.subr.bf16.mxu1 %v10488_v44 }
 0x683   : > { %4458 = vmatpush1.bf16.msra.mxu1 %v10486_v45 }
 0x684   : > { %4459 = vmatprep.subr.bf16.mxu1 %v10491_v46 }
 0x687   : > { %4460 = vmatpush1.bf16.msra.mxu1 %v10489_v48 }
 0x688   : > { %4461 = vmatprep.subr.bf16.mxu1 %v10494_v53 }
 0x68b   : > { %4462 = vmatpush1.bf16.msra.mxu1 %v10492_v18 }
 0x68e   : > { %4464 = vmatmul.mubr.bf16.vlgmr.msra.gmra.mrb[20].mxu1 %v4245_v19 }
 0x68f   : > { %4473 = vmatprep.mubr.bf16.mxu1 %v4252_v54 }
 0x696   : > { %4474 = vmatmul.mubr.bf16.gmra.mrb[24].mxu1 %v4250_v62 }
 0x697   : > { %4483 = vmatprep.mubr.bf16.mxu1 %v4256_v56 }
 0x69e   : > { %4484 = vmatmul.mubr.bf16.gmra.mrb[28].mxu1 %v4254_v20 }
 0x69f   : > { %4493 = vmatprep.mubr.bf16.mxu1 %v4260_v22 }
 0x6a6   : > { %4494 = vmatmul.mubr.bf16.gmra.mrb[32].mxu1 %v4258_v61 }
 0x6a7   : > { %4503 = vmatprep.mubr.bf16.mxu1 %v4259_v42 }
 0x6ae   : > { %4504 = vmatmul.mubr.bf16.gmra.mrb[36].mxu1 %v4257_v10 }
 0x6af   : > { %4896 = vmatprep.mubr.f32.mxu1 %v12098_v59 }
 0x761   : > { %v4465_v14 = vpop.f32.mrb[20].mxu1 }
 0x762   : > { %v4545_v39 = vadd.f32 %v12102_v27, %v4465_v14  ;;  %v4467_v36 = vpop.f32.mrb[21].mxu1 }
 0x763   : > { %v4546_v63 = vadd.f32 %v12105_v51, %v4467_v36  ;;  %v4469_v35 = vpop.f32.mrb[22].mxu1 }
 0x764   : > { %v4547_v11 = vadd.f32 %v12102_v27, %v4469_v35  ;;  %v4471_v49 = vpop.f32.mrb[23].mxu1  ;;  %v4565_v1 = vmax.f32 %v4545_v39, 0.0 }
 0x765   : > { %v4548_v28 = vadd.f32 %v12105_v51, %v4471_v49  ;;  %v4566_v34 = vmax.f32 %v4546_v63, 0.0 }
 0x766   : > { %v4567_v47 = vmax.f32 %v4547_v11, 0.0 }
 0x767   : > { %v4568_v3 = vmax.f32 %v4548_v28, 0.0 }
 0x768   : > { %v9644_v4 = vpack.c.bf16 %v4567_v47, %v4565_v1 }
 0x769   : > { %v4475_v5 = vpop.f32.mrb[24].mxu1  ;;  %v9642_v29 = vpack.c.bf16 %v4568_v3, %v4566_v34 }
 0x76a   : > { %v4549_v6 = vadd.f32 %v12102_v27, %v4475_v5  ;;  %v4477_v30 = vpop.f32.mrb[25].mxu1  ;;  %v10497_v5 = vld [vmem:[#allocation7 + $0xa04] ss:$8 sps:$4 sm:$0xff]  }
 0x76b   : > { %v4550_v8 = vadd.f32 %v12105_v51, %v4477_v30  ;;  %v4479_v7 = vpop.f32.mrb[26].mxu1  ;;  %9643 = vmatprep.subr.bf16.mxu0 %v9642_v29  ;;  %9663 = vmatprep.subr.bf16.mxu1 %v9642_v29  ;;  %v4792_v30 = vld [vmem:[#allocation10 + $0xf0] sm:$0xff] }
 0x76c   : > { %v4551_v9 = vadd.f32 %v12102_v27, %v4479_v7  ;;  %v4481_v12 = vpop.f32.mrb[27].mxu1  ;;  %9645 = vmatpush1.bf16.msra.mxu0 %v9644_v4  ;;  %9665 = vmatpush1.bf16.msra.mxu1 %v9644_v4  ;;  %v4569_v2 = vmax.f32 %v4549_v6, 0.0  ;;  %v4626_v6 = vld [vmem:[#allocation10 + $0xa0] sm:$0xff] }
 0x76d   : > { %v4552_v13 = vadd.f32 %v12105_v51, %v4481_v12  ;;  %v4570_v32 = vmax.f32 %v4550_v8, 0.0  ;;  %v10495_v8 = vld [vmem:[#allocation7 + $0xa00] ss:$8 sps:$4 sm:$0xff]   ;;  %v10500_v7 = vld [vmem:[#allocation7 + $0xa14] ss:$8 sps:$4 sm:$0xff]  }
 0x76e   : > { %v4571_v31 = vmax.f32 %v4551_v9, 0.0  ;;  %v10498_v9 = vld [vmem:[#allocation7 + $0xa10] ss:$8 sps:$4 sm:$0xff]   ;;  %v10503_v12 = vld [vmem:[#allocation7 + $0xa24] ss:$8 sps:$4 sm:$0xff]  }
 0x76f   : > { %v4572_v33 = vmax.f32 %v4552_v13, 0.0  ;;  %v4628_v13 = vld [vmem:[#allocation10 + $0xb0] sm:$0xff] }
 0x770   : > { %v9648_v26 = vpack.c.bf16 %v4571_v31, %v4569_v2  ;;  %v4794_v2 = vld [vmem:[#allocation10 + $0x100] sm:$0xff]  ;;  %v10501_v31 = vld [vmem:[#allocation7 + $0xa20] ss:$8 sps:$4 sm:$0xff]  }
 0x771   : > { %v4485_v0 = vpop.f32.mrb[28].mxu1  ;;  %v9646_v37 = vpack.c.bf16 %v4572_v33, %v4570_v32  ;;  %v10506_v32 = vld [vmem:[#allocation7 + $0xa34] ss:$8 sps:$4 sm:$0xff]   ;;  %v4629_v33 = vld [vmem:[#allocation10 + $0xb8] sm:$0xff] }
 0x772   : > { %v4553_v55 = vadd.f32 %v12102_v27, %v4485_v0  ;;  %v4487_v38 = vpop.f32.mrb[29].mxu1  ;;  %v10504_v0 = vld [vmem:[#allocation7 + $0xa30] ss:$8 sps:$4 sm:$0xff]  }
 0x773   : > { %v4554_v16 = vadd.f32 %v12105_v51, %v4487_v38  ;;  %v4489_v58 = vpop.f32.mrb[30].mxu1  ;;  %9647 = vmatprep.subr.bf16.mxu0 %v9646_v37  ;;  %9667 = vmatprep.subr.bf16.mxu1 %v9646_v37  ;;  %v10509_v37 = vld [vmem:[#allocation7 + $0xa44] ss:$8 sps:$4 sm:$0xff]  }
 0x774   : > { %v4555_v40 = vadd.f32 %v12102_v27, %v4489_v58  ;;  %v4491_v43 = vpop.f32.mrb[31].mxu1  ;;  %9649 = vmatpush1.bf16.msra.mxu0 %v9648_v26  ;;  %9669 = vmatpush1.bf16.msra.mxu1 %v9648_v26  ;;  %v4573_v44 = vmax.f32 %v4553_v55, 0.0  ;;  %v4795_v26 = vld [vmem:[#allocation10 + $0x108] sm:$0xff]  ;;  %v4630_v55 = vld [vmem:[#allocation10 + $0xc0] sm:$0xff]  ;;  %v4796_v38 = vld [vmem:[#allocation10 + $0x110] sm:$0xff] }
 0x775   : > { %v4556_v17 = vadd.f32 %v12105_v51, %v4491_v43  ;;  %v4574_v46 = vmax.f32 %v4554_v16, 0.0  ;;  %v10507_v16 = vld [vmem:[#allocation7 + $0xa40] ss:$8 sps:$4 sm:$0xff]   ;;  %v10512_v58 = vld [vmem:[#allocation7 + $0xa54] ss:$8 sps:$4 sm:$0xff]  }
 0x776   : > { %v4575_v45 = vmax.f32 %v4555_v40, 0.0  ;;  %v4631_v40 = vld [vmem:[#allocation10 + $0xc8] sm:$0xff]  ;;  %v4797_v43 = vld [vmem:[#allocation10 + $0x118] sm:$0xff] }
 0x777   : > { %v4576_v48 = vmax.f32 %v4556_v17, 0.0  ;;  %v10510_v17 = vld [vmem:[#allocation7 + $0xa50] ss:$8 sps:$4 sm:$0xff]  }
 0x778   : > { %v9652_v53 = vpack.c.bf16 %v4575_v45, %v4573_v44  ;;  %v10515_v44 = vld [vmem:[#allocation7 + $0xa64] ss:$8 sps:$4 sm:$0xff]  }
 0x779   : > { %v4495_v18 = vpop.f32.mrb[32].mxu1  ;;  %v9650_v41 = vpack.c.bf16 %v4576_v48, %v4574_v46  ;;  %v4632_v45 = vld [vmem:[#allocation10 + $0xd0] sm:$0xff]  ;;  %v4798_v46 = vld [vmem:[#allocation10 + $0x120] sm:$0xff] }
 0x77a   : > { %v4557_v50 = vadd.f32 %v12102_v27, %v4495_v18  ;;  %v4497_v52 = vpop.f32.mrb[33].mxu1  ;;  %v10513_v48 = vld [vmem:[#allocation7 + $0xa60] ss:$8 sps:$4 sm:$0xff]  }
 0x77b   : > { %v4558_v19 = vadd.f32 %v12105_v51, %v4497_v52  ;;  %v4499_v54 = vpop.f32.mrb[34].mxu1  ;;  %9651 = vmatprep.subr.bf16.mxu0 %v9650_v41  ;;  %9671 = vmatprep.subr.bf16.mxu1 %v9650_v41  ;;  %v4633_v18 = vld [vmem:[#allocation10 + $0xd8] sm:$0xff]  ;;  %v4799_v41 = vld [vmem:[#allocation10 + $0x128] sm:$0xff] }
 0x77c   : > { %v4559_v57 = vadd.f32 %v12102_v27, %v4499_v54  ;;  %v4501_v24 = vpop.f32.mrb[35].mxu1  ;;  %9653 = vmatpush1.bf16.msra.mxu0 %v9652_v53  ;;  %9673 = vmatpush1.bf16.msra.mxu1 %v9652_v53  ;;  %v4577_v56 = vmax.f32 %v4557_v50, 0.0  ;;  %v10518_v53 = vld [vmem:[#allocation7 + $0xa74] ss:$8 sps:$4 sm:$0xff]   ;;  %v10516_v50 = vld [vmem:[#allocation7 + $0xa70] ss:$8 sps:$4 sm:$0xff]  }
 0x77d   : > { %v4560_v62 = vadd.f32 %v12105_v51, %v4501_v24  ;;  %v4578_v42 = vmax.f32 %v4558_v19, 0.0  ;;  %v10521_v52 = vld [vmem:[#allocation7 + $0xa84] ss:$8 sps:$4 sm:$0xff]   ;;  %v4634_v19 = vld [vmem:[#allocation10 + $0xe0] sm:$0xff]  ;;  %v4635_v24 = vld [vmem:[#allocation10 + $0xe8] sm:$0xff] }
 0x77e   : > { %v4579_v15 = vmax.f32 %v4559_v57, 0.0  ;;  %v4800_v54 = vld [vmem:[#allocation10 + $0x130] sm:$0xff] }
 0x77f   : > { %v4580_v20 = vmax.f32 %v4560_v62, 0.0  ;;  %v10519_v57 = vld [vmem:[#allocation7 + $0xa80] ss:$8 sps:$4 sm:$0xff]  }
 0x780   : > { %v9656_v22 = vpack.c.bf16 %v4579_v15, %v4577_v56  ;;  %v4801_v62 = vld [vmem:[#allocation10 + $0x138] sm:$0xff]  ;;  %v10524_v56 = vld [vmem:[#allocation7 + $0xa94] ss:$8 sps:$4 sm:$0xff]   ;;  %v10522_v15 = vld [vmem:[#allocation7 + $0xa90] ss:$8 sps:$4 sm:$0xff]  }
 0x781   : > { %v4505_v10 = vpop.f32.mrb[36].mxu1  ;;  %v9654_v61 = vpack.c.bf16 %v4580_v20, %v4578_v42  ;;  %v10527_v42 = vld [vmem:[#allocation7 + $0xaa4] ss:$8 sps:$4 sm:$0xff]   ;;  %v10525_v20 = vld [vmem:[#allocation7 + $0xaa0] ss:$8 sps:$4 sm:$0xff]  }
 0x782   : > { %v4507_v60 = vpop.f32.mrb[37].mxu1  ;;  %v4561_v28 = vadd.f32 %v12102_v27, %v4505_v10  ;;  %v10528_v10 = vld [vmem:[#allocation7 + $0xab0] ss:$8 sps:$4 sm:$0xff]  }
 0x783   : > { %v4509_v14 = vpop.f32.mrb[38].mxu1  ;;  %9655 = vmatprep.subr.bf16.mxu0 %v9654_v61  ;;  %9675 = vmatprep.subr.bf16.mxu1 %v9654_v61  ;;  %v4562_v49 = vadd.f32 %v12105_v51, %v4507_v60  ;;  %v10531_v61 = vld [vmem:[#allocation7 + $0xac0] ss:$8 sps:$4 sm:$0xff]   ;;  %v10536_v60 = vld [vmem:[#allocation7 + $0xad4] ss:$8 sps:$4 sm:$0xff]  }
 0x784   : > { %v4563_v39 = vadd.f32 %v12102_v27, %v4509_v14  ;;  %v4511_v36 = vpop.f32.mrb[39].mxu1  ;;  %9657 = vmatpush1.bf16.msra.mxu0 %v9656_v22  ;;  %9677 = vmatpush1.bf16.msra.mxu1 %v9656_v22  ;;  %v4581_v34 = vmax.f32 %v4561_v28, 0.0  ;;  %v4627_v27 = vld [vmem:[#allocation10 + $0xa8] sm:$0xff] }
 0x785   : > { %v4564_v63 = vadd.f32 %v12105_v51, %v4511_v36  ;;  %v4582_v1 = vmax.f32 %v4562_v49, 0.0  ;;  %v4793_v51 = vld [vmem:[#allocation10 + $0xf8] sm:$0xff]  ;;  %v10530_v22 = vld [vmem:[#allocation7 + $0xab4] ss:$8 sps:$4 sm:$0xff]   ;;  %v10534_v14 = vld [vmem:[#allocation7 + $0xad0] ss:$8 sps:$4 sm:$0xff]  }
 0x786   : > { %v4583_v35 = vmax.f32 %v4563_v39, 0.0  ;;  %v10539_v39 = vld [vmem:[#allocation7 + $0xae4] ss:$8 sps:$4 sm:$0xff]   ;;  %v10537_v36 = vld [vmem:[#allocation7 + $0xae0] ss:$8 sps:$4 sm:$0xff]  }
 0x787   : > { %v4584_v11 = vmax.f32 %v4564_v63, 0.0  ;;  %v10542_v63 = vld [vmem:[#allocation7 + $0xaf4] ss:$8 sps:$4 sm:$0xff]  }
 0x788   : > { %4603 = vst [vmem:[#allocation2 + $0x90] sm:$0x3f] %v4583_v35  ;;  %v10540_v35 = vld [vmem:[#allocation7 + $0xaf0] ss:$8 sps:$4 sm:$0xff]  }
 0x789   : > { %4604 = vst [vmem:[#allocation2 + $0x98] sm:$0x3f] %v4584_v11  ;;  %v10545_v11 = vld [vmem:[#allocation7 + $0x904] ss:$8 sps:$4 sm:$0xff]  }
 0x78f   : > { %v4623_v47 = vld [vmem:[#allocation2 + $0x90] sm:$0xff] }
 0x790   : > { %v4624_v3 = vld [vmem:[#allocation2 + $0x98] sm:$0xff]  ;;  %v9660_v29 = vpack.c.bf16 %v4623_v47, %v4581_v34 }
 0x791   : > { %v9658_v4 = vpack.c.bf16 %v4624_v3, %v4582_v1 }
 0x793   : > { %9659 = vmatprep.subr.bf16.mxu0 %v9658_v4  ;;  %9679 = vmatprep.subr.bf16.mxu1 %v9658_v4 }
 0x794   : > { %9661 = vmatpush1.bf16.msra.mxu0 %v9660_v29  ;;  %9681 = vmatpush1.bf16.msra.mxu1 %v9660_v29 }
 0x795   : > { %5376 = vmatprep.subr.bf16.mxu0 %v10497_v5 }
 0x797   : > { %9182 = vmatmul.mubr.msk.f32.vlgmr.msra.gmra.mrb[80].mxu0 %vm2089_vm3, %v4626_v6  ;;  %9192 = vmatmul.mubr.msk.f32.vlgmr.msra.gmra.mrb[40].mxu1 %vm2089_vm3, %v4792_v30 }
 0x798   : > { %4736 = vmatprep.mubr.f32.mxu0 %v12098_v59  ;;  %4902 = vmatprep.mubr.f32.mxu1 %v12098_v59 }
 0x799   : > { %5377 = vmatpush1.bf16.msra.mxu0 %v10495_v8 }
 0x79a   : > { %5378 = vmatprep.subr.bf16.mxu0 %v10500_v7 }
 0x79b   : > { %9183 = vmatmul.mubr.msk.f32.gmra.mrb[82].mxu0 %vm2089_vm3, %v4627_v27  ;;  %9193 = vmatmul.mubr.msk.f32.gmra.mrb[42].mxu1 %vm2089_vm3, %v4793_v51 }
 0x79c   : > { %4742 = vmatprep.mubr.f32.mxu0 %v12098_v59  ;;  %4908 = vmatprep.mubr.f32.mxu1 %v12098_v59 }
 0x79d   : > { %5379 = vmatpush1.bf16.msra.mxu0 %v10498_v9 }
 0x79e   : > { %5380 = vmatprep.subr.bf16.mxu0 %v10503_v12 }
 0x79f   : > { %9184 = vmatmul.mubr.msk.f32.gmra.mrb[84].mxu0 %vm2089_vm3, %v4628_v13  ;;  %9194 = vmatmul.mubr.msk.f32.gmra.mrb[44].mxu1 %vm2089_vm3, %v4794_v2 }
 0x7a0   : > { %4748 = vmatprep.mubr.f32.mxu0 %v12098_v59  ;;  %4914 = vmatprep.mubr.f32.mxu1 %v12098_v59 }
 0x7a1   : > { %5381 = vmatpush1.bf16.msra.mxu0 %v10501_v31 }
 0x7a2   : > { %5382 = vmatprep.subr.bf16.mxu0 %v10506_v32 }
 0x7a3   : > { %9185 = vmatmul.mubr.msk.f32.gmra.mrb[86].mxu0 %vm2089_vm3, %v4629_v33  ;;  %9195 = vmatmul.mubr.msk.f32.gmra.mrb[46].mxu1 %vm2089_vm3, %v4795_v26 }
 0x7a4   : > { %4754 = vmatprep.mubr.f32.mxu0 %v12098_v59  ;;  %4920 = vmatprep.mubr.f32.mxu1 %v12098_v59 }
 0x7a5   : > { %5383 = vmatpush1.bf16.msra.mxu0 %v10504_v0 }
 0x7a6   : > { %5384 = vmatprep.subr.bf16.mxu0 %v10509_v37 }
 0x7a7   : > { %9186 = vmatmul.mubr.msk.f32.gmra.mrb[88].mxu0 %vm2089_vm3, %v4630_v55  ;;  %9196 = vmatmul.mubr.msk.f32.gmra.mrb[48].mxu1 %vm2089_vm3, %v4796_v38 }
 0x7a8   : > { %4760 = vmatprep.mubr.f32.mxu0 %v12098_v59  ;;  %4926 = vmatprep.mubr.f32.mxu1 %v12098_v59 }
 0x7a9   : > { %5385 = vmatpush1.bf16.msra.mxu0 %v10507_v16 }
 0x7aa   : > { %5386 = vmatprep.subr.bf16.mxu0 %v10512_v58 }
 0x7ab   : > { %9187 = vmatmul.mubr.msk.f32.gmra.mrb[90].mxu0 %vm2089_vm3, %v4631_v40  ;;  %9197 = vmatmul.mubr.msk.f32.gmra.mrb[50].mxu1 %vm2089_vm3, %v4797_v43 }
 0x7ac   : > { %4766 = vmatprep.mubr.f32.mxu0 %v12098_v59  ;;  %4932 = vmatprep.mubr.f32.mxu1 %v12098_v59 }
 0x7ad   : > { %5387 = vmatpush1.bf16.msra.mxu0 %v10510_v17 }
 0x7ae   : > { %5388 = vmatprep.subr.bf16.mxu0 %v10515_v44 }
 0x7af   : > { %9188 = vmatmul.mubr.msk.f32.gmra.mrb[92].mxu0 %vm2089_vm3, %v4632_v45  ;;  %9198 = vmatmul.mubr.msk.f32.gmra.mrb[52].mxu1 %vm2089_vm3, %v4798_v46 }
 0x7b0   : > { %4772 = vmatprep.mubr.f32.mxu0 %v12098_v59  ;;  %4938 = vmatprep.mubr.f32.mxu1 %v12098_v59 }
 0x7b1   : > { %5389 = vmatpush1.bf16.msra.mxu0 %v10513_v48 }
 0x7b2   : > { %5390 = vmatprep.subr.bf16.mxu0 %v10518_v53 }
 0x7b3   : > { %9189 = vmatmul.mubr.msk.f32.gmra.mrb[94].mxu0 %vm2089_vm3, %v4633_v18  ;;  %9199 = vmatmul.mubr.msk.f32.gmra.mrb[54].mxu1 %vm2089_vm3, %v4799_v41 }
 0x7b4   : > { %4778 = vmatprep.mubr.f32.mxu0 %v12098_v59  ;;  %4944 = vmatprep.mubr.f32.mxu1 %v12098_v59 }
 0x7b5   : > { %5391 = vmatpush1.bf16.msra.mxu0 %v10516_v50 }
 0x7b6   : > { %5392 = vmatprep.subr.bf16.mxu0 %v10521_v52 }
 0x7b7   : > { %9190 = vmatmul.mubr.msk.f32.gmra.mrb[96].mxu0 %vm2089_vm3, %v4634_v19  ;;  %9200 = vmatmul.mubr.msk.f32.gmra.mrb[56].mxu1 %vm2089_vm3, %v4800_v54 }
 0x7b8   : > { %4784 = vmatprep.mubr.f32.mxu0 %v12098_v59  ;;  %4950 = vmatprep.mubr.f32.mxu1 %v12098_v59  ;;  %v10533_v59 = vld [vmem:[#allocation7 + $0xac4] ss:$8 sps:$4 sm:$0xff]  }
 0x7b9   : > { %5393 = vmatpush1.bf16.msra.mxu0 %v10519_v57 }
 0x7ba   : > { %5394 = vmatprep.subr.bf16.mxu0 %v10524_v56 }
 0x7bb   : > { %9191 = vmatmul.mubr.msk.f32.gmra.mrb[98].mxu0 %vm2089_vm3, %v4635_v24  ;;  %9201 = vmatmul.mubr.msk.f32.gmra.mrb[58].mxu1 %vm2089_vm3, %v4801_v62 }
 0x7bd   : > { %5395 = vmatpush1.bf16.msra.mxu0 %v10522_v15 }
 0x7be   : > { %5396 = vmatprep.subr.bf16.mxu0 %v10527_v42 }
 0x7c1   : > { %5397 = vmatpush1.bf16.msra.mxu0 %v10525_v20 }
 0x7c2   : > { %5398 = vmatprep.subr.bf16.mxu0 %v10530_v22  ;;  %v10543_v22 = vld [vmem:[#allocation7 + $0x900] ss:$8 sps:$4 sm:$0xff]  }
 0x7c5   : > { %5399 = vmatpush1.bf16.msra.mxu0 %v10528_v10 }
 0x7c6   : > { %5400 = vmatprep.subr.bf16.mxu0 %v10533_v59 }
 0x7c9   : > { %5401 = vmatpush1.bf16.msra.mxu0 %v10531_v61 }
 0x7ca   : > { %5402 = vmatprep.subr.bf16.mxu0 %v10536_v60  ;;  %v10548_v60 = vld [vmem:[#allocation7 + $0x914] ss:$8 sps:$4 sm:$0xff]  }
 0x7cd   : > { %5403 = vmatpush1.bf16.msra.mxu0 %v10534_v14 }
 0x7ce   : > { %5404 = vmatprep.subr.bf16.mxu0 %v10539_v39 }
 0x7d1   : > { %5405 = vmatpush1.bf16.msra.mxu0 %v10537_v36 }
 0x7d2   : > { %5406 = vmatprep.subr.bf16.mxu0 %v10542_v63 }
 0x7d5   : > { %5407 = vmatpush1.bf16.msra.mxu0 %v10540_v35 }
 0x7d6   : > { %5619 = vmatprep.subr.bf16.mxu0 %v10545_v11 }
 0x86a   : > { %v4732_v49 = vpop.f32.mrb[80].mxu0  ;;  %v4898_v28 = vpop.f32.mrb[40].mxu1 }
 0x86b   : > { %v4957_v1 = vmax.f32 %v4732_v49, %v4898_v28  ;;  %v4734_v47 = vpop.f32.mrb[81].mxu0  ;;  %v4900_v34 = vpop.f32.mrb[41].mxu1 }
 0x86c   : > { %v4958_v3 = vmax.f32 %v4734_v47, %v4900_v34 }
 0x86e   : > { %v4738_v4 = vpop.f32.mrb[82].mxu0  ;;  %v4904_v5 = vpop.f32.mrb[42].mxu1 }
 0x86f   : > { %v4959_v29 = vmax.f32 %v4738_v4, %v4904_v5  ;;  %v4740_v6 = vpop.f32.mrb[83].mxu0  ;;  %v4906_v30 = vpop.f32.mrb[43].mxu1  ;;  %v10551_v5 = vld [vmem:[#allocation7 + $0x924] ss:$8 sps:$4 sm:$0xff]  }
 0x870   : > { %v4960_v8 = vmax.f32 %v4740_v6, %v4906_v30 }
 0x871   : > { %v12165_v7 = vpack.c.bf16 %v4959_v29, %v4957_v1  ;;  %v10546_v1 = vld [vmem:[#allocation7 + $0x910] ss:$8 sps:$4 sm:$0xff]  }
 0x872   : > { %v4744_v27 = vpop.f32.mrb[84].mxu0  ;;  %v4910_v51 = vpop.f32.mrb[44].mxu1  ;;  %v12167_v9 = vpack.c.bf16 %v4960_v8, %v4958_v3 }
 0x873   : > { %v4961_v12 = vmax.f32 %v4744_v27, %v4910_v51  ;;  %v4746_v13 = vpop.f32.mrb[85].mxu0  ;;  %v4912_v2 = vpop.f32.mrb[45].mxu1  ;;  %v5131_v38 = vshll.u32 %v12165_v7, 16  ;;  %v5129_v19 = vshrl.u32 %v12165_v7, 16 }
 0x874   : > { %v4962_v31 = vmax.f32 %v4746_v13, %v4912_v2  ;;  %v5143_v26 = vshll.u32 %v12167_v9, 16  ;;  %v5141_v50 = vshrl.u32 %v12167_v9, 16 }
 0x875   : > { %v5133_v53 = vrot.slane %v5131_v38, 1 }
 0x876   : > { %v4750_v32 = vpop.f32.mrb[86].mxu0  ;;  %v4916_v33 = vpop.f32.mrb[46].mxu1  ;;  %v5145_v44 = vrot.slane %v5143_v26, 1 }
 0x877   : > { %v4963_v0 = vmax.f32 %v4750_v32, %v4916_v33  ;;  %v4752_v37 = vpop.f32.mrb[87].mxu0  ;;  %v4918_v55 = vpop.f32.mrb[47].mxu1  ;;  %v5134_v10 = vor.u32 %v5133_v53, %v5129_v19  ;;  %v10552_v53 = vld [vmem:[#allocation7 + $0x930] ss:$8 sps:$4 sm:$0xff]  }
 0x878   : > { %v4964_v16 = vmax.f32 %v4752_v37, %v4918_v55  ;;  %v5146_v62 = vor.u32 %v5145_v44, %v5141_v50  ;;  %v10554_v37 = vld [vmem:[#allocation7 + $0x934] ss:$8 sps:$4 sm:$0xff]  }
 0x879   : > { %v12171_v58 = vpack.c.bf16 %v4963_v0, %v4961_v12 }
 0x87a   : > { %v4756_v40 = vpop.f32.mrb[88].mxu0  ;;  %v4922_v43 = vpop.f32.mrb[48].mxu1  ;;  %v12173_v17 = vpack.c.bf16 %v4964_v16, %v4962_v31  ;;  %v10549_v31 = vld [vmem:[#allocation7 + $0x920] ss:$8 sps:$4 sm:$0xff]  }
 0x87b   : > { %v4965_v45 = vmax.f32 %v4756_v40, %v4922_v43  ;;  %v4758_v46 = vpop.f32.mrb[89].mxu0  ;;  %v4924_v48 = vpop.f32.mrb[49].mxu1  ;;  %v5136_v18 = vshll.u32 %v12171_v58, 16  ;;  %v5152_v29 = vshrl.u32 %v12171_v58, 16 }
 0x87c   : > { %v4966_v41 = vmax.f32 %v4758_v46, %v4924_v48  ;;  %v5148_v52 = vshll.u32 %v12173_v17, 16  ;;  %v5160_v3 = vshrl.u32 %v12173_v17, 16 }
 0x87d   : > { %v5138_v54 = vrot.slane %v5136_v18, 1 }
 0x87e   : > { %v4762_v57 = vpop.f32.mrb[90].mxu0  ;;  %v4928_v24 = vpop.f32.mrb[50].mxu1  ;;  %v5150_v56 = vrot.slane %v5148_v52, 1 }
 0x87f   : > { %v4967_v15 = vmax.f32 %v4762_v57, %v4928_v24  ;;  %v4764_v42 = vpop.f32.mrb[91].mxu0  ;;  %v4930_v20 = vpop.f32.mrb[51].mxu1  ;;  %v5139_v14 = vsel %vm492_vm0, %v5134_v10, %v5138_v54  ;;  %v5154_v32 = vor.u32 %v5152_v29, %v5138_v54  ;;  %v10557_v54 = vld [vmem:[#allocation7 + $0x944] ss:$8 sps:$4 sm:$0xff]  }
 0x880   : > { %v4968_v59 = vmax.f32 %v4764_v42, %v4930_v20  ;;  %v5151_v61 = vsel %vm492_vm0, %v5146_v62, %v5150_v56  ;;  %v5162_v27 = vor.u32 %v5160_v3, %v5150_v56  ;;  %v10563_v3 = vld [vmem:[#allocation7 + $0x964] ss:$8 sps:$4 sm:$0xff]  }
 0x881   : > { %5408 = vmatprep.mubr.bf16.mxu0 %v5151_v61  ;;  %v12181_v39 = vpack.c.bf16 %v4967_v15, %v4965_v45 }
 0x882   : > { %v4768_v36 = vpop.f32.mrb[92].mxu0  ;;  %v4934_v63 = vpop.f32.mrb[52].mxu1  ;;  %5409 = vmatmul.mubr.bf16.vlgmr.msra.gmra.mrb[100].mxu0 %v5139_v14  ;;  %v12183_v35 = vpack.c.bf16 %v4968_v59, %v4966_v41  ;;  %v10560_v14 = vld [vmem:[#allocation7 + $0x954] ss:$8 sps:$4 sm:$0xff]  }
 0x883   : > { %v4969_v11 = vmax.f32 %v4768_v36, %v4934_v63  ;;  %v4770_v49 = vpop.f32.mrb[93].mxu0  ;;  %v4936_v28 = vpop.f32.mrb[53].mxu1  ;;  %5620 = vmatpush1.bf16.msra.mxu0 %v10543_v22  ;;  %v5156_v47 = vshll.u32 %v12181_v39, 16  ;;  %v5168_v33 = vshrl.u32 %v12181_v39, 16  ;;  %v10555_v22 = vld [vmem:[#allocation7 + $0x940] ss:$8 sps:$4 sm:$0xff]  }
 0x884   : > { %v4970_v34 = vmax.f32 %v4770_v49, %v4936_v28  ;;  %5621 = vmatprep.subr.bf16.mxu0 %v10548_v60  ;;  %v5164_v4 = vshll.u32 %v12183_v35, 16  ;;  %v5176_v55 = vshrl.u32 %v12183_v35, 16  ;;  %v10558_v49 = vld [vmem:[#allocation7 + $0x950] ss:$8 sps:$4 sm:$0xff]  }
 0x885   : > { %v5158_v6 = vrot.slane %v5156_v47, 1 }
 0x886   : > { %v4774_v30 = vpop.f32.mrb[94].mxu0  ;;  %v4940_v8 = vpop.f32.mrb[54].mxu1  ;;  %v5166_v51 = vrot.slane %v5164_v4, 1 }
 0x887   : > { %v4971_v12 = vmax.f32 %v4774_v30, %v4940_v8  ;;  %v4776_v13 = vpop.f32.mrb[95].mxu0  ;;  %v4942_v2 = vpop.f32.mrb[55].mxu1  ;;  %5622 = vmatpush1.bf16.msra.mxu0 %v10546_v1  ;;  %v5159_v38 = vsel %vm492_vm0, %v5154_v32, %v5158_v6  ;;  %v5170_v18 = vor.u32 %v5168_v33, %v5158_v6  ;;  %v10561_v6 = vld [vmem:[#allocation7 + $0x960] ss:$8 sps:$4 sm:$0xff]   ;;  %v10572_v33 = vld [vmem:[#allocation7 + $0x994] ss:$8 sps:$4 sm:$0xff]  }
 0x888   : > { %v4972_v26 = vmax.f32 %v4776_v13, %v4942_v2  ;;  %v5167_v0 = vsel %vm492_vm0, %v5162_v27, %v5166_v51  ;;  %5623 = vmatprep.subr.bf16.mxu0 %v10551_v5  ;;  %v5178_v52 = vor.u32 %v5176_v55, %v5166_v51  ;;  %v10566_v27 = vld [vmem:[#allocation7 + $0x974] ss:$8 sps:$4 sm:$0xff]   ;;  %v10564_v13 = vld [vmem:[#allocation7 + $0x970] ss:$8 sps:$4 sm:$0xff]   ;;  %v10569_v2 = vld [vmem:[#allocation7 + $0x984] ss:$8 sps:$4 sm:$0xff]  }
 0x889   : > { %5418 = vmatprep.mubr.bf16.mxu0 %v5167_v0  ;;  %v12193_v16 = vpack.c.bf16 %v4971_v12, %v4969_v11  ;;  %v10567_v32 = vld [vmem:[#allocation7 + $0x980] ss:$8 sps:$4 sm:$0xff]   ;;  %v10641_v0 = vld [vmem:[#allocation7 + $0xd04] ss:$8 sps:$4 sm:$0xff]   ;;  %v10644_v55 = vld [vmem:[#allocation7 + $0xd14] ss:$8 sps:$4 sm:$0xff]  }
 0x88a   : > { %v4780_v40 = vpop.f32.mrb[96].mxu0  ;;  %v4946_v43 = vpop.f32.mrb[56].mxu1  ;;  %5419 = vmatmul.mubr.bf16.gmra.mrb[104].mxu0 %v5159_v38  ;;  %v12195_v44 = vpack.c.bf16 %v4972_v26, %v4970_v34  ;;  %v10639_v26 = vld [vmem:[#allocation7 + $0xd00] ss:$8 sps:$4 sm:$0xff]   ;;  %v10575_v38 = vld [vmem:[#allocation7 + $0x9a4] ss:$8 sps:$4 sm:$0xff]   ;;  %6453 = vmatprep.subr.bf16.mxu1 %v10641_v0 }
 0x88b   : > { %v4973_v45 = vmax.f32 %v4780_v40, %v4946_v43  ;;  %v4782_v46 = vpop.f32.mrb[97].mxu0  ;;  %v4948_v48 = vpop.f32.mrb[57].mxu1  ;;  %5624 = vmatpush1.bf16.msra.mxu0 %v10549_v31  ;;  %v5172_v41 = vshll.u32 %v12193_v16, 16  ;;  %v5184_v59 = vshrl.u32 %v12193_v16, 16  ;;  %6454 = vmatpush1.bf16.msra.mxu1 %v10639_v26  ;;  %v10642_v40 = vld [vmem:[#allocation7 + $0xd10] ss:$8 sps:$4 sm:$0xff]  }
 0x88c   : > { %v4974_v50 = vmax.f32 %v4782_v46, %v4948_v48  ;;  %5625 = vmatprep.subr.bf16.mxu0 %v10554_v37  ;;  %v5180_v19 = vshll.u32 %v12195_v44, 16  ;;  %v5192_v36 = vshrl.u32 %v12195_v44, 16  ;;  %v10570_v37 = vld [vmem:[#allocation7 + $0x990] ss:$8 sps:$4 sm:$0xff]   ;;  %6455 = vmatprep.subr.bf16.mxu1 %v10644_v55  ;;  %v10647_v43 = vld [vmem:[#allocation7 + $0xd24] ss:$8 sps:$4 sm:$0xff]  }
 0x88d   : > { %v5174_v57 = vrot.slane %v5172_v41, 1  ;;  %v10578_v46 = vld [vmem:[#allocation7 + $0x9b4] ss:$8 sps:$4 sm:$0xff]   ;;  %v10645_v48 = vld [vmem:[#allocation7 + $0xd20] ss:$8 sps:$4 sm:$0xff]  }
 0x88e   : > { %v4786_v24 = vpop.f32.mrb[98].mxu0  ;;  %v4952_v62 = vpop.f32.mrb[58].mxu1  ;;  %v5182_v56 = vrot.slane %v5180_v19, 1  ;;  %v10581_v41 = vld [vmem:[#allocation7 + $0x9c4] ss:$8 sps:$4 sm:$0xff]  }
 0x88f   : > { %v4975_v15 = vmax.f32 %v4786_v24, %v4952_v62  ;;  %v4788_v42 = vpop.f32.mrb[99].mxu0  ;;  %v4954_v20 = vpop.f32.mrb[59].mxu1  ;;  %5626 = vmatpush1.bf16.msra.mxu0 %v10552_v53  ;;  %v5175_v10 = vsel %vm492_vm0, %v5170_v18, %v5174_v57  ;;  %v5186_v28 = vor.u32 %v5184_v59, %v5174_v57  ;;  %6456 = vmatpush1.bf16.msra.mxu1 %v10642_v40  ;;  %v10650_v53 = vld [vmem:[#allocation7 + $0xd34] ss:$8 sps:$4 sm:$0xff]   ;;  %v10576_v18 = vld [vmem:[#allocation7 + $0x9b0] ss:$8 sps:$4 sm:$0xff]  }
 0x890   : > { %v4976_v61 = vmax.f32 %v4788_v42, %v4954_v20  ;;  %v5183_v60 = vsel %vm492_vm0, %v5178_v52, %v5182_v56  ;;  %5627 = vmatprep.subr.bf16.mxu0 %v10557_v54  ;;  %v5194_v47 = vor.u32 %v5192_v36, %v5182_v56  ;;  %6457 = vmatprep.subr.bf16.mxu1 %v10647_v43  ;;  %v10653_v52 = vld [vmem:[#allocation7 + $0xd44] ss:$8 sps:$4 sm:$0xff]   ;;  %v10579_v19 = vld [vmem:[#allocation7 + $0x9c0] ss:$8 sps:$4 sm:$0xff]   ;;  %v10584_v54 = vld [vmem:[#allocation7 + $0x9d4] ss:$8 sps:$4 sm:$0xff]  }
 0x891   : > { %4995 = vst [vmem:[#allocation3 + $0x90] sm:$0xff] %v4975_v15  ;;  %5428 = vmatprep.mubr.bf16.mxu0 %v5183_v60  ;;  %v12203_v63 = vpack.c.bf16 %v4975_v15, %v4973_v45  ;;  %v10573_v45 = vld [vmem:[#allocation7 + $0x9a0] ss:$8 sps:$4 sm:$0xff]   ;;  %v10656_v24 = vld [vmem:[#allocation7 + $0xd54] ss:$8 sps:$4 sm:$0xff]  }
 0x892   : > { %4996 = vst [vmem:[#allocation3 + $0x98] sm:$0xff] %v4976_v61  ;;  %5429 = vmatmul.mubr.bf16.gmra.mrb[108].mxu0 %v5175_v10  ;;  %v12205_v11 = vpack.c.bf16 %v4976_v61, %v4974_v50  ;;  %v10648_v50 = vld [vmem:[#allocation7 + $0xd30] ss:$8 sps:$4 sm:$0xff]   ;;  %v10651_v57 = vld [vmem:[#allocation7 + $0xd40] ss:$8 sps:$4 sm:$0xff]  }
 0x893   : > { %5628 = vmatpush1.bf16.msra.mxu0 %v10555_v22  ;;  %v5188_v1 = vshll.u32 %v12203_v63, 16  ;;  %v5200_v12 = vshrl.u32 %v12203_v63, 16  ;;  %6458 = vmatpush1.bf16.msra.mxu1 %v10645_v48  ;;  %v10582_v62 = vld [vmem:[#allocation7 + $0x9d0] ss:$8 sps:$4 sm:$0xff]   ;;  %v10587_v56 = vld [vmem:[#allocation7 + $0x9e4] ss:$8 sps:$4 sm:$0xff]  }
 0x894   : > { %5629 = vmatprep.subr.bf16.mxu0 %v10560_v14  ;;  %v5196_v34 = vshll.u32 %v12205_v11, 16  ;;  %v5203_v4 = vshrl.u32 %v12205_v11, 16  ;;  %6459 = vmatprep.subr.bf16.mxu1 %v10650_v53  ;;  %v10654_v15 = vld [vmem:[#allocation7 + $0xd50] ss:$8 sps:$4 sm:$0xff]   ;;  %v10659_v42 = vld [vmem:[#allocation7 + $0xd64] ss:$8 sps:$4 sm:$0xff]  }
 0x895   : > { %v5190_v5 = vrot.slane %v5188_v1, 1  ;;  %v10585_v20 = vld [vmem:[#allocation7 + $0x9e0] ss:$8 sps:$4 sm:$0xff]   ;;  %v10590_v22 = vld [vmem:[#allocation7 + $0x9f4] ss:$8 sps:$4 sm:$0xff]  }
 0x896   : > { %v5198_v29 = vrot.slane %v5196_v34, 1  ;;  %v10657_v10 = vld [vmem:[#allocation7 + $0xd60] ss:$8 sps:$4 sm:$0xff]   ;;  %v10662_v59 = vld [vmem:[#allocation7 + $0xd74] ss:$8 sps:$4 sm:$0xff]  }
 0x897   : > { %5630 = vmatpush1.bf16.msra.mxu0 %v10558_v49  ;;  %v5191_v30 = vsel %vm492_vm0, %v5186_v28, %v5190_v5  ;;  %v5202_v31 = vor.u32 %v5200_v12, %v5190_v5  ;;  %6460 = vmatpush1.bf16.msra.mxu1 %v10648_v50  ;;  %v10588_v61 = vld [vmem:[#allocation7 + $0x9f0] ss:$8 sps:$4 sm:$0xff]   ;;  %v10593_v60 = vld [vmem:[#allocation7 + $0xb04] ss:$8 sps:$4 sm:$0xff]   ;;  %v10591_v49 = vld [vmem:[#allocation7 + $0xb00] ss:$8 sps:$4 sm:$0xff]  }
 0x898   : > { %v5199_v8 = vsel %vm492_vm0, %v5194_v47, %v5198_v29  ;;  %5631 = vmatprep.subr.bf16.mxu0 %v10563_v3  ;;  %v5205_v51 = vor.u32 %v5203_v4, %v5198_v29  ;;  %6461 = vmatprep.subr.bf16.mxu1 %v10653_v52  ;;  %v10660_v14 = vld [vmem:[#allocation7 + $0xd70] ss:$8 sps:$4 sm:$0xff]   ;;  %v10665_v36 = vld [vmem:[#allocation7 + $0xd84] ss:$8 sps:$4 sm:$0xff]   ;;  %v10596_v28 = vld [vmem:[#allocation7 + $0xb14] ss:$8 sps:$4 sm:$0xff]  }
 0x899   : > { %5438 = vmatprep.mubr.bf16.mxu0 %v5199_v8  ;;  %v10663_v1 = vld [vmem:[#allocation7 + $0xd80] ss:$8 sps:$4 sm:$0xff]   ;;  %v10594_v47 = vld [vmem:[#allocation7 + $0xb10] ss:$8 sps:$4 sm:$0xff]   ;;  %v10599_v34 = vld [vmem:[#allocation7 + $0xb24] ss:$8 sps:$4 sm:$0xff]  }
 0x89a   : > { %5439 = vmatmul.mubr.bf16.gmra.mrb[112].mxu0 %v5191_v30  ;;  %v10597_v3 = vld [vmem:[#allocation7 + $0xb20] ss:$8 sps:$4 sm:$0xff]   ;;  %v10602_v4 = vld [vmem:[#allocation7 + $0xb34] ss:$8 sps:$4 sm:$0xff]   ;;  %v10600_v5 = vld [vmem:[#allocation7 + $0xb30] ss:$8 sps:$4 sm:$0xff]  }
 0x89b   : > { %5632 = vmatpush1.bf16.msra.mxu0 %v10561_v6  ;;  %5448 = vmatprep.mubr.bf16.mxu0 %v5205_v51  ;;  %v10605_v29 = vld [vmem:[#allocation7 + $0xb44] ss:$8 sps:$4 sm:$0xff]   ;;  %v10603_v6 = vld [vmem:[#allocation7 + $0xb40] ss:$8 sps:$4 sm:$0xff]   ;;  %v10608_v30 = vld [vmem:[#allocation7 + $0xb54] ss:$8 sps:$4 sm:$0xff]  }
 0x89c   : > { %5633 = vmatprep.subr.bf16.mxu0 %v10566_v27  ;;  %6462 = vmatpush1.bf16.msra.mxu1 %v10651_v57  ;;  %v10606_v8 = vld [vmem:[#allocation7 + $0xb50] ss:$8 sps:$4 sm:$0xff]   ;;  %v10611_v27 = vld [vmem:[#allocation7 + $0xb64] ss:$8 sps:$4 sm:$0xff]   ;;  %v10609_v51 = vld [vmem:[#allocation7 + $0xb60] ss:$8 sps:$4 sm:$0xff]  }
 0x89d   : > { %6463 = vmatprep.subr.bf16.mxu1 %v10656_v24  ;;  %v10614_v12 = vld [vmem:[#allocation7 + $0xb74] ss:$8 sps:$4 sm:$0xff]   ;;  %v10623_v55 = vld [vmem:[#allocation7 + $0xba4] ss:$8 sps:$4 sm:$0xff]   ;;  %v10633_v53 = vld [vmem:[#allocation7 + $0xbe0] ss:$8 sps:$4 sm:$0xff]  }
 0x89e   : > { %v10620_v26 = vld [vmem:[#allocation7 + $0xb94] ss:$8 sps:$4 sm:$0xff]   ;;  %v10629_v43 = vld [vmem:[#allocation7 + $0xbc4] ss:$8 sps:$4 sm:$0xff]   ;;  %v5713_v50 = vrot.slane %v12171_v58, 1  ;;  %v5720_v52 = vrot.slane %v12183_v35, 1 }
 0x89f   : > { %5634 = vmatpush1.bf16.msra.mxu0 %v10564_v13  ;;  %v10612_v13 = vld [vmem:[#allocation7 + $0xb70] ss:$8 sps:$4 sm:$0xff]   ;;  %v10626_v40 = vld [vmem:[#allocation7 + $0xbb4] ss:$8 sps:$4 sm:$0xff]   ;;  %v10635_v48 = vld [vmem:[#allocation7 + $0xbe4] ss:$8 sps:$4 sm:$0xff]  }
 0x8a0   : > { %5635 = vmatprep.subr.bf16.mxu0 %v10569_v2  ;;  %6464 = vmatpush1.bf16.msra.mxu1 %v10654_v15  ;;  %v10617_v2 = vld [vmem:[#allocation7 + $0xb84] ss:$8 sps:$4 sm:$0xff]   ;;  %v5718_v24 = vrot.slane %v12181_v39, 1 }
 0x8a1   : > { %6465 = vmatprep.subr.bf16.mxu1 %v10659_v42 }
 0x8a2   : > { %5449 = vmatmul.mubr.bf16.gmra.mrb[116].mxu0 %v5202_v31  ;;  %v5716_v31 = vrot.slane %v12173_v17, 1 }
 0x8a3   : > { %5636 = vmatpush1.bf16.msra.mxu0 %v10567_v32  ;;  %5651 = vmatprep.mubr.bf16.mxu0 %v12167_v9  ;;  %v10615_v32 = vld [vmem:[#allocation7 + $0xb80] ss:$8 sps:$4 sm:$0xff]  }
 0x8a4   : > { %5637 = vmatprep.subr.bf16.mxu0 %v10572_v33  ;;  %6466 = vmatpush1.bf16.msra.mxu1 %v10657_v10  ;;  %v5715_v33 = vrot.slane %v12167_v9, 1  ;;  %v10627_v9 = vld [vmem:[#allocation7 + $0xbc0] ss:$8 sps:$4 sm:$0xff]   ;;  %v5721_v57 = vsel %vm764_vm2, %v5716_v31, %v5720_v52 }
 0x8a5   : > { %6467 = vmatprep.subr.bf16.mxu1 %v10662_v59  ;;  %v10669_v10 = vld [vmem:[#allocation7 + $0xda0] ss:$8 sps:$4 sm:$0xff]   ;;  %v10672_v59 = vld [vmem:[#allocation7 + $0xdb0] ss:$8 sps:$4 sm:$0xff]  }
 0x8a6   : > { %v5717_v0 = vsel %vm764_vm2, %v5715_v33, %v5716_v31 }
 0x8a7   : > { %5638 = vmatpush1.bf16.msra.mxu0 %v10570_v37  ;;  %v10618_v37 = vld [vmem:[#allocation7 + $0xb90] ss:$8 sps:$4 sm:$0xff]  }
 0x8a8   : > { %5639 = vmatprep.subr.bf16.mxu0 %v10575_v38  ;;  %6468 = vmatpush1.bf16.msra.mxu1 %v10660_v14  ;;  %v10621_v38 = vld [vmem:[#allocation7 + $0xba0] ss:$8 sps:$4 sm:$0xff]   ;;  %v10678_v14 = vld [vmem:[#allocation7 + $0xdd0] ss:$8 sps:$4 sm:$0xff]  }
 0x8a9   : > { %6469 = vmatprep.subr.bf16.mxu1 %v10665_v36  ;;  %v10683_v36 = vld [vmem:[#allocation7 + $0xde4] ss:$8 sps:$4 sm:$0xff]  }
 0x8ab   : > { %5640 = vmatpush1.bf16.msra.mxu0 %v10573_v45  ;;  %v10632_v45 = vld [vmem:[#allocation7 + $0xbd4] ss:$8 sps:$4 sm:$0xff]  }
 0x8ac   : > { %5641 = vmatprep.subr.bf16.mxu0 %v10578_v46  ;;  %6470 = vmatpush1.bf16.msra.mxu1 %v10663_v1  ;;  %v10630_v46 = vld [vmem:[#allocation7 + $0xbd0] ss:$8 sps:$4 sm:$0xff]  }
 0x8ad   : > { %v10684_v1 = vld [vmem:[#allocation7 + $0xdf0] ss:$8 sps:$4 sm:$0xff]  }
 0x8af   : > { %5642 = vmatpush1.bf16.msra.mxu0 %v10576_v18  ;;  %v10638_v18 = vld [vmem:[#allocation7 + $0xbf4] ss:$8 sps:$4 sm:$0xff]  }
 0x8b0   : > { %5643 = vmatprep.subr.bf16.mxu0 %v10581_v41  ;;  %v10636_v41 = vld [vmem:[#allocation7 + $0xbf0] ss:$8 sps:$4 sm:$0xff]  }
 0x8b3   : > { %5644 = vmatpush1.bf16.msra.mxu0 %v10579_v19  ;;  %v5712_v19 = vrot.slane %v12165_v7, 1 }
 0x8b4   : > { %5645 = vmatprep.subr.bf16.mxu0 %v10584_v54 }
 0x8b5   : > { %v5714_v54 = vsel %vm764_vm2, %v5712_v19, %v5713_v50 }
 0x8b7   : > { %5646 = vmatpush1.bf16.msra.mxu0 %v10582_v62  ;;  %v5724_v62 = vrot.slane %v12195_v44, 1 }
 0x8b8   : > { %5647 = vmatprep.subr.bf16.mxu0 %v10587_v56  ;;  %v5719_v56 = vsel %vm764_vm2, %v5713_v50, %v5718_v24 }
 0x8bb   : > { %5648 = vmatpush1.bf16.msra.mxu0 %v10585_v20  ;;  %v10668_v20 = vld [vmem:[#allocation7 + $0xd94] ss:$8 sps:$4 sm:$0xff]  }
 0x8bc   : > { %5649 = vmatprep.subr.bf16.mxu0 %v10590_v22  ;;  %v10666_v22 = vld [vmem:[#allocation7 + $0xd90] ss:$8 sps:$4 sm:$0xff]   ;;  %6471 = vmatprep.subr.bf16.mxu1 %v10668_v20 }
 0x8bd   : > { %6472 = vmatpush1.bf16.msra.mxu1 %v10666_v22 }
 0x8bf   : > { %5650 = vmatpush1.bf16.msra.mxu0 %v10588_v61  ;;  %v10677_v61 = vld [vmem:[#allocation7 + $0xdc4] ss:$8 sps:$4 sm:$0xff]  }
 0x8c0   : > { %5900 = vmatprep.subr.bf16.mxu0 %v10593_v60  ;;  %v10675_v60 = vld [vmem:[#allocation7 + $0xdc0] ss:$8 sps:$4 sm:$0xff]  }
 0x8c2   : > { %5652 = vmatmul.mubr.bf16.vlgmr.msra.gmra.mrb[100].mxu0 %v12165_v7  ;;  %v5728_v7 = vrot.slane %v12205_v11, 1 }
 0x8c3   : > { %5661 = vmatprep.mubr.bf16.mxu0 %v12173_v17  ;;  %5901 = vmatpush1.bf16.msra.mxu0 %v10591_v49  ;;  %v10624_v17 = vld [vmem:[#allocation7 + $0xbb0] ss:$8 sps:$4 sm:$0xff]   ;;  %v10681_v49 = vld [vmem:[#allocation7 + $0xde0] ss:$8 sps:$4 sm:$0xff]  }
 0x8c4   : > { %5902 = vmatprep.subr.bf16.mxu0 %v10596_v28  ;;  %v5729_v42 = vsel %vm764_vm2, %v5724_v62, %v5728_v7  ;;  %v10686_v28 = vld [vmem:[#allocation7 + $0xdf4] ss:$8 sps:$4 sm:$0xff]  }
 0x8c7   : > { %5903 = vmatpush1.bf16.msra.mxu0 %v10594_v47  ;;  %v10689_v47 = vld [vmem:[#allocation7 + $0xc04] ss:$8 sps:$4 sm:$0xff]  }
 0x8c8   : > { %5904 = vmatprep.subr.bf16.mxu0 %v10599_v34  ;;  %v5127_v34 = vld [vmem:[#allocation9 + $0x4] ss:$8 sm:$0x3] }
 0x8ca   : > { %5662 = vmatmul.mubr.bf16.gmra.mrb[104].mxu0 %v12171_v58  ;;  %v5725_v58 = vsel %vm764_vm2, %v5720_v52, %v5724_v62 }
 0x8cb   : > { %5671 = vmatprep.mubr.bf16.mxu0 %v12183_v35  ;;  %5905 = vmatpush1.bf16.msra.mxu0 %v10597_v3  ;;  %v5722_v35 = vrot.slane %v12193_v16, 1  ;;  %v12242_v3 = vrot.slane %v5127_v34, %v11710_v23 }
 0x8cc   : > { %5906 = vmatprep.subr.bf16.mxu0 %v10602_v4  ;;  %v12245_v4 = vrot.slane %v5127_v34, %v11712_v25 }
 0x8cd   : > { %v5723_v15 = vsel %vm764_vm2, %v5718_v24, %v5722_v35 }
 0x8cf   : > { %5907 = vmatpush1.bf16.msra.mxu0 %v10600_v5 }
 0x8d0   : > { %5908 = vmatprep.subr.bf16.mxu0 %v10605_v29 }
 0x8d2   : > { %5672 = vmatmul.mubr.bf16.gmra.mrb[108].mxu0 %v12181_v39  ;;  %v5726_v39 = vrot.slane %v12203_v63, 1 }
 0x8d3   : > { %5681 = vmatprep.mubr.bf16.mxu0 %v12195_v44  ;;  %5909 = vmatpush1.bf16.msra.mxu0 %v10603_v6 }
 0x8d4   : > { %5910 = vmatprep.subr.bf16.mxu0 %v10608_v30  ;;  %v5727_v44 = vsel %vm764_vm2, %v5722_v35, %v5726_v39 }
 0x8d7   : > { %5911 = vmatpush1.bf16.msra.mxu0 %v10606_v8 }
 0x8d8   : > { %5912 = vmatprep.subr.bf16.mxu0 %v10611_v27 }
 0x8da   : > { %5682 = vmatmul.mubr.bf16.gmra.mrb[112].mxu0 %v12193_v16  ;;  %v10671_v16 = vld [vmem:[#allocation7 + $0xda4] ss:$8 sps:$4 sm:$0xff]  }
 0x8db   : > { %5691 = vmatprep.mubr.bf16.mxu0 %v12205_v11  ;;  %5913 = vmatpush1.bf16.msra.mxu0 %v10609_v51  ;;  %v10674_v11 = vld [vmem:[#allocation7 + $0xdb4] ss:$8 sps:$4 sm:$0xff]  }
 0x8dc   : > { %5914 = vmatprep.subr.bf16.mxu0 %v10614_v12  ;;  %6473 = vmatprep.subr.bf16.mxu1 %v10671_v16 }
 0x8dd   : > { %6474 = vmatpush1.bf16.msra.mxu1 %v10669_v10 }
 0x8de   : > { %6475 = vmatprep.subr.bf16.mxu1 %v10674_v11 }
 0x8df   : > { %5915 = vmatpush1.bf16.msra.mxu0 %v10612_v13 }
 0x8e0   : > { %5916 = vmatprep.subr.bf16.mxu0 %v10617_v2 }
 0x8e1   : > { %6476 = vmatpush1.bf16.msra.mxu1 %v10672_v59 }
 0x8e2   : > { %5692 = vmatmul.mubr.bf16.gmra.mrb[116].mxu0 %v12203_v63  ;;  %6477 = vmatprep.subr.bf16.mxu1 %v10677_v61  ;;  %v10680_v63 = vld [vmem:[#allocation7 + $0xdd4] ss:$8 sps:$4 sm:$0xff]  }
 0x8e3   : > { %5917 = vmatpush1.bf16.msra.mxu0 %v10615_v32  ;;  %5932 = vmatprep.mubr.bf16.mxu0 %v5717_v0 }
 0x8e4   : > { %5918 = vmatprep.subr.bf16.mxu0 %v10620_v26 }
 0x8e5   : > { %6478 = vmatpush1.bf16.msra.mxu1 %v10675_v60  ;;  %v10687_v60 = vld [vmem:[#allocation7 + $0xc00] ss:$8 sps:$4 sm:$0xff]  }
 0x8e6   : > { %6479 = vmatprep.subr.bf16.mxu1 %v10680_v63 }
 0x8e7   : > { %5919 = vmatpush1.bf16.msra.mxu0 %v10618_v37 }
 0x8e8   : > { %5920 = vmatprep.subr.bf16.mxu0 %v10623_v55 }
 0x8e9   : > { %6480 = vmatpush1.bf16.msra.mxu1 %v10678_v14 }
 0x8ea   : > { %6481 = vmatprep.subr.bf16.mxu1 %v10683_v36 }
 0x8eb   : > { %5921 = vmatpush1.bf16.msra.mxu0 %v10621_v38 }
 0x8ec   : > { %5922 = vmatprep.subr.bf16.mxu0 %v10626_v40 }
 0x8ed   : > { %6482 = vmatpush1.bf16.msra.mxu1 %v10681_v49  ;;  %v10692_v49 = vld [vmem:[#allocation7 + $0xc14] ss:$8 sps:$4 sm:$0xff]  }
 0x8ee   : > { %6483 = vmatprep.subr.bf16.mxu1 %v10686_v28 }
 0x8ef   : > { %5923 = vmatpush1.bf16.msra.mxu0 %v10624_v17 }
 0x8f0   : > { %5924 = vmatprep.subr.bf16.mxu0 %v10629_v43 }
 0x8f1   : > { %6484 = vmatpush1.bf16.msra.mxu1 %v10684_v1 }
 0x8f2   : > { %6696 = vmatprep.subr.bf16.mxu1 %v10689_v47 }
 0x8f3   : > { %5925 = vmatpush1.bf16.msra.mxu0 %v10627_v9 }
 0x8f4   : > { %5926 = vmatprep.subr.bf16.mxu0 %v10632_v45 }
 0x8f7   : > { %5927 = vmatpush1.bf16.msra.mxu0 %v10630_v46 }
 0x8f8   : > { %5928 = vmatprep.subr.bf16.mxu0 %v10635_v48 }
 0x8fb   : > { %5929 = vmatpush1.bf16.msra.mxu0 %v10633_v53 }
 0x8fc   : > { %5930 = vmatprep.subr.bf16.mxu0 %v10638_v18 }
 0x8ff   : > { %5931 = vmatpush1.bf16.msra.mxu0 %v10636_v41 }
 0x902   : > { %5933 = vmatmul.mubr.bf16.vlgmr.msra.gmra.mrb[100].mxu0 %v5714_v54 }
 0x903   : > { %5942 = vmatprep.mubr.bf16.mxu0 %v5721_v57 }
 0x90a   : > { %5943 = vmatmul.mubr.bf16.gmra.mrb[104].mxu0 %v5719_v56 }
 0x90b   : > { %5952 = vmatprep.mubr.bf16.mxu0 %v5725_v58 }
 0x912   : > { %5953 = vmatmul.mubr.bf16.gmra.mrb[108].mxu0 %v5723_v15 }
 0x913   : > { %5962 = vmatprep.mubr.bf16.mxu0 %v5729_v42 }
 0x91a   : > { %5963 = vmatmul.mubr.bf16.gmra.mrb[112].mxu0 %v5727_v44 }
 0x91b   : > { %5972 = vmatprep.mubr.bf16.mxu0 %v5728_v7 }
 0x922   : > { %5973 = vmatmul.mubr.bf16.gmra.mrb[116].mxu0 %v5726_v39 }
 0x9d5   : > { %v5934_v5 = vpop.f32.mrb[100].mxu0 }
 0x9d6   : > { %v6014_v29 = vadd.f32 %v12242_v3, %v5934_v5  ;;  %v5936_v6 = vpop.f32.mrb[101].mxu0 }
 0x9d7   : > { %v6015_v30 = vadd.f32 %v12245_v4, %v5936_v6  ;;  %v5938_v8 = vpop.f32.mrb[102].mxu0  ;;  %v10690_v6 = vld [vmem:[#allocation7 + $0xc10] ss:$8 sps:$4 sm:$0xff]  }
 0x9d8   : > { %v6034_v27 = vmax.f32 %v6014_v29, 0.0  ;;  %v6016_v51 = vadd.f32 %v12242_v3, %v5938_v8  ;;  %v5940_v12 = vpop.f32.mrb[103].mxu0 }
 0x9d9   : > { %v6035_v13 = vmax.f32 %v6015_v30, 0.0  ;;  %v6017_v2 = vadd.f32 %v12245_v4, %v5940_v12 }
 0x9da   : > { %v6036_v31 = vmax.f32 %v6016_v51, 0.0 }
 0x9db   : > { %v6037_v32 = vmax.f32 %v6017_v2, 0.0 }
 0x9dc   : > { %v12251_v33 = vpack.c.bf16 %v6036_v31, %v6034_v27 }
 0x9dd   : > { %v5944_v26 = vpop.f32.mrb[104].mxu0  ;;  %v12253_v0 = vpack.c.bf16 %v6037_v32, %v6035_v13  ;;  %v10695_v13 = vld [vmem:[#allocation7 + $0xc24] ss:$8 sps:$4 sm:$0xff]  }
 0x9de   : > { %v6018_v37 = vadd.f32 %v12242_v3, %v5944_v26  ;;  %v5946_v55 = vpop.f32.mrb[105].mxu0  ;;  %v6208_v18 = vshll.u32 %v12251_v33, 16  ;;  %v6206_v20 = vshrl.u32 %v12251_v33, 16 }
 0x9df   : > { %v6019_v38 = vadd.f32 %v12245_v4, %v5946_v55  ;;  %v5948_v40 = vpop.f32.mrb[106].mxu0  ;;  %v6220_v48 = vshll.u32 %v12253_v0, 16  ;;  %v6218_v7 = vshrl.u32 %v12253_v0, 16 }
 0x9e0   : > { %v6038_v17 = vmax.f32 %v6018_v37, 0.0  ;;  %v6020_v43 = vadd.f32 %v12242_v3, %v5948_v40  ;;  %v5950_v9 = vpop.f32.mrb[107].mxu0  ;;  %v6210_v62 = vrot.slane %v6208_v18, 1 }
 0x9e1   : > { %v6039_v45 = vmax.f32 %v6019_v38, 0.0  ;;  %v6021_v46 = vadd.f32 %v12245_v4, %v5950_v9  ;;  %v6222_v54 = vrot.slane %v6220_v48, 1  ;;  %v10693_v9 = vld [vmem:[#allocation7 + $0xc20] ss:$8 sps:$4 sm:$0xff]  }
 0x9e2   : > { %v6040_v53 = vmax.f32 %v6020_v43, 0.0  ;;  %v6211_v63 = vor.u32 %v6210_v62, %v6206_v20  ;;  %v10696_v62 = vld [vmem:[#allocation7 + $0xc30] ss:$8 sps:$4 sm:$0xff]  }
 0x9e3   : > { %v6041_v41 = vmax.f32 %v6021_v46, 0.0  ;;  %v6223_v11 = vor.u32 %v6222_v54, %v6218_v7 }
 0x9e4   : > { %v12261_v50 = vpack.c.bf16 %v6040_v53, %v6038_v17  ;;  %v10698_v53 = vld [vmem:[#allocation7 + $0xc34] ss:$8 sps:$4 sm:$0xff]  }
 0x9e5   : > { %v5954_v52 = vpop.f32.mrb[108].mxu0  ;;  %v12263_v19 = vpack.c.bf16 %v6041_v41, %v6039_v45 }
 0x9e6   : > { %v6022_v57 = vadd.f32 %v12242_v3, %v5954_v52  ;;  %v5956_v24 = vpop.f32.mrb[109].mxu0  ;;  %v6213_v56 = vshll.u32 %v12261_v50, 16  ;;  %v6229_v26 = vshrl.u32 %v12261_v50, 16 }
 0x9e7   : > { %v6023_v58 = vadd.f32 %v12245_v4, %v5956_v24  ;;  %v5958_v35 = vpop.f32.mrb[110].mxu0  ;;  %v6225_v15 = vshll.u32 %v12263_v19, 16  ;;  %v6237_v51 = vshrl.u32 %v12263_v19, 16 }
 0x9e8   : > { %v6042_v42 = vmax.f32 %v6022_v57, 0.0  ;;  %v6024_v39 = vadd.f32 %v12242_v3, %v5958_v35  ;;  %v5960_v44 = vpop.f32.mrb[111].mxu0  ;;  %v6215_v22 = vrot.slane %v6213_v56, 1 }
 0x9e9   : > { %v6043_v16 = vmax.f32 %v6023_v58, 0.0  ;;  %v6025_v10 = vadd.f32 %v12245_v4, %v5960_v44  ;;  %v6227_v59 = vrot.slane %v6225_v15, 1 }
 0x9ea   : > { %v6044_v61 = vmax.f32 %v6024_v39, 0.0  ;;  %v6216_v28 = vsel %vm492_vm0, %v6211_v63, %v6215_v22  ;;  %v6231_v45 = vor.u32 %v6229_v26, %v6215_v22  ;;  %v10699_v63 = vld [vmem:[#allocation7 + $0xc40] ss:$8 sps:$4 sm:$0xff]  }
 0x9eb   : > { %v6045_v14 = vmax.f32 %v6025_v10, 0.0  ;;  %v6228_v36 = vsel %vm492_vm0, %v6223_v11, %v6227_v59  ;;  %v6239_v40 = vor.u32 %v6237_v51, %v6227_v59 }
 0x9ec   : > { %6485 = vmatprep.mubr.bf16.mxu1 %v6228_v36  ;;  %v12275_v1 = vpack.c.bf16 %v6044_v61, %v6042_v42  ;;  %v10701_v42 = vld [vmem:[#allocation7 + $0xc44] ss:$8 sps:$4 sm:$0xff]  }
 0x9ed   : > { %v5964_v47 = vpop.f32.mrb[112].mxu0  ;;  %6486 = vmatmul.mubr.bf16.vlgmr.msra.gmra.mrb[60].mxu1 %v6216_v28  ;;  %v12277_v34 = vpack.c.bf16 %v6045_v14, %v6043_v16  ;;  %v10704_v28 = vld [vmem:[#allocation7 + $0xc54] ss:$8 sps:$4 sm:$0xff]  }
 0x9ee   : > { %v6026_v5 = vadd.f32 %v12242_v3, %v5964_v47  ;;  %v5966_v29 = vpop.f32.mrb[113].mxu0  ;;  %6697 = vmatpush1.bf16.msra.mxu1 %v10687_v60  ;;  %v6233_v30 = vshll.u32 %v12275_v1, 16  ;;  %v6245_v22 = vshrl.u32 %v12275_v1, 16  ;;  %v10702_v47 = vld [vmem:[#allocation7 + $0xc50] ss:$8 sps:$4 sm:$0xff]  }
 0x9ef   : > { %v6027_v8 = vadd.f32 %v12245_v4, %v5966_v29  ;;  %v5968_v27 = vpop.f32.mrb[114].mxu0  ;;  %6698 = vmatprep.subr.bf16.mxu1 %v10692_v49  ;;  %v6241_v12 = vshll.u32 %v12277_v34, 16  ;;  %v6253_v7 = vshrl.u32 %v12277_v34, 16 }
 0x9f0   : > { %v6046_v2 = vmax.f32 %v6026_v5, 0.0  ;;  %v6028_v31 = vadd.f32 %v12242_v3, %v5968_v27  ;;  %v5970_v32 = vpop.f32.mrb[115].mxu0  ;;  %v6235_v37 = vrot.slane %v6233_v30, 1  ;;  %v10705_v5 = vld [vmem:[#allocation7 + $0xc60] ss:$8 sps:$4 sm:$0xff]  }
 0x9f1   : > { %v6047_v55 = vmax.f32 %v6027_v8, 0.0  ;;  %v6029_v38 = vadd.f32 %v12245_v4, %v5970_v32  ;;  %v6243_v17 = vrot.slane %v6241_v12, 1  ;;  %v10708_v12 = vld [vmem:[#allocation7 + $0xc70] ss:$8 sps:$4 sm:$0xff]  }
 0x9f2   : > { %v6048_v43 = vmax.f32 %v6028_v31, 0.0  ;;  %6699 = vmatpush1.bf16.msra.mxu1 %v10690_v6  ;;  %v6236_v18 = vsel %vm492_vm0, %v6231_v45, %v6235_v37  ;;  %v6247_v14 = vor.u32 %v6245_v22, %v6235_v37  ;;  %v10710_v6 = vld [vmem:[#allocation7 + $0xc74] ss:$8 sps:$4 sm:$0xff]   ;;  %v10713_v31 = vld [vmem:[#allocation7 + $0xc84] ss:$8 sps:$4 sm:$0xff]  }
 0x9f3   : > { %v6049_v46 = vmax.f32 %v6029_v38, 0.0  ;;  %v6244_v48 = vsel %vm492_vm0, %v6239_v40, %v6243_v17  ;;  %6700 = vmatprep.subr.bf16.mxu1 %v10695_v13  ;;  %v6255_v59 = vor.u32 %v6253_v7, %v6243_v17  ;;  %v10711_v17 = vld [vmem:[#allocation7 + $0xc80] ss:$8 sps:$4 sm:$0xff]   ;;  %v10716_v45 = vld [vmem:[#allocation7 + $0xc94] ss:$8 sps:$4 sm:$0xff]  }
 0x9f4   : > { %6495 = vmatprep.mubr.bf16.mxu1 %v6244_v48  ;;  %v12289_v41 = vpack.c.bf16 %v6048_v43, %v6046_v2  ;;  %v10714_v48 = vld [vmem:[#allocation7 + $0xc90] ss:$8 sps:$4 sm:$0xff]   ;;  %v10735_v22 = vld [vmem:[#allocation7 + $0xe00] ss:$8 sps:$4 sm:$0xff]  }
 0x9f5   : > { %v5974_v52 = vpop.f32.mrb[116].mxu0  ;;  %6496 = vmatmul.mubr.bf16.gmra.mrb[64].mxu1 %v6236_v18  ;;  %v12291_v54 = vpack.c.bf16 %v6049_v46, %v6047_v55  ;;  %v10726_v7 = vld [vmem:[#allocation7 + $0xcd0] ss:$8 sps:$4 sm:$0xff]  }
 0x9f6   : > { %v6030_v57 = vadd.f32 %v12242_v3, %v5974_v52  ;;  %v5976_v24 = vpop.f32.mrb[117].mxu0  ;;  %6701 = vmatpush1.bf16.msra.mxu1 %v10693_v9  ;;  %v6249_v56 = vshll.u32 %v12289_v41, 16  ;;  %v6261_v32 = vshrl.u32 %v12289_v41, 16  ;;  %v10717_v52 = vld [vmem:[#allocation7 + $0xca0] ss:$8 sps:$4 sm:$0xff]  }
 0x9f7   : > { %v6031_v58 = vadd.f32 %v12245_v4, %v5976_v24  ;;  %v5978_v35 = vpop.f32.mrb[118].mxu0  ;;  %6702 = vmatprep.subr.bf16.mxu1 %v10698_v53  ;;  %v6257_v15 = vshll.u32 %v12291_v54, 16  ;;  %v6269_v13 = vshrl.u32 %v12291_v54, 16  ;;  %v10719_v53 = vld [vmem:[#allocation7 + $0xca4] ss:$8 sps:$4 sm:$0xff]  }
 0x9f8   : > { %v6050_v39 = vmax.f32 %v6030_v57, 0.0  ;;  %v6032_v44 = vadd.f32 %v12242_v3, %v5978_v35  ;;  %v5980_v20 = vpop.f32.mrb[119].mxu0  ;;  %v6251_v16 = vrot.slane %v6249_v56, 1  ;;  %v10722_v24 = vld [vmem:[#allocation7 + $0xcb4] ss:$8 sps:$4 sm:$0xff]  }
 0x9f9   : > { %v6051_v10 = vmax.f32 %v6031_v58, 0.0  ;;  %v6033_v11 = vadd.f32 %v12245_v4, %v5980_v20  ;;  %v6259_v61 = vrot.slane %v6257_v15, 1  ;;  %v10707_v4 = vld [vmem:[#allocation7 + $0xc64] ss:$8 sps:$4 sm:$0xff]   ;;  %v10723_v58 = vld [vmem:[#allocation7 + $0xcc0] ss:$8 sps:$4 sm:$0xff]  }
 0x9fa   : > { %v6052_v60 = vmax.f32 %v6032_v44, 0.0  ;;  %6703 = vmatpush1.bf16.msra.mxu1 %v10696_v62  ;;  %v6252_v3 = vsel %vm492_vm0, %v6247_v14, %v6251_v16  ;;  %v6263_v40 = vor.u32 %v6261_v32, %v6251_v16  ;;  %v10720_v62 = vld [vmem:[#allocation7 + $0xcb0] ss:$8 sps:$4 sm:$0xff]   ;;  %v10725_v56 = vld [vmem:[#allocation7 + $0xcc4] ss:$8 sps:$4 sm:$0xff]  }
 0x9fb   : > { %v6053_v36 = vmax.f32 %v6033_v11, 0.0  ;;  %v6260_v49 = vsel %vm492_vm0, %v6255_v59, %v6259_v61  ;;  %6704 = vmatprep.subr.bf16.mxu1 %v10701_v42  ;;  %v6271_v37 = vor.u32 %v6269_v13, %v6259_v61  ;;  %v10728_v35 = vld [vmem:[#allocation7 + $0xcd4] ss:$8 sps:$4 sm:$0xff]   ;;  %v10731_v15 = vld [vmem:[#allocation7 + $0xce4] ss:$8 sps:$4 sm:$0xff]  }
 0x9fc   : > { %6072 = vst [vmem:[#allocation2 + $0x90] sm:$0x3f] %v6052_v60  ;;  %6505 = vmatprep.mubr.bf16.mxu1 %v6260_v49  ;;  %v10729_v42 = vld [vmem:[#allocation7 + $0xce0] ss:$8 sps:$4 sm:$0xff]   ;;  %v10732_v44 = vld [vmem:[#allocation7 + $0xcf0] ss:$8 sps:$4 sm:$0xff]  }
 0x9fd   : > { %6073 = vst [vmem:[#allocation2 + $0x98] sm:$0x3f] %v6053_v36  ;;  %6506 = vmatmul.mubr.bf16.gmra.mrb[68].mxu1 %v6252_v3  ;;  %v10737_v20 = vld [vmem:[#allocation7 + $0xe04] ss:$8 sps:$4 sm:$0xff]   ;;  %v10740_v16 = vld [vmem:[#allocation7 + $0xe14] ss:$8 sps:$4 sm:$0xff]  }
 0x9fe   : > { %6705 = vmatpush1.bf16.msra.mxu1 %v10699_v63  ;;  %v10743_v11 = vld [vmem:[#allocation7 + $0xe24] ss:$8 sps:$4 sm:$0xff]   ;;  %v10741_v59 = vld [vmem:[#allocation7 + $0xe20] ss:$8 sps:$4 sm:$0xff]   ;;  %v10746_v61 = vld [vmem:[#allocation7 + $0xe34] ss:$8 sps:$4 sm:$0xff]  }
 0x9ff   : > { %6706 = vmatprep.subr.bf16.mxu1 %v10704_v28  ;;  %v10744_v60 = vld [vmem:[#allocation7 + $0xe30] ss:$8 sps:$4 sm:$0xff]   ;;  %v10749_v63 = vld [vmem:[#allocation7 + $0xe44] ss:$8 sps:$4 sm:$0xff]   ;;  %v10747_v14 = vld [vmem:[#allocation7 + $0xe40] ss:$8 sps:$4 sm:$0xff]  }
 0xa00   : > { %v10752_v36 = vld [vmem:[#allocation7 + $0xe54] ss:$8 sps:$4 sm:$0xff]   ;;  %v10750_v49 = vld [vmem:[#allocation7 + $0xe50] ss:$8 sps:$4 sm:$0xff]   ;;  %v10755_v28 = vld [vmem:[#allocation7 + $0xe64] ss:$8 sps:$4 sm:$0xff]  }
 0xa01   : > { %v10753_v3 = vld [vmem:[#allocation7 + $0xe60] ss:$8 sps:$4 sm:$0xff]   ;;  %v10762_v13 = vld [vmem:[#allocation7 + $0xe90] ss:$8 sps:$4 sm:$0xff]   ;;  %v10770_v32 = vld [vmem:[#allocation7 + $0xeb4] ss:$8 sps:$4 sm:$0xff]  }
 0xa02   : > { %6707 = vmatpush1.bf16.msra.mxu1 %v10702_v47  ;;  %v10758_v47 = vld [vmem:[#allocation7 + $0xe74] ss:$8 sps:$4 sm:$0xff]  }
 0xa03   : > { %6708 = vmatprep.subr.bf16.mxu1 %v10707_v4  ;;  %v6092_v29 = vld [vmem:[#allocation2 + $0x90] sm:$0xff] }
 0xa04   : > { %v6093_v30 = vld [vmem:[#allocation2 + $0x98] sm:$0xff]  ;;  %v12303_v8 = vpack.c.bf16 %v6092_v29, %v6050_v39  ;;  %v6793_v29 = vrot.slane %v12263_v19, 1 }
 0xa05   : > { %v12305_v27 = vpack.c.bf16 %v6093_v30, %v6051_v10  ;;  %v10734_v39 = vld [vmem:[#allocation7 + $0xcf4] ss:$8 sps:$4 sm:$0xff]   ;;  %v10738_v10 = vld [vmem:[#allocation7 + $0xe10] ss:$8 sps:$4 sm:$0xff]   ;;  %v6792_v30 = vrot.slane %v12253_v0, 1 }
 0xa06   : > { %v6265_v51 = vshll.u32 %v12303_v8, 16  ;;  %6709 = vmatpush1.bf16.msra.mxu1 %v10705_v5  ;;  %v6277_v18 = vshrl.u32 %v12303_v8, 16  ;;  %v10756_v4 = vld [vmem:[#allocation7 + $0xe70] ss:$8 sps:$4 sm:$0xff]   ;;  %v10761_v5 = vld [vmem:[#allocation7 + $0xe84] ss:$8 sps:$4 sm:$0xff]  }
 0xa07   : > { %v6273_v2 = vshll.u32 %v12305_v27, 16  ;;  %6710 = vmatprep.subr.bf16.mxu1 %v10710_v6  ;;  %v6280_v38 = vshrl.u32 %v12305_v27, 16  ;;  %v10759_v6 = vld [vmem:[#allocation7 + $0xe80] ss:$8 sps:$4 sm:$0xff]  }
 0xa08   : > { %v6267_v26 = vrot.slane %v6265_v51, 1  ;;  %v10764_v51 = vld [vmem:[#allocation7 + $0xe94] ss:$8 sps:$4 sm:$0xff]  }
 0xa09   : > { %v6275_v55 = vrot.slane %v6273_v2, 1  ;;  %v10767_v2 = vld [vmem:[#allocation7 + $0xea4] ss:$8 sps:$4 sm:$0xff]  }
 0xa0a   : > { %6711 = vmatpush1.bf16.msra.mxu1 %v10708_v12  ;;  %v6268_v46 = vsel %vm492_vm0, %v6263_v40, %v6267_v26  ;;  %v6279_v57 = vor.u32 %v6277_v18, %v6267_v26  ;;  %v6794_v12 = vsel %vm764_vm2, %v6792_v30, %v6793_v29  ;;  %v10773_v26 = vld [vmem:[#allocation7 + $0xec4] ss:$8 sps:$4 sm:$0xff]   ;;  %v10777_v40 = vld [vmem:[#allocation7 + $0xee0] ss:$8 sps:$4 sm:$0xff]   ;;  %v6795_v18 = vrot.slane %v12275_v1, 1 }
 0xa0b   : > { %v6276_v43 = vsel %vm492_vm0, %v6271_v37, %v6275_v55  ;;  %v6282_v9 = vor.u32 %v6280_v38, %v6275_v55  ;;  %6712 = vmatprep.subr.bf16.mxu1 %v10713_v31  ;;  %v10765_v31 = vld [vmem:[#allocation7 + $0xea0] ss:$8 sps:$4 sm:$0xff]   ;;  %v10776_v37 = vld [vmem:[#allocation7 + $0xed4] ss:$8 sps:$4 sm:$0xff]   ;;  %v10774_v55 = vld [vmem:[#allocation7 + $0xed0] ss:$8 sps:$4 sm:$0xff]  }
 0xa0c   : > { %6515 = vmatprep.mubr.bf16.mxu1 %v6276_v43  ;;  %v10779_v38 = vld [vmem:[#allocation7 + $0xee4] ss:$8 sps:$4 sm:$0xff]   ;;  %v10780_v43 = vld [vmem:[#allocation7 + $0xef0] ss:$8 sps:$4 sm:$0xff]  }
 0xa0d   : > { %6516 = vmatmul.mubr.bf16.gmra.mrb[72].mxu1 %v6268_v46  ;;  %v6789_v46 = vrot.slane %v12251_v33, 1 }
 0xa0e   : > { %6525 = vmatprep.mubr.bf16.mxu1 %v6282_v9  ;;  %6713 = vmatpush1.bf16.msra.mxu1 %v10711_v17  ;;  %v10782_v17 = vld [vmem:[#allocation7 + $0xef4] ss:$8 sps:$4 sm:$0xff]   ;;  %v6790_v9 = vrot.slane %v12261_v50, 1 }
 0xa0f   : > { %6714 = vmatprep.subr.bf16.mxu1 %v10716_v45  ;;  %v6797_v45 = vrot.slane %v12277_v34, 1 }
 0xa12   : > { %6715 = vmatpush1.bf16.msra.mxu1 %v10714_v48  ;;  %v6791_v48 = vsel %vm764_vm2, %v6789_v46, %v6790_v9 }
 0xa13   : > { %6716 = vmatprep.subr.bf16.mxu1 %v10719_v53  ;;  %v6798_v53 = vsel %vm764_vm2, %v6793_v29, %v6797_v45 }
 0xa15   : > { %6526 = vmatmul.mubr.bf16.gmra.mrb[76].mxu1 %v6279_v57  ;;  %v6796_v57 = vsel %vm764_vm2, %v6790_v9, %v6795_v18 }
 0xa16   : > { %6728 = vmatprep.mubr.bf16.mxu1 %v12253_v0  ;;  %6717 = vmatpush1.bf16.msra.mxu1 %v10717_v52  ;;  %v10771_v0 = vld [vmem:[#allocation7 + $0xec0] ss:$8 sps:$4 sm:$0xff]   ;;  %v6801_v52 = vrot.slane %v12291_v54, 1 }
 0xa17   : > { %6718 = vmatprep.subr.bf16.mxu1 %v10722_v24 }
 0xa1a   : > { %6719 = vmatpush1.bf16.msra.mxu1 %v10720_v62 }
 0xa1b   : > { %6720 = vmatprep.subr.bf16.mxu1 %v10725_v56  ;;  %v6204_v56 = vld [vmem:[#allocation9 + $0x5] ss:$8 sm:$0x3] }
 0xa1e   : > { %6721 = vmatpush1.bf16.msra.mxu1 %v10723_v58  ;;  %v7084_v58 = vrot.slane %v6204_v56, %v11710_v23 }
 0xa1f   : > { %6722 = vmatprep.subr.bf16.mxu1 %v10728_v35 }
 0xa22   : > { %6723 = vmatpush1.bf16.msra.mxu1 %v10726_v7 }
 0xa23   : > { %6724 = vmatprep.subr.bf16.mxu1 %v10731_v15 }
 0xa26   : > { %6725 = vmatpush1.bf16.msra.mxu1 %v10729_v42 }
 0xa27   : > { %6726 = vmatprep.subr.bf16.mxu1 %v10734_v39 }
 0xa2a   : > { %6727 = vmatpush1.bf16.msra.mxu1 %v10732_v44 }
 0xa2b   : > { %6977 = vmatprep.subr.bf16.mxu1 %v10737_v20 }
 0xa2d   : > { %6729 = vmatmul.mubr.bf16.vlgmr.msra.gmra.mrb[60].mxu1 %v12251_v33  ;;  %v6805_v33 = vrot.slane %v12305_v27, 1 }
 0xa2e   : > { %6738 = vmatprep.mubr.bf16.mxu1 %v12263_v19  ;;  %6978 = vmatpush1.bf16.msra.mxu1 %v10735_v22  ;;  %v10768_v19 = vld [vmem:[#allocation7 + $0xeb0] ss:$8 sps:$4 sm:$0xff]  }
 0xa2f   : > { %6979 = vmatprep.subr.bf16.mxu1 %v10740_v16  ;;  %v6806_v62 = vsel %vm764_vm2, %v6801_v52, %v6805_v33 }
 0xa32   : > { %6980 = vmatpush1.bf16.msra.mxu1 %v10738_v10 }
 0xa33   : > { %6981 = vmatprep.subr.bf16.mxu1 %v10743_v11 }
 0xa35   : > { %6739 = vmatmul.mubr.bf16.gmra.mrb[64].mxu1 %v12261_v50  ;;  %v6802_v50 = vsel %vm764_vm2, %v6797_v45, %v6801_v52 }
 0xa36   : > { %6748 = vmatprep.mubr.bf16.mxu1 %v12277_v34  ;;  %6982 = vmatpush1.bf16.msra.mxu1 %v10741_v59  ;;  %v6799_v34 = vrot.slane %v12289_v41, 1 }
 0xa37   : > { %6983 = vmatprep.subr.bf16.mxu1 %v10746_v61 }
 0xa38   : > { %v6800_v24 = vsel %vm764_vm2, %v6795_v18, %v6799_v34 }
 0xa3a   : > { %6984 = vmatpush1.bf16.msra.mxu1 %v10744_v60 }
 0xa3b   : > { %6985 = vmatprep.subr.bf16.mxu1 %v10749_v63 }
 0xa3d   : > { %6749 = vmatmul.mubr.bf16.gmra.mrb[68].mxu1 %v12275_v1  ;;  %v6803_v1 = vrot.slane %v12303_v8, 1 }
 0xa3e   : > { %6758 = vmatprep.mubr.bf16.mxu1 %v12291_v54  ;;  %6986 = vmatpush1.bf16.msra.mxu1 %v10747_v14 }
 0xa3f   : > { %6987 = vmatprep.subr.bf16.mxu1 %v10752_v36  ;;  %v6804_v54 = vsel %vm764_vm2, %v6799_v34, %v6803_v1 }
 0xa42   : > { %6988 = vmatpush1.bf16.msra.mxu1 %v10750_v49 }
 0xa43   : > { %6989 = vmatprep.subr.bf16.mxu1 %v10755_v28 }
 0xa45   : > { %6759 = vmatmul.mubr.bf16.gmra.mrb[72].mxu1 %v12289_v41  ;;  %v7088_v41 = vrot.slane %v6204_v56, %v11712_v25 }
 0xa46   : > { %6768 = vmatprep.mubr.bf16.mxu1 %v12305_v27  ;;  %6990 = vmatpush1.bf16.msra.mxu1 %v10753_v3 }
 0xa47   : > { %6991 = vmatprep.subr.bf16.mxu1 %v10758_v47 }
 0xa4a   : > { %6992 = vmatpush1.bf16.msra.mxu1 %v10756_v4 }
 0xa4b   : > { %6993 = vmatprep.subr.bf16.mxu1 %v10761_v5 }
 0xa4d   : > { %6769 = vmatmul.mubr.bf16.gmra.mrb[76].mxu1 %v12303_v8 }
 0xa4e   : > { %6994 = vmatpush1.bf16.msra.mxu1 %v10759_v6  ;;  %7009 = vmatprep.mubr.bf16.mxu1 %v6794_v12 }
 0xa4f   : > { %6995 = vmatprep.subr.bf16.mxu1 %v10764_v51 }
 0xa52   : > { %6996 = vmatpush1.bf16.msra.mxu1 %v10762_v13 }
 0xa53   : > { %6997 = vmatprep.subr.bf16.mxu1 %v10767_v2 }
 0xa56   : > { %6998 = vmatpush1.bf16.msra.mxu1 %v10765_v31 }
 0xa57   : > { %6999 = vmatprep.subr.bf16.mxu1 %v10770_v32 }
 0xa5a   : > { %7000 = vmatpush1.bf16.msra.mxu1 %v10768_v19 }
 0xa5b   : > { %7001 = vmatprep.subr.bf16.mxu1 %v10773_v26 }
 0xa5e   : > { %7002 = vmatpush1.bf16.msra.mxu1 %v10771_v0 }
 0xa5f   : > { %7003 = vmatprep.subr.bf16.mxu1 %v10776_v37 }
 0xa62   : > { %7004 = vmatpush1.bf16.msra.mxu1 %v10774_v55 }
 0xa63   : > { %7005 = vmatprep.subr.bf16.mxu1 %v10779_v38 }
 0xa66   : > { %7006 = vmatpush1.bf16.msra.mxu1 %v10777_v40 }
 0xa67   : > { %7007 = vmatprep.subr.bf16.mxu1 %v10782_v17 }
 0xa6a   : > { %7008 = vmatpush1.bf16.msra.mxu1 %v10780_v43 }
 0xa6d   : > { %7010 = vmatmul.mubr.bf16.vlgmr.msra.gmra.mrb[60].mxu1 %v6791_v48 }
 0xa6e   : > { %7019 = vmatprep.mubr.bf16.mxu1 %v6798_v53 }
 0xa75   : > { %7020 = vmatmul.mubr.bf16.gmra.mrb[64].mxu1 %v6796_v57 }
 0xa76   : > { %7029 = vmatprep.mubr.bf16.mxu1 %v6802_v50 }
 0xa7d   : > { %7030 = vmatmul.mubr.bf16.gmra.mrb[68].mxu1 %v6800_v24 }
 0xa7e   : > { %7039 = vmatprep.mubr.bf16.mxu1 %v6806_v62 }
 0xa85   : > { %7040 = vmatmul.mubr.bf16.gmra.mrb[72].mxu1 %v6804_v54 }
 0xa86   : > { %7049 = vmatprep.mubr.bf16.mxu1 %v6805_v33 }
 0xa8d   : > { %7050 = vmatmul.mubr.bf16.gmra.mrb[76].mxu1 %v6803_v1 }
 0xb40   : > { %v7011_v35 = vpop.f32.mrb[60].mxu1 }
 0xb41   : > { %v7091_v27 = vadd.f32 %v7084_v58, %v7011_v35  ;;  %v7013_v7 = vpop.f32.mrb[61].mxu1 }
 0xb42   : > { %v7092_v15 = vadd.f32 %v7088_v41, %v7013_v7  ;;  %v7015_v42 = vpop.f32.mrb[62].mxu1 }
 0xb43   : > { %v7111_v39 = vmax.f32 %v7091_v27, 0.0  ;;  %v7017_v44 = vpop.f32.mrb[63].mxu1 }
 0xb44   : > { %v7112_v20 = vmax.f32 %v7092_v15, 0.0 }
 0xb45   : > { %7131 = vst [vmem:[#allocation3] sm:$0xff] %v7111_v39 }
 0xb46   : > { %7132 = vst [vmem:[#allocation3 + $0x8] sm:$0xff] %v7112_v20 }
 0xb48   : > { %v7021_v8 = vpop.f32.mrb[64].mxu1 }
 0xb49   : > { %v7023_v22 = vpop.f32.mrb[65].mxu1 }
 0xb4a   : > { %v7025_v16 = vpop.f32.mrb[66].mxu1 }
 0xb4b   : > { %v7027_v23 = vpop.f32.mrb[67].mxu1 }
 0xb4d   : > { %v7151_v25 = vld [vmem:[#allocation3] ss:$8 sm:$0x3]  ;;  %v7159_v11 = vld [vmem:[#allocation3 + $0x1] ss:$8 sm:$0x3] }
 0xb4e   : > { %7156 = vst.msk [vmem:[#allocation4] ss:$8 sm:$0x3] %vm12346_vm4, %v7151_v25  ;;  %7161 = vst.msk [vmem:[#allocation4 + $0x10] ss:$8 sm:$0x3] %vm12346_vm4, %v7159_v11 }
 0xb4f   : > { %v7164_v59 = vld [vmem:[#allocation3 + $0x2] ss:$8 sm:$0x3] }
 0xb50   : > { %7166 = vst.msk [vmem:[#allocation4 + $0x20] ss:$8 sm:$0x3] %vm12346_vm4, %v7164_v59  ;;  %v7031_v61 = vpop.f32.mrb[68].mxu1 }
 0xb51   : > { %v7033_v60 = vpop.f32.mrb[69].mxu1 }
 0xb52   : > { %v7035_v63 = vpop.f32.mrb[70].mxu1 }
 0xb53   : > { %v7101_v21 = vadd.f32 %v7084_v58, %v7035_v63  ;;  %v7037_v14 = vpop.f32.mrb[71].mxu1 }
 0xb54   : > { %v7102_v36 = vadd.f32 %v7088_v41, %v7037_v14 }
 0xb55   : > { %v7121_v49 = vmax.f32 %v7101_v21, 0.0 }
 0xb56   : > { %v7122_v28 = vmax.f32 %v7102_v36, 0.0 }
 0xb57   : > { %7141 = vst [vmem:[#allocation3 + $0x50] sm:$0xff] %v7121_v49 }
 0xb58   : > { %7142 = vst [vmem:[#allocation3 + $0x58] sm:$0xff] %v7122_v28  ;;  %v7041_v3 = vpop.f32.mrb[72].mxu1 }
 0xb59   : > { %v7043_v47 = vpop.f32.mrb[73].mxu1 }
 0xb5a   : > { %v7045_v4 = vpop.f32.mrb[74].mxu1 }
 0xb5b   : > { %v7047_v5 = vpop.f32.mrb[75].mxu1 }
 0xb5f   : > { %v7169_v29 = vld [vmem:[#allocation3 + $0x50] ss:$8 sm:$0x3]  ;;  %v7174_v6 = vld [vmem:[#allocation3 + $0x51] ss:$8 sm:$0x3] }
 0xb60   : > { %7171 = vst.msk [vmem:[#allocation4 + $0x1] ss:$8 sm:$0x3] %vm12346_vm4, %v7169_v29  ;;  %7176 = vst.msk [vmem:[#allocation4 + $0x11] ss:$8 sm:$0x3] %vm12346_vm4, %v7174_v6 }
 0xb61   : > { %v7179_v30 = vld [vmem:[#allocation3 + $0x52] ss:$8 sm:$0x3]  ;;  %v7051_v51 = vpop.f32.mrb[76].mxu1 }
 0xb62   : > { %7181 = vst.msk [vmem:[#allocation4 + $0x21] ss:$8 sm:$0x3] %vm12346_vm4, %v7179_v30  ;;  %v7053_v12 = vpop.f32.mrb[77].mxu1 }
 0xb63   : > { %v7055_v13 = vpop.f32.mrb[78].mxu1 }
 0xb64   : > { %v7109_v2 = vadd.f32 %v7084_v58, %v7055_v13  ;;  %v7057_v31 = vpop.f32.mrb[79].mxu1 }
 0xb65   : > { %v7110_v32 = vadd.f32 %v7088_v41, %v7057_v31 }
 0xb66   : > { %v7129_v19 = vmax.f32 %v7109_v2, 0.0 }
 0xb67   : > { %v7130_v26 = vmax.f32 %v7110_v32, 0.0 }
 0xb68   : > { %7149 = vst [vmem:[#allocation3 + $0x90] sm:$0x3f] %v7129_v19 }
 0xb69   : > { %7150 = vst [vmem:[#allocation3 + $0x98] sm:$0x3f] %v7130_v26 }
 0xb6a PF: > { %v10785_v0 = vld [vmem:[%s11587_s22 + $0x4] ss:$16 sps:$4 sm:$0xff]   ;;  %v10787_v37 = vld [vmem:[%s11587_s22 + $0xc] ss:$16 sps:$4 sm:$0xff]   ;;  %v10789_v55 = vld [vmem:[%s11587_s22] ss:$16 sps:$4 sm:$0xff]  }
 0xb6b   : > { %8375 = vmatprep.subr.bf16.mxu0 %v10785_v0  ;;  %v10790_v38 = vld [vmem:[%s11587_s22 + $0x8] ss:$16 sps:$4 sm:$0xff]   ;;  %8504 = vmatprep.subr.bf16.mxu1 %v10787_v37  ;;  %v10791_v40 = vld [vmem:[%s11587_s22 + $0x24] ss:$16 sps:$4 sm:$0xff]   ;;  %v10793_v17 = vld [vmem:[%s11587_s22 + $0x2c] ss:$16 sps:$4 sm:$0xff]  }
 0xb6c   : > { %8376 = vmatpush1.bf16.msra.mxu0 %v10789_v55  ;;  %8505 = vmatpush1.bf16.msra.mxu1 %v10790_v38  ;;  %v10795_v43 = vld [vmem:[%s11587_s22 + $0x20] ss:$16 sps:$4 sm:$0xff]   ;;  %v10796_v9 = vld [vmem:[%s11587_s22 + $0x28] ss:$16 sps:$4 sm:$0xff]   ;;  %v10797_v45 = vld [vmem:[%s11587_s22 + $0x44] ss:$16 sps:$4 sm:$0xff]  }
 0xb6d   : > { %8377 = vmatprep.subr.bf16.mxu0 %v10791_v40  ;;  %8506 = vmatprep.subr.bf16.mxu1 %v10793_v17  ;;  %v10799_v46 = vld [vmem:[%s11587_s22 + $0x4c] ss:$16 sps:$4 sm:$0xff]   ;;  %v10801_v48 = vld [vmem:[%s11587_s22 + $0x40] ss:$16 sps:$4 sm:$0xff]   ;;  %v10802_v53 = vld [vmem:[%s11587_s22 + $0x48] ss:$16 sps:$4 sm:$0xff]  }
 0xb6e   : > { %v10803_v18 = vld [vmem:[%s11587_s22 + $0x64] ss:$16 sps:$4 sm:$0xff]   ;;  %v10805_v52 = vld [vmem:[%s11587_s22 + $0x6c] ss:$16 sps:$4 sm:$0xff]   ;;  %v10807_v57 = vld [vmem:[%s11587_s22 + $0x60] ss:$16 sps:$4 sm:$0xff]  }
 0xb6f   : > { %v10808_v50 = vld [vmem:[%s11587_s22 + $0x68] ss:$16 sps:$4 sm:$0xff]   ;;  %v10809_v34 = vld [vmem:[%s11587_s22 + $0x84] ss:$16 sps:$4 sm:$0xff]   ;;  %v10811_v33 = vld [vmem:[%s11587_s22 + $0x8c] ss:$16 sps:$4 sm:$0xff]  }
 0xb70   : > { %8378 = vmatpush1.bf16.msra.mxu0 %v10795_v43  ;;  %8507 = vmatpush1.bf16.msra.mxu1 %v10796_v9  ;;  %v10813_v24 = vld [vmem:[%s11587_s22 + $0x80] ss:$16 sps:$4 sm:$0xff]   ;;  %v10814_v62 = vld [vmem:[%s11587_s22 + $0x88] ss:$16 sps:$4 sm:$0xff]   ;;  %v10815_v1 = vld [vmem:[%s11587_s22 + $0xa4] ss:$16 sps:$4 sm:$0xff]  }
 0xb71   : > { %8379 = vmatprep.subr.bf16.mxu0 %v10797_v45  ;;  %8508 = vmatprep.subr.bf16.mxu1 %v10799_v46  ;;  %v10817_v54 = vld [vmem:[%s11587_s22 + $0xac] ss:$16 sps:$4 sm:$0xff]   ;;  %v10819_v56 = vld [vmem:[%s11587_s22 + $0xa0] ss:$16 sps:$4 sm:$0xff]   ;;  %v10820_v58 = vld [vmem:[%s11587_s22 + $0xa8] ss:$16 sps:$4 sm:$0xff]  }
 0xb72   : > { %v10821_v41 = vld [vmem:[%s11587_s22 + $0xc4] ss:$16 sps:$4 sm:$0xff]   ;;  %v10823_v35 = vld [vmem:[%s11587_s22 + $0xcc] ss:$16 sps:$4 sm:$0xff]   ;;  %v10825_v27 = vld [vmem:[%s11587_s22 + $0xc0] ss:$16 sps:$4 sm:$0xff]  }
 0xb73   : > { %v10826_v7 = vld [vmem:[%s11587_s22 + $0xc8] ss:$16 sps:$4 sm:$0xff]   ;;  %v10827_v15 = vld [vmem:[%s11587_s22 + $0xe4] ss:$16 sps:$4 sm:$0xff]   ;;  %v10829_v42 = vld [vmem:[%s11587_s22 + $0xec] ss:$16 sps:$4 sm:$0xff]  }
 0xb74   : > { %8380 = vmatpush1.bf16.msra.mxu0 %v10801_v48  ;;  %8509 = vmatpush1.bf16.msra.mxu1 %v10802_v53  ;;  %v10831_v39 = vld [vmem:[%s11587_s22 + $0xe0] ss:$16 sps:$4 sm:$0xff]   ;;  %v10832_v44 = vld [vmem:[%s11587_s22 + $0xe8] ss:$16 sps:$4 sm:$0xff]   ;;  %v10833_v20 = vld [vmem:[%s11587_s22 + $0x104] ss:$16 sps:$4 sm:$0xff]  }
 0xb75   : > { %8381 = vmatprep.subr.bf16.mxu0 %v10803_v18  ;;  %8510 = vmatprep.subr.bf16.mxu1 %v10805_v52  ;;  %v10835_v8 = vld [vmem:[%s11587_s22 + $0x10c] ss:$16 sps:$4 sm:$0xff]   ;;  %v10837_v22 = vld [vmem:[%s11587_s22 + $0x100] ss:$16 sps:$4 sm:$0xff]   ;;  %v10838_v16 = vld [vmem:[%s11587_s22 + $0x108] ss:$16 sps:$4 sm:$0xff]  }
 0xb76   : > { %v10839_v10 = vld [vmem:[%s11587_s22 + $0x124] ss:$16 sps:$4 sm:$0xff]   ;;  %v10841_v23 = vld [vmem:[%s11587_s22 + $0x12c] ss:$16 sps:$4 sm:$0xff]   ;;  %v10843_v25 = vld [vmem:[%s11587_s22 + $0x120] ss:$16 sps:$4 sm:$0xff]  }
 0xb77   : > { %v10844_v11 = vld [vmem:[%s11587_s22 + $0x128] ss:$16 sps:$4 sm:$0xff]   ;;  %v10845_v59 = vld [vmem:[%s11587_s22 + $0x144] ss:$16 sps:$4 sm:$0xff]   ;;  %v10847_v61 = vld [vmem:[%s11587_s22 + $0x14c] ss:$16 sps:$4 sm:$0xff]  }
 0xb78   : > { %8382 = vmatpush1.bf16.msra.mxu0 %v10807_v57  ;;  %8511 = vmatpush1.bf16.msra.mxu1 %v10808_v50  ;;  %v10849_v60 = vld [vmem:[%s11587_s22 + $0x140] ss:$16 sps:$4 sm:$0xff]   ;;  %v10850_v63 = vld [vmem:[%s11587_s22 + $0x148] ss:$16 sps:$4 sm:$0xff]   ;;  %v10851_v21 = vld [vmem:[%s11587_s22 + $0x164] ss:$16 sps:$4 sm:$0xff]  }
 0xb79   : > { %8383 = vmatprep.subr.bf16.mxu0 %v10809_v34  ;;  %8512 = vmatprep.subr.bf16.mxu1 %v10811_v33  ;;  %v10853_v14 = vld [vmem:[%s11587_s22 + $0x16c] ss:$16 sps:$4 sm:$0xff]   ;;  %v10855_v28 = vld [vmem:[%s11587_s22 + $0x160] ss:$16 sps:$4 sm:$0xff]   ;;  %v10856_v3 = vld [vmem:[%s11587_s22 + $0x168] ss:$16 sps:$4 sm:$0xff]  }
 0xb7a   : > { %v7184_v36 = vld [vmem:[#allocation4 + $0x8] sm:$0xff]  ;;  %v7190_v49 = vld [vmem:[#allocation4 + $0x38] sm:$0xff]  ;;  %v10857_v4 = vld [vmem:[%s11587_s22 + $0x184] ss:$16 sps:$4 sm:$0xff]   ;;  %p12635_p6 = scmp.ne.s32.totalorder %s12609_s12, 0 }
 0xb7b   : > { %v7196_v47 = vpack.c.bf16 %v7190_v49, %v7184_v36  ;;  %v10859_v5 = vld [vmem:[%s11587_s22 + $0x18c] ss:$16 sps:$4 sm:$0xff]   ;;  %v10861_v29 = vld [vmem:[%s11587_s22 + $0x180] ss:$16 sps:$4 sm:$0xff]   ;;  %v10862_v6 = vld [vmem:[%s11587_s22 + $0x188] ss:$16 sps:$4 sm:$0xff]  }
 0xb7c   : > { %8384 = vmatpush1.bf16.msra.mxu0 %v10813_v24  ;;  %8513 = vmatpush1.bf16.msra.mxu1 %v10814_v62  ;;  %v10863_v30 = vld [vmem:[%s11587_s22 + $0x1a4] ss:$16 sps:$4 sm:$0xff]   ;;  %v10865_v51 = vld [vmem:[%s11587_s22 + $0x1ac] ss:$16 sps:$4 sm:$0xff]   ;;  %v10867_v12 = vld [vmem:[%s11587_s22 + $0x1a0] ss:$16 sps:$4 sm:$0xff]  }
 0xb7d   : > { %8385 = vmatprep.subr.bf16.mxu0 %v10815_v1  ;;  %8514 = vmatprep.subr.bf16.mxu1 %v10817_v54  ;;  %v10868_v13 = vld [vmem:[%s11587_s22 + $0x1a8] ss:$16 sps:$4 sm:$0xff]   ;;  %v10869_v2 = vld [vmem:[%s11587_s22 + $0x1c4] ss:$16 sps:$4 sm:$0xff]   ;;  %v10871_v31 = vld [vmem:[%s11587_s22 + $0x1cc] ss:$16 sps:$4 sm:$0xff]  }
 0xb7e   : > { %8407 = vmatprep.mubr.bf16.mxu0 %v7196_v47  ;;  %8536 = vmatprep.mubr.bf16.mxu1 %v7196_v47  ;;  %v10873_v32 = vld [vmem:[%s11587_s22 + $0x1c0] ss:$16 sps:$4 sm:$0xff]   ;;  %v10874_v19 = vld [vmem:[%s11587_s22 + $0x1c8] ss:$16 sps:$4 sm:$0xff]   ;;  %v10875_v26 = vld [vmem:[%s11587_s22 + $0x1e4] ss:$16 sps:$4 sm:$0xff]  }
 0xb7f   : > { %v10877_v0 = vld [vmem:[%s11587_s22 + $0x1ec] ss:$16 sps:$4 sm:$0xff]   ;;  %v10879_v37 = vld [vmem:[%s11587_s22 + $0x1e0] ss:$16 sps:$4 sm:$0xff]   ;;  %v10880_v55 = vld [vmem:[%s11587_s22 + $0x1e8] ss:$16 sps:$4 sm:$0xff]  }
 0xb80   : > { %8386 = vmatpush1.bf16.msra.mxu0 %v10819_v56  ;;  %8515 = vmatpush1.bf16.msra.mxu1 %v10820_v58  ;;  %v10883_v38 = vld [vmem:[%s11587_s22 + $0x204] ss:$16 sps:$4 sm:$0xff]   ;;  %v10886_v43 = vld [vmem:[%s11587_s22 + $0x20c] ss:$16 sps:$4 sm:$0xff]   ;;  %v10881_v9 = vld [vmem:[%s11587_s22 + $0x200] ss:$16 sps:$4 sm:$0xff]  }
 0xb81   : > { %8387 = vmatprep.subr.bf16.mxu0 %v10821_v41  ;;  %8516 = vmatprep.subr.bf16.mxu1 %v10823_v35  ;;  %v7183_v40 = vld [vmem:[#allocation4] sm:$0xff]  ;;  %v7189_v17 = vld [vmem:[#allocation4 + $0x30] sm:$0xff]  ;;  %v10884_v45 = vld [vmem:[%s11587_s22 + $0x208] ss:$16 sps:$4 sm:$0xff]   ;;  %s9601_s30 = sshll.u32 (%p12635_p6), %s11365_s28, 4  ;;  %s12636_s18 = sld [smem:[#allocation22_spill]] (%p12635_p6) }
 0xb82   : > { %v7195_v46 = vpack.c.bf16 %v7189_v17, %v7183_v40  ;;  %v10889_v48 = vld [vmem:[%s11587_s22 + $0x224] ss:$16 sps:$4 sm:$0xff]   ;;  %v10892_v53 = vld [vmem:[%s11587_s22 + $0x22c] ss:$16 sps:$4 sm:$0xff]   ;;  %v10887_v18 = vld [vmem:[%s11587_s22 + $0x220] ss:$16 sps:$4 sm:$0xff]  }
 0xb83   : > { %v10890_v52 = vld [vmem:[%s11587_s22 + $0x228] ss:$16 sps:$4 sm:$0xff]   ;;  %v10895_v57 = vld [vmem:[%s11587_s22 + $0x244] ss:$16 sps:$4 sm:$0xff]   ;;  %v10898_v50 = vld [vmem:[%s11587_s22 + $0x24c] ss:$16 sps:$4 sm:$0xff]  }
 0xb84   : > { %8388 = vmatpush1.bf16.msra.mxu0 %v10825_v27  ;;  %8517 = vmatpush1.bf16.msra.mxu1 %v10826_v7  ;;  %v10893_v34 = vld [vmem:[%s11587_s22 + $0x240] ss:$16 sps:$4 sm:$0xff]   ;;  %v10896_v33 = vld [vmem:[%s11587_s22 + $0x248] ss:$16 sps:$4 sm:$0xff]   ;;  %v10901_v24 = vld [vmem:[%s11587_s22 + $0x264] ss:$16 sps:$4 sm:$0xff]  }
 0xb85   : > { %8389 = vmatprep.subr.bf16.mxu0 %v10827_v15  ;;  %8518 = vmatprep.subr.bf16.mxu1 %v10829_v42  ;;  %v10904_v62 = vld [vmem:[%s11587_s22 + $0x26c] ss:$16 sps:$4 sm:$0xff]   ;;  %v10899_v1 = vld [vmem:[%s11587_s22 + $0x260] ss:$16 sps:$4 sm:$0xff]   ;;  %v10902_v54 = vld [vmem:[%s11587_s22 + $0x268] ss:$16 sps:$4 sm:$0xff]  }
 0xb86   : > { %v10907_v56 = vld [vmem:[%s11587_s22 + $0x284] ss:$16 sps:$4 sm:$0xff]   ;;  %v10910_v58 = vld [vmem:[%s11587_s22 + $0x28c] ss:$16 sps:$4 sm:$0xff]   ;;  %v10905_v41 = vld [vmem:[%s11587_s22 + $0x280] ss:$16 sps:$4 sm:$0xff]  }
 0xb87   : > { %v10908_v35 = vld [vmem:[%s11587_s22 + $0x288] ss:$16 sps:$4 sm:$0xff]   ;;  %v10913_v27 = vld [vmem:[%s11587_s22 + $0x2a4] ss:$16 sps:$4 sm:$0xff]   ;;  %v10916_v7 = vld [vmem:[%s11587_s22 + $0x2ac] ss:$16 sps:$4 sm:$0xff]   ;;  %s8678_s29 = scalar_lea.vmem (%p12635_p6), %s12636_s18, %s9601_s30 }
 0xb88   : > { %8390 = vmatpush1.bf16.msra.mxu0 %v10831_v39  ;;  %8519 = vmatpush1.bf16.msra.mxu1 %v10832_v44  ;;  %v10911_v15 = vld [vmem:[%s11587_s22 + $0x2a0] ss:$16 sps:$4 sm:$0xff]   ;;  %v10914_v42 = vld [vmem:[%s11587_s22 + $0x2a8] ss:$16 sps:$4 sm:$0xff]   ;;  %v10919_v39 = vld [vmem:[%s11587_s22 + $0x2c4] ss:$16 sps:$4 sm:$0xff]  }
 0xb89   : > { %8391 = vmatprep.subr.bf16.mxu0 %v10833_v20  ;;  %8520 = vmatprep.subr.bf16.mxu1 %v10835_v8  ;;  %v10922_v44 = vld [vmem:[%s11587_s22 + $0x2cc] ss:$16 sps:$4 sm:$0xff]   ;;  %v10935_v49 = vld [vmem:[%s11587_s22 + $0x320] ss:$16 sps:$4 sm:$0xff]   ;;  %v10968_v40 = vld [vmem:[%s11587_s22 + $0x3c8] ss:$16 sps:$4 sm:$0xff]  }
 0xb8a   : > { %v7186_v20 = vld [vmem:[#allocation4 + $0x18] sm:$0xff]  ;;  %v7192_v8 = vld [vmem:[#allocation4 + $0x48] sm:$0xff]  ;;  %v10973_v17 = vld [vmem:[%s11587_s22 + $0x3e4] ss:$16 sps:$4 sm:$0xff]  }
 0xb8b   : > { %v10940_v36 = vld [vmem:[%s11587_s22 + $0x32c] ss:$16 sps:$4 sm:$0xff]  }
 0xb8c   : > { %8392 = vmatpush1.bf16.msra.mxu0 %v10837_v22  ;;  %8521 = vmatpush1.bf16.msra.mxu1 %v10838_v16  ;;  %v10917_v22 = vld [vmem:[%s11587_s22 + $0x2c0] ss:$16 sps:$4 sm:$0xff]   ;;  %v10920_v16 = vld [vmem:[%s11587_s22 + $0x2c8] ss:$16 sps:$4 sm:$0xff]   ;;  %v10946_v47 = vld [vmem:[%s11587_s22 + $0x34c] ss:$16 sps:$4 sm:$0xff]  }
 0xb8d   : > { %8393 = vmatprep.subr.bf16.mxu0 %v10839_v10  ;;  %8522 = vmatprep.subr.bf16.mxu1 %v10841_v23  ;;  %v7198_v10 = vpack.c.bf16 %v7192_v8, %v7186_v20  ;;  %v10925_v23 = vld [vmem:[%s11587_s22 + $0x2e4] ss:$16 sps:$4 sm:$0xff]   ;;  %v11006_v20 = vld [vmem:[%s11587_s22 + $0x48c] ss:$16 sps:$4 sm:$0xff]   ;;  %v11001_v8 = vld [vmem:[%s11587_s22 + $0x480] ss:$16 sps:$4 sm:$0xff]  }
 0xb90   : > { %8394 = vmatpush1.bf16.msra.mxu0 %v10843_v25  ;;  %8523 = vmatpush1.bf16.msra.mxu1 %v10844_v11  ;;  %v10928_v25 = vld [vmem:[%s11587_s22 + $0x2ec] ss:$16 sps:$4 sm:$0xff]   ;;  %v10923_v11 = vld [vmem:[%s11587_s22 + $0x2e0] ss:$16 sps:$4 sm:$0xff]  }
 0xb91   : > { %8395 = vmatprep.subr.bf16.mxu0 %v10845_v59  ;;  %8524 = vmatprep.subr.bf16.mxu1 %v10847_v61  ;;  %v10926_v59 = vld [vmem:[%s11587_s22 + $0x2e8] ss:$16 sps:$4 sm:$0xff]   ;;  %v10931_v61 = vld [vmem:[%s11587_s22 + $0x304] ss:$16 sps:$4 sm:$0xff]  }
 0xb94   : > { %8396 = vmatpush1.bf16.msra.mxu0 %v10849_v60  ;;  %8525 = vmatpush1.bf16.msra.mxu1 %v10850_v63  ;;  %v10934_v60 = vld [vmem:[%s11587_s22 + $0x30c] ss:$16 sps:$4 sm:$0xff]   ;;  %v10929_v63 = vld [vmem:[%s11587_s22 + $0x300] ss:$16 sps:$4 sm:$0xff]  }
 0xb95   : > { %8397 = vmatprep.subr.bf16.mxu0 %v10851_v21  ;;  %8526 = vmatprep.subr.bf16.mxu1 %v10853_v14  ;;  %v10932_v21 = vld [vmem:[%s11587_s22 + $0x308] ss:$16 sps:$4 sm:$0xff]   ;;  %v10937_v14 = vld [vmem:[%s11587_s22 + $0x324] ss:$16 sps:$4 sm:$0xff]  }
 0xb98   : > { %8398 = vmatpush1.bf16.msra.mxu0 %v10855_v28  ;;  %8527 = vmatpush1.bf16.msra.mxu1 %v10856_v3  ;;  %v10938_v28 = vld [vmem:[%s11587_s22 + $0x328] ss:$16 sps:$4 sm:$0xff]   ;;  %v10943_v3 = vld [vmem:[%s11587_s22 + $0x344] ss:$16 sps:$4 sm:$0xff]  }
 0xb99   : > { %8399 = vmatprep.subr.bf16.mxu0 %v10857_v4  ;;  %8528 = vmatprep.subr.bf16.mxu1 %v10859_v5  ;;  %v10941_v4 = vld [vmem:[%s11587_s22 + $0x340] ss:$16 sps:$4 sm:$0xff]   ;;  %v10944_v5 = vld [vmem:[%s11587_s22 + $0x348] ss:$16 sps:$4 sm:$0xff]  }
 0xb9c   : > { %8400 = vmatpush1.bf16.msra.mxu0 %v10861_v29  ;;  %8529 = vmatpush1.bf16.msra.mxu1 %v10862_v6  ;;  %v10949_v29 = vld [vmem:[%s11587_s22 + $0x364] ss:$16 sps:$4 sm:$0xff]   ;;  %v10952_v6 = vld [vmem:[%s11587_s22 + $0x36c] ss:$16 sps:$4 sm:$0xff]  }
 0xb9d   : > { %8401 = vmatprep.subr.bf16.mxu0 %v10863_v30  ;;  %8530 = vmatprep.subr.bf16.mxu1 %v10865_v51  ;;  %v10947_v30 = vld [vmem:[%s11587_s22 + $0x360] ss:$16 sps:$4 sm:$0xff]   ;;  %v10950_v51 = vld [vmem:[%s11587_s22 + $0x368] ss:$16 sps:$4 sm:$0xff]  }
 0xba0   : > { %8402 = vmatpush1.bf16.msra.mxu0 %v10867_v12  ;;  %8531 = vmatpush1.bf16.msra.mxu1 %v10868_v13  ;;  %v10955_v12 = vld [vmem:[%s11587_s22 + $0x384] ss:$16 sps:$4 sm:$0xff]   ;;  %v10958_v13 = vld [vmem:[%s11587_s22 + $0x38c] ss:$16 sps:$4 sm:$0xff]  }
 0xba1   : > { %8403 = vmatprep.subr.bf16.mxu0 %v10869_v2  ;;  %8532 = vmatprep.subr.bf16.mxu1 %v10871_v31  ;;  %v10953_v2 = vld [vmem:[%s11587_s22 + $0x380] ss:$16 sps:$4 sm:$0xff]   ;;  %v10956_v31 = vld [vmem:[%s11587_s22 + $0x388] ss:$16 sps:$4 sm:$0xff]  }
 0xba4   : > { %8404 = vmatpush1.bf16.msra.mxu0 %v10873_v32  ;;  %8533 = vmatpush1.bf16.msra.mxu1 %v10874_v19  ;;  %v10961_v32 = vld [vmem:[%s11587_s22 + $0x3a4] ss:$16 sps:$4 sm:$0xff]   ;;  %v10964_v19 = vld [vmem:[%s11587_s22 + $0x3ac] ss:$16 sps:$4 sm:$0xff]  }
 0xba5   : > { %8405 = vmatprep.subr.bf16.mxu0 %v10875_v26  ;;  %8534 = vmatprep.subr.bf16.mxu1 %v10877_v0  ;;  %v10959_v26 = vld [vmem:[%s11587_s22 + $0x3a0] ss:$16 sps:$4 sm:$0xff]   ;;  %v10962_v0 = vld [vmem:[%s11587_s22 + $0x3a8] ss:$16 sps:$4 sm:$0xff]  }
 0xba8   : > { %8406 = vmatpush1.bf16.msra.mxu0 %v10879_v37  ;;  %8535 = vmatpush1.bf16.msra.mxu1 %v10880_v55  ;;  %v10967_v37 = vld [vmem:[%s11587_s22 + $0x3c4] ss:$16 sps:$4 sm:$0xff]   ;;  %v10970_v55 = vld [vmem:[%s11587_s22 + $0x3cc] ss:$16 sps:$4 sm:$0xff]  }
 0xba9   : > { %8418 = vmatprep.subr.bf16.mxu0 %v10883_v38  ;;  %8547 = vmatprep.subr.bf16.mxu1 %v10886_v43  ;;  %v10965_v38 = vld [vmem:[%s11587_s22 + $0x3c0] ss:$16 sps:$4 sm:$0xff]   ;;  %v10976_v43 = vld [vmem:[%s11587_s22 + $0x3ec] ss:$16 sps:$4 sm:$0xff]  }
 0xbab   : > { %8408 = vmatmul.mubr.bf16.vlgmr.msra.gmra.mrb[0].mxu0 %v7195_v46  ;;  %8537 = vmatmul.mubr.bf16.vlgmr.msra.gmra.mrb[0].mxu1 %v7195_v46  ;;  %v10979_v46 = vld [vmem:[%s11587_s22 + $0x404] ss:$16 sps:$4 sm:$0xff]  }
 0xbac   : > { %8419 = vmatpush1.bf16.msra.mxu0 %v10881_v9  ;;  %8548 = vmatpush1.bf16.msra.mxu1 %v10884_v45  ;;  %v10971_v9 = vld [vmem:[%s11587_s22 + $0x3e0] ss:$16 sps:$4 sm:$0xff]   ;;  %v10974_v45 = vld [vmem:[%s11587_s22 + $0x3e8] ss:$16 sps:$4 sm:$0xff]  }
 0xbad   : > { %8420 = vmatprep.subr.bf16.mxu0 %v10889_v48  ;;  %8549 = vmatprep.subr.bf16.mxu1 %v10892_v53  ;;  %v7185_v48 = vld [vmem:[#allocation4 + $0x10] sm:$0xff]  ;;  %v7191_v53 = vld [vmem:[#allocation4 + $0x40] sm:$0xff] }
 0xbae   : > { %8450 = vmatprep.mubr.bf16.mxu0 %v7198_v10  ;;  %8579 = vmatprep.mubr.bf16.mxu1 %v7198_v10  ;;  %v11012_v10 = vld [vmem:[%s11587_s22 + $0x4ac] ss:$16 sps:$4 sm:$0xff]  }
 0xbb0   : > { %8421 = vmatpush1.bf16.msra.mxu0 %v10887_v18  ;;  %8550 = vmatpush1.bf16.msra.mxu1 %v10890_v52  ;;  %v10982_v18 = vld [vmem:[%s11587_s22 + $0x40c] ss:$16 sps:$4 sm:$0xff]   ;;  %v10977_v52 = vld [vmem:[%s11587_s22 + $0x400] ss:$16 sps:$4 sm:$0xff]  }
 0xbb1   : > { %8422 = vmatprep.subr.bf16.mxu0 %v10895_v57  ;;  %8551 = vmatprep.subr.bf16.mxu1 %v10898_v50  ;;  %v10980_v57 = vld [vmem:[%s11587_s22 + $0x408] ss:$16 sps:$4 sm:$0xff]   ;;  %v7197_v50 = vpack.c.bf16 %v7191_v53, %v7185_v48  ;;  %v11069_v53 = vld [vmem:[%s11587_s22 + $0x5e4] ss:$16 sps:$4 sm:$0xff]  }
 0xbb2   : > { %v11064_v48 = vld [vmem:[%s11587_s22 + $0x5c8] ss:$16 sps:$4 sm:$0xff]  }
 0xbb4   : > { %8423 = vmatpush1.bf16.msra.mxu0 %v10893_v34  ;;  %8552 = vmatpush1.bf16.msra.mxu1 %v10896_v33  ;;  %v10985_v34 = vld [vmem:[%s11587_s22 + $0x424] ss:$16 sps:$4 sm:$0xff]   ;;  %v10988_v33 = vld [vmem:[%s11587_s22 + $0x42c] ss:$16 sps:$4 sm:$0xff]  }
 0xbb5   : > { %8424 = vmatprep.subr.bf16.mxu0 %v10901_v24  ;;  %8553 = vmatprep.subr.bf16.mxu1 %v10904_v62  ;;  %v7188_v24 = vld [vmem:[#allocation4 + $0x28] sm:$0xff]  ;;  %v7194_v62 = vld [vmem:[#allocation4 + $0x58] sm:$0xff] }
 0xbb8   : > { %8425 = vmatpush1.bf16.msra.mxu0 %v10899_v1  ;;  %8554 = vmatpush1.bf16.msra.mxu1 %v10902_v54  ;;  %v10983_v1 = vld [vmem:[%s11587_s22 + $0x420] ss:$16 sps:$4 sm:$0xff]   ;;  %v10986_v54 = vld [vmem:[%s11587_s22 + $0x428] ss:$16 sps:$4 sm:$0xff]  }
 0xbb9   : > { %8426 = vmatprep.subr.bf16.mxu0 %v10907_v56  ;;  %8555 = vmatprep.subr.bf16.mxu1 %v10910_v58  ;;  %v7200_v56 = vpack.c.bf16 %v7194_v62, %v7188_v24  ;;  %v10991_v58 = vld [vmem:[%s11587_s22 + $0x444] ss:$16 sps:$4 sm:$0xff]   ;;  %v7395_v24 = vlaneseq }
 0xbbb   : > { %v7396_v62 = vshrl.u32 %v7395_v24, 7 }
 0xbbc   : > { %8427 = vmatpush1.bf16.msra.mxu0 %v10905_v41  ;;  %8556 = vmatpush1.bf16.msra.mxu1 %v10908_v35  ;;  %v10994_v41 = vld [vmem:[%s11587_s22 + $0x44c] ss:$16 sps:$4 sm:$0xff]   ;;  %v10989_v35 = vld [vmem:[%s11587_s22 + $0x440] ss:$16 sps:$4 sm:$0xff]  }
 0xbbd   : > { %8428 = vmatprep.subr.bf16.mxu0 %v10913_v27  ;;  %8557 = vmatprep.subr.bf16.mxu1 %v10916_v7  ;;  %v10992_v27 = vld [vmem:[%s11587_s22 + $0x448] ss:$16 sps:$4 sm:$0xff]   ;;  %v10997_v7 = vld [vmem:[%s11587_s22 + $0x464] ss:$16 sps:$4 sm:$0xff]  }
 0xbc0   : > { %8429 = vmatpush1.bf16.msra.mxu0 %v10911_v15  ;;  %8558 = vmatpush1.bf16.msra.mxu1 %v10914_v42  ;;  %v11000_v15 = vld [vmem:[%s11587_s22 + $0x46c] ss:$16 sps:$4 sm:$0xff]   ;;  %v10995_v42 = vld [vmem:[%s11587_s22 + $0x460] ss:$16 sps:$4 sm:$0xff]  }
 0xbc1   : > { %8430 = vmatprep.subr.bf16.mxu0 %v10919_v39  ;;  %8559 = vmatprep.subr.bf16.mxu1 %v10922_v44  ;;  %v10998_v39 = vld [vmem:[%s11587_s22 + $0x468] ss:$16 sps:$4 sm:$0xff]   ;;  %v11003_v44 = vld [vmem:[%s11587_s22 + $0x484] ss:$16 sps:$4 sm:$0xff]  }
 0xbc4   : > { %8431 = vmatpush1.bf16.msra.mxu0 %v10917_v22  ;;  %8560 = vmatpush1.bf16.msra.mxu1 %v10920_v16  ;;  %v11004_v22 = vld [vmem:[%s11587_s22 + $0x488] ss:$16 sps:$4 sm:$0xff]   ;;  %v11009_v16 = vld [vmem:[%s11587_s22 + $0x4a4] ss:$16 sps:$4 sm:$0xff]  }
 0xbc5   : > { %8432 = vmatprep.subr.bf16.mxu0 %v10925_v23  ;;  %8561 = vmatprep.subr.bf16.mxu1 %v10928_v25  ;;  %v11007_v23 = vld [vmem:[%s11587_s22 + $0x4a0] ss:$16 sps:$4 sm:$0xff]   ;;  %v11010_v25 = vld [vmem:[%s11587_s22 + $0x4a8] ss:$16 sps:$4 sm:$0xff]  }
 0xbc8   : > { %8433 = vmatpush1.bf16.msra.mxu0 %v10923_v11  ;;  %8562 = vmatpush1.bf16.msra.mxu1 %v10926_v59  ;;  %v11015_v11 = vld [vmem:[%s11587_s22 + $0x4c4] ss:$16 sps:$4 sm:$0xff]   ;;  %v11018_v59 = vld [vmem:[%s11587_s22 + $0x4cc] ss:$16 sps:$4 sm:$0xff]  }
 0xbc9   : > { %8434 = vmatprep.subr.bf16.mxu0 %v10931_v61  ;;  %8563 = vmatprep.subr.bf16.mxu1 %v10934_v60  ;;  %v11013_v61 = vld [vmem:[%s11587_s22 + $0x4c0] ss:$16 sps:$4 sm:$0xff]   ;;  %v11016_v60 = vld [vmem:[%s11587_s22 + $0x4c8] ss:$16 sps:$4 sm:$0xff]  }
 0xbcc   : > { %8435 = vmatpush1.bf16.msra.mxu0 %v10929_v63  ;;  %8564 = vmatpush1.bf16.msra.mxu1 %v10932_v21  ;;  %v11021_v63 = vld [vmem:[%s11587_s22 + $0x4e4] ss:$16 sps:$4 sm:$0xff]   ;;  %v11024_v21 = vld [vmem:[%s11587_s22 + $0x4ec] ss:$16 sps:$4 sm:$0xff]  }
 0xbcd   : > { %8436 = vmatprep.subr.bf16.mxu0 %v10937_v14  ;;  %8565 = vmatprep.subr.bf16.mxu1 %v10940_v36  ;;  %v11019_v14 = vld [vmem:[%s11587_s22 + $0x4e0] ss:$16 sps:$4 sm:$0xff]   ;;  %v11022_v36 = vld [vmem:[%s11587_s22 + $0x4e8] ss:$16 sps:$4 sm:$0xff]  }
 0xbd0   : > { %8437 = vmatpush1.bf16.msra.mxu0 %v10935_v49  ;;  %8566 = vmatpush1.bf16.msra.mxu1 %v10938_v28  ;;  %v11027_v49 = vld [vmem:[%s11587_s22 + $0x504] ss:$16 sps:$4 sm:$0xff]   ;;  %v11030_v28 = vld [vmem:[%s11587_s22 + $0x50c] ss:$16 sps:$4 sm:$0xff]  }
 0xbd1   : > { %8438 = vmatprep.subr.bf16.mxu0 %v10943_v3  ;;  %8567 = vmatprep.subr.bf16.mxu1 %v10946_v47  ;;  %v11025_v3 = vld [vmem:[%s11587_s22 + $0x500] ss:$16 sps:$4 sm:$0xff]   ;;  %v11028_v47 = vld [vmem:[%s11587_s22 + $0x508] ss:$16 sps:$4 sm:$0xff]  }
 0xbd4   : > { %8439 = vmatpush1.bf16.msra.mxu0 %v10941_v4  ;;  %8568 = vmatpush1.bf16.msra.mxu1 %v10944_v5  ;;  %v11033_v4 = vld [vmem:[%s11587_s22 + $0x524] ss:$16 sps:$4 sm:$0xff]   ;;  %v11036_v5 = vld [vmem:[%s11587_s22 + $0x52c] ss:$16 sps:$4 sm:$0xff]  }
 0xbd5   : > { %8440 = vmatprep.subr.bf16.mxu0 %v10949_v29  ;;  %8569 = vmatprep.subr.bf16.mxu1 %v10952_v6  ;;  %v11031_v29 = vld [vmem:[%s11587_s22 + $0x520] ss:$16 sps:$4 sm:$0xff]   ;;  %v11034_v6 = vld [vmem:[%s11587_s22 + $0x528] ss:$16 sps:$4 sm:$0xff]  }
 0xbd8   : > { %8441 = vmatpush1.bf16.msra.mxu0 %v10947_v30  ;;  %8570 = vmatpush1.bf16.msra.mxu1 %v10950_v51  ;;  %v11039_v30 = vld [vmem:[%s11587_s22 + $0x544] ss:$16 sps:$4 sm:$0xff]   ;;  %v11042_v51 = vld [vmem:[%s11587_s22 + $0x54c] ss:$16 sps:$4 sm:$0xff]  }
 0xbd9   : > { %8442 = vmatprep.subr.bf16.mxu0 %v10955_v12  ;;  %8571 = vmatprep.subr.bf16.mxu1 %v10958_v13  ;;  %v11037_v12 = vld [vmem:[%s11587_s22 + $0x540] ss:$16 sps:$4 sm:$0xff]   ;;  %v11040_v13 = vld [vmem:[%s11587_s22 + $0x548] ss:$16 sps:$4 sm:$0xff]  }
 0xbdc   : > { %8443 = vmatpush1.bf16.msra.mxu0 %v10953_v2  ;;  %8572 = vmatpush1.bf16.msra.mxu1 %v10956_v31  ;;  %v11045_v2 = vld [vmem:[%s11587_s22 + $0x564] ss:$16 sps:$4 sm:$0xff]   ;;  %v11048_v31 = vld [vmem:[%s11587_s22 + $0x56c] ss:$16 sps:$4 sm:$0xff]  }
 0xbdd   : > { %8444 = vmatprep.subr.bf16.mxu0 %v10961_v32  ;;  %8573 = vmatprep.subr.bf16.mxu1 %v10964_v19  ;;  %v11043_v32 = vld [vmem:[%s11587_s22 + $0x560] ss:$16 sps:$4 sm:$0xff]   ;;  %v11046_v19 = vld [vmem:[%s11587_s22 + $0x568] ss:$16 sps:$4 sm:$0xff]  }
 0xbe0   : > { %8445 = vmatpush1.bf16.msra.mxu0 %v10959_v26  ;;  %8574 = vmatpush1.bf16.msra.mxu1 %v10962_v0  ;;  %v11051_v26 = vld [vmem:[%s11587_s22 + $0x584] ss:$16 sps:$4 sm:$0xff]   ;;  %v11054_v0 = vld [vmem:[%s11587_s22 + $0x58c] ss:$16 sps:$4 sm:$0xff]  }
 0xbe1   : > { %8446 = vmatprep.subr.bf16.mxu0 %v10967_v37  ;;  %8575 = vmatprep.subr.bf16.mxu1 %v10970_v55  ;;  %v11049_v37 = vld [vmem:[%s11587_s22 + $0x580] ss:$16 sps:$4 sm:$0xff]   ;;  %v11052_v55 = vld [vmem:[%s11587_s22 + $0x588] ss:$16 sps:$4 sm:$0xff]  }
 0xbe4   : > { %8447 = vmatpush1.bf16.msra.mxu0 %v10965_v38  ;;  %8576 = vmatpush1.bf16.msra.mxu1 %v10968_v40  ;;  %v11057_v38 = vld [vmem:[%s11587_s22 + $0x5a4] ss:$16 sps:$4 sm:$0xff]   ;;  %v11060_v40 = vld [vmem:[%s11587_s22 + $0x5ac] ss:$16 sps:$4 sm:$0xff]  }
 0xbe5   : > { %8448 = vmatprep.subr.bf16.mxu0 %v10973_v17  ;;  %8577 = vmatprep.subr.bf16.mxu1 %v10976_v43  ;;  %v11055_v17 = vld [vmem:[%s11587_s22 + $0x5a0] ss:$16 sps:$4 sm:$0xff]   ;;  %v11058_v43 = vld [vmem:[%s11587_s22 + $0x5a8] ss:$16 sps:$4 sm:$0xff]  }
 0xbe8   : > { %8449 = vmatpush1.bf16.msra.mxu0 %v10971_v9  ;;  %8578 = vmatpush1.bf16.msra.mxu1 %v10974_v45  ;;  %v11063_v9 = vld [vmem:[%s11587_s22 + $0x5c4] ss:$16 sps:$4 sm:$0xff]   ;;  %v11066_v45 = vld [vmem:[%s11587_s22 + $0x5cc] ss:$16 sps:$4 sm:$0xff]  }
 0xbe9   : > { %8461 = vmatprep.subr.bf16.mxu0 %v10979_v46  ;;  %8590 = vmatprep.subr.bf16.mxu1 %v10982_v18  ;;  %v11061_v46 = vld [vmem:[%s11587_s22 + $0x5c0] ss:$16 sps:$4 sm:$0xff]   ;;  %v11072_v18 = vld [vmem:[%s11587_s22 + $0x5ec] ss:$16 sps:$4 sm:$0xff]  }
 0xbeb   : > { %8451 = vmatmul.mubr.bf16.vlgmr.msra.gmra.mrb[0].mxu0 %v7197_v50  ;;  %8580 = vmatmul.mubr.bf16.vlgmr.msra.gmra.mrb[0].mxu1 %v7197_v50  ;;  %v7187_v50 = vld [vmem:[#allocation4 + $0x20] sm:$0xff] }
 0xbec   : > { %8462 = vmatpush1.bf16.msra.mxu0 %v10977_v52  ;;  %8591 = vmatpush1.bf16.msra.mxu1 %v10980_v57  ;;  %v11067_v52 = vld [vmem:[%s11587_s22 + $0x5e0] ss:$16 sps:$4 sm:$0xff]   ;;  %v11070_v57 = vld [vmem:[%s11587_s22 + $0x5e8] ss:$16 sps:$4 sm:$0xff]  }
 0xbed   : > { %8463 = vmatprep.subr.bf16.mxu0 %v10985_v34  ;;  %8592 = vmatprep.subr.bf16.mxu1 %v10988_v33  ;;  %v7193_v34 = vld [vmem:[#allocation4 + $0x50] sm:$0xff] }
 0xbee   : > { %8493 = vmatprep.mubr.bf16.mxu0 %v7200_v56  ;;  %8622 = vmatprep.mubr.bf16.mxu1 %v7200_v56  ;;  %v7199_v33 = vpack.c.bf16 %v7193_v34, %v7187_v50  ;;  %v7393_v56 = vld [vmem:[%s11593_s1] sm:$0xf] }
 0xbf0   : > { %8464 = vmatpush1.bf16.msra.mxu0 %v10983_v1  ;;  %8593 = vmatpush1.bf16.msra.mxu1 %v10986_v54  ;;  %v7397_v1 = vsub.s32 0, %v7396_v62  ;;  %v7405_v54 = vsub.s32 2, %v7396_v62 }
 0xbf1   : > { %8465 = vmatprep.subr.bf16.mxu0 %v10991_v58  ;;  %8594 = vmatprep.subr.bf16.mxu1 %v10994_v41  ;;  %v7401_v58 = vsub.s32 1, %v7396_v62  ;;  %v7409_v41 = vsub.s32 3, %v7396_v62 }
 0xbf4   : > { %8466 = vmatpush1.bf16.msra.mxu0 %v10989_v35  ;;  %8595 = vmatpush1.bf16.msra.mxu1 %v10992_v27  ;;  %v7398_v35 = vrot.slane %v7393_v56, %v7397_v1  ;;  %v7406_v27 = vrot.slane %v7393_v56, %v7405_v54 }
 0xbf5   : > { %8467 = vmatprep.subr.bf16.mxu0 %v10997_v7  ;;  %8596 = vmatprep.subr.bf16.mxu1 %v11000_v15  ;;  %v7402_v7 = vrot.slane %v7393_v56, %v7401_v58  ;;  %v7410_v15 = vrot.slane %v7393_v56, %v7409_v41 }
 0xbf8   : > { %8468 = vmatpush1.bf16.msra.mxu0 %v10995_v42  ;;  %8597 = vmatpush1.bf16.msra.mxu1 %v10998_v39 }
 0xbf9   : > { %8469 = vmatprep.subr.bf16.mxu0 %v11003_v44  ;;  %8598 = vmatprep.subr.bf16.mxu1 %v11006_v20 }
 0xbfc   : > { %8470 = vmatpush1.bf16.msra.mxu0 %v11001_v8  ;;  %8599 = vmatpush1.bf16.msra.mxu1 %v11004_v22 }
 0xbfd   : > { %8471 = vmatprep.subr.bf16.mxu0 %v11009_v16  ;;  %8600 = vmatprep.subr.bf16.mxu1 %v11012_v10 }
 0xc00   : > { %8472 = vmatpush1.bf16.msra.mxu0 %v11007_v23  ;;  %8601 = vmatpush1.bf16.msra.mxu1 %v11010_v25 }
 0xc01   : > { %8473 = vmatprep.subr.bf16.mxu0 %v11015_v11  ;;  %8602 = vmatprep.subr.bf16.mxu1 %v11018_v59 }
 0xc04   : > { %8474 = vmatpush1.bf16.msra.mxu0 %v11013_v61  ;;  %8603 = vmatpush1.bf16.msra.mxu1 %v11016_v60 }
 0xc05   : > { %8475 = vmatprep.subr.bf16.mxu0 %v11021_v63  ;;  %8604 = vmatprep.subr.bf16.mxu1 %v11024_v21 }
 0xc08   : > { %8476 = vmatpush1.bf16.msra.mxu0 %v11019_v14  ;;  %8605 = vmatpush1.bf16.msra.mxu1 %v11022_v36 }
 0xc09   : > { %8477 = vmatprep.subr.bf16.mxu0 %v11027_v49  ;;  %8606 = vmatprep.subr.bf16.mxu1 %v11030_v28 }
 0xc0c   : > { %8478 = vmatpush1.bf16.msra.mxu0 %v11025_v3  ;;  %8607 = vmatpush1.bf16.msra.mxu1 %v11028_v47 }
 0xc0d   : > { %8479 = vmatprep.subr.bf16.mxu0 %v11033_v4  ;;  %8608 = vmatprep.subr.bf16.mxu1 %v11036_v5 }
 0xc10   : > { %8480 = vmatpush1.bf16.msra.mxu0 %v11031_v29  ;;  %8609 = vmatpush1.bf16.msra.mxu1 %v11034_v6 }
 0xc11   : > { %8481 = vmatprep.subr.bf16.mxu0 %v11039_v30  ;;  %8610 = vmatprep.subr.bf16.mxu1 %v11042_v51 }
 0xc14   : > { %8482 = vmatpush1.bf16.msra.mxu0 %v11037_v12  ;;  %8611 = vmatpush1.bf16.msra.mxu1 %v11040_v13 }
 0xc15   : > { %8483 = vmatprep.subr.bf16.mxu0 %v11045_v2  ;;  %8612 = vmatprep.subr.bf16.mxu1 %v11048_v31 }
 0xc18   : > { %8484 = vmatpush1.bf16.msra.mxu0 %v11043_v32  ;;  %8613 = vmatpush1.bf16.msra.mxu1 %v11046_v19 }
 0xc19   : > { %8485 = vmatprep.subr.bf16.mxu0 %v11051_v26  ;;  %8614 = vmatprep.subr.bf16.mxu1 %v11054_v0 }
 0xc1c   : > { %8486 = vmatpush1.bf16.msra.mxu0 %v11049_v37  ;;  %8615 = vmatpush1.bf16.msra.mxu1 %v11052_v55 }
 0xc1d   : > { %8487 = vmatprep.subr.bf16.mxu0 %v11057_v38  ;;  %8616 = vmatprep.subr.bf16.mxu1 %v11060_v40 }
 0xc20   : > { %8488 = vmatpush1.bf16.msra.mxu0 %v11055_v17  ;;  %8617 = vmatpush1.bf16.msra.mxu1 %v11058_v43 }
 0xc21   : > { %8489 = vmatprep.subr.bf16.mxu0 %v11063_v9  ;;  %8618 = vmatprep.subr.bf16.mxu1 %v11066_v45 }
 0xc24   : > { %8490 = vmatpush1.bf16.msra.mxu0 %v11061_v46  ;;  %8619 = vmatpush1.bf16.msra.mxu1 %v11064_v48 }
 0xc25   : > { %8491 = vmatprep.subr.bf16.mxu0 %v11069_v53  ;;  %8620 = vmatprep.subr.bf16.mxu1 %v11072_v18 }
 0xc28   : > { %8492 = vmatpush1.bf16.msra.mxu0 %v11067_v52  ;;  %8621 = vmatpush1.bf16.msra.mxu1 %v11070_v57 }
 0xc2b   : > { %8494 = vmatmul.mubr.bf16.vlgmr.msra.gmra.mrb[0].mxu0 %v7199_v33  ;;  %8623 = vmatmul.mubr.bf16.vlgmr.msra.gmra.mrb[0].mxu1 %v7199_v33 }
 0xcfe   : > { %v8495_v42 = vpop.f32.mrb[0].mxu0  ;;  %v8624_v39 = vpop.f32.mrb[0].mxu1 }
 0xcff   : > { %v9922_v44 = vadd.f32 %v8495_v42, %v7398_v35  ;;  %v9926_v20 = vadd.f32 %v8624_v39, %v7406_v27  ;;  %v8497_v8 = vpop.f32.mrb[1].mxu0  ;;  %v8626_v22 = vpop.f32.mrb[1].mxu1 }
 0xd00   : > { %v9923_v16 = vadd.f32 %v8497_v8, %v7402_v7  ;;  %v9927_v10 = vadd.f32 %v8626_v22, %v7410_v15  ;;  %v8499_v23 = vpop.f32.mrb[2].mxu0  ;;  %v8628_v25 = vpop.f32.mrb[2].mxu1 }
 0xd01   : > { %v8633_v11 = vmax.f32 %v9922_v44, 0.0  ;;  %v8635_v59 = vmax.f32 %v9926_v20, 0.0  ;;  %v9924_v61 = vadd.f32 %v8499_v23, %v7398_v35  ;;  %v9928_v60 = vadd.f32 %v8628_v25, %v7406_v27  ;;  %v8501_v63 = vpop.f32.mrb[3].mxu0  ;;  %v8630_v21 = vpop.f32.mrb[3].mxu1 }
 0xd02   : > { %v8634_v14 = vmax.f32 %v9923_v16, 0.0  ;;  %v8636_v36 = vmax.f32 %v9927_v10, 0.0  ;;  %v9925_v49 = vadd.f32 %v8501_v63, %v7402_v7  ;;  %v9929_v28 = vadd.f32 %v8630_v21, %v7410_v15  ;;  %8675 = sbr.rel (!%p12635_p6) target bundleno = 3345 (0xd11), region = 80 }
 0xd03   : > { %v8637_v3 = vmax.f32 %v9924_v61, 0.0  ;;  %v8639_v47 = vmax.f32 %v9928_v60, 0.0 }
 0xd04   : > { %v9597_v4 = vpack.c.bf16 %v8634_v14, %v8633_v11  ;;  %v9598_v5 = vpack.c.bf16 %v8636_v36, %v8635_v59  ;;  %v8638_v29 = vmax.f32 %v9925_v49, 0.0  ;;  %v8640_v6 = vmax.f32 %v9929_v28, 0.0 }
 0xd06   : > { %8665 = vst [vmem:[%s11595_s23] sm:$0xff] %v9597_v4  ;;  %8666 = vst [vmem:[%s11595_s23 + $0x8] sm:$0xff] %v9598_v5  ;;  %v9599_v30 = vpack.c.bf16 %v8638_v29, %v8637_v3  ;;  %v9600_v51 = vpack.c.bf16 %v8640_v6, %v8639_v47 }
 0xd08   : > { %8667 = vst [vmem:[%s11595_s23 + $0x10] sm:$0xff] %v9599_v30  ;;  %8668 = vst [vmem:[%s11595_s23 + $0x18] sm:$0xff] %v9600_v51 }
 0xd0d   : > { %v8691_v12 = vld [vmem:[%s11595_s23] sm:$0xff]  ;;  %v8693_v13 = vld [vmem:[%s11595_s23 + $0x8] sm:$0xff] }
 0xd0e   : > { %8692 = vst [vmem:[%s8678_s29] sm:$0xff] %v8691_v12  ;;  %8694 = vst [vmem:[%s8678_s29 + $0x8] sm:$0xff] %v8693_v13 }
 0xd0f   : > { %v8695_v2 = vld [vmem:[%s11595_s23 + $0x10] sm:$0xff]  ;;  %v8697_v31 = vld [vmem:[%s11595_s23 + $0x18] sm:$0xff] }
 0xd10   : > { %8696 = vst [vmem:[%s8678_s29 + $0x40] sm:$0xff] %v8695_v2  ;;  %8698 = vst [vmem:[%s8678_s29 + $0x48] sm:$0xff] %v8697_v31 }
 0xd11 PF: > { %s12637_s27 = sld [smem:[#allocation19_spill]]  ;;  %s12638_s12 = sld [smem:[#allocation20_spill]] }
 0xd12   : > { %s12639_s24 = smov %s11283_s25  ;;  %s12640_s25 = smov %s11287_s26 }
 0xd17   : > { %p17_p10 = scmp.ge.s32.totalorder %s12637_s27, 6   ;;  %s12641_s26 = smov %s12638_s12 }
 0xd19   :  { %19 = sbr.rel (!%p17_p10) target bundleno = 7 (0x7), region = 175 }
 0xd20   :  { %8714 = vsyncpa [#allocation6], 1 }
 0xd21   :  { %8716 = vsyncpa [#allocation6 + $0x1], 1 }
 0xd22   :  { %8717 = vsyncpa [#allocation8], 1 }
 0xd23   :  { %8718 = vsyncpa [#allocation11], 1 }

</bundles_post_ra>
